<compile_context>
chip_gen: v7x
topology: tpu7x:2x2x1
jax: 0.10.0
libtpu: 0.0.40
codegen_flags: <defaults>
</compile_context>

<pallas_src>
import numpy as np
import jax
import jax.numpy as jnp
from jax.experimental import pallas as pl
from jax.experimental.pallas import tpu as pltpu

C = 48          # in_channels[0]
CH = C // 2     # 24
EPS = 1e-5      # BatchNorm eps (PyTorch default)


# ---------------------------------------------------------------------------
# Packed-parameter layout (rows in each slab). Weights are stored transposed
# to (out, in) so every 1x1 conv is  y = W @ x  on channel-major slabs.
# ---------------------------------------------------------------------------
def _layout(sizes):
    off, out = 0, {}
    for name, n in sizes:
        out[name] = (off, n)
        off += n
    return out, off


W48_LAYOUT, W48_ROWS = _layout([          # weights with 48 input channels
    ("wr1", CH),      # res_block conv1 (+BN24 folded)            (24, 48)
    ("wqv", 2 * C),   # la_query || la_value                      (96, 48)
    ("wk12", C),      # la_key_1 || la_key_2                      (48, 48)
    ("wcf0", C),      # cat_fuse, x0 half                         (48, 48)
    ("wcf1", C),      # cat_fuse, x1 half                         (48, 48)
])
W24_LAYOUT, W24_ROWS = _layout([          # weights with 24 input channels
    ("wr2", C),       # res_block conv2 (standalone BN folded)    (48, 24)
    ("we1a", CH),     # emb conv1, ref1 half                      (24, 24)
    ("we1b", CH),     # emb conv1, ref2 half                      (24, 24)
    ("we2", C),       # emb conv2                                 (48, 24)
])
B_LAYOUT, B_ROWS = _layout([              # bias / scale columns, f32 (n, 1)
    ("br1", CH), ("br2", C), ("sbn", C), ("bqv", 2 * C),
    ("bk12", C), ("bcf", C), ("be1", CH), ("be2", C),
])


# ---------------------------------------------------------------------------
# Kernel: one (batch, pixel-tile) block; x0/x1 are (48, T) channel-major slabs.
# ---------------------------------------------------------------------------
def ds_fusion_kernel(x0_ref, x1_ref, w48_ref, w24_ref, bias_ref, out_ref):
    bf = jnp.bfloat16

    def w48(name):
        o, n = W48_LAYOUT[name]
        return w48_ref[o:o + n, :].astype(bf)

    def w24(name):
        o, n = W24_LAYOUT[name]
        return w24_ref[o:o + n, :].astype(bf)

    def bias(name):
        o, n = B_LAYOUT[name]
        return bias_ref[o:o + n, :]                 # (n, 1) f32

    # weights cast to bf16 once per grid step (outside the 4-iteration loop)
    wr1, wqv, wk12, wcf0, wcf1 = (w48(n) for n in ("wr1", "wqv", "wk12",
                                                   "wcf0", "wcf1"))
    wr2, we1a, we1b, we2 = (w24(n) for n in ("wr2", "we1a", "we1b", "we2"))
    br1, br2, sbn, bqv, bk12, bcf, be1, be2 = (
        bias(n) for n in ("br1", "br2", "sbn", "bqv", "bk12", "bcf",
                          "be1", "be2"))

    x0 = x0_ref[0]                                   # (48, T) f32
    x1 = x1_ref[0]

    def mm(w, xb):
        # bf16 operands -> single-pass MXU; f32 accumulation.
        return jnp.dot(w, xb, preferred_element_type=jnp.float32)

    def gelu(v):
        # tanh-approx GELU (EUP); close to torch.nn.GELU()'s erf form.
        c0 = jnp.float32(0.7978845608028654)
        c1 = jnp.float32(0.044715)
        return 0.5 * v * (1.0 + jnp.tanh(c0 * (v + c1 * v * v * v)))

    def res_bn_relu(x):
        # relu(bn(x + res_block(x))); standalone BN folded into wr2/br2, the
        # skip path keeps the BN scale as sbn.
        h = jnp.maximum(mm(wr1, x.astype(bf)) + br1, 0.0)        # (24, T)
        return jnp.maximum(x * sbn + mm(wr2, h.astype(bf)) + br2, 0.0)

    def emb(top, bot):
        # emb = conv48->24 + GELU + conv24->48; Dropout(0.1) identity in eval.
        # First conv split into row-halves so ref1/ref2 never get concatenated.
        h = gelu(mm(we1a, top.astype(bf)) + mm(we1b, bot.astype(bf)) + be1)
        return mm(we2, h.astype(bf)) + be2                        # (48, T)

    def attend(key, qs, vs):
        # key (24,T); qs/vs: 4 slabs of (24,T). Per-pixel 4-way softmax done as
        # an elementwise tree on (1,T) rows: no concat, no lane reductions.
        l = [jnp.sum(key * q, axis=0, keepdims=True) for q in qs]   # (1,T) x4
        m = jnp.maximum(jnp.maximum(l[0], l[1]), jnp.maximum(l[2], l[3]))
        e = [jnp.exp(li - m) for li in l]
        inv = pl.reciprocal(e[0] + e[1] + e[2] + e[3], approx=True)
        a = [ei * inv for ei in e]
        return a[0] * vs[0] + a[1] * vs[1] + a[2] * vs[2] + a[3] * vs[3]

    la_res = None
    for k in range(4):                               # statically unrolled
        x0 = res_bn_relu(x0)
        x1 = res_bn_relu(x1)
        x0b = x0.astype(bf)                          # hoisted bf16 casts
        x1b = x1.astype(bf)
        qv0 = mm(wqv, x0b) + bqv                     # (96,T) = [q0 ; v0]
        qv1 = mm(wqv, x1b) + bqv                     # (96,T) = [q1 ; v1]
        qs = (qv0[0:CH], qv0[CH:C], qv1[0:CH], qv1[CH:C])
        vs = (qv0[C:C + CH], qv0[C + CH:2 * C],
              qv1[C:C + CH], qv1[C + CH:2 * C])
        if k == 0:
            cf = jnp.maximum(mm(wcf0, x0b) + mm(wcf1, x1b) + bcf, 0.0)
            la_res = emb(cf[0:CH], cf[CH:C])
        keys = mm(wk12, la_res.astype(bf)) + bk12    # (48,T) = [key1 ; key2]
        ref1 = attend(keys[0:CH], qs, vs)            # (24,T)
        ref2 = attend(keys[CH:C], qs, vs)            # (24,T)
        la_res = emb(ref1, ref2)                     # (48,T)

    out_ref[0] = la_res.astype(out_ref.dtype)        # lane-dense (T % 128 == 0)


# ---------------------------------------------------------------------------
# Wrapper: NCHW used directly as (B, 48, H*W); pixels tiled on the lane axis.
# ---------------------------------------------------------------------------
def _pick_tile(hw_p, batch):
    # largest pixel tile (multiple of 128, <= 2048) that divides the padded
    # pixel count; then keep the total step count even so v7x's two
    # TensorCores split the "parallel" grid evenly (no extra padding, so this
    # is ~free on single-TC v5e/v6e).
    tile = 128
    for t in range(2048, 127, -128):
        if hw_p % t == 0:
            tile = t
            break
    if (batch * (hw_p // tile)) % 2 == 1 and tile % 256 == 0:
        tile //= 2
    return tile


def pack_kernel_params(p):
    # Transpose every 1x1 conv weight to (out, in), fold the standalone BN
    # into the res_block's second conv, fuse query||value and key1||key2,
    # split cat_fuse / emb-conv1 by input halves, and pack into 3 slabs.
    def col(v):
        return v.reshape(-1, 1)

    sbn_row, tbn_row = p["sbn"], p["tbn"]                     # (1, 48)
    wr2f = (p["wr2"] * sbn_row).T                             # (48, 24)
    br2f = col(p["br2"] * sbn_row + tbn_row)                  # (48, 1)

    w48 = jnp.concatenate([
        p["wr1"].T,                                           # (24, 48)
        jnp.concatenate([p["wq"].T, p["wv"].T], axis=0),      # (96, 48)
        jnp.concatenate([p["wk1"].T, p["wk2"].T], axis=0),    # (48, 48)
        p["wcf"][:C].T,                                       # (48, 48)
        p["wcf"][C:].T,                                       # (48, 48)
    ], axis=0).astype(jnp.float32)
    w24 = jnp.concatenate([
        wr2f,                                                 # (48, 24)
        p["we1"][:CH].T,                                      # (24, 24)
        p["we1"][CH:].T,                                      # (24, 24)
        p["we2"].T,                                           # (48, 24)
    ], axis=0).astype(jnp.float32)
    bcol = jnp.concatenate([
        col(p["br1"]), br2f, col(sbn_row),
        col(jnp.concatenate([p["bq"], p["bv"]], axis=1)),
        col(jnp.concatenate([p["bk1"], p["bk2"]], axis=1)),
        col(p["bcf"]), col(p["be1"]), col(p["be2"]),
    ], axis=0).astype(jnp.float32)

    assert w48.shape == (W48_ROWS, C)
    assert w24.shape == (W24_ROWS, CH)
    assert bcol.shape == (B_ROWS, 1)
    return w48, w24, bcol


def ds_fusion_pallas(x0_nchw, x1_nchw, params):
    bsz, c, h, w = x0_nchw.shape
    assert c == C and x1_nchw.shape == x0_nchw.shape
    hw = h * w

    # free contiguous reshape -- no transpose, no stack, no extra HBM pass
    x0 = x0_nchw.reshape(bsz, c, hw)
    x1 = x1_nchw.reshape(bsz, c, hw)

    hw_p = int(pl.cdiv(hw, 128)) * 128
    if hw_p != hw:                           # only copies when hw % 128 != 0
        pad = ((0, 0), (0, 0), (0, hw_p - hw))
        x0 = jnp.pad(x0, pad)
        x1 = jnp.pad(x1, pad)

    tile = _pick_tile(hw_p, bsz)
    grid = (bsz, hw_p // tile)
    w48, w24, bcol = pack_kernel_params(params)

    out = pl.pallas_call(
        ds_fusion_kernel,
        out_shape=jax.ShapeDtypeStruct((bsz, c, hw_p), jnp.float32),
        grid_spec=pltpu.PrefetchScalarGridSpec(
            num_scalar_prefetch=0,
            grid=grid,
            in_specs=[
                pl.BlockSpec((1, c, tile), lambda bi, i: (bi, 0, i)),
                pl.BlockSpec((1, c, tile), lambda bi, i: (bi, 0, i)),
                pl.BlockSpec((W48_ROWS, C), lambda bi, i: (0, 0)),
                pl.BlockSpec((W24_ROWS, CH), lambda bi, i: (0, 0)),
                pl.BlockSpec((B_ROWS, 1), lambda bi, i: (0, 0)),
            ],
            out_specs=pl.BlockSpec((1, c, tile), lambda bi, i: (bi, 0, i)),
        ),
        compiler_params=pltpu.CompilerParams(
            dimension_semantics=("parallel", "parallel")),
    )(x0, x1, w48, w24, bcol)

    if hw_p != hw:
        out = out[:, :, :hw]
    return out.reshape(bsz, c, h, w)


# ---------------------------------------------------------------------------
# Pure-JAX reference: un-fused params, f32 matmuls, exact erf GELU.
# ---------------------------------------------------------------------------
def _reference_math(x0, x1, p):
    inv_sqrt2 = np.float32(1.0 / np.sqrt(2.0))

    def mm(x, w, b):
        return jnp.dot(x, w, preferred_element_type=jnp.float32) + b

    def gelu(x):
        return 0.5 * x * (1.0 + jax.lax.erf(x * inv_sqrt2))

    def res_bn_relu(x):
        h = jnp.maximum(mm(x, p["wr1"], p["br1"]), 0.0)
        r = mm(h, p["wr2"], p["br2"])
        return jnp.maximum((x + r) * p["sbn"] + p["tbn"], 0.0)

    def emb(x):
        return mm(gelu(mm(x, p["we1"], p["be1"])), p["we2"], p["be2"])

    def attend(key, qs, vs):
        logits = jnp.concatenate(
            [jnp.sum(key * q, axis=-1, keepdims=True) for q in qs], axis=-1)
        logits = logits - jnp.max(logits, axis=-1, keepdims=True)
        e = jnp.exp(logits)
        att = e / jnp.sum(e, axis=-1, keepdims=True)
        return (att[:, 0:1] * vs[0] + att[:, 1:2] * vs[1]
                + att[:, 2:3] * vs[2] + att[:, 3:4] * vs[3])

    la_res = None
    for k in range(4):
        x0 = res_bn_relu(x0)
        x1 = res_bn_relu(x1)
        q0 = mm(x0, p["wq"], p["bq"])
        q1 = mm(x1, p["wq"], p["bq"])
        v0 = mm(x0, p["wv"], p["bv"])
        v1 = mm(x1, p["wv"], p["bv"])
        qs = (q0[:, :CH], q0[:, CH:], q1[:, :CH], q1[:, CH:])
        vs = (v0[:, :CH], v0[:, CH:], v1[:, :CH], v1[:, CH:])
        if k == 0:
            cat = jnp.concatenate([x0, x1], axis=-1)
            la_res = emb(jnp.maximum(mm(cat, p["wcf"], p["bcf"]), 0.0))
        ref1 = attend(mm(la_res, p["wk1"], p["bk1"]), qs, vs)
        ref2 = attend(mm(la_res, p["wk2"], p["bk2"]), qs, vs)
        la_res = emb(jnp.concatenate([ref1, ref2], axis=-1))
    return la_res


def ds_fusion_ref(x0_nchw, x1_nchw, params):
    b, c, h, w = x0_nchw.shape
    x0 = jnp.transpose(x0_nchw, (0, 2, 3, 1)).reshape(-1, c)
    x1 = jnp.transpose(x1_nchw, (0, 2, 3, 1)).reshape(-1, c)
    out = _reference_math(x0, x1, params)
    return jnp.transpose(out.reshape(b, h, w, c), (0, 3, 1, 2))


# ---------------------------------------------------------------------------
# Deterministic synthetic parameters; eval-mode BN folded into 1x1 convs.
# ---------------------------------------------------------------------------
def _conv(key, cin, cout):
    kw, kb = jax.random.split(key)
    wgt = (0.5 / np.sqrt(cin)) * jax.random.normal(kw, (cin, cout), jnp.float32)
    bias = 0.05 * jax.random.normal(kb, (cout,), jnp.float32)
    return wgt, bias


def _bn(key, c):
    k1, k2, k3, k4 = jax.random.split(key, 4)
    gamma = 1.0 + 0.1 * jax.random.normal(k1, (c,), jnp.float32)
    beta = 0.05 * jax.random.normal(k2, (c,), jnp.float32)
    mean = 0.05 * jax.random.normal(k3, (c,), jnp.float32)
    var = 1.0 + 0.2 * jax.random.uniform(k4, (c,), jnp.float32)
    return gamma, beta, mean, var


def _fold(wb, bn):
    wgt, bias = wb
    gamma, beta, mean, var = bn
    s = gamma / jnp.sqrt(var + EPS)
    return wgt * s[None, :], (bias - mean) * s + beta


def init_params(key):
    ks = jax.random.split(key, 16)
    wr1, br1 = _fold(_conv(ks[0], C, CH), _bn(ks[1], CH))    # res_block conv1+BN
    wr2, br2 = _conv(ks[2], CH, C)                           # res_block conv2
    g, be, m, v = _bn(ks[3], C)                              # standalone self.bn
    sbn = g / jnp.sqrt(v + EPS)
    tbn = be - m * sbn
    wq, bq = _fold(_conv(ks[4], C, C), _bn(ks[5], C))        # la_query
    wv, bv = _fold(_conv(ks[6], C, C), _bn(ks[7], C))        # la_value
    wk1, bk1 = _fold(_conv(ks[8], C, CH), _bn(ks[9], CH))    # la_key_1
    wk2, bk2 = _fold(_conv(ks[10], C, CH), _bn(ks[11], CH))  # la_key_2
    wcf, bcf = _fold(_conv(ks[12], 2 * C, C), _bn(ks[13], C))  # cat_fuse
    we1, be1 = _conv(ks[14], C, CH)                          # emb conv1
    we2, be2 = _conv(ks[15], CH, C)                          # emb conv2

    def row(x):
        return x.reshape(1, -1)

    return dict(
        wr1=wr1, br1=row(br1), wr2=wr2, br2=row(br2),
        sbn=row(sbn), tbn=row(tbn),
        wq=wq, bq=row(bq), wv=wv, bv=row(bv),
        wk1=wk1, bk1=row(bk1), wk2=wk2, bk2=row(bk2),
        wcf=wcf, bcf=row(bcf),
        we1=we1, be1=row(be1), we2=we2, be2=row(be2),
    )


if __name__ == "__main__":
    key = jax.random.PRNGKey(0)
    kx0, kx1, kp = jax.random.split(key, 3)
    B, H, W = 2, 16, 16
    # x is a list of 2 feature maps, each (B, 48, H, W) in NCHW.
    x0 = jax.random.normal(kx0, (B, C, H, W), jnp.float32)
    x1 = jax.random.normal(kx1, (B, C, H, W), jnp.float32)
    params = init_params(kp)

    out = jax.block_until_ready(ds_fusion_pallas(x0, x1, params))
    ref = jax.block_until_ready(ds_fusion_ref(x0, x1, params))

    assert out.shape == (B, C, H, W)
    if not np.allclose(np.asarray(out), np.asarray(ref), atol=5e-2, rtol=5e-2):
        max_err = float(jnp.max(jnp.abs(out - ref)))
        raise AssertionError(f"kernel/reference mismatch, max abs err = {max_err}")

    print("KERNEL_OK")
</pallas_src>

<mosaic_0001>
module attributes {stable_mosaic.version = 11 : i64} {
  func.func @ds_fusion_kernel(%arg0: i32, %arg1: i32, %arg2: memref<1x48x256xf32, #tpu.memory_space<vmem>>, %arg3: memref<1x48x256xf32, #tpu.memory_space<vmem>>, %arg4: memref<264x48xf32, #tpu.memory_space<vmem>>, %arg5: memref<144x24xf32, #tpu.memory_space<vmem>>, %arg6: memref<384x1xf32, #tpu.memory_space<vmem>>, %arg7: memref<1x48x256xf32, #tpu.memory_space<vmem>>) attributes {dimension_semantics = [#tpu.dimension_semantics<parallel>, #tpu.dimension_semantics<parallel>], iteration_bounds = array<i64: 2, 1>, scalar_prefetch = 0 : i64, scratch_operands = 0 : i64, tpu.core_type = #tpu.core_type<tc>, window_params = [{transform_indices = @transform_0, window_bounds = array<i64: 1, 48, 256>}, {transform_indices = @transform_1, window_bounds = array<i64: 1, 48, 256>}, {pipeline_mode = #tpu.pipeline_mode<synchronous>, transform_indices = @transform_2, window_bounds = array<i64: 264, 48>}, {pipeline_mode = #tpu.pipeline_mode<synchronous>, transform_indices = @transform_3, window_bounds = array<i64: 144, 24>}, {pipeline_mode = #tpu.pipeline_mode<synchronous>, transform_indices = @transform_4, window_bounds = array<i64: 384, 1>}, {transform_indices = @transform_5, window_bounds = array<i64: 1, 48, 256>}]} {
    %c0 = arith.constant 0 : index
    %c0_0 = arith.constant 0 : index
    %0 = vector.load %arg4[%c0, %c0_0] : memref<264x48xf32, #tpu.memory_space<vmem>>, vector<24x48xf32>
    %1 = arith.truncf %0 : vector<24x48xf32> to vector<24x48xbf16>
    %c24 = arith.constant 24 : index
    %c0_1 = arith.constant 0 : index
    %2 = vector.load %arg4[%c24, %c0_1] : memref<264x48xf32, #tpu.memory_space<vmem>>, vector<96x48xf32>
    %3 = arith.truncf %2 : vector<96x48xf32> to vector<96x48xbf16>
    %c120 = arith.constant 120 : index
    %c0_2 = arith.constant 0 : index
    %4 = vector.load %arg4[%c120, %c0_2] : memref<264x48xf32, #tpu.memory_space<vmem>>, vector<48x48xf32>
    %5 = arith.truncf %4 : vector<48x48xf32> to vector<48x48xbf16>
    %c168 = arith.constant 168 : index
    %c0_3 = arith.constant 0 : index
    %6 = vector.load %arg4[%c168, %c0_3] : memref<264x48xf32, #tpu.memory_space<vmem>>, vector<48x48xf32>
    %7 = arith.truncf %6 : vector<48x48xf32> to vector<48x48xbf16>
    %c216 = arith.constant 216 : index
    %c0_4 = arith.constant 0 : index
    %8 = vector.load %arg4[%c216, %c0_4] : memref<264x48xf32, #tpu.memory_space<vmem>>, vector<48x48xf32>
    %9 = arith.truncf %8 : vector<48x48xf32> to vector<48x48xbf16>
    %c0_5 = arith.constant 0 : index
    %c0_6 = arith.constant 0 : index
    %10 = vector.load %arg5[%c0_5, %c0_6] : memref<144x24xf32, #tpu.memory_space<vmem>>, vector<48x24xf32>
    %11 = arith.truncf %10 : vector<48x24xf32> to vector<48x24xbf16>
    %c48 = arith.constant 48 : index
    %c0_7 = arith.constant 0 : index
    %12 = vector.load %arg5[%c48, %c0_7] : memref<144x24xf32, #tpu.memory_space<vmem>>, vector<24x24xf32>
    %13 = arith.truncf %12 : vector<24x24xf32> to vector<24x24xbf16>
    %c72 = arith.constant 72 : index
    %c0_8 = arith.constant 0 : index
    %14 = vector.load %arg5[%c72, %c0_8] : memref<144x24xf32, #tpu.memory_space<vmem>>, vector<24x24xf32>
    %15 = arith.truncf %14 : vector<24x24xf32> to vector<24x24xbf16>
    %c96 = arith.constant 96 : index
    %c0_9 = arith.constant 0 : index
    %16 = vector.load %arg5[%c96, %c0_9] : memref<144x24xf32, #tpu.memory_space<vmem>>, vector<48x24xf32>
    %17 = arith.truncf %16 : vector<48x24xf32> to vector<48x24xbf16>
    %c0_10 = arith.constant 0 : index
    %c0_11 = arith.constant 0 : index
    %18 = vector.load %arg6[%c0_10, %c0_11] : memref<384x1xf32, #tpu.memory_space<vmem>>, vector<24x1xf32>
    %c24_12 = arith.constant 24 : index
    %c0_13 = arith.constant 0 : index
    %19 = vector.load %arg6[%c24_12, %c0_13] : memref<384x1xf32, #tpu.memory_space<vmem>>, vector<48x1xf32>
    %c72_14 = arith.constant 72 : index
    %c0_15 = arith.constant 0 : index
    %20 = vector.load %arg6[%c72_14, %c0_15] : memref<384x1xf32, #tpu.memory_space<vmem>>, vector<48x1xf32>
    %c120_16 = arith.constant 120 : index
    %c0_17 = arith.constant 0 : index
    %21 = vector.load %arg6[%c120_16, %c0_17] : memref<384x1xf32, #tpu.memory_space<vmem>>, vector<96x1xf32>
    %c216_18 = arith.constant 216 : index
    %c0_19 = arith.constant 0 : index
    %22 = vector.load %arg6[%c216_18, %c0_19] : memref<384x1xf32, #tpu.memory_space<vmem>>, vector<48x1xf32>
    %c264 = arith.constant 264 : index
    %c0_20 = arith.constant 0 : index
    %23 = vector.load %arg6[%c264, %c0_20] : memref<384x1xf32, #tpu.memory_space<vmem>>, vector<48x1xf32>
    %c312 = arith.constant 312 : index
    %c0_21 = arith.constant 0 : index
    %24 = vector.load %arg6[%c312, %c0_21] : memref<384x1xf32, #tpu.memory_space<vmem>>, vector<24x1xf32>
    %c336 = arith.constant 336 : index
    %c0_22 = arith.constant 0 : index
    %25 = vector.load %arg6[%c336, %c0_22] : memref<384x1xf32, #tpu.memory_space<vmem>>, vector<48x1xf32>
    %c0_23 = arith.constant 0 : index
    %c0_24 = arith.constant 0 : index
    %c0_25 = arith.constant 0 : index
    %26 = vector.load %arg2[%c0_23, %c0_24, %c0_25] : memref<1x48x256xf32, #tpu.memory_space<vmem>>, vector<1x48x256xf32>
    %27 = vector.shape_cast %26 : vector<1x48x256xf32> to vector<48x256xf32>
    %c0_26 = arith.constant 0 : index
    %c0_27 = arith.constant 0 : index
    %c0_28 = arith.constant 0 : index
    %28 = vector.load %arg3[%c0_26, %c0_27, %c0_28] : memref<1x48x256xf32, #tpu.memory_space<vmem>>, vector<1x48x256xf32>
    %29 = vector.shape_cast %28 : vector<1x48x256xf32> to vector<48x256xf32>
    %30 = arith.truncf %27 : vector<48x256xf32> to vector<48x256xbf16>
    %cst = arith.constant dense<0.000000e+00> : vector<24x256xf32>
    %31 = tpu.matmul %1, %30, %cst {dimension_numbers = #tpu.dot_dimension_numbers<[1], [0], [0], [1], [0, 0, 1, 1], [], []>} : vector<24x48xbf16>, vector<48x256xbf16>, vector<24x256xf32> -> vector<24x256xf32>
    %32 = vector.broadcast %18 : vector<24x1xf32> to vector<24x256xf32>
    %33 = arith.addf %31, %32 : vector<24x256xf32>
    %cst_29 = arith.constant 0.000000e+00 : f32
    %34 = vector.broadcast %cst_29 : f32 to vector<24x256xf32>
    %35 = arith.maximumf %33, %34 : vector<24x256xf32>
    %36 = vector.broadcast %20 : vector<48x1xf32> to vector<48x256xf32>
    %37 = arith.mulf %27, %36 : vector<48x256xf32>
    %38 = arith.truncf %35 : vector<24x256xf32> to vector<24x256xbf16>
    %cst_30 = arith.constant dense<0.000000e+00> : vector<48x256xf32>
    %39 = tpu.matmul %11, %38, %cst_30 {dimension_numbers = #tpu.dot_dimension_numbers<[1], [0], [0], [1], [0, 0, 1, 1], [], []>} : vector<48x24xbf16>, vector<24x256xbf16>, vector<48x256xf32> -> vector<48x256xf32>
    %40 = arith.addf %37, %39 : vector<48x256xf32>
    %41 = vector.broadcast %19 : vector<48x1xf32> to vector<48x256xf32>
    %42 = arith.addf %40, %41 : vector<48x256xf32>
    %cst_31 = arith.constant 0.000000e+00 : f32
    %43 = vector.broadcast %cst_31 : f32 to vector<48x256xf32>
    %44 = arith.maximumf %42, %43 : vector<48x256xf32>
    %45 = arith.truncf %29 : vector<48x256xf32> to vector<48x256xbf16>
    %cst_32 = arith.constant dense<0.000000e+00> : vector<24x256xf32>
    %46 = tpu.matmul %1, %45, %cst_32 {dimension_numbers = #tpu.dot_dimension_numbers<[1], [0], [0], [1], [0, 0, 1, 1], [], []>} : vector<24x48xbf16>, vector<48x256xbf16>, vector<24x256xf32> -> vector<24x256xf32>
    %47 = vector.broadcast %18 : vector<24x1xf32> to vector<24x256xf32>
    %48 = arith.addf %46, %47 : vector<24x256xf32>
    %cst_33 = arith.constant 0.000000e+00 : f32
    %49 = vector.broadcast %cst_33 : f32 to vector<24x256xf32>
    %50 = arith.maximumf %48, %49 : vector<24x256xf32>
    %51 = vector.broadcast %20 : vector<48x1xf32> to vector<48x256xf32>
    %52 = arith.mulf %29, %51 : vector<48x256xf32>
    %53 = arith.truncf %50 : vector<24x256xf32> to vector<24x256xbf16>
    %cst_34 = arith.constant dense<0.000000e+00> : vector<48x256xf32>
    %54 = tpu.matmul %11, %53, %cst_34 {dimension_numbers = #tpu.dot_dimension_numbers<[1], [0], [0], [1], [0, 0, 1, 1], [], []>} : vector<48x24xbf16>, vector<24x256xbf16>, vector<48x256xf32> -> vector<48x256xf32>
    %55 = arith.addf %52, %54 : vector<48x256xf32>
    %56 = vector.broadcast %19 : vector<48x1xf32> to vector<48x256xf32>
    %57 = arith.addf %55, %56 : vector<48x256xf32>
    %cst_35 = arith.constant 0.000000e+00 : f32
    %58 = vector.broadcast %cst_35 : f32 to vector<48x256xf32>
    %59 = arith.maximumf %57, %58 : vector<48x256xf32>
    %60 = arith.truncf %44 : vector<48x256xf32> to vector<48x256xbf16>
    %61 = arith.truncf %59 : vector<48x256xf32> to vector<48x256xbf16>
    %cst_36 = arith.constant dense<0.000000e+00> : vector<96x256xf32>
    %62 = tpu.matmul %3, %60, %cst_36 {dimension_numbers = #tpu.dot_dimension_numbers<[1], [0], [0], [1], [0, 0, 1, 1], [], []>} : vector<96x48xbf16>, vector<48x256xbf16>, vector<96x256xf32> -> vector<96x256xf32>
    %63 = vector.broadcast %21 : vector<96x1xf32> to vector<96x256xf32>
    %64 = arith.addf %62, %63 : vector<96x256xf32>
    %cst_37 = arith.constant dense<0.000000e+00> : vector<96x256xf32>
    %65 = tpu.matmul %3, %61, %cst_37 {dimension_numbers = #tpu.dot_dimension_numbers<[1], [0], [0], [1], [0, 0, 1, 1], [], []>} : vector<96x48xbf16>, vector<48x256xbf16>, vector<96x256xf32> -> vector<96x256xf32>
    %66 = vector.broadcast %21 : vector<96x1xf32> to vector<96x256xf32>
    %67 = arith.addf %65, %66 : vector<96x256xf32>
    %68 = vector.extract_strided_slice %64 {offsets = [0, 0], sizes = [24, 256], strides = [1, 1]} : vector<96x256xf32> to vector<24x256xf32>
    %69 = vector.extract_strided_slice %64 {offsets = [24, 0], sizes = [24, 256], strides = [1, 1]} : vector<96x256xf32> to vector<24x256xf32>
    %70 = vector.extract_strided_slice %67 {offsets = [0, 0], sizes = [24, 256], strides = [1, 1]} : vector<96x256xf32> to vector<24x256xf32>
    %71 = vector.extract_strided_slice %67 {offsets = [24, 0], sizes = [24, 256], strides = [1, 1]} : vector<96x256xf32> to vector<24x256xf32>
    %72 = vector.extract_strided_slice %64 {offsets = [48, 0], sizes = [24, 256], strides = [1, 1]} : vector<96x256xf32> to vector<24x256xf32>
    %73 = vector.extract_strided_slice %64 {offsets = [72, 0], sizes = [24, 256], strides = [1, 1]} : vector<96x256xf32> to vector<24x256xf32>
    %74 = vector.extract_strided_slice %67 {offsets = [48, 0], sizes = [24, 256], strides = [1, 1]} : vector<96x256xf32> to vector<24x256xf32>
    %75 = vector.extract_strided_slice %67 {offsets = [72, 0], sizes = [24, 256], strides = [1, 1]} : vector<96x256xf32> to vector<24x256xf32>
    %cst_38 = arith.constant dense<0.000000e+00> : vector<48x256xf32>
    %76 = tpu.matmul %7, %60, %cst_38 {dimension_numbers = #tpu.dot_dimension_numbers<[1], [0], [0], [1], [0, 0, 1, 1], [], []>} : vector<48x48xbf16>, vector<48x256xbf16>, vector<48x256xf32> -> vector<48x256xf32>
    %cst_39 = arith.constant dense<0.000000e+00> : vector<48x256xf32>
    %77 = tpu.matmul %9, %61, %cst_39 {dimension_numbers = #tpu.dot_dimension_numbers<[1], [0], [0], [1], [0, 0, 1, 1], [], []>} : vector<48x48xbf16>, vector<48x256xbf16>, vector<48x256xf32> -> vector<48x256xf32>
    %78 = arith.addf %76, %77 : vector<48x256xf32>
    %79 = vector.broadcast %23 : vector<48x1xf32> to vector<48x256xf32>
    %80 = arith.addf %78, %79 : vector<48x256xf32>
    %cst_40 = arith.constant 0.000000e+00 : f32
    %81 = vector.broadcast %cst_40 : f32 to vector<48x256xf32>
    %82 = arith.maximumf %80, %81 : vector<48x256xf32>
    %83 = vector.extract_strided_slice %82 {offsets = [0, 0], sizes = [24, 256], strides = [1, 1]} : vector<48x256xf32> to vector<24x256xf32>
    %84 = vector.extract_strided_slice %82 {offsets = [24, 0], sizes = [24, 256], strides = [1, 1]} : vector<48x256xf32> to vector<24x256xf32>
    %85 = arith.truncf %83 : vector<24x256xf32> to vector<24x256xbf16>
    %cst_41 = arith.constant dense<0.000000e+00> : vector<24x256xf32>
    %86 = tpu.matmul %13, %85, %cst_41 {dimension_numbers = #tpu.dot_dimension_numbers<[1], [0], [0], [1], [0, 0, 1, 1], [], []>} : vector<24x24xbf16>, vector<24x256xbf16>, vector<24x256xf32> -> vector<24x256xf32>
    %87 = arith.truncf %84 : vector<24x256xf32> to vector<24x256xbf16>
    %cst_42 = arith.constant dense<0.000000e+00> : vector<24x256xf32>
    %88 = tpu.matmul %15, %87, %cst_42 {dimension_numbers = #tpu.dot_dimension_numbers<[1], [0], [0], [1], [0, 0, 1, 1], [], []>} : vector<24x24xbf16>, vector<24x256xbf16>, vector<24x256xf32> -> vector<24x256xf32>
    %89 = arith.addf %86, %88 : vector<24x256xf32>
    %90 = vector.broadcast %24 : vector<24x1xf32> to vector<24x256xf32>
    %91 = arith.addf %89, %90 : vector<24x256xf32>
    %cst_43 = arith.constant 5.000000e-01 : f32
    %92 = vector.broadcast %cst_43 : f32 to vector<24x256xf32>
    %93 = arith.mulf %92, %91 : vector<24x256xf32>
    %cst_44 = arith.constant 4.471500e-02 : f32
    %94 = vector.broadcast %cst_44 : f32 to vector<24x256xf32>
    %95 = arith.mulf %94, %91 : vector<24x256xf32>
    %96 = arith.mulf %95, %91 : vector<24x256xf32>
    %97 = arith.mulf %96, %91 : vector<24x256xf32>
    %98 = arith.addf %91, %97 : vector<24x256xf32>
    %cst_45 = arith.constant 0.797884583 : f32
    %99 = vector.broadcast %cst_45 : f32 to vector<24x256xf32>
    %100 = arith.mulf %99, %98 : vector<24x256xf32>
    %101 = math.tanh %100 : vector<24x256xf32>
    %cst_46 = arith.constant 1.000000e+00 : f32
    %102 = vector.broadcast %cst_46 : f32 to vector<24x256xf32>
    %103 = arith.addf %102, %101 : vector<24x256xf32>
    %104 = arith.mulf %93, %103 : vector<24x256xf32>
    %105 = arith.truncf %104 : vector<24x256xf32> to vector<24x256xbf16>
    %cst_47 = arith.constant dense<0.000000e+00> : vector<48x256xf32>
    %106 = tpu.matmul %17, %105, %cst_47 {dimension_numbers = #tpu.dot_dimension_numbers<[1], [0], [0], [1], [0, 0, 1, 1], [], []>} : vector<48x24xbf16>, vector<24x256xbf16>, vector<48x256xf32> -> vector<48x256xf32>
    %107 = vector.broadcast %25 : vector<48x1xf32> to vector<48x256xf32>
    %108 = arith.addf %106, %107 : vector<48x256xf32>
    %109 = arith.truncf %108 : vector<48x256xf32> to vector<48x256xbf16>
    %cst_48 = arith.constant dense<0.000000e+00> : vector<48x256xf32>
    %110 = tpu.matmul %5, %109, %cst_48 {dimension_numbers = #tpu.dot_dimension_numbers<[1], [0], [0], [1], [0, 0, 1, 1], [], []>} : vector<48x48xbf16>, vector<48x256xbf16>, vector<48x256xf32> -> vector<48x256xf32>
    %111 = vector.broadcast %22 : vector<48x1xf32> to vector<48x256xf32>
    %112 = arith.addf %110, %111 : vector<48x256xf32>
    %113 = vector.extract_strided_slice %112 {offsets = [0, 0], sizes = [24, 256], strides = [1, 1]} : vector<48x256xf32> to vector<24x256xf32>
    %114 = arith.mulf %113, %68 : vector<24x256xf32>
    %cst_49 = arith.constant dense<0.000000e+00> : vector<256xf32>
    %115 = vector.multi_reduction <add>, %114, %cst_49 [0] : vector<24x256xf32> to vector<256xf32>
    %116 = vector.shape_cast %115 : vector<256xf32> to vector<1x256xf32>
    %117 = arith.mulf %113, %69 : vector<24x256xf32>
    %cst_50 = arith.constant dense<0.000000e+00> : vector<256xf32>
    %118 = vector.multi_reduction <add>, %117, %cst_50 [0] : vector<24x256xf32> to vector<256xf32>
    %119 = vector.shape_cast %118 : vector<256xf32> to vector<1x256xf32>
    %120 = arith.mulf %113, %70 : vector<24x256xf32>
    %cst_51 = arith.constant dense<0.000000e+00> : vector<256xf32>
    %121 = vector.multi_reduction <add>, %120, %cst_51 [0] : vector<24x256xf32> to vector<256xf32>
    %122 = vector.shape_cast %121 : vector<256xf32> to vector<1x256xf32>
    %123 = arith.mulf %113, %71 : vector<24x256xf32>
    %cst_52 = arith.constant dense<0.000000e+00> : vector<256xf32>
    %124 = vector.multi_reduction <add>, %123, %cst_52 [0] : vector<24x256xf32> to vector<256xf32>
    %125 = vector.shape_cast %124 : vector<256xf32> to vector<1x256xf32>
    %126 = arith.maximumf %116, %119 : vector<1x256xf32>
    %127 = arith.maximumf %122, %125 : vector<1x256xf32>
    %128 = arith.maximumf %126, %127 : vector<1x256xf32>
    %129 = arith.subf %116, %128 : vector<1x256xf32>
    %130 = math.exp %129 : vector<1x256xf32>
    %131 = arith.subf %119, %128 : vector<1x256xf32>
    %132 = math.exp %131 : vector<1x256xf32>
    %133 = arith.subf %122, %128 : vector<1x256xf32>
    %134 = math.exp %133 : vector<1x256xf32>
    %135 = arith.subf %125, %128 : vector<1x256xf32>
    %136 = math.exp %135 : vector<1x256xf32>
    %137 = arith.addf %130, %132 : vector<1x256xf32>
    %138 = arith.addf %137, %134 : vector<1x256xf32>
    %139 = arith.addf %138, %136 : vector<1x256xf32>
    %140 = tpu.reciprocal %139 {approx = true} : vector<1x256xf32> -> vector<1x256xf32>
    %141 = arith.mulf %130, %140 : vector<1x256xf32>
    %142 = arith.mulf %132, %140 : vector<1x256xf32>
    %143 = arith.mulf %134, %140 : vector<1x256xf32>
    %144 = arith.mulf %136, %140 : vector<1x256xf32>
    %145 = vector.broadcast %141 : vector<1x256xf32> to vector<24x256xf32>
    %146 = arith.mulf %145, %72 : vector<24x256xf32>
    %147 = vector.broadcast %142 : vector<1x256xf32> to vector<24x256xf32>
    %148 = arith.mulf %147, %73 : vector<24x256xf32>
    %149 = arith.addf %146, %148 : vector<24x256xf32>
    %150 = vector.broadcast %143 : vector<1x256xf32> to vector<24x256xf32>
    %151 = arith.mulf %150, %74 : vector<24x256xf32>
    %152 = arith.addf %149, %151 : vector<24x256xf32>
    %153 = vector.broadcast %144 : vector<1x256xf32> to vector<24x256xf32>
    %154 = arith.mulf %153, %75 : vector<24x256xf32>
    %155 = arith.addf %152, %154 : vector<24x256xf32>
    %156 = vector.extract_strided_slice %112 {offsets = [24, 0], sizes = [24, 256], strides = [1, 1]} : vector<48x256xf32> to vector<24x256xf32>
    %157 = arith.mulf %156, %68 : vector<24x256xf32>
    %cst_53 = arith.constant dense<0.000000e+00> : vector<256xf32>
    %158 = vector.multi_reduction <add>, %157, %cst_53 [0] : vector<24x256xf32> to vector<256xf32>
    %159 = vector.shape_cast %158 : vector<256xf32> to vector<1x256xf32>
    %160 = arith.mulf %156, %69 : vector<24x256xf32>
    %cst_54 = arith.constant dense<0.000000e+00> : vector<256xf32>
    %161 = vector.multi_reduction <add>, %160, %cst_54 [0] : vector<24x256xf32> to vector<256xf32>
    %162 = vector.shape_cast %161 : vector<256xf32> to vector<1x256xf32>
    %163 = arith.mulf %156, %70 : vector<24x256xf32>
    %cst_55 = arith.constant dense<0.000000e+00> : vector<256xf32>
    %164 = vector.multi_reduction <add>, %163, %cst_55 [0] : vector<24x256xf32> to vector<256xf32>
    %165 = vector.shape_cast %164 : vector<256xf32> to vector<1x256xf32>
    %166 = arith.mulf %156, %71 : vector<24x256xf32>
    %cst_56 = arith.constant dense<0.000000e+00> : vector<256xf32>
    %167 = vector.multi_reduction <add>, %166, %cst_56 [0] : vector<24x256xf32> to vector<256xf32>
    %168 = vector.shape_cast %167 : vector<256xf32> to vector<1x256xf32>
    %169 = arith.maximumf %159, %162 : vector<1x256xf32>
    %170 = arith.maximumf %165, %168 : vector<1x256xf32>
    %171 = arith.maximumf %169, %170 : vector<1x256xf32>
    %172 = arith.subf %159, %171 : vector<1x256xf32>
    %173 = math.exp %172 : vector<1x256xf32>
    %174 = arith.subf %162, %171 : vector<1x256xf32>
    %175 = math.exp %174 : vector<1x256xf32>
    %176 = arith.subf %165, %171 : vector<1x256xf32>
    %177 = math.exp %176 : vector<1x256xf32>
    %178 = arith.subf %168, %171 : vector<1x256xf32>
    %179 = math.exp %178 : vector<1x256xf32>
    %180 = arith.addf %173, %175 : vector<1x256xf32>
    %181 = arith.addf %180, %177 : vector<1x256xf32>
    %182 = arith.addf %181, %179 : vector<1x256xf32>
    %183 = tpu.reciprocal %182 {approx = true} : vector<1x256xf32> -> vector<1x256xf32>
    %184 = arith.mulf %173, %183 : vector<1x256xf32>
    %185 = arith.mulf %175, %183 : vector<1x256xf32>
    %186 = arith.mulf %177, %183 : vector<1x256xf32>
    %187 = arith.mulf %179, %183 : vector<1x256xf32>
    %188 = vector.broadcast %184 : vector<1x256xf32> to vector<24x256xf32>
    %189 = arith.mulf %188, %72 : vector<24x256xf32>
    %190 = vector.broadcast %185 : vector<1x256xf32> to vector<24x256xf32>
    %191 = arith.mulf %190, %73 : vector<24x256xf32>
    %192 = arith.addf %189, %191 : vector<24x256xf32>
    %193 = vector.broadcast %186 : vector<1x256xf32> to vector<24x256xf32>
    %194 = arith.mulf %193, %74 : vector<24x256xf32>
    %195 = arith.addf %192, %194 : vector<24x256xf32>
    %196 = vector.broadcast %187 : vector<1x256xf32> to vector<24x256xf32>
    %197 = arith.mulf %196, %75 : vector<24x256xf32>
    %198 = arith.addf %195, %197 : vector<24x256xf32>
    %199 = arith.truncf %155 : vector<24x256xf32> to vector<24x256xbf16>
    %cst_57 = arith.constant dense<0.000000e+00> : vector<24x256xf32>
    %200 = tpu.matmul %13, %199, %cst_57 {dimension_numbers = #tpu.dot_dimension_numbers<[1], [0], [0], [1], [0, 0, 1, 1], [], []>} : vector<24x24xbf16>, vector<24x256xbf16>, vector<24x256xf32> -> vector<24x256xf32>
    %201 = arith.truncf %198 : vector<24x256xf32> to vector<24x256xbf16>
    %cst_58 = arith.constant dense<0.000000e+00> : vector<24x256xf32>
    %202 = tpu.matmul %15, %201, %cst_58 {dimension_numbers = #tpu.dot_dimension_numbers<[1], [0], [0], [1], [0, 0, 1, 1], [], []>} : vector<24x24xbf16>, vector<24x256xbf16>, vector<24x256xf32> -> vector<24x256xf32>
    %203 = arith.addf %200, %202 : vector<24x256xf32>
    %204 = vector.broadcast %24 : vector<24x1xf32> to vector<24x256xf32>
    %205 = arith.addf %203, %204 : vector<24x256xf32>
    %cst_59 = arith.constant 5.000000e-01 : f32
    %206 = vector.broadcast %cst_59 : f32 to vector<24x256xf32>
    %207 = arith.mulf %206, %205 : vector<24x256xf32>
    %cst_60 = arith.constant 4.471500e-02 : f32
    %208 = vector.broadcast %cst_60 : f32 to vector<24x256xf32>
    %209 = arith.mulf %208, %205 : vector<24x256xf32>
    %210 = arith.mulf %209, %205 : vector<24x256xf32>
    %211 = arith.mulf %210, %205 : vector<24x256xf32>
    %212 = arith.addf %205, %211 : vector<24x256xf32>
    %cst_61 = arith.constant 0.797884583 : f32
    %213 = vector.broadcast %cst_61 : f32 to vector<24x256xf32>
    %214 = arith.mulf %213, %212 : vector<24x256xf32>
    %215 = math.tanh %214 : vector<24x256xf32>
    %cst_62 = arith.constant 1.000000e+00 : f32
    %216 = vector.broadcast %cst_62 : f32 to vector<24x256xf32>
    %217 = arith.addf %216, %215 : vector<24x256xf32>
    %218 = arith.mulf %207, %217 : vector<24x256xf32>
    %219 = arith.truncf %218 : vector<24x256xf32> to vector<24x256xbf16>
    %cst_63 = arith.constant dense<0.000000e+00> : vector<48x256xf32>
    %220 = tpu.matmul %17, %219, %cst_63 {dimension_numbers = #tpu.dot_dimension_numbers<[1], [0], [0], [1], [0, 0, 1, 1], [], []>} : vector<48x24xbf16>, vector<24x256xbf16>, vector<48x256xf32> -> vector<48x256xf32>
    %221 = vector.broadcast %25 : vector<48x1xf32> to vector<48x256xf32>
    %222 = arith.addf %220, %221 : vector<48x256xf32>
    %223 = arith.truncf %44 : vector<48x256xf32> to vector<48x256xbf16>
    %cst_64 = arith.constant dense<0.000000e+00> : vector<24x256xf32>
    %224 = tpu.matmul %1, %223, %cst_64 {dimension_numbers = #tpu.dot_dimension_numbers<[1], [0], [0], [1], [0, 0, 1, 1], [], []>} : vector<24x48xbf16>, vector<48x256xbf16>, vector<24x256xf32> -> vector<24x256xf32>
    %225 = vector.broadcast %18 : vector<24x1xf32> to vector<24x256xf32>
    %226 = arith.addf %224, %225 : vector<24x256xf32>
    %cst_65 = arith.constant 0.000000e+00 : f32
    %227 = vector.broadcast %cst_65 : f32 to vector<24x256xf32>
    %228 = arith.maximumf %226, %227 : vector<24x256xf32>
    %229 = vector.broadcast %20 : vector<48x1xf32> to vector<48x256xf32>
    %230 = arith.mulf %44, %229 : vector<48x256xf32>
    %231 = arith.truncf %228 : vector<24x256xf32> to vector<24x256xbf16>
    %cst_66 = arith.constant dense<0.000000e+00> : vector<48x256xf32>
    %232 = tpu.matmul %11, %231, %cst_66 {dimension_numbers = #tpu.dot_dimension_numbers<[1], [0], [0], [1], [0, 0, 1, 1], [], []>} : vector<48x24xbf16>, vector<24x256xbf16>, vector<48x256xf32> -> vector<48x256xf32>
    %233 = arith.addf %230, %232 : vector<48x256xf32>
    %234 = vector.broadcast %19 : vector<48x1xf32> to vector<48x256xf32>
    %235 = arith.addf %233, %234 : vector<48x256xf32>
    %cst_67 = arith.constant 0.000000e+00 : f32
    %236 = vector.broadcast %cst_67 : f32 to vector<48x256xf32>
    %237 = arith.maximumf %235, %236 : vector<48x256xf32>
    %238 = arith.truncf %59 : vector<48x256xf32> to vector<48x256xbf16>
    %cst_68 = arith.constant dense<0.000000e+00> : vector<24x256xf32>
    %239 = tpu.matmul %1, %238, %cst_68 {dimension_numbers = #tpu.dot_dimension_numbers<[1], [0], [0], [1], [0, 0, 1, 1], [], []>} : vector<24x48xbf16>, vector<48x256xbf16>, vector<24x256xf32> -> vector<24x256xf32>
    %240 = vector.broadcast %18 : vector<24x1xf32> to vector<24x256xf32>
    %241 = arith.addf %239, %240 : vector<24x256xf32>
    %cst_69 = arith.constant 0.000000e+00 : f32
    %242 = vector.broadcast %cst_69 : f32 to vector<24x256xf32>
    %243 = arith.maximumf %241, %242 : vector<24x256xf32>
    %244 = vector.broadcast %20 : vector<48x1xf32> to vector<48x256xf32>
    %245 = arith.mulf %59, %244 : vector<48x256xf32>
    %246 = arith.truncf %243 : vector<24x256xf32> to vector<24x256xbf16>
    %cst_70 = arith.constant dense<0.000000e+00> : vector<48x256xf32>
    %247 = tpu.matmul %11, %246, %cst_70 {dimension_numbers = #tpu.dot_dimension_numbers<[1], [0], [0], [1], [0, 0, 1, 1], [], []>} : vector<48x24xbf16>, vector<24x256xbf16>, vector<48x256xf32> -> vector<48x256xf32>
    %248 = arith.addf %245, %247 : vector<48x256xf32>
    %249 = vector.broadcast %19 : vector<48x1xf32> to vector<48x256xf32>
    %250 = arith.addf %248, %249 : vector<48x256xf32>
    %cst_71 = arith.constant 0.000000e+00 : f32
    %251 = vector.broadcast %cst_71 : f32 to vector<48x256xf32>
    %252 = arith.maximumf %250, %251 : vector<48x256xf32>
    %253 = arith.truncf %237 : vector<48x256xf32> to vector<48x256xbf16>
    %254 = arith.truncf %252 : vector<48x256xf32> to vector<48x256xbf16>
    %cst_72 = arith.constant dense<0.000000e+00> : vector<96x256xf32>
    %255 = tpu.matmul %3, %253, %cst_72 {dimension_numbers = #tpu.dot_dimension_numbers<[1], [0], [0], [1], [0, 0, 1, 1], [], []>} : vector<96x48xbf16>, vector<48x256xbf16>, vector<96x256xf32> -> vector<96x256xf32>
    %256 = vector.broadcast %21 : vector<96x1xf32> to vector<96x256xf32>
    %257 = arith.addf %255, %256 : vector<96x256xf32>
    %cst_73 = arith.constant dense<0.000000e+00> : vector<96x256xf32>
    %258 = tpu.matmul %3, %254, %cst_73 {dimension_numbers = #tpu.dot_dimension_numbers<[1], [0], [0], [1], [0, 0, 1, 1], [], []>} : vector<96x48xbf16>, vector<48x256xbf16>, vector<96x256xf32> -> vector<96x256xf32>
    %259 = vector.broadcast %21 : vector<96x1xf32> to vector<96x256xf32>
    %260 = arith.addf %258, %259 : vector<96x256xf32>
    %261 = vector.extract_strided_slice %257 {offsets = [0, 0], sizes = [24, 256], strides = [1, 1]} : vector<96x256xf32> to vector<24x256xf32>
    %262 = vector.extract_strided_slice %257 {offsets = [24, 0], sizes = [24, 256], strides = [1, 1]} : vector<96x256xf32> to vector<24x256xf32>
    %263 = vector.extract_strided_slice %260 {offsets = [0, 0], sizes = [24, 256], strides = [1, 1]} : vector<96x256xf32> to vector<24x256xf32>
    %264 = vector.extract_strided_slice %260 {offsets = [24, 0], sizes = [24, 256], strides = [1, 1]} : vector<96x256xf32> to vector<24x256xf32>
    %265 = vector.extract_strided_slice %257 {offsets = [48, 0], sizes = [24, 256], strides = [1, 1]} : vector<96x256xf32> to vector<24x256xf32>
    %266 = vector.extract_strided_slice %257 {offsets = [72, 0], sizes = [24, 256], strides = [1, 1]} : vector<96x256xf32> to vector<24x256xf32>
    %267 = vector.extract_strided_slice %260 {offsets = [48, 0], sizes = [24, 256], strides = [1, 1]} : vector<96x256xf32> to vector<24x256xf32>
    %268 = vector.extract_strided_slice %260 {offsets = [72, 0], sizes = [24, 256], strides = [1, 1]} : vector<96x256xf32> to vector<24x256xf32>
    %269 = arith.truncf %222 : vector<48x256xf32> to vector<48x256xbf16>
    %cst_74 = arith.constant dense<0.000000e+00> : vector<48x256xf32>
    %270 = tpu.matmul %5, %269, %cst_74 {dimension_numbers = #tpu.dot_dimension_numbers<[1], [0], [0], [1], [0, 0, 1, 1], [], []>} : vector<48x48xbf16>, vector<48x256xbf16>, vector<48x256xf32> -> vector<48x256xf32>
    %271 = vector.broadcast %22 : vector<48x1xf32> to vector<48x256xf32>
    %272 = arith.addf %270, %271 : vector<48x256xf32>
    %273 = vector.extract_strided_slice %272 {offsets = [0, 0], sizes = [24, 256], strides = [1, 1]} : vector<48x256xf32> to vector<24x256xf32>
    %274 = arith.mulf %273, %261 : vector<24x256xf32>
    %cst_75 = arith.constant dense<0.000000e+00> : vector<256xf32>
    %275 = vector.multi_reduction <add>, %274, %cst_75 [0] : vector<24x256xf32> to vector<256xf32>
    %276 = vector.shape_cast %275 : vector<256xf32> to vector<1x256xf32>
    %277 = arith.mulf %273, %262 : vector<24x256xf32>
    %cst_76 = arith.constant dense<0.000000e+00> : vector<256xf32>
    %278 = vector.multi_reduction <add>, %277, %cst_76 [0] : vector<24x256xf32> to vector<256xf32>
    %279 = vector.shape_cast %278 : vector<256xf32> to vector<1x256xf32>
    %280 = arith.mulf %273, %263 : vector<24x256xf32>
    %cst_77 = arith.constant dense<0.000000e+00> : vector<256xf32>
    %281 = vector.multi_reduction <add>, %280, %cst_77 [0] : vector<24x256xf32> to vector<256xf32>
    %282 = vector.shape_cast %281 : vector<256xf32> to vector<1x256xf32>
    %283 = arith.mulf %273, %264 : vector<24x256xf32>
    %cst_78 = arith.constant dense<0.000000e+00> : vector<256xf32>
    %284 = vector.multi_reduction <add>, %283, %cst_78 [0] : vector<24x256xf32> to vector<256xf32>
    %285 = vector.shape_cast %284 : vector<256xf32> to vector<1x256xf32>
    %286 = arith.maximumf %276, %279 : vector<1x256xf32>
    %287 = arith.maximumf %282, %285 : vector<1x256xf32>
    %288 = arith.maximumf %286, %287 : vector<1x256xf32>
    %289 = arith.subf %276, %288 : vector<1x256xf32>
    %290 = math.exp %289 : vector<1x256xf32>
    %291 = arith.subf %279, %288 : vector<1x256xf32>
    %292 = math.exp %291 : vector<1x256xf32>
    %293 = arith.subf %282, %288 : vector<1x256xf32>
    %294 = math.exp %293 : vector<1x256xf32>
    %295 = arith.subf %285, %288 : vector<1x256xf32>
    %296 = math.exp %295 : vector<1x256xf32>
    %297 = arith.addf %290, %292 : vector<1x256xf32>
    %298 = arith.addf %297, %294 : vector<1x256xf32>
    %299 = arith.addf %298, %296 : vector<1x256xf32>
    %300 = tpu.reciprocal %299 {approx = true} : vector<1x256xf32> -> vector<1x256xf32>
    %301 = arith.mulf %290, %300 : vector<1x256xf32>
    %302 = arith.mulf %292, %300 : vector<1x256xf32>
    %303 = arith.mulf %294, %300 : vector<1x256xf32>
    %304 = arith.mulf %296, %300 : vector<1x256xf32>
    %305 = vector.broadcast %301 : vector<1x256xf32> to vector<24x256xf32>
    %306 = arith.mulf %305, %265 : vector<24x256xf32>
    %307 = vector.broadcast %302 : vector<1x256xf32> to vector<24x256xf32>
    %308 = arith.mulf %307, %266 : vector<24x256xf32>
    %309 = arith.addf %306, %308 : vector<24x256xf32>
    %310 = vector.broadcast %303 : vector<1x256xf32> to vector<24x256xf32>
    %311 = arith.mulf %310, %267 : vector<24x256xf32>
    %312 = arith.addf %309, %311 : vector<24x256xf32>
    %313 = vector.broadcast %304 : vector<1x256xf32> to vector<24x256xf32>
    %314 = arith.mulf %313, %268 : vector<24x256xf32>
    %315 = arith.addf %312, %314 : vector<24x256xf32>
    %316 = vector.extract_strided_slice %272 {offsets = [24, 0], sizes = [24, 256], strides = [1, 1]} : vector<48x256xf32> to vector<24x256xf32>
    %317 = arith.mulf %316, %261 : vector<24x256xf32>
    %cst_79 = arith.constant dense<0.000000e+00> : vector<256xf32>
    %318 = vector.multi_reduction <add>, %317, %cst_79 [0] : vector<24x256xf32> to vector<256xf32>
    %319 = vector.shape_cast %318 : vector<256xf32> to vector<1x256xf32>
    %320 = arith.mulf %316, %262 : vector<24x256xf32>
    %cst_80 = arith.constant dense<0.000000e+00> : vector<256xf32>
    %321 = vector.multi_reduction <add>, %320, %cst_80 [0] : vector<24x256xf32> to vector<256xf32>
    %322 = vector.shape_cast %321 : vector<256xf32> to vector<1x256xf32>
    %323 = arith.mulf %316, %263 : vector<24x256xf32>
    %cst_81 = arith.constant dense<0.000000e+00> : vector<256xf32>
    %324 = vector.multi_reduction <add>, %323, %cst_81 [0] : vector<24x256xf32> to vector<256xf32>
    %325 = vector.shape_cast %324 : vector<256xf32> to vector<1x256xf32>
    %326 = arith.mulf %316, %264 : vector<24x256xf32>
    %cst_82 = arith.constant dense<0.000000e+00> : vector<256xf32>
    %327 = vector.multi_reduction <add>, %326, %cst_82 [0] : vector<24x256xf32> to vector<256xf32>
    %328 = vector.shape_cast %327 : vector<256xf32> to vector<1x256xf32>
    %329 = arith.maximumf %319, %322 : vector<1x256xf32>
    %330 = arith.maximumf %325, %328 : vector<1x256xf32>
    %331 = arith.maximumf %329, %330 : vector<1x256xf32>
    %332 = arith.subf %319, %331 : vector<1x256xf32>
    %333 = math.exp %332 : vector<1x256xf32>
    %334 = arith.subf %322, %331 : vector<1x256xf32>
    %335 = math.exp %334 : vector<1x256xf32>
    %336 = arith.subf %325, %331 : vector<1x256xf32>
    %337 = math.exp %336 : vector<1x256xf32>
    %338 = arith.subf %328, %331 : vector<1x256xf32>
    %339 = math.exp %338 : vector<1x256xf32>
    %340 = arith.addf %333, %335 : vector<1x256xf32>
    %341 = arith.addf %340, %337 : vector<1x256xf32>
    %342 = arith.addf %341, %339 : vector<1x256xf32>
    %343 = tpu.reciprocal %342 {approx = true} : vector<1x256xf32> -> vector<1x256xf32>
    %344 = arith.mulf %333, %343 : vector<1x256xf32>
    %345 = arith.mulf %335, %343 : vector<1x256xf32>
    %346 = arith.mulf %337, %343 : vector<1x256xf32>
    %347 = arith.mulf %339, %343 : vector<1x256xf32>
    %348 = vector.broadcast %344 : vector<1x256xf32> to vector<24x256xf32>
    %349 = arith.mulf %348, %265 : vector<24x256xf32>
    %350 = vector.broadcast %345 : vector<1x256xf32> to vector<24x256xf32>
    %351 = arith.mulf %350, %266 : vector<24x256xf32>
    %352 = arith.addf %349, %351 : vector<24x256xf32>
    %353 = vector.broadcast %346 : vector<1x256xf32> to vector<24x256xf32>
    %354 = arith.mulf %353, %267 : vector<24x256xf32>
    %355 = arith.addf %352, %354 : vector<24x256xf32>
    %356 = vector.broadcast %347 : vector<1x256xf32> to vector<24x256xf32>
    %357 = arith.mulf %356, %268 : vector<24x256xf32>
    %358 = arith.addf %355, %357 : vector<24x256xf32>
    %359 = arith.truncf %315 : vector<24x256xf32> to vector<24x256xbf16>
    %cst_83 = arith.constant dense<0.000000e+00> : vector<24x256xf32>
    %360 = tpu.matmul %13, %359, %cst_83 {dimension_numbers = #tpu.dot_dimension_numbers<[1], [0], [0], [1], [0, 0, 1, 1], [], []>} : vector<24x24xbf16>, vector<24x256xbf16>, vector<24x256xf32> -> vector<24x256xf32>
    %361 = arith.truncf %358 : vector<24x256xf32> to vector<24x256xbf16>
    %cst_84 = arith.constant dense<0.000000e+00> : vector<24x256xf32>
    %362 = tpu.matmul %15, %361, %cst_84 {dimension_numbers = #tpu.dot_dimension_numbers<[1], [0], [0], [1], [0, 0, 1, 1], [], []>} : vector<24x24xbf16>, vector<24x256xbf16>, vector<24x256xf32> -> vector<24x256xf32>
    %363 = arith.addf %360, %362 : vector<24x256xf32>
    %364 = vector.broadcast %24 : vector<24x1xf32> to vector<24x256xf32>
    %365 = arith.addf %363, %364 : vector<24x256xf32>
    %cst_85 = arith.constant 5.000000e-01 : f32
    %366 = vector.broadcast %cst_85 : f32 to vector<24x256xf32>
    %367 = arith.mulf %366, %365 : vector<24x256xf32>
    %cst_86 = arith.constant 4.471500e-02 : f32
    %368 = vector.broadcast %cst_86 : f32 to vector<24x256xf32>
    %369 = arith.mulf %368, %365 : vector<24x256xf32>
    %370 = arith.mulf %369, %365 : vector<24x256xf32>
    %371 = arith.mulf %370, %365 : vector<24x256xf32>
    %372 = arith.addf %365, %371 : vector<24x256xf32>
    %cst_87 = arith.constant 0.797884583 : f32
    %373 = vector.broadcast %cst_87 : f32 to vector<24x256xf32>
    %374 = arith.mulf %373, %372 : vector<24x256xf32>
    %375 = math.tanh %374 : vector<24x256xf32>
    %cst_88 = arith.constant 1.000000e+00 : f32
    %376 = vector.broadcast %cst_88 : f32 to vector<24x256xf32>
    %377 = arith.addf %376, %375 : vector<24x256xf32>
    %378 = arith.mulf %367, %377 : vector<24x256xf32>
    %379 = arith.truncf %378 : vector<24x256xf32> to vector<24x256xbf16>
    %cst_89 = arith.constant dense<0.000000e+00> : vector<48x256xf32>
    %380 = tpu.matmul %17, %379, %cst_89 {dimension_numbers = #tpu.dot_dimension_numbers<[1], [0], [0], [1], [0, 0, 1, 1], [], []>} : vector<48x24xbf16>, vector<24x256xbf16>, vector<48x256xf32> -> vector<48x256xf32>
    %381 = vector.broadcast %25 : vector<48x1xf32> to vector<48x256xf32>
    %382 = arith.addf %380, %381 : vector<48x256xf32>
    %383 = arith.truncf %237 : vector<48x256xf32> to vector<48x256xbf16>
    %cst_90 = arith.constant dense<0.000000e+00> : vector<24x256xf32>
    %384 = tpu.matmul %1, %383, %cst_90 {dimension_numbers = #tpu.dot_dimension_numbers<[1], [0], [0], [1], [0, 0, 1, 1], [], []>} : vector<24x48xbf16>, vector<48x256xbf16>, vector<24x256xf32> -> vector<24x256xf32>
    %385 = vector.broadcast %18 : vector<24x1xf32> to vector<24x256xf32>
    %386 = arith.addf %384, %385 : vector<24x256xf32>
    %cst_91 = arith.constant 0.000000e+00 : f32
    %387 = vector.broadcast %cst_91 : f32 to vector<24x256xf32>
    %388 = arith.maximumf %386, %387 : vector<24x256xf32>
    %389 = vector.broadcast %20 : vector<48x1xf32> to vector<48x256xf32>
    %390 = arith.mulf %237, %389 : vector<48x256xf32>
    %391 = arith.truncf %388 : vector<24x256xf32> to vector<24x256xbf16>
    %cst_92 = arith.constant dense<0.000000e+00> : vector<48x256xf32>
    %392 = tpu.matmul %11, %391, %cst_92 {dimension_numbers = #tpu.dot_dimension_numbers<[1], [0], [0], [1], [0, 0, 1, 1], [], []>} : vector<48x24xbf16>, vector<24x256xbf16>, vector<48x256xf32> -> vector<48x256xf32>
    %393 = arith.addf %390, %392 : vector<48x256xf32>
    %394 = vector.broadcast %19 : vector<48x1xf32> to vector<48x256xf32>
    %395 = arith.addf %393, %394 : vector<48x256xf32>
    %cst_93 = arith.constant 0.000000e+00 : f32
    %396 = vector.broadcast %cst_93 : f32 to vector<48x256xf32>
    %397 = arith.maximumf %395, %396 : vector<48x256xf32>
    %398 = arith.truncf %252 : vector<48x256xf32> to vector<48x256xbf16>
    %cst_94 = arith.constant dense<0.000000e+00> : vector<24x256xf32>
    %399 = tpu.matmul %1, %398, %cst_94 {dimension_numbers = #tpu.dot_dimension_numbers<[1], [0], [0], [1], [0, 0, 1, 1], [], []>} : vector<24x48xbf16>, vector<48x256xbf16>, vector<24x256xf32> -> vector<24x256xf32>
    %400 = vector.broadcast %18 : vector<24x1xf32> to vector<24x256xf32>
    %401 = arith.addf %399, %400 : vector<24x256xf32>
    %cst_95 = arith.constant 0.000000e+00 : f32
    %402 = vector.broadcast %cst_95 : f32 to vector<24x256xf32>
    %403 = arith.maximumf %401, %402 : vector<24x256xf32>
    %404 = vector.broadcast %20 : vector<48x1xf32> to vector<48x256xf32>
    %405 = arith.mulf %252, %404 : vector<48x256xf32>
    %406 = arith.truncf %403 : vector<24x256xf32> to vector<24x256xbf16>
    %cst_96 = arith.constant dense<0.000000e+00> : vector<48x256xf32>
    %407 = tpu.matmul %11, %406, %cst_96 {dimension_numbers = #tpu.dot_dimension_numbers<[1], [0], [0], [1], [0, 0, 1, 1], [], []>} : vector<48x24xbf16>, vector<24x256xbf16>, vector<48x256xf32> -> vector<48x256xf32>
    %408 = arith.addf %405, %407 : vector<48x256xf32>
    %409 = vector.broadcast %19 : vector<48x1xf32> to vector<48x256xf32>
    %410 = arith.addf %408, %409 : vector<48x256xf32>
    %cst_97 = arith.constant 0.000000e+00 : f32
    %411 = vector.broadcast %cst_97 : f32 to vector<48x256xf32>
    %412 = arith.maximumf %410, %411 : vector<48x256xf32>
    %413 = arith.truncf %397 : vector<48x256xf32> to vector<48x256xbf16>
    %414 = arith.truncf %412 : vector<48x256xf32> to vector<48x256xbf16>
    %cst_98 = arith.constant dense<0.000000e+00> : vector<96x256xf32>
    %415 = tpu.matmul %3, %413, %cst_98 {dimension_numbers = #tpu.dot_dimension_numbers<[1], [0], [0], [1], [0, 0, 1, 1], [], []>} : vector<96x48xbf16>, vector<48x256xbf16>, vector<96x256xf32> -> vector<96x256xf32>
    %416 = vector.broadcast %21 : vector<96x1xf32> to vector<96x256xf32>
    %417 = arith.addf %415, %416 : vector<96x256xf32>
    %cst_99 = arith.constant dense<0.000000e+00> : vector<96x256xf32>
    %418 = tpu.matmul %3, %414, %cst_99 {dimension_numbers = #tpu.dot_dimension_numbers<[1], [0], [0], [1], [0, 0, 1, 1], [], []>} : vector<96x48xbf16>, vector<48x256xbf16>, vector<96x256xf32> -> vector<96x256xf32>
    %419 = vector.broadcast %21 : vector<96x1xf32> to vector<96x256xf32>
    %420 = arith.addf %418, %419 : vector<96x256xf32>
    %421 = vector.extract_strided_slice %417 {offsets = [0, 0], sizes = [24, 256], strides = [1, 1]} : vector<96x256xf32> to vector<24x256xf32>
    %422 = vector.extract_strided_slice %417 {offsets = [24, 0], sizes = [24, 256], strides = [1, 1]} : vector<96x256xf32> to vector<24x256xf32>
    %423 = vector.extract_strided_slice %420 {offsets = [0, 0], sizes = [24, 256], strides = [1, 1]} : vector<96x256xf32> to vector<24x256xf32>
    %424 = vector.extract_strided_slice %420 {offsets = [24, 0], sizes = [24, 256], strides = [1, 1]} : vector<96x256xf32> to vector<24x256xf32>
    %425 = vector.extract_strided_slice %417 {offsets = [48, 0], sizes = [24, 256], strides = [1, 1]} : vector<96x256xf32> to vector<24x256xf32>
    %426 = vector.extract_strided_slice %417 {offsets = [72, 0], sizes = [24, 256], strides = [1, 1]} : vector<96x256xf32> to vector<24x256xf32>
    %427 = vector.extract_strided_slice %420 {offsets = [48, 0], sizes = [24, 256], strides = [1, 1]} : vector<96x256xf32> to vector<24x256xf32>
    %428 = vector.extract_strided_slice %420 {offsets = [72, 0], sizes = [24, 256], strides = [1, 1]} : vector<96x256xf32> to vector<24x256xf32>
    %429 = arith.truncf %382 : vector<48x256xf32> to vector<48x256xbf16>
    %cst_100 = arith.constant dense<0.000000e+00> : vector<48x256xf32>
    %430 = tpu.matmul %5, %429, %cst_100 {dimension_numbers = #tpu.dot_dimension_numbers<[1], [0], [0], [1], [0, 0, 1, 1], [], []>} : vector<48x48xbf16>, vector<48x256xbf16>, vector<48x256xf32> -> vector<48x256xf32>
    %431 = vector.broadcast %22 : vector<48x1xf32> to vector<48x256xf32>
    %432 = arith.addf %430, %431 : vector<48x256xf32>
    %433 = vector.extract_strided_slice %432 {offsets = [0, 0], sizes = [24, 256], strides = [1, 1]} : vector<48x256xf32> to vector<24x256xf32>
    %434 = arith.mulf %433, %421 : vector<24x256xf32>
    %cst_101 = arith.constant dense<0.000000e+00> : vector<256xf32>
    %435 = vector.multi_reduction <add>, %434, %cst_101 [0] : vector<24x256xf32> to vector<256xf32>
    %436 = vector.shape_cast %435 : vector<256xf32> to vector<1x256xf32>
    %437 = arith.mulf %433, %422 : vector<24x256xf32>
    %cst_102 = arith.constant dense<0.000000e+00> : vector<256xf32>
    %438 = vector.multi_reduction <add>, %437, %cst_102 [0] : vector<24x256xf32> to vector<256xf32>
    %439 = vector.shape_cast %438 : vector<256xf32> to vector<1x256xf32>
    %440 = arith.mulf %433, %423 : vector<24x256xf32>
    %cst_103 = arith.constant dense<0.000000e+00> : vector<256xf32>
    %441 = vector.multi_reduction <add>, %440, %cst_103 [0] : vector<24x256xf32> to vector<256xf32>
    %442 = vector.shape_cast %441 : vector<256xf32> to vector<1x256xf32>
    %443 = arith.mulf %433, %424 : vector<24x256xf32>
    %cst_104 = arith.constant dense<0.000000e+00> : vector<256xf32>
    %444 = vector.multi_reduction <add>, %443, %cst_104 [0] : vector<24x256xf32> to vector<256xf32>
    %445 = vector.shape_cast %444 : vector<256xf32> to vector<1x256xf32>
    %446 = arith.maximumf %436, %439 : vector<1x256xf32>
    %447 = arith.maximumf %442, %445 : vector<1x256xf32>
    %448 = arith.maximumf %446, %447 : vector<1x256xf32>
    %449 = arith.subf %436, %448 : vector<1x256xf32>
    %450 = math.exp %449 : vector<1x256xf32>
    %451 = arith.subf %439, %448 : vector<1x256xf32>
    %452 = math.exp %451 : vector<1x256xf32>
    %453 = arith.subf %442, %448 : vector<1x256xf32>
    %454 = math.exp %453 : vector<1x256xf32>
    %455 = arith.subf %445, %448 : vector<1x256xf32>
    %456 = math.exp %455 : vector<1x256xf32>
    %457 = arith.addf %450, %452 : vector<1x256xf32>
    %458 = arith.addf %457, %454 : vector<1x256xf32>
    %459 = arith.addf %458, %456 : vector<1x256xf32>
    %460 = tpu.reciprocal %459 {approx = true} : vector<1x256xf32> -> vector<1x256xf32>
    %461 = arith.mulf %450, %460 : vector<1x256xf32>
    %462 = arith.mulf %452, %460 : vector<1x256xf32>
    %463 = arith.mulf %454, %460 : vector<1x256xf32>
    %464 = arith.mulf %456, %460 : vector<1x256xf32>
    %465 = vector.broadcast %461 : vector<1x256xf32> to vector<24x256xf32>
    %466 = arith.mulf %465, %425 : vector<24x256xf32>
    %467 = vector.broadcast %462 : vector<1x256xf32> to vector<24x256xf32>
    %468 = arith.mulf %467, %426 : vector<24x256xf32>
    %469 = arith.addf %466, %468 : vector<24x256xf32>
    %470 = vector.broadcast %463 : vector<1x256xf32> to vector<24x256xf32>
    %471 = arith.mulf %470, %427 : vector<24x256xf32>
    %472 = arith.addf %469, %471 : vector<24x256xf32>
    %473 = vector.broadcast %464 : vector<1x256xf32> to vector<24x256xf32>
    %474 = arith.mulf %473, %428 : vector<24x256xf32>
    %475 = arith.addf %472, %474 : vector<24x256xf32>
    %476 = vector.extract_strided_slice %432 {offsets = [24, 0], sizes = [24, 256], strides = [1, 1]} : vector<48x256xf32> to vector<24x256xf32>
    %477 = arith.mulf %476, %421 : vector<24x256xf32>
    %cst_105 = arith.constant dense<0.000000e+00> : vector<256xf32>
    %478 = vector.multi_reduction <add>, %477, %cst_105 [0] : vector<24x256xf32> to vector<256xf32>
    %479 = vector.shape_cast %478 : vector<256xf32> to vector<1x256xf32>
    %480 = arith.mulf %476, %422 : vector<24x256xf32>
    %cst_106 = arith.constant dense<0.000000e+00> : vector<256xf32>
    %481 = vector.multi_reduction <add>, %480, %cst_106 [0] : vector<24x256xf32> to vector<256xf32>
    %482 = vector.shape_cast %481 : vector<256xf32> to vector<1x256xf32>
    %483 = arith.mulf %476, %423 : vector<24x256xf32>
    %cst_107 = arith.constant dense<0.000000e+00> : vector<256xf32>
    %484 = vector.multi_reduction <add>, %483, %cst_107 [0] : vector<24x256xf32> to vector<256xf32>
    %485 = vector.shape_cast %484 : vector<256xf32> to vector<1x256xf32>
    %486 = arith.mulf %476, %424 : vector<24x256xf32>
    %cst_108 = arith.constant dense<0.000000e+00> : vector<256xf32>
    %487 = vector.multi_reduction <add>, %486, %cst_108 [0] : vector<24x256xf32> to vector<256xf32>
    %488 = vector.shape_cast %487 : vector<256xf32> to vector<1x256xf32>
    %489 = arith.maximumf %479, %482 : vector<1x256xf32>
    %490 = arith.maximumf %485, %488 : vector<1x256xf32>
    %491 = arith.maximumf %489, %490 : vector<1x256xf32>
    %492 = arith.subf %479, %491 : vector<1x256xf32>
    %493 = math.exp %492 : vector<1x256xf32>
    %494 = arith.subf %482, %491 : vector<1x256xf32>
    %495 = math.exp %494 : vector<1x256xf32>
    %496 = arith.subf %485, %491 : vector<1x256xf32>
    %497 = math.exp %496 : vector<1x256xf32>
    %498 = arith.subf %488, %491 : vector<1x256xf32>
    %499 = math.exp %498 : vector<1x256xf32>
    %500 = arith.addf %493, %495 : vector<1x256xf32>
    %501 = arith.addf %500, %497 : vector<1x256xf32>
    %502 = arith.addf %501, %499 : vector<1x256xf32>
    %503 = tpu.reciprocal %502 {approx = true} : vector<1x256xf32> -> vector<1x256xf32>
    %504 = arith.mulf %493, %503 : vector<1x256xf32>
    %505 = arith.mulf %495, %503 : vector<1x256xf32>
    %506 = arith.mulf %497, %503 : vector<1x256xf32>
    %507 = arith.mulf %499, %503 : vector<1x256xf32>
    %508 = vector.broadcast %504 : vector<1x256xf32> to vector<24x256xf32>
    %509 = arith.mulf %508, %425 : vector<24x256xf32>
    %510 = vector.broadcast %505 : vector<1x256xf32> to vector<24x256xf32>
    %511 = arith.mulf %510, %426 : vector<24x256xf32>
    %512 = arith.addf %509, %511 : vector<24x256xf32>
    %513 = vector.broadcast %506 : vector<1x256xf32> to vector<24x256xf32>
    %514 = arith.mulf %513, %427 : vector<24x256xf32>
    %515 = arith.addf %512, %514 : vector<24x256xf32>
    %516 = vector.broadcast %507 : vector<1x256xf32> to vector<24x256xf32>
    %517 = arith.mulf %516, %428 : vector<24x256xf32>
    %518 = arith.addf %515, %517 : vector<24x256xf32>
    %519 = arith.truncf %475 : vector<24x256xf32> to vector<24x256xbf16>
    %cst_109 = arith.constant dense<0.000000e+00> : vector<24x256xf32>
    %520 = tpu.matmul %13, %519, %cst_109 {dimension_numbers = #tpu.dot_dimension_numbers<[1], [0], [0], [1], [0, 0, 1, 1], [], []>} : vector<24x24xbf16>, vector<24x256xbf16>, vector<24x256xf32> -> vector<24x256xf32>
    %521 = arith.truncf %518 : vector<24x256xf32> to vector<24x256xbf16>
    %cst_110 = arith.constant dense<0.000000e+00> : vector<24x256xf32>
    %522 = tpu.matmul %15, %521, %cst_110 {dimension_numbers = #tpu.dot_dimension_numbers<[1], [0], [0], [1], [0, 0, 1, 1], [], []>} : vector<24x24xbf16>, vector<24x256xbf16>, vector<24x256xf32> -> vector<24x256xf32>
    %523 = arith.addf %520, %522 : vector<24x256xf32>
    %524 = vector.broadcast %24 : vector<24x1xf32> to vector<24x256xf32>
    %525 = arith.addf %523, %524 : vector<24x256xf32>
    %cst_111 = arith.constant 5.000000e-01 : f32
    %526 = vector.broadcast %cst_111 : f32 to vector<24x256xf32>
    %527 = arith.mulf %526, %525 : vector<24x256xf32>
    %cst_112 = arith.constant 4.471500e-02 : f32
    %528 = vector.broadcast %cst_112 : f32 to vector<24x256xf32>
    %529 = arith.mulf %528, %525 : vector<24x256xf32>
    %530 = arith.mulf %529, %525 : vector<24x256xf32>
    %531 = arith.mulf %530, %525 : vector<24x256xf32>
    %532 = arith.addf %525, %531 : vector<24x256xf32>
    %cst_113 = arith.constant 0.797884583 : f32
    %533 = vector.broadcast %cst_113 : f32 to vector<24x256xf32>
    %534 = arith.mulf %533, %532 : vector<24x256xf32>
    %535 = math.tanh %534 : vector<24x256xf32>
    %cst_114 = arith.constant 1.000000e+00 : f32
    %536 = vector.broadcast %cst_114 : f32 to vector<24x256xf32>
    %537 = arith.addf %536, %535 : vector<24x256xf32>
    %538 = arith.mulf %527, %537 : vector<24x256xf32>
    %539 = arith.truncf %538 : vector<24x256xf32> to vector<24x256xbf16>
    %cst_115 = arith.constant dense<0.000000e+00> : vector<48x256xf32>
    %540 = tpu.matmul %17, %539, %cst_115 {dimension_numbers = #tpu.dot_dimension_numbers<[1], [0], [0], [1], [0, 0, 1, 1], [], []>} : vector<48x24xbf16>, vector<24x256xbf16>, vector<48x256xf32> -> vector<48x256xf32>
    %541 = vector.broadcast %25 : vector<48x1xf32> to vector<48x256xf32>
    %542 = arith.addf %540, %541 : vector<48x256xf32>
    %543 = arith.truncf %397 : vector<48x256xf32> to vector<48x256xbf16>
    %cst_116 = arith.constant dense<0.000000e+00> : vector<24x256xf32>
    %544 = tpu.matmul %1, %543, %cst_116 {dimension_numbers = #tpu.dot_dimension_numbers<[1], [0], [0], [1], [0, 0, 1, 1], [], []>} : vector<24x48xbf16>, vector<48x256xbf16>, vector<24x256xf32> -> vector<24x256xf32>
    %545 = vector.broadcast %18 : vector<24x1xf32> to vector<24x256xf32>
    %546 = arith.addf %544, %545 : vector<24x256xf32>
    %cst_117 = arith.constant 0.000000e+00 : f32
    %547 = vector.broadcast %cst_117 : f32 to vector<24x256xf32>
    %548 = arith.maximumf %546, %547 : vector<24x256xf32>
    %549 = vector.broadcast %20 : vector<48x1xf32> to vector<48x256xf32>
    %550 = arith.mulf %397, %549 : vector<48x256xf32>
    %551 = arith.truncf %548 : vector<24x256xf32> to vector<24x256xbf16>
    %cst_118 = arith.constant dense<0.000000e+00> : vector<48x256xf32>
    %552 = tpu.matmul %11, %551, %cst_118 {dimension_numbers = #tpu.dot_dimension_numbers<[1], [0], [0], [1], [0, 0, 1, 1], [], []>} : vector<48x24xbf16>, vector<24x256xbf16>, vector<48x256xf32> -> vector<48x256xf32>
    %553 = arith.addf %550, %552 : vector<48x256xf32>
    %554 = vector.broadcast %19 : vector<48x1xf32> to vector<48x256xf32>
    %555 = arith.addf %553, %554 : vector<48x256xf32>
    %cst_119 = arith.constant 0.000000e+00 : f32
    %556 = vector.broadcast %cst_119 : f32 to vector<48x256xf32>
    %557 = arith.maximumf %555, %556 : vector<48x256xf32>
    %558 = arith.truncf %412 : vector<48x256xf32> to vector<48x256xbf16>
    %cst_120 = arith.constant dense<0.000000e+00> : vector<24x256xf32>
    %559 = tpu.matmul %1, %558, %cst_120 {dimension_numbers = #tpu.dot_dimension_numbers<[1], [0], [0], [1], [0, 0, 1, 1], [], []>} : vector<24x48xbf16>, vector<48x256xbf16>, vector<24x256xf32> -> vector<24x256xf32>
    %560 = vector.broadcast %18 : vector<24x1xf32> to vector<24x256xf32>
    %561 = arith.addf %559, %560 : vector<24x256xf32>
    %cst_121 = arith.constant 0.000000e+00 : f32
    %562 = vector.broadcast %cst_121 : f32 to vector<24x256xf32>
    %563 = arith.maximumf %561, %562 : vector<24x256xf32>
    %564 = vector.broadcast %20 : vector<48x1xf32> to vector<48x256xf32>
    %565 = arith.mulf %412, %564 : vector<48x256xf32>
    %566 = arith.truncf %563 : vector<24x256xf32> to vector<24x256xbf16>
    %cst_122 = arith.constant dense<0.000000e+00> : vector<48x256xf32>
    %567 = tpu.matmul %11, %566, %cst_122 {dimension_numbers = #tpu.dot_dimension_numbers<[1], [0], [0], [1], [0, 0, 1, 1], [], []>} : vector<48x24xbf16>, vector<24x256xbf16>, vector<48x256xf32> -> vector<48x256xf32>
    %568 = arith.addf %565, %567 : vector<48x256xf32>
    %569 = vector.broadcast %19 : vector<48x1xf32> to vector<48x256xf32>
    %570 = arith.addf %568, %569 : vector<48x256xf32>
    %cst_123 = arith.constant 0.000000e+00 : f32
    %571 = vector.broadcast %cst_123 : f32 to vector<48x256xf32>
    %572 = arith.maximumf %570, %571 : vector<48x256xf32>
    %573 = arith.truncf %557 : vector<48x256xf32> to vector<48x256xbf16>
    %574 = arith.truncf %572 : vector<48x256xf32> to vector<48x256xbf16>
    %cst_124 = arith.constant dense<0.000000e+00> : vector<96x256xf32>
    %575 = tpu.matmul %3, %573, %cst_124 {dimension_numbers = #tpu.dot_dimension_numbers<[1], [0], [0], [1], [0, 0, 1, 1], [], []>} : vector<96x48xbf16>, vector<48x256xbf16>, vector<96x256xf32> -> vector<96x256xf32>
    %576 = vector.broadcast %21 : vector<96x1xf32> to vector<96x256xf32>
    %577 = arith.addf %575, %576 : vector<96x256xf32>
    %cst_125 = arith.constant dense<0.000000e+00> : vector<96x256xf32>
    %578 = tpu.matmul %3, %574, %cst_125 {dimension_numbers = #tpu.dot_dimension_numbers<[1], [0], [0], [1], [0, 0, 1, 1], [], []>} : vector<96x48xbf16>, vector<48x256xbf16>, vector<96x256xf32> -> vector<96x256xf32>
    %579 = vector.broadcast %21 : vector<96x1xf32> to vector<96x256xf32>
    %580 = arith.addf %578, %579 : vector<96x256xf32>
    %581 = vector.extract_strided_slice %577 {offsets = [0, 0], sizes = [24, 256], strides = [1, 1]} : vector<96x256xf32> to vector<24x256xf32>
    %582 = vector.extract_strided_slice %577 {offsets = [24, 0], sizes = [24, 256], strides = [1, 1]} : vector<96x256xf32> to vector<24x256xf32>
    %583 = vector.extract_strided_slice %580 {offsets = [0, 0], sizes = [24, 256], strides = [1, 1]} : vector<96x256xf32> to vector<24x256xf32>
    %584 = vector.extract_strided_slice %580 {offsets = [24, 0], sizes = [24, 256], strides = [1, 1]} : vector<96x256xf32> to vector<24x256xf32>
    %585 = vector.extract_strided_slice %577 {offsets = [48, 0], sizes = [24, 256], strides = [1, 1]} : vector<96x256xf32> to vector<24x256xf32>
    %586 = vector.extract_strided_slice %577 {offsets = [72, 0], sizes = [24, 256], strides = [1, 1]} : vector<96x256xf32> to vector<24x256xf32>
    %587 = vector.extract_strided_slice %580 {offsets = [48, 0], sizes = [24, 256], strides = [1, 1]} : vector<96x256xf32> to vector<24x256xf32>
    %588 = vector.extract_strided_slice %580 {offsets = [72, 0], sizes = [24, 256], strides = [1, 1]} : vector<96x256xf32> to vector<24x256xf32>
    %589 = arith.truncf %542 : vector<48x256xf32> to vector<48x256xbf16>
    %cst_126 = arith.constant dense<0.000000e+00> : vector<48x256xf32>
    %590 = tpu.matmul %5, %589, %cst_126 {dimension_numbers = #tpu.dot_dimension_numbers<[1], [0], [0], [1], [0, 0, 1, 1], [], []>} : vector<48x48xbf16>, vector<48x256xbf16>, vector<48x256xf32> -> vector<48x256xf32>
    %591 = vector.broadcast %22 : vector<48x1xf32> to vector<48x256xf32>
    %592 = arith.addf %590, %591 : vector<48x256xf32>
    %593 = vector.extract_strided_slice %592 {offsets = [0, 0], sizes = [24, 256], strides = [1, 1]} : vector<48x256xf32> to vector<24x256xf32>
    %594 = arith.mulf %593, %581 : vector<24x256xf32>
    %cst_127 = arith.constant dense<0.000000e+00> : vector<256xf32>
    %595 = vector.multi_reduction <add>, %594, %cst_127 [0] : vector<24x256xf32> to vector<256xf32>
    %596 = vector.shape_cast %595 : vector<256xf32> to vector<1x256xf32>
    %597 = arith.mulf %593, %582 : vector<24x256xf32>
    %cst_128 = arith.constant dense<0.000000e+00> : vector<256xf32>
    %598 = vector.multi_reduction <add>, %597, %cst_128 [0] : vector<24x256xf32> to vector<256xf32>
    %599 = vector.shape_cast %598 : vector<256xf32> to vector<1x256xf32>
    %600 = arith.mulf %593, %583 : vector<24x256xf32>
    %cst_129 = arith.constant dense<0.000000e+00> : vector<256xf32>
    %601 = vector.multi_reduction <add>, %600, %cst_129 [0] : vector<24x256xf32> to vector<256xf32>
    %602 = vector.shape_cast %601 : vector<256xf32> to vector<1x256xf32>
    %603 = arith.mulf %593, %584 : vector<24x256xf32>
    %cst_130 = arith.constant dense<0.000000e+00> : vector<256xf32>
    %604 = vector.multi_reduction <add>, %603, %cst_130 [0] : vector<24x256xf32> to vector<256xf32>
    %605 = vector.shape_cast %604 : vector<256xf32> to vector<1x256xf32>
    %606 = arith.maximumf %596, %599 : vector<1x256xf32>
    %607 = arith.maximumf %602, %605 : vector<1x256xf32>
    %608 = arith.maximumf %606, %607 : vector<1x256xf32>
    %609 = arith.subf %596, %608 : vector<1x256xf32>
    %610 = math.exp %609 : vector<1x256xf32>
    %611 = arith.subf %599, %608 : vector<1x256xf32>
    %612 = math.exp %611 : vector<1x256xf32>
    %613 = arith.subf %602, %608 : vector<1x256xf32>
    %614 = math.exp %613 : vector<1x256xf32>
    %615 = arith.subf %605, %608 : vector<1x256xf32>
    %616 = math.exp %615 : vector<1x256xf32>
    %617 = arith.addf %610, %612 : vector<1x256xf32>
    %618 = arith.addf %617, %614 : vector<1x256xf32>
    %619 = arith.addf %618, %616 : vector<1x256xf32>
    %620 = tpu.reciprocal %619 {approx = true} : vector<1x256xf32> -> vector<1x256xf32>
    %621 = arith.mulf %610, %620 : vector<1x256xf32>
    %622 = arith.mulf %612, %620 : vector<1x256xf32>
    %623 = arith.mulf %614, %620 : vector<1x256xf32>
    %624 = arith.mulf %616, %620 : vector<1x256xf32>
    %625 = vector.broadcast %621 : vector<1x256xf32> to vector<24x256xf32>
    %626 = arith.mulf %625, %585 : vector<24x256xf32>
    %627 = vector.broadcast %622 : vector<1x256xf32> to vector<24x256xf32>
    %628 = arith.mulf %627, %586 : vector<24x256xf32>
    %629 = arith.addf %626, %628 : vector<24x256xf32>
    %630 = vector.broadcast %623 : vector<1x256xf32> to vector<24x256xf32>
    %631 = arith.mulf %630, %587 : vector<24x256xf32>
    %632 = arith.addf %629, %631 : vector<24x256xf32>
    %633 = vector.broadcast %624 : vector<1x256xf32> to vector<24x256xf32>
    %634 = arith.mulf %633, %588 : vector<24x256xf32>
    %635 = arith.addf %632, %634 : vector<24x256xf32>
    %636 = vector.extract_strided_slice %592 {offsets = [24, 0], sizes = [24, 256], strides = [1, 1]} : vector<48x256xf32> to vector<24x256xf32>
    %637 = arith.mulf %636, %581 : vector<24x256xf32>
    %cst_131 = arith.constant dense<0.000000e+00> : vector<256xf32>
    %638 = vector.multi_reduction <add>, %637, %cst_131 [0] : vector<24x256xf32> to vector<256xf32>
    %639 = vector.shape_cast %638 : vector<256xf32> to vector<1x256xf32>
    %640 = arith.mulf %636, %582 : vector<24x256xf32>
    %cst_132 = arith.constant dense<0.000000e+00> : vector<256xf32>
    %641 = vector.multi_reduction <add>, %640, %cst_132 [0] : vector<24x256xf32> to vector<256xf32>
    %642 = vector.shape_cast %641 : vector<256xf32> to vector<1x256xf32>
    %643 = arith.mulf %636, %583 : vector<24x256xf32>
    %cst_133 = arith.constant dense<0.000000e+00> : vector<256xf32>
    %644 = vector.multi_reduction <add>, %643, %cst_133 [0] : vector<24x256xf32> to vector<256xf32>
    %645 = vector.shape_cast %644 : vector<256xf32> to vector<1x256xf32>
    %646 = arith.mulf %636, %584 : vector<24x256xf32>
    %cst_134 = arith.constant dense<0.000000e+00> : vector<256xf32>
    %647 = vector.multi_reduction <add>, %646, %cst_134 [0] : vector<24x256xf32> to vector<256xf32>
    %648 = vector.shape_cast %647 : vector<256xf32> to vector<1x256xf32>
    %649 = arith.maximumf %639, %642 : vector<1x256xf32>
    %650 = arith.maximumf %645, %648 : vector<1x256xf32>
    %651 = arith.maximumf %649, %650 : vector<1x256xf32>
    %652 = arith.subf %639, %651 : vector<1x256xf32>
    %653 = math.exp %652 : vector<1x256xf32>
    %654 = arith.subf %642, %651 : vector<1x256xf32>
    %655 = math.exp %654 : vector<1x256xf32>
    %656 = arith.subf %645, %651 : vector<1x256xf32>
    %657 = math.exp %656 : vector<1x256xf32>
    %658 = arith.subf %648, %651 : vector<1x256xf32>
    %659 = math.exp %658 : vector<1x256xf32>
    %660 = arith.addf %653, %655 : vector<1x256xf32>
    %661 = arith.addf %660, %657 : vector<1x256xf32>
    %662 = arith.addf %661, %659 : vector<1x256xf32>
    %663 = tpu.reciprocal %662 {approx = true} : vector<1x256xf32> -> vector<1x256xf32>
    %664 = arith.mulf %653, %663 : vector<1x256xf32>
    %665 = arith.mulf %655, %663 : vector<1x256xf32>
    %666 = arith.mulf %657, %663 : vector<1x256xf32>
    %667 = arith.mulf %659, %663 : vector<1x256xf32>
    %668 = vector.broadcast %664 : vector<1x256xf32> to vector<24x256xf32>
    %669 = arith.mulf %668, %585 : vector<24x256xf32>
    %670 = vector.broadcast %665 : vector<1x256xf32> to vector<24x256xf32>
    %671 = arith.mulf %670, %586 : vector<24x256xf32>
    %672 = arith.addf %669, %671 : vector<24x256xf32>
    %673 = vector.broadcast %666 : vector<1x256xf32> to vector<24x256xf32>
    %674 = arith.mulf %673, %587 : vector<24x256xf32>
    %675 = arith.addf %672, %674 : vector<24x256xf32>
    %676 = vector.broadcast %667 : vector<1x256xf32> to vector<24x256xf32>
    %677 = arith.mulf %676, %588 : vector<24x256xf32>
    %678 = arith.addf %675, %677 : vector<24x256xf32>
    %679 = arith.truncf %635 : vector<24x256xf32> to vector<24x256xbf16>
    %cst_135 = arith.constant dense<0.000000e+00> : vector<24x256xf32>
    %680 = tpu.matmul %13, %679, %cst_135 {dimension_numbers = #tpu.dot_dimension_numbers<[1], [0], [0], [1], [0, 0, 1, 1], [], []>} : vector<24x24xbf16>, vector<24x256xbf16>, vector<24x256xf32> -> vector<24x256xf32>
    %681 = arith.truncf %678 : vector<24x256xf32> to vector<24x256xbf16>
    %cst_136 = arith.constant dense<0.000000e+00> : vector<24x256xf32>
    %682 = tpu.matmul %15, %681, %cst_136 {dimension_numbers = #tpu.dot_dimension_numbers<[1], [0], [0], [1], [0, 0, 1, 1], [], []>} : vector<24x24xbf16>, vector<24x256xbf16>, vector<24x256xf32> -> vector<24x256xf32>
    %683 = arith.addf %680, %682 : vector<24x256xf32>
    %684 = vector.broadcast %24 : vector<24x1xf32> to vector<24x256xf32>
    %685 = arith.addf %683, %684 : vector<24x256xf32>
    %cst_137 = arith.constant 5.000000e-01 : f32
    %686 = vector.broadcast %cst_137 : f32 to vector<24x256xf32>
    %687 = arith.mulf %686, %685 : vector<24x256xf32>
    %cst_138 = arith.constant 4.471500e-02 : f32
    %688 = vector.broadcast %cst_138 : f32 to vector<24x256xf32>
    %689 = arith.mulf %688, %685 : vector<24x256xf32>
    %690 = arith.mulf %689, %685 : vector<24x256xf32>
    %691 = arith.mulf %690, %685 : vector<24x256xf32>
    %692 = arith.addf %685, %691 : vector<24x256xf32>
    %cst_139 = arith.constant 0.797884583 : f32
    %693 = vector.broadcast %cst_139 : f32 to vector<24x256xf32>
    %694 = arith.mulf %693, %692 : vector<24x256xf32>
    %695 = math.tanh %694 : vector<24x256xf32>
    %cst_140 = arith.constant 1.000000e+00 : f32
    %696 = vector.broadcast %cst_140 : f32 to vector<24x256xf32>
    %697 = arith.addf %696, %695 : vector<24x256xf32>
    %698 = arith.mulf %687, %697 : vector<24x256xf32>
    %699 = arith.truncf %698 : vector<24x256xf32> to vector<24x256xbf16>
    %cst_141 = arith.constant dense<0.000000e+00> : vector<48x256xf32>
    %700 = tpu.matmul %17, %699, %cst_141 {dimension_numbers = #tpu.dot_dimension_numbers<[1], [0], [0], [1], [0, 0, 1, 1], [], []>} : vector<48x24xbf16>, vector<24x256xbf16>, vector<48x256xf32> -> vector<48x256xf32>
    %701 = vector.broadcast %25 : vector<48x1xf32> to vector<48x256xf32>
    %702 = arith.addf %700, %701 : vector<48x256xf32>
    %c0_142 = arith.constant 0 : index
    %c0_143 = arith.constant 0 : index
    %c0_144 = arith.constant 0 : index
    %703 = vector.load %arg7[%c0_142, %c0_143, %c0_144] : memref<1x48x256xf32, #tpu.memory_space<vmem>>, vector<1x48x256xf32>
    %704 = vector.shape_cast %703 : vector<1x48x256xf32> to vector<48x256xf32>
    %705 = vector.shape_cast %702 : vector<48x256xf32> to vector<1x48x256xf32>
    tpu.vector_store %arg7[%c0_142, %c0_143, %c0_144], %705 {strides = array<i32>} : memref<1x48x256xf32, #tpu.memory_space<vmem>>, vector<1x48x256xf32>,
    return
  }
  func.func @transform_0(%arg0: i32, %arg1: i32) -> (i32, i32, i32) {
    %c0_i32 = arith.constant 0 : i32
    %c0_i32_0 = arith.constant 0 : i32
    return %arg0, %c0_i32, %arg1 : i32, i32, i32
  }
  func.func @transform_1(%arg0: i32, %arg1: i32) -> (i32, i32, i32) {
    %c0_i32 = arith.constant 0 : i32
    %c0_i32_0 = arith.constant 0 : i32
    return %arg0, %c0_i32, %arg1 : i32, i32, i32
  }
  func.func @transform_2(%arg0: i32, %arg1: i32) -> (i32, i32) {
    %c0_i32 = arith.constant 0 : i32
    %c0_i32_0 = arith.constant 0 : i32
    %c0_i32_1 = arith.constant 0 : i32
    return %c0_i32, %c0_i32_0 : i32, i32
  }
  func.func @transform_3(%arg0: i32, %arg1: i32) -> (i32, i32) {
    %c0_i32 = arith.constant 0 : i32
    %c0_i32_0 = arith.constant 0 : i32
    %c0_i32_1 = arith.constant 0 : i32
    return %c0_i32, %c0_i32_0 : i32, i32
  }
  func.func @transform_4(%arg0: i32, %arg1: i32) -> (i32, i32) {
    %c0_i32 = arith.constant 0 : i32
    %c0_i32_0 = arith.constant 0 : i32
    %c0_i32_1 = arith.constant 0 : i32
    return %c0_i32, %c0_i32_0 : i32, i32
  }
  func.func @transform_5(%arg0: i32, %arg1: i32) -> (i32, i32, i32) {
    %c0_i32 = arith.constant 0 : i32
    %c0_i32_0 = arith.constant 0 : i32
    return %arg0, %c0_i32, %arg1 : i32, i32, i32
  }
}

</mosaic_0001>

<bundles_post_ra>
// kernel: tpu_custom_call.1
= control target key start
LH: loop header
LB: loop body
LE: loop exit
PB: predicated region body
PF: predicated region fallthrough
CT: control target
= control target key end

     0   :  { %10 = vsyncpa [#allocation3], 0  ;;  %s10873_s0 = inlined_call_operand.vmem [shape: f32[2,48,256], index: 0, kind: input, shape index: {}]   ;;  %s10874_s1 = inlined_call_operand.vmem [shape: f32[2,48,256], index: 1, kind: input, shape index: {}]   ;;  %s10875_s2 = inlined_call_operand.vmem [shape: f32[264,48], index: 2, kind: input, shape index: {}]   ;;  %s10876_s3 = inlined_call_operand.vmem [shape: f32[144,24], index: 3, kind: input, shape index: {}]   ;;  %s10877_s4 = inlined_call_operand.vmem [shape: f32[384,1], index: 4, kind: input, shape index: {}]   ;;  %s10878_s5 = inlined_call_operand.hbm [shape: f32[2,48,256], index: 5, kind: output, shape index: {}]  }
   0x1   :  { %12 = vsyncpa [#allocation3 + $0x1], 0  ;;  %s6830_s18 = smov 0   ;;  %s6832_s19 = smov 0  }
   0x2   :  { %s6834_s20 = smov 0   ;;  %s6836_s21 = smov 0  }
   0x3   :  { %s6838_s22 = smov 0   ;;  %s6840_s23 = smov 0  }
   0x4 LB: > { %s6227_s24 = sadd.s32 4294967295, %s6794_s23   ;;  %s6228_s25 = sadd.s32 4294967294, %s6794_s23   ;;  %s6794_s23 = sphi %s6840_s23, %s18_s23   ;;  %s6790_s22 = sphi %s6838_s22, %s12176_s22   ;;  %s6786_s21 = sphi %s6836_s21, %s12175_s21   ;;  %s6782_s20 = sphi %s6834_s20, %s12174_s20   ;;  %s6778_s19 = sphi %s6832_s19, %s12173_s19   ;;  %s6774_s18 = sphi %s6830_s18, %s12172_s18  }
   0x5   : > { %s30_s26 = sadd.s32 1, %s6790_s22  ;;  %s158_s27 = sadd.s32 1, %s6782_s20 }
   0x6   : > { %p32_p0 = scmp.ge.s32.totalorder %s30_s26, 2  ;;  %p168_p1 = scmp.ne.s32.totalorder %s6782_s20, %s6778_s19 }
   0x7   : > { %p169_p2 = scmp.eq.s32.totalorder %s6227_s24, 1  ;;  %p174_p3 = scmp.ne.s32.totalorder %s6778_s19, %s6774_s18 }
   0x8   : > { %s12178_s26 = smov (%p32_p0, %s30_s26), 0  ;;  %p175_p5 = scmp.eq.s32.totalorder %s6228_s25, 1 }
   0x9   : > { %p6870_p4 = por %p169_p2, %p168_p1  ;;  %s153_s29 = ssub.s32 %s6790_s22, %s12178_s26 }
   0xa   : > { %p6231_p6 = scmp.ge.s32.totalorder %s6794_s23, 1  ;;  %p156_p7 = scmp.eq.s32.totalorder %s153_s29, 0 }
   0xb   : > { %p6877_p8 = por %p175_p5, %p174_p3  ;;  %p228_p9 = scmp.lt.s32.totalorder %s6794_s23, 3 }
   0xc   : > { %s6883_s6 = scalar_select %p156_p7, %s6782_s20, %s158_s27  }
   0xd   : > { %p229_p10 = pnand %p6231_p6, %p228_p9 }
   0xf   : > { %232 = sbr.rel (%p229_p10) target bundleno = 5721 (0x1659), region = 40 }
  0x16   : > { %p270_p11 = scmp.lt.s32.totalorder %s6786_s21, 1  ;;  %v369_v0 = vld [vmem:[%s10877_s4] sm:$0xff]  ;;  %v10893_v1 = vmov 0   ;;  %v371_v2 = vld [vmem:[%s10877_s4 + $0x10] sm:$0xff]  ;;  %v370_v3 = vld [vmem:[%s10877_s4 + $0x8] sm:$0xff]  ;;  %vm462_vm0 = vcmask 392192  }
  0x17   : > { %6494 = vset.pattern.permute.xlu0 %v10893_v1  ;;  %501 = vmatprep.mubr.bf16.mxu0 %v10893_v1  ;;  %v378_v4 = vld [vmem:[%s10877_s4 + $0x48] sm:$0xff]  ;;  %v379_v5 = vld [vmem:[%s10877_s4 + $0x50] sm:$0xff]  ;;  %v380_v6 = vld [vmem:[%s10877_s4 + $0x58] sm:$0xff]  ;;  %vm582_vm1 = vcmask 1043456   ;;  %vm572_vm2 = vcmask 195584   ;;  %s6797_s13 = smov [#allocation2]  }
  0x18   : > { %s6895_s11 = scalar_select %p270_p11, %s6786_s21, 1  ;;  %449 = vperm.xlu0 %6494, %v369_v0   ;;  %6495 = vset.pattern.permute.xlu1 %v10893_v1  ;;  %v381_v21 = vld [vmem:[%s10877_s4 + $0x60] sm:$0xff]  ;;  %v372_v25 = vld [vmem:[%s10877_s4 + $0x18] sm:$0xff]  ;;  %v292_v30 = vld [vmem:[%s10875_s2 + $0x8] sm:$0xff] }
  0x19   : > { %459 = vperm.xlu1 %6495, %v371_v2   ;;  %621 = vmatprep.mubr.bf16.mxu1 %v10893_v1  ;;  %v291_v29 = vld [vmem:[%s10875_s2] sm:$0xff]  ;;  %v382_v35 = vld [vmem:[%s10877_s4 + $0x68] sm:$0xff]  ;;  %v383_v40 = vld [vmem:[%s10877_s4 + $0x70] sm:$0xff] }
  0x1a   : > { %s6434_s14 = smul.u32 96, %s6895_s11  ;;  %v373_v31 = vld [vmem:[%s10877_s4 + $0x20] sm:$0xff]  ;;  %v6994_v38 = vpack.c.bf16 %v292_v30, %v291_v29  ;;  %v374_v46 = vld [vmem:[%s10877_s4 + $0x28] sm:$0xff]  ;;  %v293_v47 = vld [vmem:[%s10875_s2 + $0x10] sm:$0xff] }
  0x1b   : > { %v375_v49 = vld [vmem:[%s10877_s4 + $0x30] sm:$0xff]  ;;  %v376_v53 = vld [vmem:[%s10877_s4 + $0x38] sm:$0xff]  ;;  %v7040_v54 = vpack.c.bf16 %v293_v47, %v293_v47  ;;  %v377_v56 = vld [vmem:[%s10877_s4 + $0x40] sm:$0xff] }
  0x1c   : > { %s277_s25 = scalar_lea.vmem %s10873_s0, %s6434_s14  ;;  %454 = vperm.xlu0 %6494, %v370_v3   ;;  %s6944_s11 = scalar_lea.vmem %s10874_s1, %s6434_s14  ;;  %11343 = vst [vmem:[#allocation5_spill] sm:$0xff] %v6994_v38  ;;  %v405_v57 = vld [vmem:[%s10877_s4 + $0x120] sm:$0xff]  ;;  %v406_v58 = vld [vmem:[%s10877_s4 + $0x128] sm:$0xff]  ;;  %v407_v59 = vld [vmem:[%s10877_s4 + $0x130] sm:$0xff] }
  0x1d   : > { %v6915_v7 = vld [vmem:[%s277_s25 + $0x8] sm:$0xff]  ;;  %v6917_v8 = vld [vmem:[%s277_s25 + $0x18] sm:$0xff]  ;;  %v6919_v9 = vld [vmem:[%s277_s25] sm:$0xff]  ;;  %528 = vperm.xlu1 %6495, %v378_v4   ;;  %11344 = vst [vmem:[#allocation6_spill] sm:$0xff] %v7040_v54  ;;  %s6720_s14 = sshll.u32 %s6797_s13, 4  ;;  %s6721_s14 = int_to_ptr.vmem [resolvable:$false] %s6720_s14 }
  0x1e   : > { %v442_v10 = vpack.c.bf16 %v6917_v8, %v6915_v7  ;;  %v6923_v11 = vld [vmem:[%s277_s25 + $0x10] sm:$0xff]  ;;  %v6925_v12 = vld [vmem:[%s277_s25 + $0x28] sm:$0xff]  ;;  %v6927_v13 = vld [vmem:[%s277_s25 + $0x38] sm:$0xff]  ;;  %s6722_s15 = scalar_lea.vmem %s6721_s14, 3072 }
  0x1f   : > { %v441_v14 = vpack.c.bf16 %v6923_v11, %v6919_v9  ;;  %v444_v15 = vpack.c.bf16 %v6927_v13, %v6925_v12  ;;  %v6933_v16 = vld [vmem:[%s277_s25 + $0x20] sm:$0xff]  ;;  %v6935_v17 = vld [vmem:[%s277_s25 + $0x30] sm:$0xff]  ;;  %v6937_v18 = vld [vmem:[%s277_s25 + $0x48] sm:$0xff] }
  0x20   : > { %469 = vmatprep.subr.bf16.mxu0 %v442_v10  ;;  %v6939_v19 = vld [vmem:[%s277_s25 + $0x58] sm:$0xff]  ;;  %533 = vperm.xlu0 %6494, %v379_v5   ;;  %v443_v20 = vpack.c.bf16 %v6935_v17, %v6933_v16  ;;  %v6953_v23 = vld [vmem:[%s277_s25 + $0x40] sm:$0xff]  ;;  %v6955_v24 = vld [vmem:[%s277_s25 + $0x50] sm:$0xff]  ;;  %s266_s25 = sand.u32 1, %s6778_s19  }
  0x21   : > { %470 = vmatpush1.bf16.msra.mxu0 %v441_v14  ;;  %538 = vperm.xlu1 %6495, %v380_v6   ;;  %v446_v22 = vpack.c.bf16 %v6939_v19, %v6937_v18  ;;  %v6961_v26 = vld [vmem:[%s6944_s11 + $0x8] sm:$0xff]  ;;  %v6964_v27 = vld [vmem:[%s6944_s11 + $0x18] sm:$0xff]  ;;  %v445_v28 = vpack.c.bf16 %v6955_v24, %v6953_v23  ;;  %v6980_v33 = vld [vmem:[%s6944_s11] sm:$0xff]  ;;  %s6433_s27 = smul.u32 96, %s266_s25  ;;  %s10827_s10 = scalar_lea.sflag [#allocation3], %s266_s25 }
  0x22   : > { %471 = vmatprep.subr.bf16.mxu0 %v444_v15  ;;  %v719_v32 = vpack.c.bf16 %v6964_v27, %v6961_v26  ;;  %v6983_v34 = vld [vmem:[%s6944_s11 + $0x10] sm:$0xff]  ;;  %v6989_v36 = vld [vmem:[%s6944_s11 + $0x28] sm:$0xff]  ;;  %v6992_v37 = vld [vmem:[%s6944_s11 + $0x38] sm:$0xff] }
  0x23   : > { %v718_v39 = vpack.c.bf16 %v6983_v34, %v6980_v33  ;;  %v721_v41 = vpack.c.bf16 %v6992_v37, %v6989_v36  ;;  %v7004_v42 = vld [vmem:[%s6944_s11 + $0x20] sm:$0xff]  ;;  %v7007_v43 = vld [vmem:[%s6944_s11 + $0x30] sm:$0xff]  ;;  %v7010_v44 = vld [vmem:[%s6944_s11 + $0x48] sm:$0xff]  ;;  %s10792_s29 = scalar_lea.vmem [#allocation2], %s6433_s27 }
  0x24   : > { %543 = vperm.xlu0 %6494, %v381_v21   ;;  %v7013_v45 = vld [vmem:[%s6944_s11 + $0x58] sm:$0xff]  ;;  %v720_v48 = vpack.c.bf16 %v7007_v43, %v7004_v42  ;;  %v7032_v51 = vld [vmem:[%s6944_s11 + $0x40] sm:$0xff]  ;;  %v7035_v52 = vld [vmem:[%s6944_s11 + $0x50] sm:$0xff]  ;;  %s6435_s11 = smul.u32 1536, %s6786_s21  ;;  %s6130_s7 = sshll.u32 %s10792_s29, 4  ;;  %s10814_s7 = int_to_ptr.vmem [resolvable:$true] %s6130_s7 }
  0x25   : > { %472 = vmatpush1.bf16.msra.mxu0 %v443_v20  ;;  %666 = vperm.xlu1 %6495, %v372_v25   ;;  %v723_v50 = vpack.c.bf16 %v7013_v45, %v7010_v44  ;;  %v722_v55 = vpack.c.bf16 %v7035_v52, %v7032_v51  ;;  %v402_v60 = vld [vmem:[%s10877_s4 + $0x108] sm:$0xff]  ;;  %v403_v61 = vld [vmem:[%s10877_s4 + $0x110] sm:$0xff]  ;;  %v404_v62 = vld [vmem:[%s10877_s4 + $0x118] sm:$0xff]  ;;  %s6716_s12 = scalar_lea.vmem %s10814_s7, 1536  ;;  %p6723_p1 = scmp.lt.s32.totalorder %s10814_s7, %s6721_s14 }
  0x26   : > { %473 = vmatprep.subr.bf16.mxu0 %v446_v22  ;;  %v408_v63 = vld [vmem:[%s10877_s4 + $0x138] sm:$0xff]  ;;  %v409_v0 = vld [vmem:[%s10877_s4 + $0x140] sm:$0xff]  ;;  %v410_v2 = vld [vmem:[%s10877_s4 + $0x148] sm:$0xff]  ;;  %s10821_s9 = scalar_lea.hbm %s10878_s5, %s6435_s11  ;;  %p6717_p12 = scmp.ne.s32.totalorder %s10814_s7, %s6716_s12 }
  0x27   : > { %v411_v3 = vld [vmem:[%s10877_s4 + $0x150] sm:$0xff]  ;;  %v412_v4 = vld [vmem:[%s10877_s4 + $0x158] sm:$0xff]  ;;  %v413_v5 = vld [vmem:[%s10877_s4 + $0x160] sm:$0xff]  ;;  %p6724_p2 = scmp.lt.s32.totalorder %s6722_s15, %s6716_s12 }
  0x28   : > { %671 = vperm.xlu0 %6494, %v373_v31   ;;  %v414_v6 = vld [vmem:[%s10877_s4 + $0x168] sm:$0xff]  ;;  %v415_v10 = vld [vmem:[%s10877_s4 + $0x170] sm:$0xff]  ;;  %v416_v14 = vld [vmem:[%s10877_s4 + $0x178] sm:$0xff]  ;;  %p6718_p13 = pnand %p6717_p12, %p6870_p4 }
  0x29   : > { %474 = vmatpush1.bf16.msra.mxu0 %v445_v28  ;;  %548 = vperm.xlu1 %6495, %v382_v35   ;;  %v384_v15 = vld [vmem:[%s10877_s4 + $0x78] sm:$0xff]  ;;  %v385_v20 = vld [vmem:[%s10877_s4 + $0x80] sm:$0xff]  ;;  %v387_v21 = vld [vmem:[%s10877_s4 + $0x90] sm:$0xff]  ;;  %p6725_p3 = por %p6724_p2, %p6723_p1 }
  0x2a   : > { %724 = vmatprep.subr.bf16.mxu0 %v719_v32  ;;  %v388_v22 = vld [vmem:[%s10877_s4 + $0x98] sm:$0xff]  ;;  %v399_v25 = vld [vmem:[%s10877_s4 + $0xf0] sm:$0xff]  ;;  %v386_v29 = vld [vmem:[%s10877_s4 + $0x88] sm:$0xff]  ;;  %p6719_p0 = pneg %p6718_p13 }
  0x2b   : > { %v400_v28 = vld [vmem:[%s10877_s4 + $0xf8] sm:$0xff]  ;;  %v389_v30 = vld [vmem:[%s10877_s4 + $0xa0] sm:$0xff]  ;;  %v394_v47 = vld [vmem:[%s10877_s4 + $0xc8] sm:$0xff] }
  0x2c   : > { %6234 = vmatmul.mubr.msk.bf16.vlgmr.msra.gmra.mrb[0].mxu0 %vm462_vm0, %v6994_v38  ;;  %553 = vperm.xlu0 %6494, %v383_v40   ;;  %v401_v31 = vld [vmem:[%s10877_s4 + $0x100] sm:$0xff]  ;;  %v396_v32 = vld [vmem:[%s10877_s4 + $0xd8] sm:$0xff]  ;;  %v390_v40 = vld [vmem:[%s10877_s4 + $0xa8] sm:$0xff]  ;;  %p6726_p5 = pnand %p6725_p3, %p6719_p0 }
  0x2d   : > { %725 = vmatpush1.bf16.msra.mxu0 %v718_v39  ;;  %511 = vmatprep.mubr.bf16.mxu0 %v10893_v1  ;;  %v397_v35 = vld [vmem:[%s10877_s4 + $0xe0] sm:$0xff]  ;;  %v398_v39 = vld [vmem:[%s10877_s4 + $0xe8] sm:$0xff] }
  0x2e   : > { %726 = vmatprep.subr.bf16.mxu0 %v721_v41  ;;  %676 = vperm.xlu1 %6495, %v374_v46   ;;  %v391_v41 = vld [vmem:[%s10877_s4 + $0xb0] sm:$0xff]  ;;  %v393_v46 = vld [vmem:[%s10877_s4 + $0xc0] sm:$0xff] }
  0x30   : > { %681 = vperm.xlu0 %6494, %v375_v49   ;;  %v395_v49 = vld [vmem:[%s10877_s4 + $0xd0] sm:$0xff] }
  0x31   : > { %727 = vmatpush1.bf16.msra.mxu0 %v720_v48  ;;  %v392_v48 = vld [vmem:[%s10877_s4 + $0xb8] sm:$0xff] }
  0x32   : > { %728 = vmatprep.subr.bf16.mxu0 %v723_v50  ;;  %686 = vperm.xlu1 %6495, %v376_v53  }
  0x34   : > { %6235 = vmatmul.mubr.msk.bf16.gmra.mrb[4].mxu0 %vm462_vm0, %v7040_v54  ;;  %691 = vperm.xlu0 %6494, %v377_v56  }
  0x35   : > { %729 = vmatpush1.bf16.msra.mxu0 %v722_v55  ;;  %756 = vmatprep.mubr.bf16.mxu0 %v10893_v1 }
  0x36   : > { %1339 = vperm.xlu1 %6495, %v405_v57  }
  0x38   : > { %1344 = vperm.xlu0 %6494, %v406_v58  }
  0x3a   : > { %1349 = vperm.xlu1 %6495, %v407_v59  }
  0x3c   : > { %6240 = vmatmul.mubr.msk.bf16.vlgmr.msra.gmra.mrb[8].mxu0 %vm462_vm0, %v6994_v38  ;;  %1324 = vperm.xlu0 %6494, %v402_v60  }
  0x3d   : > { %766 = vmatprep.mubr.bf16.mxu0 %v10893_v1 }
  0x3e   : > { %1329 = vperm.xlu1 %6495, %v403_v61  }
  0x40   : > { %1334 = vperm.xlu0 %6494, %v404_v62  }
  0x42   : > { %1512 = vperm.xlu1 %6495, %v408_v63  }
  0x44   : > { %6241 = vmatmul.mubr.msk.bf16.gmra.mrb[12].mxu0 %vm462_vm0, %v7040_v54  ;;  %1517 = vperm.xlu0 %6494, %v409_v0  }
  0x45   : > { %1024 = vmatprep.mubr.bf16.mxu0 %v10893_v1 }
  0x46   : > { %1522 = vperm.xlu1 %6495, %v410_v2  }
  0x48   : > { %1591 = vperm.xlu0 %6494, %v411_v3  }
  0x4a   : > { %1596 = vperm.xlu1 %6495, %v412_v4  }
  0x4c   : > { %1601 = vperm.xlu0 %6494, %v413_v5  }
  0x4e   : > { %1606 = vperm.xlu1 %6495, %v414_v6  }
  0x50   : > { %1611 = vperm.xlu0 %6494, %v415_v10  }
  0x52   : > { %1616 = vperm.xlu1 %6495, %v416_v14  }
  0x54   : > { %916 = vperm.xlu0 %6494, %v384_v15  }
  0x56   : > { %921 = vperm.xlu1 %6495, %v385_v20  }
  0x58   : > { %931 = vperm.xlu0 %6494, %v387_v21  }
  0x5a   : > { %936 = vperm.xlu1 %6495, %v388_v22  }
  0x5c   : > { %1720 = vperm.xlu0 %6494, %v399_v25  }
  0x5e   : > { %1725 = vperm.xlu1 %6495, %v400_v28  }
  0x60   : > { %926 = vperm.xlu0 %6494, %v386_v29  }
  0x62   : > { %941 = vperm.xlu1 %6495, %v389_v30   ;;  %v341_v30 = vld [vmem:[%s10876_s3] sm:$0xff] }
  0x64   : > { %1730 = vperm.xlu0 %6494, %v401_v31   ;;  %v342_v31 = vld [vmem:[%s10876_s3 + $0x8] sm:$0xff] }
  0x66   : > { %1705 = vperm.xlu1 %6495, %v396_v32  }
  0x68   : > { %1710 = vperm.xlu0 %6494, %v397_v35  }
  0x6a   : > { %1715 = vperm.xlu1 %6495, %v398_v39  }
  0x6c   : > { %946 = vperm.xlu0 %6494, %v390_v40   ;;  %v7175_v40 = vpack.c.bf16 %v342_v31, %v341_v30 }
  0x6e   : > { %951 = vperm.xlu1 %6495, %v391_v41   ;;  %11348 = vst [vmem:[#allocation10_spill] sm:$0xff] %v7175_v40 }
  0x70   : > { %961 = vperm.xlu0 %6494, %v393_v46  }
  0x72   : > { %966 = vperm.xlu1 %6495, %v394_v47  }
  0x74   : > { %956 = vperm.xlu0 %6494, %v392_v48  }
  0x76   : > { %971 = vperm.xlu1 %6495, %v395_v49  }
  0x97   : > { %v7155_v50 = vpop.permute.xlu0 %449 }
  0x98   : > { %11345 = vst [vmem:[#allocation7_spill] sm:$0xff] %v7155_v50  ;;  %v7163_v5 = vpop.permute.xlu1 %459 }
  0x99   : > { %11347 = vst [vmem:[#allocation9_spill] sm:$0xff] %v7163_v5 }
  0x9b   : > { %v7158_v57 = vpop.permute.xlu0 %454 }
  0x9c   : > { %11346 = vst [vmem:[#allocation8_spill] sm:$0xff] %v7158_v57 }
  0xff   : > { %v503_v53 = vpop.f32.mrb[0].mxu0 }
 0x100   : > { %v504_v55 = vadd.f32 %v503_v53, %v7155_v50  ;;  %v505_v56 = vpop.f32.mrb[1].mxu0 }
 0x101   : > { %v507_v58 = vpop.f32.mrb[2].mxu0  ;;  %v506_v59 = vadd.f32 %v505_v56, %v7155_v50 }
 0x102   : > { %v508_v60 = vadd.f32 %v507_v58, %v7158_v57  ;;  %v509_v61 = vpop.f32.mrb[3].mxu0  ;;  %v520_v63 = vmax.f32 %v504_v55, 0.0 }
 0x103   : > { %v510_v62 = vadd.f32 %v509_v61, %v7158_v57  ;;  %v521_v2 = vmax.f32 %v506_v59, 0.0  ;;  %v343_v59 = vld [vmem:[%s10876_s3 + $0x10] sm:$0xff] }
 0x104   : > { %v522_v0 = vmax.f32 %v508_v60, 0.0  ;;  %v344_v60 = vld [vmem:[%s10876_s3 + $0x18] sm:$0xff] }
 0x105   : > { %v523_v3 = vmax.f32 %v510_v62, 0.0 }
 0x106   : > { %v568_v4 = vpack.c.bf16 %v522_v0, %v520_v63 }
 0x107   : > { %v513_v6 = vpop.f32.mrb[4].mxu0  ;;  %v569_v10 = vpack.c.bf16 %v523_v3, %v521_v2  ;;  %v7190_v3 = vpack.c.bf16 %v344_v60, %v343_v59 }
 0x108   : > { %v514_v14 = vadd.f32 %v513_v6, %v7163_v5  ;;  %v515_v15 = vpop.f32.mrb[5].mxu0 }
 0x109   : > { %v516_v20 = vadd.f32 %v515_v15, %v7163_v5  ;;  %v517_v21 = vpop.f32.mrb[6].mxu0  ;;  %589 = vmatprep.subr.bf16.mxu1 %v569_v10  ;;  %11349 = vst [vmem:[#allocation11_spill] sm:$0xff] %v7190_v3 }
 0x10a   : > { %v524_v22 = vmax.f32 %v514_v14, 0.0  ;;  %v518_v25 = vpop.f32.mrb[7].mxu0  ;;  %590 = vmatpush1.bf16.msra.mxu1 %v568_v4 }
 0x10b   : > { %v525_v28 = vmax.f32 %v516_v20, 0.0  ;;  %v345_v25 = vld [vmem:[%s10876_s3 + $0x20] sm:$0xff] }
 0x10c   : > { %v570_v29 = vpack.c.bf16 %v524_v22, %v524_v22 }
 0x10d   : > { %v571_v32 = vpack.c.bf16 %v525_v28, %v525_v28  ;;  %v346_v28 = vld [vmem:[%s10876_s3 + $0x28] sm:$0xff] }
 0x10e   : > { %v584_v35 = vsel %vm582_vm1, %v570_v29, 0  ;;  %v7205_v31 = vpack.c.bf16 %v346_v28, %v345_v25 }
 0x10f   : > { %6236 = vmatprep.subr.msk.bf16.mxu1 %vm582_vm1, %v571_v32  ;;  %v758_v39 = vpop.f32.mrb[8].mxu0  ;;  %v7219_v32 = vpop.permute.xlu1 %528 }
 0x110   : > { %v759_v41 = vadd.f32 %v758_v39, %v7155_v50  ;;  %592 = vmatpush1.bf16.msra.mxu1 %v584_v35  ;;  %v760_v46 = vpop.f32.mrb[9].mxu0  ;;  %11350 = vst [vmem:[#allocation12_spill] sm:$0xff] %v7205_v31  ;;  %11351 = vst [vmem:[#allocation13_spill] sm:$0xff] %v7219_v32  ;;  %v7221_v35 = vpop.permute.xlu0 %533 }
 0x111   : > { %v761_v47 = vadd.f32 %v760_v46, %v7155_v50  ;;  %v762_v48 = vpop.f32.mrb[10].mxu0  ;;  %11352 = vst [vmem:[#allocation14_spill] sm:$0xff] %v7221_v35 }
 0x112   : > { %v763_v49 = vadd.f32 %v762_v48, %v7158_v57  ;;  %v764_v53 = vpop.f32.mrb[11].mxu0  ;;  %v775_v56 = vmax.f32 %v759_v41, 0.0 }
 0x113   : > { %v765_v55 = vadd.f32 %v764_v53, %v7158_v57  ;;  %6237 = vmatmul.mubr.msk.bf16.vlgmr.msra.gmra.mrb[0].mxu1 %vm572_vm2, %v7175_v40  ;;  %v776_v61 = vmax.f32 %v761_v47, 0.0  ;;  %v7223_v39 = vpop.permute.xlu1 %538  ;;  %v556_v47 = vmul.f32 %v7219_v32, %v6919_v9  ;;  %v557_v53 = vmul.f32 %v7219_v32, %v6915_v7 }
 0x114   : > { %v777_v58 = vmax.f32 %v763_v49, 0.0  ;;  %631 = vmatprep.mubr.bf16.mxu1 %v10893_v1  ;;  %11353 = vst [vmem:[#allocation15_spill] sm:$0xff] %v7223_v39  ;;  %v7225_v41 = vpop.permute.xlu0 %543 }
 0x115   : > { %v778_v62 = vmax.f32 %v765_v55, 0.0  ;;  %11354 = vst [vmem:[#allocation16_spill] sm:$0xff] %v7225_v41 }
 0x116   : > { %v793_v63 = vpack.c.bf16 %v777_v58, %v775_v56  ;;  %v558_v58 = vmul.f32 %v7221_v35, %v6923_v11 }
 0x117   : > { %v768_v0 = vpop.f32.mrb[12].mxu0  ;;  %v794_v2 = vpack.c.bf16 %v778_v62, %v776_v61  ;;  %v7227_v46 = vpop.permute.xlu1 %666  ;;  %v559_v61 = vmul.f32 %v7221_v35, %v6917_v8 }
 0x118   : > { %v769_v4 = vadd.f32 %v768_v0, %v7163_v5  ;;  %v770_v6 = vpop.f32.mrb[13].mxu0  ;;  %11355 = vst [vmem:[#allocation17_spill] sm:$0xff] %v7227_v46  ;;  %v7231_v48 = vpop.permute.xlu0 %671 }
 0x119   : > { %v771_v10 = vadd.f32 %v770_v6, %v7163_v5  ;;  %803 = vmatprep.subr.bf16.mxu1 %v794_v2  ;;  %v772_v14 = vpop.f32.mrb[14].mxu0  ;;  %11356 = vst [vmem:[#allocation18_spill] sm:$0xff] %v7231_v48 }
 0x11a   : > { %v779_v15 = vmax.f32 %v769_v4, 0.0  ;;  %804 = vmatpush1.bf16.msra.mxu1 %v793_v63  ;;  %v773_v20 = vpop.f32.mrb[15].mxu0  ;;  %v560_v14 = vmul.f32 %v7223_v39, %v6933_v16 }
 0x11b   : > { %v780_v21 = vmax.f32 %v771_v10, 0.0  ;;  %6238 = vmatmul.mubr.msk.bf16.gmra.mrb[4].mxu1 %vm572_vm2, %v7190_v3  ;;  %v7242_v0 = vpop.permute.xlu1 %548  ;;  %v561_v20 = vmul.f32 %v7223_v39, %v6925_v12  ;;  %v563_v12 = vmul.f32 %v7225_v41, %v6927_v13 }
 0x11c   : > { %v795_v22 = vpack.c.bf16 %v779_v15, %v779_v15  ;;  %641 = vmatprep.mubr.bf16.mxu1 %v10893_v1  ;;  %11358 = vst [vmem:[#allocation20_spill] sm:$0xff] %v7242_v0  ;;  %v7250_v11 = vpop.permute.xlu0 %553 }
 0x11d   : > { %v796_v29 = vpack.c.bf16 %v780_v21, %v780_v21  ;;  %11361 = vst [vmem:[#allocation23_spill] sm:$0xff] %v7250_v11 }
 0x11e   : > { %v798_v30 = vsel %vm582_vm1, %v795_v22, 0 }
 0x11f   : > { %6242 = vmatprep.subr.msk.bf16.mxu1 %vm582_vm1, %v796_v29  ;;  %v562_v29 = vmul.f32 %v7225_v41, %v6935_v17  ;;  %v7271_v16 = vpop.permute.xlu1 %676 }
 0x120   : > { %806 = vmatpush1.bf16.msra.mxu1 %v798_v30  ;;  %11364 = vst [vmem:[#allocation26_spill] sm:$0xff] %v7271_v16 }
 0x123   : > { %6239 = vmatmul.mubr.msk.bf16.gmra.mrb[8].mxu1 %vm572_vm2, %v7205_v31 }
 0x124   : > { %835 = vmatprep.mubr.bf16.mxu1 %v10893_v1 }
 0x12b   : > { %6243 = vmatmul.mubr.msk.bf16.vlgmr.msra.gmra.mrb[12].mxu1 %vm572_vm2, %v7175_v40 }
 0x12c   : > { %845 = vmatprep.mubr.bf16.mxu1 %v10893_v1 }
 0x133   : > { %6244 = vmatmul.mubr.msk.bf16.gmra.mrb[16].mxu1 %vm572_vm2, %v7190_v3 }
 0x134   : > { %855 = vmatprep.mubr.bf16.mxu1 %v10893_v1 }
 0x13b   : > { %6245 = vmatmul.mubr.msk.bf16.gmra.mrb[20].mxu1 %vm572_vm2, %v7205_v31 }
 0x13c   : > { %1117 = vmatprep.mubr.bf16.mxu1 %v10893_v1 }
 0x1e6   : > { %v623_v49 = vpop.f32.mrb[0].mxu1 }
 0x1e7   : > { %v652_v55 = vadd.f32 %v623_v49, %v556_v47  ;;  %v625_v56 = vpop.f32.mrb[1].mxu1 }
 0x1e8   : > { %v653_v59 = vadd.f32 %v625_v56, %v557_v53  ;;  %v627_v60 = vpop.f32.mrb[2].mxu1 }
 0x1e9   : > { %v7240_v62 = vadd.f32 %v7227_v46, %v652_v55  ;;  %v654_v9 = vadd.f32 %v627_v60, %v558_v58  ;;  %v629_v63 = vpop.f32.mrb[3].mxu1  ;;  %v7284_v58 = vpop.permute.xlu0 %681 }
 0x1ea   : > { %v7245_v2 = vadd.f32 %v7227_v46, %v653_v59  ;;  %v655_v7 = vadd.f32 %v629_v63, %v559_v61  ;;  %11367 = vst [vmem:[#allocation29_spill] sm:$0xff] %v7284_v58 }
 0x1eb   : > { %11357 = vst [vmem:[#allocation19_spill] sm:$0xff] %v7240_v62  ;;  %v7248_v4 = vadd.f32 %v7231_v48, %v654_v9  ;;  %v10888_v8 = vmax.f32 %v7240_v62, 0.0 }
 0x1ec   : > { %11359 = vst [vmem:[#allocation21_spill] sm:$0xff] %v7245_v2  ;;  %v7253_v6 = vadd.f32 %v7231_v48, %v655_v7  ;;  %v10885_v21 = vmax.f32 %v7245_v2, 0.0  ;;  %v564_v7 = vmul.f32 %v7242_v0, %v6953_v23  ;;  %v7313_v23 = vpop.permute.xlu1 %686 }
 0x1ed   : > { %11360 = vst [vmem:[#allocation22_spill] sm:$0xff] %v7248_v4  ;;  %v10884_v10 = vmax.f32 %v7248_v4, 0.0  ;;  %11372 = vst [vmem:[#allocation34_spill] sm:$0xff] %v7313_v23 }
 0x1ee   : > { %11362 = vst [vmem:[#allocation24_spill] sm:$0xff] %v7253_v6  ;;  %v633_v15 = vpop.f32.mrb[4].mxu1  ;;  %v10883_v22 = vmax.f32 %v7253_v6, 0.0 }
 0x1ef   : > { %v656_v25 = vadd.f32 %v633_v15, %v560_v14  ;;  %v635_v28 = vpop.f32.mrb[5].mxu1  ;;  %v7269_v30 = vpack.c.bf16 %v10884_v10, %v10888_v8  ;;  %v565_v15 = vmul.f32 %v7242_v0, %v6937_v18  ;;  %v567_v18 = vmul.f32 %v7250_v11, %v6939_v19 }
 0x1f0   : > { %v657_v47 = vadd.f32 %v635_v28, %v561_v20  ;;  %v637_v49 = vpop.f32.mrb[6].mxu1  ;;  %v7279_v53 = vpack.c.bf16 %v10883_v22, %v10885_v21  ;;  %v297_v22 = vld [vmem:[%s10875_s2 + $0x20] sm:$0xff]  ;;  %v784_v21 = vmul.f32 %v7221_v35, %v6964_v27  ;;  %v1340_v3 = vpop.permute.xlu1 %1339 }
 0x1f1   : > { %11363 = vst [vmem:[#allocation25_spill] sm:$0xff] %v7269_v30  ;;  %v7282_v17 = vadd.f32 %v7271_v16, %v656_v25  ;;  %v658_v55 = vadd.f32 %v637_v49, %v562_v29  ;;  %v639_v56 = vpop.f32.mrb[7].mxu1 }
 0x1f2   : > { %11365 = vst [vmem:[#allocation27_spill] sm:$0xff] %v7279_v53  ;;  %v7287_v59 = vadd.f32 %v7271_v16, %v657_v47  ;;  %v659_v60 = vadd.f32 %v639_v56, %v563_v12  ;;  %992 = vmatprep.subr.bf16.mxu0 %v7279_v53  ;;  %v566_v47 = vmul.f32 %v7250_v11, %v6955_v24 }
 0x1f3   : > { %11366 = vst [vmem:[#allocation28_spill] sm:$0xff] %v7282_v17  ;;  %v7291_v13 = vadd.f32 %v7284_v58, %v658_v55  ;;  %993 = vmatpush1.bf16.msra.mxu0 %v7269_v30  ;;  %v10882_v9 = vmax.f32 %v7282_v17, 0.0 }
 0x1f4   : > { %11368 = vst [vmem:[#allocation30_spill] sm:$0xff] %v7287_v59  ;;  %v7295_v61 = vadd.f32 %v7284_v58, %v659_v60  ;;  %v10881_v20 = vmax.f32 %v7287_v59, 0.0  ;;  %v1350_v54 = vpop.permute.xlu1 %1349 }
 0x1f5   : > { %11369 = vst [vmem:[#allocation31_spill] sm:$0xff] %v7291_v13  ;;  %v10879_v63 = vmax.f32 %v7291_v13, 0.0 }
 0x1f6   : > { %11370 = vst [vmem:[#allocation32_spill] sm:$0xff] %v7295_v61  ;;  %v643_v14 = vpop.f32.mrb[8].mxu1  ;;  %v10880_v25 = vmax.f32 %v7295_v61, 0.0 }
 0x1f7   : > { %v660_v28 = vadd.f32 %v643_v14, %v564_v7  ;;  %v645_v29 = vpop.f32.mrb[9].mxu1  ;;  %v7311_v49 = vpack.c.bf16 %v10879_v63, %v10882_v9  ;;  %v7326_v14 = vpop.permute.xlu0 %691  ;;  %v783_v9 = vmul.f32 %v7221_v35, %v6983_v34 }
 0x1f8   : > { %v661_v12 = vadd.f32 %v645_v29, %v565_v15  ;;  %v647_v55 = vpop.f32.mrb[10].mxu1  ;;  %v7321_v56 = vpack.c.bf16 %v10880_v25, %v10881_v20  ;;  %11375 = vst [vmem:[#allocation37_spill] sm:$0xff] %v7326_v14  ;;  %v1330_v38 = vpop.permute.xlu1 %1329 }
 0x1f9   : > { %11371 = vst [vmem:[#allocation33_spill] sm:$0xff] %v7311_v49  ;;  %v7324_v24 = vadd.f32 %v7313_v23, %v660_v28  ;;  %v662_v60 = vadd.f32 %v647_v55, %v566_v47  ;;  %v649_v7 = vpop.f32.mrb[11].mxu1  ;;  %v781_v55 = vmul.f32 %v7219_v32, %v6980_v33  ;;  %v296_v33 = vld [vmem:[%s10875_s2 + $0x18] sm:$0xff] }
 0x1fa   : > { %11373 = vst [vmem:[#allocation35_spill] sm:$0xff] %v7321_v56  ;;  %v7329_v63 = vadd.f32 %v7313_v23, %v661_v12  ;;  %v663_v15 = vadd.f32 %v649_v7, %v567_v18  ;;  %994 = vmatprep.subr.bf16.mxu0 %v7321_v56 }
 0x1fb   : > { %11374 = vst [vmem:[#allocation36_spill] sm:$0xff] %v7324_v24  ;;  %v7333_v19 = vadd.f32 %v7326_v14, %v662_v60  ;;  %995 = vmatpush1.bf16.msra.mxu0 %v7311_v49  ;;  %v10887_v28 = vmax.f32 %v7324_v24, 0.0  ;;  %v782_v60 = vmul.f32 %v7219_v32, %v6961_v26  ;;  %v1345_v57 = vpop.permute.xlu0 %1344 }
 0x1fc   : > { %11376 = vst [vmem:[#allocation38_spill] sm:$0xff] %v7329_v63  ;;  %v7337_v29 = vadd.f32 %v7326_v14, %v663_v15  ;;  %v10890_v12 = vmax.f32 %v7329_v63, 0.0 }
 0x1fd   : > { %11377 = vst [vmem:[#allocation39_spill] sm:$0xff] %v7333_v19  ;;  %v10886_v47 = vmax.f32 %v7333_v19, 0.0 }
 0x1fe   : > { %11378 = vst [vmem:[#allocation40_spill] sm:$0xff] %v7337_v29  ;;  %v10889_v18 = vmax.f32 %v7337_v29, 0.0  ;;  %v837_v7 = vpop.f32.mrb[12].mxu1 }
 0x1ff   : > { %v7351_v15 = vpack.c.bf16 %v10886_v47, %v10887_v28  ;;  %v866_v25 = vadd.f32 %v837_v7, %v781_v55  ;;  %v839_v20 = vpop.f32.mrb[13].mxu1 }
 0x200   : > { %v867_v26 = vadd.f32 %v839_v20, %v782_v60  ;;  %v841_v10 = vpop.f32.mrb[14].mxu1  ;;  %v7367_v55 = vpack.c.bf16 %v10889_v18, %v10890_v12  ;;  %v7376_v20 = vpack.c.bf16 %v297_v22, %v296_v33  ;;  %v786_v33 = vmul.f32 %v7223_v39, %v6989_v36  ;;  %v298_v18 = vld [vmem:[%s10875_s2 + $0x28] sm:$0xff]  ;;  %v299_v36 = vld [vmem:[%s10875_s2 + $0x30] sm:$0xff] }
 0x201   : > { %11379 = vst [vmem:[#allocation41_spill] sm:$0xff] %v7351_v15  ;;  %v7370_v34 = vadd.f32 %v866_v25, %v7227_v46  ;;  %v868_v7 = vadd.f32 %v841_v10, %v783_v9  ;;  %v843_v47 = vpop.f32.mrb[15].mxu1  ;;  %v785_v9 = vmul.f32 %v7223_v39, %v7004_v42  ;;  %v787_v42 = vmul.f32 %v7225_v41, %v7007_v43 }
 0x202   : > { %11380 = vst [vmem:[#allocation42_spill] sm:$0xff] %v7367_v55  ;;  %v7373_v28 = vadd.f32 %v867_v26, %v7227_v46  ;;  %v869_v8 = vadd.f32 %v843_v47, %v784_v21  ;;  %996 = vmatprep.subr.bf16.mxu0 %v7367_v55  ;;  %11383 = vst [vmem:[#allocation45_spill] sm:$0xff] %v7376_v20 }
 0x203   : > { %11381 = vst [vmem:[#allocation43_spill] sm:$0xff] %v7370_v34  ;;  %v7379_v27 = vadd.f32 %v868_v7, %v7231_v48  ;;  %997 = vmatpush1.bf16.msra.mxu0 %v7351_v15  ;;  %v10892_v25 = vmax.f32 %v7370_v34, 0.0 }
 0x204   : > { %11382 = vst [vmem:[#allocation44_spill] sm:$0xff] %v7373_v28  ;;  %v7383_v60 = vadd.f32 %v869_v8, %v7231_v48  ;;  %v10897_v21 = vmax.f32 %v7373_v28, 0.0 }
 0x205   : > { %11384 = vst [vmem:[#allocation46_spill] sm:$0xff] %v7379_v27  ;;  %v10891_v10 = vmax.f32 %v7379_v27, 0.0 }
 0x206   : > { %11385 = vst [vmem:[#allocation47_spill] sm:$0xff] %v7383_v60  ;;  %v847_v47 = vpop.f32.mrb[16].mxu1  ;;  %6246 = vmatmul.mubr.msk.bf16.vlgmr.msra.gmra.mrb[16].mxu0 %vm462_vm0, %v7376_v20 }
 0x207   : > { %v7399_v8 = vpack.c.bf16 %v10891_v10, %v10892_v25  ;;  %v870_v26 = vadd.f32 %v847_v47, %v785_v9  ;;  %v849_v7 = vpop.f32.mrb[17].mxu1  ;;  %1034 = vmatprep.mubr.bf16.mxu0 %v10893_v1  ;;  %v788_v10 = vmul.f32 %v7225_v41, %v6992_v37  ;;  %v11387_v9 = vmax.f32 %v7383_v60, 0.0 }
 0x208   : > { %v871_v12 = vadd.f32 %v849_v7, %v786_v33  ;;  %v851_v22 = vpop.f32.mrb[18].mxu1  ;;  %v7426_v37 = vpack.c.bf16 %v299_v36, %v298_v18  ;;  %v790_v7 = vmul.f32 %v7242_v0, %v7010_v44  ;;  %v301_v44 = vld [vmem:[%s10875_s2 + $0x40] sm:$0xff] }
 0x209   : > { %11386 = vst [vmem:[#allocation48_spill] sm:$0xff] %v7399_v8  ;;  %v7416_v43 = vpack.c.bf16 %v11387_v9, %v10897_v21  ;;  %v7419_v47 = vadd.f32 %v870_v26, %v7271_v16  ;;  %v872_v25 = vadd.f32 %v851_v22, %v787_v42  ;;  %v853_v1 = vpop.f32.mrb[19].mxu1  ;;  %v11395_v9 = vmov 0   ;;  %v300_v21 = vld [vmem:[%s10875_s2 + $0x38] sm:$0xff] }
 0x20a   : > { %v7422_v27 = vadd.f32 %v871_v12, %v7271_v16  ;;  %v873_v34 = vadd.f32 %v853_v1, %v788_v10  ;;  %11391 = vst [vmem:[#allocation52_spill] sm:$0xff] %v7426_v37  ;;  %v789_v10 = vmul.f32 %v7242_v0, %v7032_v51  ;;  %v791_v51 = vmul.f32 %v7250_v11, %v7035_v52 }
 0x20b   : > { %11388 = vst [vmem:[#allocation49_spill] sm:$0xff] %v7416_v43  ;;  %11389 = vst [vmem:[#allocation50_spill] sm:$0xff] %v7419_v47  ;;  %1085 = vmatprep.subr.bf16.mxu1 %v7416_v43  ;;  %1187 = vmatprep.subr.bf16.mxu0 %v7416_v43  ;;  %v7429_v33 = vadd.f32 %v872_v25, %v7284_v58  ;;  %v10899_v12 = vmax.f32 %v7419_v47, 0.0 }
 0x20c   : > { %11390 = vst [vmem:[#allocation51_spill] sm:$0xff] %v7422_v27  ;;  %1086 = vmatpush1.bf16.msra.mxu1 %v7399_v8  ;;  %1188 = vmatpush1.bf16.msra.mxu0 %v7399_v8  ;;  %v7434_v22 = vadd.f32 %v873_v34, %v7284_v58 }
 0x20d   : > { %11392 = vst [vmem:[#allocation53_spill] sm:$0xff] %v7429_v33  ;;  %v10898_v1 = vmax.f32 %v7429_v33, 0.0 }
 0x20e   : > { %11393 = vst [vmem:[#allocation54_spill] sm:$0xff] %v7434_v22  ;;  %v857_v25 = vpop.f32.mrb[20].mxu1  ;;  %6247 = vmatmul.mubr.msk.bf16.gmra.mrb[20].mxu0 %vm462_vm0, %v7426_v37 }
 0x20f   : > { %v7450_v34 = vpack.c.bf16 %v10898_v1, %v10899_v12  ;;  %v874_v42 = vadd.f32 %v857_v25, %v789_v10  ;;  %v859_v36 = vpop.f32.mrb[21].mxu1  ;;  %1044 = vmatprep.mubr.bf16.mxu0 %v11395_v9  ;;  %v792_v1 = vmul.f32 %v7250_v11, %v7013_v45  ;;  %v11396_v10 = vmax.f32 %v7422_v27, 0.0 }
 0x210   : > { %v875_v26 = vadd.f32 %v859_v36, %v790_v7  ;;  %v861_v18 = vpop.f32.mrb[22].mxu1  ;;  %v11397_v25 = vmax.f32 %v7434_v22, 0.0  ;;  %v7477_v45 = vpack.c.bf16 %v301_v44, %v300_v21  ;;  %v304_v44 = vld [vmem:[%s10875_s2 + $0x58] sm:$0xff] }
 0x211   : > { %11394 = vst [vmem:[#allocation55_spill] sm:$0xff] %v7450_v34  ;;  %v7470_v12 = vadd.f32 %v874_v42, %v7313_v23  ;;  %v876_v33 = vadd.f32 %v861_v18, %v791_v51  ;;  %v863_v47 = vpop.f32.mrb[23].mxu1 }
 0x212   : > { %v7467_v52 = vpack.c.bf16 %v11397_v25, %v11396_v10  ;;  %v7473_v60 = vadd.f32 %v875_v26, %v7313_v23  ;;  %v877_v28 = vadd.f32 %v863_v47, %v792_v1  ;;  %11401 = vst [vmem:[#allocation59_spill] sm:$0xff] %v7477_v45  ;;  %v305_v10 = vld [vmem:[%s10875_s2 + $0x60] sm:$0xff] }
 0x213   : > { %11399 = vst [vmem:[#allocation57_spill] sm:$0xff] %v7470_v12  ;;  %v7480_v7 = vadd.f32 %v876_v33, %v7326_v14  ;;  %v10907_v26 = vmax.f32 %v7470_v12, 0.0  ;;  %v303_v33 = vld [vmem:[%s10875_s2 + $0x50] sm:$0xff]  ;;  %v7531_v25 = vpack.c.bf16 %v305_v10, %v304_v44  ;;  %v332_v10 = vld [vmem:[%s10875_s2 + $0xd8] sm:$0xff] }
 0x214   : > { %11398 = vst [vmem:[#allocation56_spill] sm:$0xff] %v7467_v52  ;;  %11400 = vst [vmem:[#allocation58_spill] sm:$0xff] %v7473_v60  ;;  %1087 = vmatprep.subr.bf16.mxu1 %v7467_v52  ;;  %1189 = vmatprep.subr.bf16.mxu0 %v7467_v52  ;;  %v7485_v18 = vadd.f32 %v877_v28, %v7326_v14  ;;  %v10906_v1 = vmax.f32 %v7473_v60, 0.0  ;;  %v302_v28 = vld [vmem:[%s10875_s2 + $0x48] sm:$0xff] }
 0x215   : > { %11402 = vst [vmem:[#allocation60_spill] sm:$0xff] %v7480_v7  ;;  %1088 = vmatpush1.bf16.msra.mxu1 %v7450_v34  ;;  %1190 = vmatpush1.bf16.msra.mxu0 %v7450_v34  ;;  %v10905_v47 = vmax.f32 %v7480_v7, 0.0  ;;  %v7514_v51 = vpack.c.bf16 %v303_v33, %v302_v28  ;;  %11407 = vst [vmem:[#allocation65_spill] sm:$0xff] %v7531_v25  ;;  %v306_v28 = vld [vmem:[%s10875_s2 + $0x68] sm:$0xff]  ;;  %v307_v33 = vld [vmem:[%s10875_s2 + $0x70] sm:$0xff] }
 0x216   : > { %11403 = vst [vmem:[#allocation61_spill] sm:$0xff] %v7485_v18  ;;  %v10904_v42 = vmax.f32 %v7485_v18, 0.0  ;;  %6248 = vmatmul.mubr.msk.bf16.gmra.mrb[24].mxu0 %vm462_vm0, %v7477_v45  ;;  %v7545_v44 = vpack.c.bf16 %v307_v33, %v306_v28  ;;  %v334_v33 = vld [vmem:[%s10875_s2 + $0xe8] sm:$0xff] }
 0x217   : > { %v7497_v21 = vpack.c.bf16 %v10905_v47, %v10907_v26  ;;  %1054 = vmatprep.mubr.bf16.mxu0 %v11395_v9  ;;  %11406 = vst [vmem:[#allocation64_spill] sm:$0xff] %v7514_v51  ;;  %v335_v47 = vld [vmem:[%s10875_s2 + $0xf0] sm:$0xff] }
 0x218   : > { %v7510_v36 = vpack.c.bf16 %v10904_v42, %v10906_v1  ;;  %11408 = vst [vmem:[#allocation66_spill] sm:$0xff] %v7545_v44  ;;  %v333_v42 = vld [vmem:[%s10875_s2 + $0xe0] sm:$0xff] }
 0x219   : > { %11404 = vst [vmem:[#allocation62_spill] sm:$0xff] %v7497_v21  ;;  %v338_v28 = vpack.c.bf16 %v333_v42, %v332_v10  ;;  %v339_v42 = vpack.c.bf16 %v335_v47, %v334_v33  ;;  %v336_v10 = vld [vmem:[%s10875_s2 + $0xf8] sm:$0xff]  ;;  %v337_v47 = vld [vmem:[%s10875_s2 + $0x100] sm:$0xff]  ;;  %v323_v33 = vld [vmem:[%s10875_s2 + $0xa8] sm:$0xff] }
 0x21a   : > { %11405 = vst [vmem:[#allocation63_spill] sm:$0xff] %v7510_v36  ;;  %1089 = vmatprep.subr.bf16.mxu1 %v7510_v36  ;;  %1191 = vmatprep.subr.bf16.mxu0 %v7510_v36  ;;  %v1325_v36 = vpop.permute.xlu0 %1324 }
 0x21b   : > { %1090 = vmatpush1.bf16.msra.mxu1 %v7497_v21  ;;  %1192 = vmatpush1.bf16.msra.mxu0 %v7497_v21 }
 0x21c   : > { %1259 = vmatprep.subr.bf16.mxu0 %v7279_v53 }
 0x21e   : > { %6249 = vmatmul.mubr.msk.bf16.gmra.mrb[28].mxu0 %vm462_vm0, %v7514_v51  ;;  %6252 = vmatmul.mubr.msk.bf16.vlgmr.msra.gmra.mrb[24].mxu1 %vm462_vm0, %v7376_v20 }
 0x21f   : > { %1064 = vmatprep.mubr.bf16.mxu0 %v11395_v9  ;;  %1127 = vmatprep.mubr.bf16.mxu1 %v11395_v9 }
 0x226   : > { %6250 = vmatmul.mubr.msk.bf16.gmra.mrb[32].mxu0 %vm462_vm0, %v7531_v25  ;;  %6253 = vmatmul.mubr.msk.bf16.gmra.mrb[28].mxu1 %vm462_vm0, %v7426_v37 }
 0x227   : > { %1074 = vmatprep.mubr.bf16.mxu0 %v11395_v9  ;;  %1137 = vmatprep.mubr.bf16.mxu1 %v11395_v9 }
 0x22e   : > { %6251 = vmatmul.mubr.msk.bf16.gmra.mrb[36].mxu0 %vm462_vm0, %v7545_v44  ;;  %6254 = vmatmul.mubr.msk.bf16.gmra.mrb[32].mxu1 %vm462_vm0, %v7477_v45 }
 0x22f   : > { %1147 = vmatprep.mubr.bf16.mxu1 %v11395_v9  ;;  %1219 = vmatprep.mubr.bf16.mxu0 %v11395_v9 }
 0x236   : > { %6255 = vmatmul.mubr.msk.bf16.gmra.mrb[36].mxu1 %vm462_vm0, %v7514_v51  ;;  %6258 = vmatmul.mubr.msk.bf16.vlgmr.msra.gmra.mrb[40].mxu0 %vm462_vm0, %v338_v28  ;;  %v340_v28 = vpack.c.bf16 %v337_v47, %v336_v10  ;;  %v325_v10 = vld [vmem:[%s10875_s2 + $0xb8] sm:$0xff]  ;;  %v326_v47 = vld [vmem:[%s10875_s2 + $0xc0] sm:$0xff] }
 0x237   : > { %1260 = vmatpush1.bf16.msra.mxu0 %v7269_v30  ;;  %1157 = vmatprep.mubr.bf16.mxu1 %v11395_v9 }
 0x238   : > { %1261 = vmatprep.subr.bf16.mxu0 %v7321_v56  ;;  %1229 = vmatprep.mubr.bf16.mxu0 %v11395_v9 }
 0x23b   : > { %1262 = vmatpush1.bf16.msra.mxu0 %v7311_v49 }
 0x23c   : > { %1263 = vmatprep.subr.bf16.mxu0 %v7367_v55 }
 0x23e   : > { %6256 = vmatmul.mubr.msk.bf16.gmra.mrb[40].mxu1 %vm462_vm0, %v7531_v25  ;;  %6259 = vmatmul.mubr.msk.bf16.gmra.mrb[44].mxu0 %vm462_vm0, %v339_v42  ;;  %v324_v42 = vld [vmem:[%s10875_s2 + $0xb0] sm:$0xff] }
 0x23f   : > { %1264 = vmatpush1.bf16.msra.mxu0 %v7351_v15  ;;  %1167 = vmatprep.mubr.bf16.mxu1 %v11395_v9  ;;  %v329_v1 = vpack.c.bf16 %v324_v42, %v323_v33  ;;  %v327_v33 = vld [vmem:[%s10875_s2 + $0xc8] sm:$0xff] }
 0x240   : > { %1239 = vmatprep.mubr.bf16.mxu0 %v11395_v9 }
 0x246   : > { %6257 = vmatmul.mubr.msk.bf16.gmra.mrb[44].mxu1 %vm462_vm0, %v7545_v44  ;;  %6260 = vmatmul.mubr.msk.bf16.gmra.mrb[48].mxu0 %vm462_vm0, %v340_v28  ;;  %v330_v28 = vpack.c.bf16 %v326_v47, %v325_v10 }
 0x247   : > { %1291 = vmatprep.mubr.bf16.mxu0 %v11395_v9  ;;  %1428 = vmatprep.mubr.bf16.mxu1 %v11395_v9 }
 0x24e   : > { %6261 = vmatmul.mubr.msk.bf16.vlgmr.msra.gmra.mrb[40].mxu0 %vm462_vm0, %v329_v1  ;;  %v328_v1 = vld [vmem:[%s10875_s2 + $0xd0] sm:$0xff] }
 0x24f   : > { %1301 = vmatprep.mubr.bf16.mxu0 %v11395_v9  ;;  %v331_v42 = vpack.c.bf16 %v328_v1, %v327_v33 }
 0x256   : > { %6262 = vmatmul.mubr.msk.bf16.gmra.mrb[44].mxu0 %vm462_vm0, %v330_v28 }
 0x257   : > { %1311 = vmatprep.mubr.bf16.mxu0 %v11395_v9 }
 0x25e   : > { %6263 = vmatmul.mubr.msk.bf16.gmra.mrb[48].mxu0 %vm462_vm0, %v331_v42 }
 0x25f   : > { %1774 = vmatprep.mubr.bf16.mxu0 %v11395_v9 }
 0x2d9   : > { %v7615_v26 = vpop.f32.mrb[16].mxu0 }
 0x2da   : > { %v7617_v10 = vpop.f32.mrb[17].mxu0 }
 0x2db   : > { %v7619_v47 = vpop.f32.mrb[18].mxu0 }
 0x2dc   : > { %v7621_v28 = vpop.f32.mrb[19].mxu0 }
 0x2e1   : > { %v7623_v44 = vpop.f32.mrb[20].mxu0 }
 0x2e2   : > { %v7625_v25 = vpop.f32.mrb[21].mxu0 }
 0x2e3   : > { %v7627_v51 = vpop.f32.mrb[22].mxu0 }
 0x2e4   : > { %v7629_v45 = vpop.f32.mrb[23].mxu0 }
 0x2e9   : > { %v7631_v33 = vpop.f32.mrb[24].mxu0 }
 0x2ea   : > { %v7633_v1 = vpop.f32.mrb[25].mxu0 }
 0x2eb   : > { %v7635_v42 = vpop.f32.mrb[26].mxu0 }
 0x2ec   : > { %v7637_v18 = vpop.f32.mrb[27].mxu0 }
 0x2f1   : > { %v7639_v7 = vpop.f32.mrb[28].mxu0  ;;  %v7641_v60 = vpop.f32.mrb[24].mxu1 }
 0x2f2   : > { %v7643_v37 = vpop.f32.mrb[29].mxu0  ;;  %v7645_v12 = vpop.f32.mrb[25].mxu1 }
 0x2f3   : > { %v7647_v22 = vpop.f32.mrb[30].mxu0  ;;  %v7649_v27 = vpop.f32.mrb[26].mxu1 }
 0x2f4   : > { %v7651_v20 = vpop.f32.mrb[31].mxu0  ;;  %v7653_v14 = vpop.f32.mrb[27].mxu1 }
 0x2f9   : > { %v7655_v23 = vpop.f32.mrb[32].mxu0  ;;  %v7657_v29 = vpop.f32.mrb[28].mxu1 }
 0x2fa   : > { %v7659_v19 = vpop.f32.mrb[33].mxu0  ;;  %v7661_v11 = vpop.f32.mrb[29].mxu1 }
 0x2fb   : > { %v7663_v63 = vpop.f32.mrb[34].mxu0  ;;  %v7665_v24 = vpop.f32.mrb[30].mxu1 }
 0x2fc   : > { %v7667_v0 = vpop.f32.mrb[35].mxu0  ;;  %v7669_v58 = vpop.f32.mrb[31].mxu1 }
 0x301   : > { %v7671_v16 = vpop.f32.mrb[36].mxu0  ;;  %v7673_v61 = vpop.f32.mrb[32].mxu1 }
 0x302   : > { %v7675_v13 = vpop.f32.mrb[37].mxu0  ;;  %v7677_v41 = vpop.f32.mrb[33].mxu1 }
 0x303   : > { %v7679_v59 = vpop.f32.mrb[38].mxu0  ;;  %v7681_v17 = vpop.f32.mrb[34].mxu1 }
 0x304   : > { %11409 = vst [vmem:[#allocation67_spill] sm:$0xff] %v7679_v59  ;;  %v7683_v39 = vpop.f32.mrb[39].mxu0  ;;  %v7685_v48 = vpop.f32.mrb[35].mxu1 }
 0x305   : > { %11410 = vst [vmem:[#allocation68_spill] sm:$0xff] %v7683_v39 }
 0x309   : > { %v7687_v46 = vpop.f32.mrb[36].mxu1 }
 0x30a   : > { %11411 = vst [vmem:[#allocation69_spill] sm:$0xff] %v7687_v46  ;;  %v7689_v6 = vpop.f32.mrb[37].mxu1 }
 0x30b   : > { %11412 = vst [vmem:[#allocation70_spill] sm:$0xff] %v7689_v6  ;;  %v7691_v4 = vpop.f32.mrb[38].mxu1 }
 0x30c   : > { %11413 = vst [vmem:[#allocation71_spill] sm:$0xff] %v7691_v4  ;;  %v7693_v35 = vpop.f32.mrb[39].mxu1 }
 0x30d   : > { %11414 = vst [vmem:[#allocation72_spill] sm:$0xff] %v7693_v35 }
 0x311   : > { %v7695_v2 = vpop.f32.mrb[40].mxu1 }
 0x312   : > { %11415 = vst [vmem:[#allocation73_spill] sm:$0xff] %v7695_v2  ;;  %v7697_v62 = vpop.f32.mrb[41].mxu1 }
 0x313   : > { %11416 = vst [vmem:[#allocation74_spill] sm:$0xff] %v7697_v62  ;;  %v7699_v32 = vpop.f32.mrb[42].mxu1 }
 0x314   : > { %11417 = vst [vmem:[#allocation75_spill] sm:$0xff] %v7699_v32  ;;  %v7701_v31 = vpop.f32.mrb[43].mxu1 }
 0x315   : > { %11418 = vst [vmem:[#allocation76_spill] sm:$0xff] %v7701_v31 }
 0x319   : > { %v7703_v40 = vpop.f32.mrb[44].mxu1 }
 0x31a   : > { %11419 = vst [vmem:[#allocation77_spill] sm:$0xff] %v7703_v40  ;;  %v7705_v5 = vpop.f32.mrb[45].mxu1 }
 0x31b   : > { %11420 = vst [vmem:[#allocation78_spill] sm:$0xff] %v7705_v5  ;;  %v7707_v50 = vpop.f32.mrb[46].mxu1 }
 0x31c   : > { %11421 = vst [vmem:[#allocation79_spill] sm:$0xff] %v7707_v50  ;;  %v7709_v21 = vpop.f32.mrb[47].mxu1 }
 0x31d   : > { %11422 = vst [vmem:[#allocation80_spill] sm:$0xff] %v7709_v21 }
 0x321   : > { %v1293_v34 = vpop.f32.mrb[40].mxu0 }
 0x322   : > { %v1352_v52 = vadd.f32 %v1325_v36, %v1293_v34  ;;  %v1295_v8 = vpop.f32.mrb[41].mxu0 }
 0x323   : > { %v1353_v43 = vadd.f32 %v1325_v36, %v1295_v8  ;;  %v1297_v15 = vpop.f32.mrb[42].mxu0 }
 0x324   : > { %v1354_v55 = vadd.f32 %v1330_v38, %v1297_v15  ;;  %v1299_v49 = vpop.f32.mrb[43].mxu0  ;;  %v1364_v30 = vmax.f32 %v1352_v52, 0.0  ;;  %v1335_v52 = vpop.permute.xlu0 %1334 }
 0x325   : > { %v1355_v56 = vadd.f32 %v1330_v38, %v1299_v49  ;;  %v1365_v40 = vmax.f32 %v1353_v43, 0.0 }
 0x326   : > { %v1366_v53 = vmax.f32 %v1354_v55, 0.0 }
 0x327   : > { %v1367_v5 = vmax.f32 %v1355_v56, 0.0 }
 0x328   : > { %v1376_v31 = vpack.c.bf16 %v1366_v53, %v1364_v30 }
 0x329   : > { %v1377_v32 = vpack.c.bf16 %v1367_v5, %v1365_v40  ;;  %v1303_v50 = vpop.f32.mrb[44].mxu0 }
 0x32a   : > { %v1305_v62 = vpop.f32.mrb[45].mxu0  ;;  %v1356_v59 = vadd.f32 %v1335_v52, %v1303_v50 }
 0x32b   : > { %v1307_v21 = vpop.f32.mrb[46].mxu0 }
 0x32c   : > { %v1309_v2 = vpop.f32.mrb[47].mxu0  ;;  %v1358_v35 = vadd.f32 %v1340_v3, %v1307_v21  ;;  %v1357_v21 = vadd.f32 %v1335_v52, %v1305_v62 }
 0x32d   : > { %v1359_v4 = vadd.f32 %v1340_v3, %v1309_v2 }
 0x32e   : > { %v1370_v15 = vmax.f32 %v1358_v35, 0.0  ;;  %v356_v35 = vld [vmem:[%s10876_s3 + $0x50] sm:$0xff] }
 0x32f   : > { %v1371_v55 = vmax.f32 %v1359_v4, 0.0 }
 0x331   : > { %v1313_v34 = vpop.f32.mrb[48].mxu0 }
 0x332   : > { %v1360_v6 = vadd.f32 %v1345_v57, %v1313_v34  ;;  %v1315_v46 = vpop.f32.mrb[49].mxu0 }
 0x333   : > { %v1361_v8 = vadd.f32 %v1345_v57, %v1315_v46  ;;  %v1317_v36 = vpop.f32.mrb[50].mxu0  ;;  %v355_v57 = vld [vmem:[%s10876_s3 + $0x48] sm:$0xff] }
 0x334   : > { %v1372_v39 = vmax.f32 %v1360_v6, 0.0  ;;  %v1362_v38 = vadd.f32 %v1350_v54, %v1317_v36  ;;  %v1319_v49 = vpop.f32.mrb[51].mxu0  ;;  %v7719_v50 = vpack.c.bf16 %v356_v35, %v355_v57  ;;  %v357_v6 = vld [vmem:[%s10876_s3 + $0x58] sm:$0xff]  ;;  %v352_v36 = vld [vmem:[%s10876_s3 + $0x40] sm:$0xff] }
 0x335   : > { %v1373_v43 = vmax.f32 %v1361_v8, 0.0  ;;  %v1363_v56 = vadd.f32 %v1350_v54, %v1319_v49  ;;  %v1368_v54 = vmax.f32 %v1356_v59, 0.0  ;;  %v7729_v34 = vpack.c.bf16 %v357_v6, %v357_v6 }
 0x336   : > { %v1380_v30 = vpack.c.bf16 %v1372_v39, %v1370_v15  ;;  %v1374_v5 = vmax.f32 %v1362_v38, 0.0  ;;  %v1369_v39 = vmax.f32 %v1357_v21, 0.0  ;;  %11423 = vst [vmem:[#allocation81_spill] sm:$0xff] %v7719_v50  ;;  %v7748_v15 = vpack.c.bf16 %v352_v36, %v352_v36 }
 0x337   : > { %v1381_v40 = vpack.c.bf16 %v1373_v43, %v1371_v55  ;;  %v1375_v53 = vmax.f32 %v1363_v56, 0.0  ;;  %v1378_v62 = vpack.c.bf16 %v1368_v54, %v1368_v54  ;;  %11424 = vst [vmem:[#allocation82_spill] sm:$0xff] %v7729_v34  ;;  %v7753_v56 = vpop.permute.xlu1 %1512 }
 0x338   : > { %v1382_v3 = vpack.c.bf16 %v1374_v5, %v1374_v5  ;;  %v1379_v4 = vpack.c.bf16 %v1369_v39, %v1369_v39  ;;  %11426 = vst [vmem:[#allocation84_spill] sm:$0xff] %v7748_v15  ;;  %11427 = vst [vmem:[#allocation85_spill] sm:$0xff] %v7753_v56 }
 0x339   : > { %v1383_v2 = vpack.c.bf16 %v1375_v53, %v1375_v53  ;;  %1396 = vmatprep.subr.bf16.mxu1 %v1381_v40  ;;  %v1454_v59 = vsel %vm582_vm1, %v1378_v62, 0  ;;  %v7756_v53 = vpop.permute.xlu0 %1517 }
 0x33a   : > { %1397 = vmatpush1.bf16.msra.mxu1 %v1380_v30  ;;  %v1391_v46 = vsel %vm582_vm1, %v1382_v3, 0  ;;  %11428 = vst [vmem:[#allocation86_spill] sm:$0xff] %v7756_v53 }
 0x33b   : > { %6264 = vmatprep.subr.msk.bf16.mxu1 %vm582_vm1, %v1383_v2 }
 0x33e   : > { %1399 = vmatpush1.bf16.msra.mxu1 %v1391_v46 }
 0x33f   : > { %1459 = vmatprep.subr.bf16.mxu1 %v1377_v32  ;;  %v351_v32 = vld [vmem:[%s10876_s3 + $0x38] sm:$0xff] }
 0x341   : > { %6265 = vmatmul.mubr.msk.bf16.vlgmr.msra.gmra.mrb[48].mxu1 %vm572_vm2, %v7719_v50 }
 0x342   : > { %1460 = vmatpush1.bf16.msra.mxu1 %v1376_v31  ;;  %1438 = vmatprep.mubr.bf16.mxu1 %v11395_v9  ;;  %v350_v31 = vld [vmem:[%s10876_s3 + $0x30] sm:$0xff] }
 0x343   : > { %6267 = vmatprep.subr.msk.bf16.mxu1 %vm582_vm1, %v1379_v4  ;;  %v7740_v8 = vpack.c.bf16 %v351_v32, %v350_v31 }
 0x345   : > { %11425 = vst [vmem:[#allocation83_spill] sm:$0xff] %v7740_v8 }
 0x346   : > { %1462 = vmatpush1.bf16.msra.mxu1 %v1454_v59 }
 0x349   : > { %6266 = vmatmul.mubr.msk.bf16.gmra.mrb[52].mxu1 %vm572_vm2, %v7729_v34 }
 0x34a   : > { %1491 = vmatprep.mubr.bf16.mxu1 %v11395_v9 }
 0x351   : > { %6268 = vmatmul.mubr.msk.bf16.vlgmr.msra.gmra.mrb[48].mxu1 %vm572_vm2, %v7740_v8 }
 0x352   : > { %1501 = vmatprep.mubr.bf16.mxu1 %v11395_v9 }
 0x359   : > { %6269 = vmatmul.mubr.msk.bf16.gmra.mrb[56].mxu1 %vm572_vm2, %v7748_v15 }
 0x35a   : > { %1666 = vmatprep.mubr.bf16.mxu1 %v11395_v9 }
 0x41c   : > { %v1440_v38 = vpop.f32.mrb[52].mxu1 }
 0x41d   : > { %v1442_v49 = vpop.f32.mrb[53].mxu1 }
 0x41e   : > { %v1444_v55 = vpop.f32.mrb[54].mxu1 }
 0x41f   : > { %v1445_v43 = vpop.f32.mrb[55].mxu1 }
 0x424   : > { %v1493_v30 = vpop.f32.mrb[48].mxu1 }
 0x425   : > { %v1525_v5 = vadd.f32 %v7753_v56, %v1493_v30  ;;  %v1495_v40 = vpop.f32.mrb[49].mxu1 }
 0x426   : > { %v1526_v52 = vadd.f32 %v7753_v56, %v1495_v40  ;;  %v1497_v21 = vpop.f32.mrb[50].mxu1  ;;  %v7761_v56 = vpop.permute.xlu1 %1522 }
 0x427   : > { %v1537_v3 = vmul.f32 0.044715, %v1525_v5  ;;  %v1527_v2 = vadd.f32 %v7756_v53, %v1497_v21  ;;  %v1499_v57 = vpop.f32.mrb[51].mxu1  ;;  %11429 = vst [vmem:[#allocation87_spill] sm:$0xff] %v7761_v56 }
 0x428   : > { %v1538_v35 = vmul.f32 0.044715, %v1526_v52  ;;  %v1528_v54 = vadd.f32 %v7756_v53, %v1499_v57 }
 0x429   : > { %v1543_v39 = vmul.f32 %v1537_v3, %v1525_v5  ;;  %v1539_v46 = vmul.f32 0.044715, %v1527_v2 }
 0x42a   : > { %v1544_v62 = vmul.f32 %v1538_v35, %v1526_v52  ;;  %v1540_v4 = vmul.f32 0.044715, %v1528_v54 }
 0x42b   : > { %v1549_v6 = vmul.f32 %v1543_v39, %v1525_v5  ;;  %v1545_v59 = vmul.f32 %v1539_v46, %v1527_v2 }
 0x42c   : > { %v1550_v31 = vmul.f32 %v1544_v62, %v1526_v52  ;;  %v1546_v32 = vmul.f32 %v1540_v4, %v1528_v54  ;;  %v1503_v36 = vpop.f32.mrb[56].mxu1 }
 0x42d   : > { %v1555_v55 = vadd.f32 %v1549_v6, %v1525_v5  ;;  %v1551_v43 = vmul.f32 %v1545_v59, %v1527_v2  ;;  %v1504_v30 = vadd.f32 %v1503_v36, %v1440_v38  ;;  %v1505_v40 = vpop.f32.mrb[57].mxu1 }
 0x42e   : > { %v1552_v21 = vmul.f32 %v1546_v32, %v1528_v54  ;;  %v1506_v15 = vadd.f32 %v1505_v40, %v1442_v49  ;;  %v1507_v8 = vpop.f32.mrb[58].mxu1  ;;  %v1556_v34 = vadd.f32 %v1550_v31, %v1526_v52 }
 0x42f   : > { %v1561_v57 = vmul.f32 0.7978846, %v1555_v55  ;;  %v1557_v3 = vadd.f32 %v1551_v43, %v1527_v2  ;;  %v1529_v35 = vadd.f32 %v7761_v56, %v1504_v30  ;;  %v1508_v53 = vpop.f32.mrb[59].mxu1 }
 0x430   : > { %v1530_v39 = vadd.f32 %v7761_v56, %v1506_v15  ;;  %v1558_v46 = vadd.f32 %v1552_v21, %v1528_v54  ;;  %v1562_v62 = vmul.f32 0.7978846, %v1556_v34 }
 0x431   : > { %6496 = vtanh.f32 %v1561_v57  ;;  %v1563_v4 = vmul.f32 0.7978846, %v1557_v3  ;;  %v1541_v6 = vmul.f32 0.044715, %v1529_v35  ;;  %v1531_v3 = vmul.f32 0.5, %v1525_v5 }
 0x432   : > { %v1542_v38 = vmul.f32 0.044715, %v1530_v39  ;;  %v1564_v59 = vmul.f32 0.7978846, %v1558_v46  ;;  %6498 = vtanh.f32 %v1562_v62  ;;  %v1533_v46 = vmul.f32 0.5, %v1527_v2 }
 0x433   : > { %6500 = vtanh.f32 %v1563_v4  ;;  %v1547_v32 = vmul.f32 %v1541_v6, %v1529_v35  ;;  %v1532_v4 = vmul.f32 0.5, %v1526_v52  ;;  %v1534_v6 = vmul.f32 0.5, %v1528_v54  ;;  %v360_v52 = vld [vmem:[%s10876_s3 + $0x60] sm:$0xff]  ;;  %v361_v54 = vld [vmem:[%s10876_s3 + $0x68] sm:$0xff] }
 0x434   : > { %v1548_v49 = vmul.f32 %v1542_v38, %v1530_v39  ;;  %6502 = vtanh.f32 %v1564_v59 }
 0x435   : > { %v1553_v8 = vmul.f32 %v1547_v32, %v1529_v35 }
 0x436   : > { %v1554_v31 = vmul.f32 %v1548_v49, %v1530_v39 }
 0x437   : > { %v1559_v36 = vadd.f32 %v1553_v8, %v1529_v35 }
 0x438   : > { %v1560_v55 = vadd.f32 %v1554_v31, %v1530_v39 }
 0x439   : > { %v1565_v43 = vmul.f32 0.7978846, %v1559_v36 }
 0x43a   : > { %v1566_v53 = vmul.f32 0.7978846, %v1560_v55 }
 0x43b   : > { %v6497_v30 = vpop.eup %6496  ;;  %6504 = vtanh.f32 %v1565_v43 }
 0x43c   : > { %v6499_v15 = vpop.eup %6498  ;;  %v1573_v34 = vadd.f32 1.0, %v6497_v30  ;;  %6506 = vtanh.f32 %v1566_v53  ;;  %v1535_v53 = vmul.f32 0.5, %v1529_v35  ;;  %v7773_v35 = vpack.c.bf16 %v361_v54, %v360_v52 }
 0x43d   : > { %v6501_v40 = vpop.eup %6500  ;;  %v1574_v21 = vadd.f32 1.0, %v6499_v15  ;;  %v1536_v15 = vmul.f32 0.5, %v1530_v39  ;;  %v363_v39 = vld [vmem:[%s10876_s3 + $0x78] sm:$0xff] }
 0x43e   : > { %v6503_v57 = vpop.eup %6502  ;;  %v1575_v62 = vadd.f32 1.0, %v6501_v40  ;;  %v1579_v59 = vmul.f32 %v1573_v34, %v1531_v3  ;;  %11430 = vst [vmem:[#allocation88_spill] sm:$0xff] %v7773_v35  ;;  %v364_v3 = vld [vmem:[%s10876_s3 + $0x80] sm:$0xff] }
 0x43f   : > { %v1576_v38 = vadd.f32 1.0, %v6503_v57  ;;  %v1580_v49 = vmul.f32 %v1574_v21, %v1532_v4 }
 0x440   : > { %v1581_v32 = vmul.f32 %v1575_v62, %v1533_v46  ;;  %v365_v46 = vld [vmem:[%s10876_s3 + $0x88] sm:$0xff] }
 0x441   : > { %v1582_v8 = vmul.f32 %v1576_v38, %v1534_v6  ;;  %v7795_v62 = vpack.c.bf16 %v365_v46, %v364_v3  ;;  %v7800_v6 = vpop.permute.xlu0 %1591 }
 0x442   : > { %v1585_v31 = vpack.c.bf16 %v1581_v32, %v1579_v59  ;;  %11433 = vst [vmem:[#allocation91_spill] sm:$0xff] %v7800_v6  ;;  %v7802_v59 = vpop.permute.xlu1 %1596 }
 0x443   : > { %v1586_v36 = vpack.c.bf16 %v1582_v8, %v1580_v49  ;;  %11432 = vst [vmem:[#allocation90_spill] sm:$0xff] %v7795_v62  ;;  %11434 = vst [vmem:[#allocation92_spill] sm:$0xff] %v7802_v59 }
 0x445   : > { %v6505_v55 = vpop.eup %6504  ;;  %1634 = vmatprep.subr.bf16.mxu1 %v1586_v36 }
 0x446   : > { %v6507_v43 = vpop.eup %6506  ;;  %1635 = vmatpush1.bf16.msra.mxu1 %v1585_v31  ;;  %v1577_v30 = vadd.f32 1.0, %v6505_v55 }
 0x447   : > { %v1578_v56 = vadd.f32 1.0, %v6507_v43 }
 0x448   : > { %v1583_v5 = vmul.f32 %v1577_v30, %v1535_v53 }
 0x449   : > { %v1584_v2 = vmul.f32 %v1578_v56, %v1536_v15  ;;  %v362_v56 = vld [vmem:[%s10876_s3 + $0x70] sm:$0xff]  ;;  %v7808_v15 = vpop.permute.xlu0 %1601 }
 0x44a   : > { %v1587_v40 = vpack.c.bf16 %v1583_v5, %v1583_v5  ;;  %v7784_v57 = vpack.c.bf16 %v363_v39, %v362_v56  ;;  %11435 = vst [vmem:[#allocation93_spill] sm:$0xff] %v7808_v15 }
 0x44b   : > { %v1588_v34 = vpack.c.bf16 %v1584_v2, %v1584_v2  ;;  %v7810_v2 = vpop.permute.xlu1 %1606 }
 0x44c   : > { %v1629_v21 = vsel %vm582_vm1, %v1587_v40, 0  ;;  %11431 = vst [vmem:[#allocation89_spill] sm:$0xff] %v7784_v57  ;;  %11436 = vst [vmem:[#allocation94_spill] sm:$0xff] %v7810_v2 }
 0x44d   : > { %6270 = vmatprep.subr.msk.bf16.mxu1 %vm582_vm1, %v1588_v34 }
 0x44e   : > { %1637 = vmatpush1.bf16.msra.mxu1 %v1629_v21 }
 0x451   : > { %6271 = vmatmul.mubr.msk.bf16.vlgmr.msra.gmra.mrb[60].mxu1 %vm572_vm2, %v7773_v35 }
 0x452   : > { %1676 = vmatprep.mubr.bf16.mxu1 %v11395_v9 }
 0x459   : > { %6272 = vmatmul.mubr.msk.bf16.gmra.mrb[64].mxu1 %vm572_vm2, %v7784_v57 }
 0x45a   : > { %1686 = vmatprep.mubr.bf16.mxu1 %v11395_v9 }
 0x461   : > { %6273 = vmatmul.mubr.msk.bf16.gmra.mrb[68].mxu1 %vm572_vm2, %v7795_v62 }
 0x462   : > { %2203 = vmatprep.mubr.bf16.mxu1 %v11395_v9 }
 0x524   : > { %v1668_v4 = vpop.f32.mrb[60].mxu1 }
 0x525   : > { %v1670_v38 = vpop.f32.mrb[61].mxu1  ;;  %v1669_v49 = vadd.f32 %v1668_v4, %v7800_v6  ;;  %v7816_v4 = vpop.permute.xlu0 %1611 }
 0x526   : > { %v1672_v32 = vpop.f32.mrb[62].mxu1  ;;  %v1671_v36 = vadd.f32 %v1670_v38, %v7800_v6  ;;  %11437 = vst [vmem:[#allocation95_spill] sm:$0xff] %v7816_v4 }
 0x527   : > { %v1673_v8 = vadd.f32 %v1672_v32, %v7802_v59  ;;  %v1674_v31 = vpop.f32.mrb[63].mxu1  ;;  %v7818_v32 = vpop.permute.xlu1 %1616 }
 0x528   : > { %v1675_v55 = vadd.f32 %v1674_v31, %v7802_v59  ;;  %11438 = vst [vmem:[#allocation96_spill] sm:$0xff] %v7818_v32 }
 0x529   : > { %v1697_v43 = vpack.c.bf16 %v1673_v8, %v1669_v49 }
 0x52a   : > { %v1698_v53 = vpack.c.bf16 %v1675_v55, %v1671_v36 }
 0x52c   : > { %v1678_v30 = vpop.f32.mrb[64].mxu1  ;;  %1742 = vmatprep.subr.bf16.mxu0 %v1698_v53 }
 0x52d   : > { %v1680_v5 = vpop.f32.mrb[65].mxu1  ;;  %1743 = vmatpush1.bf16.msra.mxu0 %v1697_v43  ;;  %v1679_v52 = vadd.f32 %v1678_v30, %v7808_v15  ;;  %v314_v30 = vld [vmem:[%s10875_s2 + $0x78] sm:$0xff] }
 0x52e   : > { %v1682_v40 = vpop.f32.mrb[66].mxu1  ;;  %v1681_v21 = vadd.f32 %v1680_v5, %v7808_v15  ;;  %v315_v5 = vld [vmem:[%s10875_s2 + $0x80] sm:$0xff] }
 0x52f   : > { %v1683_v54 = vadd.f32 %v1682_v40, %v7810_v2  ;;  %v1684_v34 = vpop.f32.mrb[67].mxu1 }
 0x530   : > { %v1685_v56 = vadd.f32 %v1684_v34, %v7810_v2  ;;  %v317_v34 = vld [vmem:[%s10875_s2 + $0x90] sm:$0xff] }
 0x531   : > { %v1699_v39 = vpack.c.bf16 %v1683_v54, %v1679_v52  ;;  %v7830_v52 = vpack.c.bf16 %v315_v5, %v314_v30  ;;  %v316_v54 = vld [vmem:[%s10875_s2 + $0x88] sm:$0xff] }
 0x532   : > { %v1700_v3 = vpack.c.bf16 %v1685_v56, %v1681_v21  ;;  %v7841_v21 = vpack.c.bf16 %v317_v34, %v316_v54  ;;  %v318_v56 = vld [vmem:[%s10875_s2 + $0x98] sm:$0xff] }
 0x533   : > { %11439 = vst [vmem:[#allocation97_spill] sm:$0xff] %v7830_v52 }
 0x534   : > { %v1688_v46 = vpop.f32.mrb[68].mxu1  ;;  %1744 = vmatprep.subr.bf16.mxu0 %v1700_v3  ;;  %11440 = vst [vmem:[#allocation98_spill] sm:$0xff] %v7841_v21 }
 0x535   : > { %v1690_v38 = vpop.f32.mrb[69].mxu1  ;;  %1745 = vmatpush1.bf16.msra.mxu0 %v1699_v39  ;;  %v1689_v8 = vadd.f32 %v1688_v46, %v7816_v4  ;;  %v319_v39 = vld [vmem:[%s10875_s2 + $0xa0] sm:$0xff]  ;;  %v7857_v46 = vpop.permute.xlu0 %916 }
 0x536   : > { %v1692_v49 = vpop.f32.mrb[70].mxu1  ;;  %v1691_v55 = vadd.f32 %v1690_v38, %v7816_v4  ;;  %v7852_v3 = vpack.c.bf16 %v319_v39, %v318_v56  ;;  %11442 = vst [vmem:[#allocation100_spill] sm:$0xff] %v7857_v46  ;;  %v7887_v56 = vadd.f32 %v7615_v26, %v7857_v46  ;;  %v7891_v39 = vadd.f32 %v7617_v10, %v7857_v46 }
 0x537   : > { %v1693_v31 = vadd.f32 %v1692_v49, %v7818_v32  ;;  %v1694_v36 = vpop.f32.mrb[71].mxu1  ;;  %v7861_v49 = vpop.permute.xlu1 %921 }
 0x538   : > { %v1695_v43 = vadd.f32 %v1694_v36, %v7818_v32  ;;  %11441 = vst [vmem:[#allocation99_spill] sm:$0xff] %v7852_v3  ;;  %11444 = vst [vmem:[#allocation102_spill] sm:$0xff] %v7861_v49 }
 0x539   : > { %v1701_v53 = vpack.c.bf16 %v1693_v31, %v1689_v8  ;;  %v7859_v38 = vpop.permute.xlu0 %931 }
 0x53a   : > { %v1702_v40 = vpack.c.bf16 %v1695_v43, %v1691_v55  ;;  %11443 = vst [vmem:[#allocation101_spill] sm:$0xff] %v7859_v38  ;;  %v7911_v10 = vadd.f32 %v7627_v51, %v7859_v38 }
 0x53b   : > { %v7865_v31 = vpop.permute.xlu1 %936 }
 0x53c   : > { %1746 = vmatprep.subr.bf16.mxu0 %v1702_v40  ;;  %11446 = vst [vmem:[#allocation104_spill] sm:$0xff] %v7865_v31 }
 0x53d   : > { %1747 = vmatpush1.bf16.msra.mxu0 %v1701_v53  ;;  %v7863_v8 = vpop.permute.xlu0 %1720 }
 0x53e   : > { %11445 = vst [vmem:[#allocation103_spill] sm:$0xff] %v7863_v8 }
 0x53f   : > { %v7869_v55 = vpop.permute.xlu1 %1725 }
 0x540   : > { %6274 = vmatmul.mubr.msk.bf16.vlgmr.msra.gmra.mrb[52].mxu0 %vm462_vm0, %v7830_v52  ;;  %11448 = vst [vmem:[#allocation106_spill] sm:$0xff] %v7869_v55 }
 0x541   : > { %1784 = vmatprep.mubr.bf16.mxu0 %v11395_v9  ;;  %v7867_v36 = vpop.permute.xlu0 %926 }
 0x542   : > { %11447 = vst [vmem:[#allocation105_spill] sm:$0xff] %v7867_v36  ;;  %v7903_v52 = vadd.f32 %v7623_v44, %v7867_v36  ;;  %v7907_v26 = vadd.f32 %v7625_v25, %v7867_v36  ;;  %v7923_v44 = vadd.f32 %v7633_v1, %v7865_v31  ;;  %v7980_v15 = vadd.f32 %v7657_v29, %v7867_v36 }
 0x543   : > { %v7873_v53 = vpop.permute.xlu1 %941  ;;  %v8007_v35 = vadd.f32 %v7661_v11, %v7867_v36 }
 0x544   : > { %11450 = vst [vmem:[#allocation108_spill] sm:$0xff] %v7873_v53  ;;  %11456 = vst [vmem:[#allocation114_spill] sm:$0xff] %v7907_v26  ;;  %v7929_v25 = vadd.f32 %v7635_v42, %v7873_v53  ;;  %v7933_v51 = vadd.f32 %v7637_v18, %v7873_v53  ;;  %v7949_v42 = vadd.f32 %v7645_v12, %v7857_v46 }
 0x545   : > { %v7871_v43 = vpop.permute.xlu0 %1730  ;;  %v7971_v12 = vadd.f32 %v7665_v24, %v7859_v38  ;;  %11466 = vst [vmem:[#allocation124_spill] sm:$0xff] %v8007_v35 }
 0x546   : > { %11449 = vst [vmem:[#allocation107_spill] sm:$0xff] %v7871_v43  ;;  %11458 = vst [vmem:[#allocation116_spill] sm:$0xff] %v7933_v51 }
 0x547   : > { %v7877_v5 = vpop.permute.xlu1 %1705 }
 0x548   : > { %6275 = vmatmul.mubr.msk.bf16.gmra.mrb[56].mxu0 %vm462_vm0, %v7841_v21  ;;  %11452 = vst [vmem:[#allocation110_spill] sm:$0xff] %v7877_v5  ;;  %v7899_v21 = vadd.f32 %v7621_v28, %v7861_v49  ;;  %v7919_v28 = vadd.f32 %v7631_v33, %v7865_v31  ;;  %v7941_v33 = vadd.f32 %v7641_v60, %v7857_v46 }
 0x549   : > { %1794 = vmatprep.mubr.bf16.mxu0 %v11395_v9  ;;  %v7875_v30 = vpop.permute.xlu0 %1710 }
 0x54a   : > { %11451 = vst [vmem:[#allocation109_spill] sm:$0xff] %v7875_v30 }
 0x54b   : > { %v7881_v54 = vpop.permute.xlu1 %1715 }
 0x54c   : > { %11454 = vst [vmem:[#allocation112_spill] sm:$0xff] %v7881_v54 }
 0x54d   : > { %v7879_v40 = vpop.permute.xlu0 %946 }
 0x54e   : > { %11453 = vst [vmem:[#allocation111_spill] sm:$0xff] %v7879_v40  ;;  %v7945_v1 = vadd.f32 %v7643_v37, %v7879_v40  ;;  %v7967_v37 = vadd.f32 %v7653_v14, %v7861_v49 }
 0x54f   : > { %v7925_v32 = vpop.permute.xlu1 %951 }
 0x550   : > { %6276 = vmatmul.mubr.msk.bf16.gmra.mrb[60].mxu0 %vm462_vm0, %v7852_v3  ;;  %v7895_v3 = vadd.f32 %v7619_v47, %v7861_v49  ;;  %v7915_v47 = vadd.f32 %v7629_v45, %v7859_v38  ;;  %11457 = vst [vmem:[#allocation115_spill] sm:$0xff] %v7925_v32  ;;  %v7937_v45 = vadd.f32 %v7639_v7, %v7879_v40  ;;  %11460 = vst [vmem:[#allocation118_spill] sm:$0xff] %v7945_v1 }
 0x551   : > { %2381 = vmatprep.mubr.bf16.mxu0 %v11395_v9  ;;  %v7883_v34 = vpop.permute.xlu0 %961  ;;  %v7953_v18 = vadd.f32 %v7647_v22, %v7925_v32  ;;  %v7957_v7 = vadd.f32 %v7649_v27, %v7861_v49  ;;  %v7963_v60 = vadd.f32 %v7651_v20, %v7925_v32  ;;  %v7984_v20 = vadd.f32 %v7669_v58, %v7859_v38 }
 0x552   : > { %11455 = vst [vmem:[#allocation113_spill] sm:$0xff] %v7883_v34  ;;  %11459 = vst [vmem:[#allocation117_spill] sm:$0xff] %v7937_v45  ;;  %v8011_v9 = vadd.f32 %v7663_v63, %v7883_v34 }
 0x553   : > { %11461 = vst [vmem:[#allocation119_spill] sm:$0xff] %v7953_v18  ;;  %11463 = vst [vmem:[#allocation121_spill] sm:$0xff] %v7963_v60  ;;  %v8029_v60 = vpop.permute.xlu1 %966 }
 0x554   : > { %11467 = vst [vmem:[#allocation125_spill] sm:$0xff] %v8011_v9  ;;  %11469 = vst [vmem:[#allocation127_spill] sm:$0xff] %v8029_v60 }
 0x555   : > { %v7959_v2 = vpop.permute.xlu0 %956 }
 0x556   : > { %11462 = vst [vmem:[#allocation120_spill] sm:$0xff] %v7959_v2  ;;  %v7976_v27 = vadd.f32 %v7655_v23, %v7959_v2 }
 0x558   : > { %11464 = vst [vmem:[#allocation122_spill] sm:$0xff] %v7976_v27 }
 0x613   : > { %v1776_v4 = vpop.f32.mrb[52].mxu0 }
 0x614   : > { %v1777_v22 = vadd.f32 %v1776_v4, %v7877_v5  ;;  %v1778_v46 = vpop.f32.mrb[53].mxu0 }
 0x615   : > { %v1779_v14 = vadd.f32 %v1778_v46, %v7877_v5  ;;  %v1780_v49 = vpop.f32.mrb[54].mxu0  ;;  %v7997_v46 = vadd.f32 %v7659_v19, %v7959_v2  ;;  %v8001_v5 = vadd.f32 %v7673_v61, %v7865_v31  ;;  %v8015_v19 = vadd.f32 %v7667_v0, %v7883_v34 }
 0x616   : > { %v1805_v24 = vmul.f32 %v1777_v22, %v7887_v56  ;;  %v1827_v4 = vmul.f32 %v1777_v22, %v7911_v10  ;;  %v1849_v59 = vmul.f32 %v1777_v22, %v7941_v33  ;;  %v1871_v23 = vmul.f32 %v1777_v22, %v7971_v12  ;;  %v1782_v6 = vpop.f32.mrb[55].mxu0 }
 0x617   : > { %v1806_v62 = vmul.f32 %v1779_v14, %v7891_v39  ;;  %v1828_v29 = vmul.f32 %v1779_v14, %v7915_v47  ;;  %v1850_v57 = vmul.f32 %v1779_v14, %v7949_v42  ;;  %v1872_v58 = vmul.f32 %v1779_v14, %v7984_v20  ;;  %11465 = vst [vmem:[#allocation123_spill] sm:$0xff] %v7997_v46 }
 0x618   : > { %v1781_v38 = vadd.f32 %v1780_v49, %v7875_v30  ;;  %v1783_v22 = vadd.f32 %v1782_v6, %v7875_v30  ;;  %11468 = vst [vmem:[#allocation126_spill] sm:$0xff] %v8015_v19  ;;  %v8019_v61 = vadd.f32 %v7677_v41, %v7865_v31  ;;  %v8033_v34 = vadd.f32 %v7671_v16, %v8029_v60 }
 0x61a   : > { %v1807_v49 = vmul.f32 %v1781_v38, %v7895_v3  ;;  %v1829_v6 = vmul.f32 %v1781_v38, %v7919_v28  ;;  %v1851_v14 = vmul.f32 %v1781_v38, %v7957_v7  ;;  %v1873_v11 = vmul.f32 %v1781_v38, %v8001_v5  ;;  %11470 = vst [vmem:[#allocation128_spill] sm:$0xff] %v8033_v34 }
 0x61b   : > { %v1808_v30 = vmul.f32 %v1783_v22, %v7899_v21  ;;  %v1830_v63 = vmul.f32 %v1783_v22, %v7923_v44  ;;  %v1852_v36 = vmul.f32 %v1783_v22, %v7967_v37  ;;  %v1874_v0 = vmul.f32 %v1783_v22, %v8019_v61  ;;  %v1786_v50 = vpop.f32.mrb[56].mxu0 }
 0x61c   : > { %v1811_v27 = vadd.f32 %v1807_v49, %v1805_v24  ;;  %v1833_v41 = vadd.f32 %v1829_v6, %v1827_v4  ;;  %v1855_v31 = vadd.f32 %v1851_v14, %v1849_v59  ;;  %v1877_v46 = vadd.f32 %v1873_v11, %v1871_v23  ;;  %v1788_v19 = vpop.f32.mrb[57].mxu0 }
 0x61d   : > { %v1819_v1 = vadd.f32 %v1808_v30, %v1806_v62  ;;  %v1841_v9 = vadd.f32 %v1830_v63, %v1828_v29  ;;  %v1863_v18 = vadd.f32 %v1852_v36, %v1850_v57  ;;  %v1885_v38 = vadd.f32 %v1874_v0, %v1872_v58  ;;  %v1790_v45 = vpop.f32.mrb[58].mxu0 }
 0x61e   : > { %v8037_v22 = vadd.f32 %v7681_v17, %v7873_v53  ;;  %v1787_v24 = vadd.f32 %v1786_v50, %v7881_v54  ;;  %v1789_v59 = vadd.f32 %v1788_v19, %v7881_v54  ;;  %v1792_v4 = vpop.f32.mrb[59].mxu0  ;;  %v8043_v62 = vadd.f32 %v7675_v13, %v8029_v60 }
 0x61f   : > { %v8047_v57 = vadd.f32 %v7685_v48, %v7873_v53  ;;  %v8050_v16 = vadd.f32 %v1790_v45, %v7863_v8  ;;  %v8053_v36 = vadd.f32 %v1792_v4, %v7863_v8 }
 0x620   : > { %11471 = vst [vmem:[#allocation129_spill] sm:$0xff] %v8037_v22  ;;  %11472 = vst [vmem:[#allocation130_spill] sm:$0xff] %v8043_v62  ;;  %v1809_v17 = vmul.f32 %v1787_v24, %v7903_v52  ;;  %v1831_v50 = vmul.f32 %v1787_v24, %v7929_v25  ;;  %v1853_v30 = vmul.f32 %v1787_v24, %v7980_v15 }
 0x621   : > { %11473 = vst [vmem:[#allocation131_spill] sm:$0xff] %v8047_v57  ;;  %v1875_v23 = vmul.f32 %v1787_v24, %v8037_v22  ;;  %v1810_v13 = vmul.f32 %v1789_v59, %v7907_v26  ;;  %v1832_v29 = vmul.f32 %v1789_v59, %v7933_v51  ;;  %v1854_v48 = vmul.f32 %v1789_v59, %v8007_v35 }
 0x622   : > { %v1876_v45 = vmul.f32 %v1789_v59, %v8047_v57  ;;  %v1812_v58 = vadd.f32 %v1811_v27, %v1809_v17  ;;  %v1834_v19 = vadd.f32 %v1833_v41, %v1831_v50  ;;  %v1856_v49 = vadd.f32 %v1855_v31, %v1853_v30 }
 0x623   : > { %v1878_v6 = vadd.f32 %v1877_v46, %v1875_v23  ;;  %v1820_v14 = vadd.f32 %v1819_v1, %v1810_v13  ;;  %v1842_v11 = vadd.f32 %v1841_v9, %v1832_v29  ;;  %v1864_v63 = vadd.f32 %v1863_v18, %v1854_v48  ;;  %v8063_v4 = vpop.f32.mrb[60].mxu0 }
 0x624   : > { %v1886_v0 = vadd.f32 %v1885_v38, %v1876_v45  ;;  %v1813_v8 = vrot.slane %v1812_v58, 4  ;;  %v1835_v24 = vrot.slane %v1834_v19, 4  ;;  %v1857_v54 = vrot.slane %v1856_v49, 4  ;;  %v1798_v62 = vpop.f32.mrb[61].mxu0 }
 0x625   : > { %v1879_v53 = vrot.slane %v1878_v6, 4  ;;  %v1821_v34 = vrot.slane %v1820_v14, 4  ;;  %v1843_v60 = vrot.slane %v1842_v11, 4  ;;  %v1865_v2 = vrot.slane %v1864_v63, 4  ;;  %v8065_v59 = vpop.f32.mrb[62].mxu0 }
 0x626   : > { %v1887_v32 = vrot.slane %v1886_v0, 4  ;;  %v1814_v27 = vadd.f32 %v1813_v8, %v1812_v58  ;;  %v1836_v31 = vadd.f32 %v1835_v24, %v1834_v19  ;;  %v1858_v46 = vadd.f32 %v1857_v54, %v1856_v49  ;;  %v8067_v9 = vpop.f32.mrb[63].mxu0 }
 0x627   : > { %v1880_v1 = vadd.f32 %v1879_v53, %v1878_v6  ;;  %v1822_v18 = vadd.f32 %v1821_v34, %v1820_v14  ;;  %v1844_v41 = vadd.f32 %v1843_v60, %v1842_v11  ;;  %v1866_v38 = vadd.f32 %v1865_v2, %v1864_v63 }
 0x628   : > { %v1888_v17 = vadd.f32 %v1887_v32, %v1886_v0  ;;  %v1815_v50 = vrot.slane %v1814_v27, 2  ;;  %v1837_v30 = vrot.slane %v1836_v31, 2  ;;  %v1859_v23 = vrot.slane %v1858_v46, 2 }
 0x629   : > { %v1881_v13 = vrot.slane %v1880_v1, 2  ;;  %v1823_v29 = vrot.slane %v1822_v18, 2  ;;  %v1845_v48 = vrot.slane %v1844_v41, 2  ;;  %v1867_v45 = vrot.slane %v1866_v38, 2 }
 0x62a   : > { %v1889_v57 = vrot.slane %v1888_v17, 2  ;;  %v1816_v35 = vadd.f32 %v1815_v50, %v1814_v27  ;;  %v1838_v51 = vadd.f32 %v1837_v30, %v1836_v31  ;;  %v1860_v8 = vadd.f32 %v1859_v23, %v1858_v46 }
 0x62b   : > { %v1882_v58 = vadd.f32 %v1881_v13, %v1880_v1  ;;  %v1824_v54 = vadd.f32 %v1823_v29, %v1822_v18  ;;  %v1846_v53 = vadd.f32 %v1845_v48, %v1844_v41  ;;  %v1868_v19 = vadd.f32 %v1867_v45, %v1866_v38 }
 0x62c   : > { %v1890_v49 = vadd.f32 %v1889_v57, %v1888_v17  ;;  %v1817_v34 = vrot.slane %v1816_v35, 1  ;;  %v1839_v60 = vrot.slane %v1838_v51, 1  ;;  %v1861_v2 = vrot.slane %v1860_v8, 1 }
 0x62d   : > { %v1883_v32 = vrot.slane %v1882_v58, 1  ;;  %v1825_v6 = vrot.slane %v1824_v54, 1  ;;  %v1847_v14 = vrot.slane %v1846_v53, 1  ;;  %v1869_v11 = vrot.slane %v1868_v19, 1 }
 0x62e   : > { %v1891_v63 = vrot.slane %v1890_v49, 1  ;;  %v1818_v0 = vadd.f32 %v1817_v34, %v1816_v35  ;;  %v1840_v24 = vadd.f32 %v1839_v60, %v1838_v51  ;;  %v1862_v26 = vadd.f32 %v1861_v2, %v1860_v8 }
 0x62f   : > { %v1884_v22 = vadd.f32 %v1883_v32, %v1882_v58  ;;  %v1826_v27 = vadd.f32 %v1825_v6, %v1824_v54  ;;  %v1848_v31 = vadd.f32 %v1847_v14, %v1846_v53  ;;  %v1870_v46 = vadd.f32 %v1869_v11, %v1868_v19 }
 0x630   : > { %v1892_v1 = vadd.f32 %v1891_v63, %v1890_v49  ;;  %v1893_v18 = vmax.f32 %v1818_v0, %v1840_v24  ;;  %v1981_v57 = vmul.f32 %v8050_v16, %v7887_v56  ;;  %v2003_v38 = vmul.f32 %v8050_v16, %v7911_v10 }
 0x631   : > { %v1895_v41 = vmax.f32 %v1862_v26, %v1884_v22  ;;  %v1894_v17 = vmax.f32 %v1826_v27, %v1848_v31  ;;  %v2025_v35 = vmul.f32 %v8050_v16, %v7941_v33  ;;  %v2047_v51 = vmul.f32 %v8050_v16, %v7971_v12 }
 0x632   : > { %v1896_v50 = vmax.f32 %v1870_v46, %v1892_v1  ;;  %v1982_v23 = vmul.f32 %v8053_v36, %v7891_v39  ;;  %v2004_v13 = vmul.f32 %v8053_v36, %v7915_v47  ;;  %v2026_v56 = vmul.f32 %v8053_v36, %v7949_v42 }
 0x633   : > { %v1897_v30 = vmax.f32 %v1893_v18, %v1895_v41  ;;  %v2048_v10 = vmul.f32 %v8053_v36, %v7984_v20  ;;  %v1797_v33 = vadd.f32 %v8063_v4, %v7869_v55  ;;  %v1799_v48 = vadd.f32 %v1798_v62, %v7869_v55 }
 0x634   : > { %v1898_v29 = vmax.f32 %v1894_v17, %v1896_v50  ;;  %v11479_v17 = vld [vmem:[#allocation114_spill] sm:$0xff] }
 0x635   : > { %v1899_v12 = vsub.f32 %v1818_v0, %v1897_v30  ;;  %v1905_v16 = vsub.f32 %v1840_v24, %v1897_v30  ;;  %v1911_v45 = vsub.f32 %v1862_v26, %v1897_v30  ;;  %v1917_v8 = vsub.f32 %v1884_v22, %v1897_v30  ;;  %v11481_v30 = vld [vmem:[#allocation124_spill] sm:$0xff] }
 0x636   : > { %v1900_v39 = vsub.f32 %v1826_v27, %v1898_v29  ;;  %v1906_v58 = vsub.f32 %v1848_v31, %v1898_v29  ;;  %v1912_v54 = vsub.f32 %v1870_v46, %v1898_v29  ;;  %v1918_v47 = vsub.f32 %v1892_v1, %v1898_v29  ;;  %v8096_v31 = vpop.permute.xlu1 %971  ;;  %v11477_v1 = vld [vmem:[#allocation69_spill] sm:$0xff] }
 0x637   : > { %v1901_v53 = vmul.f32 1.442695, %v1899_v12  ;;  %v1907_v19 = vmul.f32 1.442695, %v1905_v16  ;;  %v1913_v42 = vmul.f32 1.442695, %v1911_v45  ;;  %v1983_v49 = vmul.f32 %v1797_v33, %v7895_v3 }
 0x638   : > { %v1919_v34 = vmul.f32 1.442695, %v1917_v8  ;;  %v1903_v20 = vmul.f32 1.442695, %v1900_v39  ;;  %v1909_v36 = vmul.f32 1.442695, %v1906_v58  ;;  %v2005_v4 = vmul.f32 %v1797_v33, %v7919_v28 }
 0x639   : > { %6508 = vpow2.f32 %v1901_v53  ;;  %v1915_v62 = vmul.f32 1.442695, %v1912_v54  ;;  %v1921_v60 = vmul.f32 1.442695, %v1918_v47  ;;  %v1987_v2 = vadd.f32 %v1983_v49, %v1981_v57  ;;  %11474 = vst [vmem:[#allocation132_spill] sm:$0xff] %v8096_v31  ;;  %v11478_v57 = vld [vmem:[#allocation129_spill] sm:$0xff] }
 0x63a   : > { %6510 = vpow2.f32 %v1907_v19  ;;  %v2009_v26 = vadd.f32 %v2005_v4, %v2003_v38  ;;  %v2027_v22 = vmul.f32 %v1797_v33, %v7957_v7  ;;  %v2049_v32 = vmul.f32 %v1797_v33, %v8001_v5  ;;  %v11475_v7 = vld [vmem:[#allocation67_spill] sm:$0xff] }
 0x63b   : > { %6512 = vpow2.f32 %v1913_v42  ;;  %v1984_v6 = vmul.f32 %v1799_v48, %v7899_v21  ;;  %v2006_v3 = vmul.f32 %v1799_v48, %v7923_v44  ;;  %v2028_v14 = vmul.f32 %v1799_v48, %v7967_v37 }
 0x63c   : > { %6514 = vpow2.f32 %v1919_v34  ;;  %v2031_v11 = vadd.f32 %v2027_v22, %v2025_v35  ;;  %v2053_v28 = vadd.f32 %v2049_v32, %v2047_v51  ;;  %v2050_v63 = vmul.f32 %v1799_v48, %v8019_v61  ;;  %v11476_v61 = vld [vmem:[#allocation68_spill] sm:$0xff] }
 0x63d   : > { %6516 = vpow2.f32 %v1903_v20  ;;  %v1995_v0 = vadd.f32 %v1984_v6, %v1982_v23  ;;  %v2017_v24 = vadd.f32 %v2006_v3, %v2004_v13  ;;  %v2039_v27 = vadd.f32 %v2028_v14, %v2026_v56  ;;  %v11480_v35 = vld [vmem:[#allocation116_spill] sm:$0xff] }
 0x63e   : > { %6518 = vpow2.f32 %v1909_v36  ;;  %v2061_v5 = vadd.f32 %v2050_v63, %v2048_v10  ;;  %v1801_v21 = vadd.f32 %v8065_v59, %v7871_v43  ;;  %v1803_v44 = vadd.f32 %v8067_v9, %v7871_v43  ;;  %v11482_v10 = vld [vmem:[#allocation131_spill] sm:$0xff] }
 0x63f   : > { %v8104_v37 = vadd.f32 %v11475_v7, %v8096_v31  ;;  %v8108_v46 = vadd.f32 %v11476_v61, %v8096_v31  ;;  %v8112_v18 = vadd.f32 %v11477_v1, %v7879_v40  ;;  %6520 = vpow2.f32 %v1915_v62 }
 0x640   : > { %6522 = vpow2.f32 %v1921_v60  ;;  %v1985_v41 = vmul.f32 %v1801_v21, %v7903_v52  ;;  %v2007_v59 = vmul.f32 %v1801_v21, %v7929_v25  ;;  %v2029_v9 = vmul.f32 %v1801_v21, %v7980_v15 }
 0x641   : > { %v2051_v38 = vmul.f32 %v1801_v21, %v11478_v57  ;;  %v1986_v50 = vmul.f32 %v1803_v44, %v11479_v17  ;;  %v2008_v51 = vmul.f32 %v1803_v44, %v11480_v35  ;;  %v2030_v23 = vmul.f32 %v1803_v44, %v11481_v30 }
 0x642   : > { %v1988_v13 = vadd.f32 %v1987_v2, %v1985_v41  ;;  %v2010_v56 = vadd.f32 %v2009_v26, %v2007_v59  ;;  %v2032_v29 = vadd.f32 %v2031_v11, %v2029_v9  ;;  %v2052_v33 = vmul.f32 %v1803_v44, %v11482_v10 }
 0x643   : > { %v8122_v48 = vpop.eup %6508  ;;  %v2054_v52 = vadd.f32 %v2053_v28, %v2051_v38  ;;  %v1996_v12 = vadd.f32 %v1995_v0, %v1986_v50  ;;  %v2018_v25 = vadd.f32 %v2017_v24, %v2008_v51  ;;  %v2040_v16 = vadd.f32 %v2039_v27, %v2030_v23 }
 0x644   : > { %v8124_v15 = vpop.eup %6510  ;;  %v1989_v45 = vrot.slane %v1988_v13, 4  ;;  %v2011_v8 = vrot.slane %v2010_v56, 4  ;;  %v2033_v39 = vrot.slane %v2032_v29, 4  ;;  %v2062_v58 = vadd.f32 %v2061_v5, %v2052_v33 }
 0x645   : > { %v8126_v54 = vpop.eup %6512  ;;  %v1923_v47 = vadd.f32 %v8124_v15, %v8122_v48  ;;  %v2055_v53 = vrot.slane %v2054_v52, 4  ;;  %v1997_v19 = vrot.slane %v1996_v12, 4  ;;  %v2019_v42 = vrot.slane %v2018_v25, 4 }
 0x646   : > { %v8130_v49 = vpop.eup %6514  ;;  %v1990_v34 = vadd.f32 %v1989_v45, %v1988_v13  ;;  %v2012_v20 = vadd.f32 %v2011_v8, %v2010_v56  ;;  %v2034_v36 = vadd.f32 %v2033_v39, %v2032_v29  ;;  %v2041_v4 = vrot.slane %v2040_v16, 4  ;;  %v11484_v39 = vld [vmem:[#allocation115_spill] sm:$0xff] }
 0x647   : > { %v8132_v62 = vpop.eup %6516  ;;  %v1925_v60 = vadd.f32 %v8126_v54, %v1923_v47  ;;  %v2056_v2 = vadd.f32 %v2055_v53, %v2054_v52  ;;  %v1998_v26 = vadd.f32 %v1997_v19, %v1996_v12  ;;  %v2020_v22 = vadd.f32 %v2019_v42, %v2018_v25  ;;  %v11483_v12 = vld [vmem:[#allocation70_spill] sm:$0xff]  ;;  %v11485_v47 = vld [vmem:[#allocation71_spill] sm:$0xff]  ;;  %v11486_v19 = vld [vmem:[#allocation72_spill] sm:$0xff] }
 0x648   : > { %v8135_v32 = vpop.eup %6518  ;;  %v1991_v6 = vrot.slane %v1990_v34, 2  ;;  %v2013_v3 = vrot.slane %v2012_v20, 2  ;;  %v2035_v14 = vrot.slane %v2034_v36, 2  ;;  %v2042_v11 = vadd.f32 %v2041_v4, %v2040_v16  ;;  %v11488_v4 = vld [vmem:[#allocation73_spill] sm:$0xff] }
 0x649   : > { %v8137_v28 = vpop.eup %6520  ;;  %v1927_v63 = vadd.f32 %v8130_v49, %v1925_v60  ;;  %v1924_v0 = vadd.f32 %v8135_v32, %v8132_v62  ;;  %v2057_v24 = vrot.slane %v2056_v2, 2  ;;  %v1999_v27 = vrot.slane %v1998_v26, 2 }
 0x64a   : > { %v8142_v5 = vpop.eup %6522  ;;  %v1992_v21 = vadd.f32 %v1991_v6, %v1990_v34  ;;  %v2014_v44 = vadd.f32 %v2013_v3, %v2012_v20  ;;  %v2036_v7 = vadd.f32 %v2035_v14, %v2034_v36  ;;  %v2021_v61 = vrot.slane %v2020_v22, 2  ;;  %v11487_v36 = vld [vmem:[#allocation120_spill] sm:$0xff]  ;;  %v11490_v3 = vld [vmem:[#allocation113_spill] sm:$0xff]  ;;  %v11491_v14 = vld [vmem:[#allocation75_spill] sm:$0xff] }
 0x64b   : > { %6524 = vrcp.f32 %v1927_v63  ;;  %v1926_v1 = vadd.f32 %v8137_v28, %v1924_v0  ;;  %v2058_v41 = vadd.f32 %v2057_v24, %v2056_v2  ;;  %v2000_v59 = vadd.f32 %v1999_v27, %v1998_v26  ;;  %v11489_v2 = vld [vmem:[#allocation74_spill] sm:$0xff]  ;;  %v11492_v63 = vld [vmem:[#allocation76_spill] sm:$0xff]  ;;  %v11493_v24 = vld [vmem:[#allocation127_spill] sm:$0xff] }
 0x64c   : > { %v1993_v9 = vrot.slane %v1992_v21, 1  ;;  %v2015_v57 = vrot.slane %v2014_v44, 1  ;;  %v2037_v38 = vrot.slane %v2036_v7, 1  ;;  %v2022_v17 = vadd.f32 %v2021_v61, %v2020_v22  ;;  %v11494_v27 = vld [vmem:[#allocation77_spill] sm:$0xff] }
 0x64d   : > { %v1928_v50 = vadd.f32 %v8142_v5, %v1926_v1  ;;  %v2059_v35 = vrot.slane %v2058_v41, 1  ;;  %v2001_v51 = vrot.slane %v2000_v59, 1  ;;  %v2043_v30 = vrot.slane %v2042_v11, 2 }
 0x64e   : > { %v1994_v23 = vadd.f32 %v1993_v9, %v1992_v21  ;;  %v2016_v13 = vadd.f32 %v2015_v57, %v2014_v44  ;;  %v2038_v56 = vadd.f32 %v2037_v38, %v2036_v7  ;;  %v2023_v29 = vrot.slane %v2022_v17, 1  ;;  %v11495_v7 = vld [vmem:[#allocation78_spill] sm:$0xff] }
 0x64f   : > { %6526 = vrcp.f32 %v1928_v50  ;;  %v2060_v10 = vadd.f32 %v2059_v35, %v2058_v41  ;;  %v8146_v33 = vadd.f32 %v2001_v51, %v2000_v59  ;;  %v2044_v52 = vadd.f32 %v2043_v30, %v2042_v11 }
 0x650   : > { %v8150_v25 = vadd.f32 %v11483_v12, %v7879_v40  ;;  %v2069_v16 = vmax.f32 %v1994_v23, %v2016_v13  ;;  %v8152_v45 = vadd.f32 %v2023_v29, %v2022_v17  ;;  %v2063_v8 = vrot.slane %v2062_v58, 4 }
 0x651   : > { %v8156_v53 = vadd.f32 %v11485_v47, %v11484_v39  ;;  %v8160_v42 = vadd.f32 %v11486_v19, %v11484_v39  ;;  %v2071_v34 = vmax.f32 %v2038_v56, %v2060_v10  ;;  %v2045_v20 = vrot.slane %v2044_v52, 1  ;;  %v11498_v47 = vld [vmem:[#allocation119_spill] sm:$0xff] }
 0x652   : > { %v8164_v60 = vadd.f32 %v11488_v4, %v11487_v36  ;;  %v8168_v26 = vadd.f32 %v11489_v2, %v11487_v36  ;;  %v2064_v22 = vadd.f32 %v2063_v8, %v2062_v58  ;;  %v2070_v6 = vmax.f32 %v8146_v33, %v8152_v45  ;;  %v11496_v58 = vld [vmem:[#allocation80_spill] sm:$0xff] }
 0x653   : > { %v8174_v11 = vadd.f32 %v11491_v14, %v11490_v3  ;;  %v8178_v0 = vadd.f32 %v11492_v63, %v11490_v3  ;;  %v8182_v21 = vadd.f32 %v11494_v27, %v11493_v24  ;;  %v2073_v44 = vmax.f32 %v2069_v16, %v2071_v34  ;;  %v11500_v34 = vld [vmem:[#allocation128_spill] sm:$0xff] }
 0x654   : > { %v8186_v61 = vadd.f32 %v11495_v7, %v11493_v24  ;;  %v8190_v1 = vadd.f32 %v11496_v58, %v8096_v31  ;;  %v2046_v41 = vadd.f32 %v2045_v20, %v2044_v52  ;;  %v2065_v59 = vrot.slane %v2064_v22, 2  ;;  %v11501_v7 = vld [vmem:[#allocation118_spill] sm:$0xff] }
 0x655   : > { %v6525_v9 = vpop.eup %6524  ;;  %v2075_v57 = vsub.f32 %v1994_v23, %v2073_v44  ;;  %v2081_v38 = vsub.f32 %v2016_v13, %v2073_v44  ;;  %v2087_v17 = vsub.f32 %v2038_v56, %v2073_v44  ;;  %v2093_v50 = vsub.f32 %v2060_v10, %v2073_v44  ;;  %v11497_v56 = vld [vmem:[#allocation117_spill] sm:$0xff] }
 0x656   : > { %v2066_v35 = vadd.f32 %v2065_v59, %v2064_v22  ;;  %v8193_v51 = vmul.f32 %v6525_v9, %v8122_v48  ;;  %v8196_v30 = vmul.f32 %v6525_v9, %v8124_v15  ;;  %v8199_v29 = vmul.f32 %v6525_v9, %v8126_v54  ;;  %v11499_v15 = vld [vmem:[#allocation125_spill] sm:$0xff] }
 0x657   : > { %v2077_v12 = vmul.f32 1.442695, %v2075_v57  ;;  %v2083_v16 = vmul.f32 1.442695, %v2081_v38  ;;  %v2089_v8 = vmul.f32 1.442695, %v2087_v17  ;;  %v8202_v52 = vmul.f32 %v6525_v9, %v8130_v49 }
 0x658   : > { %v2095_v23 = vmul.f32 1.442695, %v2093_v50  ;;  %v2067_v13 = vrot.slane %v2066_v35, 1  ;;  %v1939_v10 = vmul.f32 %v8193_v51, %v11497_v56  ;;  %v1941_v48 = vmul.f32 %v8193_v51, %v11498_v47  ;;  %v11502_v59 = vld [vmem:[#allocation121_spill] sm:$0xff]  ;;  %v11503_v57 = vld [vmem:[#allocation126_spill] sm:$0xff] }
 0x659   : > { %v6527_v19 = vpop.eup %6526  ;;  %6528 = vpow2.f32 %v2077_v12  ;;  %v1945_v54 = vmul.f32 %v8196_v30, %v11499_v15  ;;  %v1947_v20 = vmul.f32 %v8196_v30, %v11500_v34  ;;  %v1957_v49 = vmul.f32 %v8199_v29, %v8112_v18  ;;  %v11504_v17 = vld [vmem:[#allocation130_spill] sm:$0xff] }
 0x65a   : > { %6530 = vpow2.f32 %v2083_v16  ;;  %v2068_v4 = vadd.f32 %v2067_v13, %v2066_v35  ;;  %v1932_v2 = vmul.f32 %v6527_v19, %v8132_v62  ;;  %v1934_v22 = vmul.f32 %v6527_v19, %v8135_v32 }
 0x65b   : > { %6532 = vpow2.f32 %v2089_v8  ;;  %v1936_v14 = vmul.f32 %v6527_v19, %v8137_v28  ;;  %v1938_v63 = vmul.f32 %v6527_v19, %v8142_v5  ;;  %v1951_v27 = vadd.f32 %v1945_v54, %v1939_v10 }
 0x65c   : > { %6534 = vpow2.f32 %v2095_v23  ;;  %v2072_v44 = vmax.f32 %v2046_v41, %v2068_v4  ;;  %v1940_v58 = vmul.f32 %v1932_v2, %v11501_v7  ;;  %v1942_v9 = vmul.f32 %v1932_v2, %v11502_v59 }
 0x65d   : > { %v1946_v38 = vmul.f32 %v1934_v22, %v11503_v57  ;;  %v1948_v50 = vmul.f32 %v1934_v22, %v11504_v17  ;;  %v1958_v62 = vmul.f32 %v1936_v14, %v8150_v25  ;;  %v1960_v32 = vmul.f32 %v1936_v14, %v8160_v42 }
 0x65e   : > { %v2074_v35 = vmax.f32 %v2070_v6, %v2072_v44  ;;  %v1970_v28 = vmul.f32 %v1938_v63, %v8178_v0  ;;  %v1972_v5 = vmul.f32 %v1938_v63, %v8186_v61  ;;  %v1953_v12 = vadd.f32 %v1947_v20, %v1941_v48 }
 0x65f   : > { %v1952_v16 = vadd.f32 %v1946_v38, %v1940_v58  ;;  %v1954_v8 = vadd.f32 %v1948_v50, %v1942_v9  ;;  %v1959_v23 = vmul.f32 %v8199_v29, %v8156_v53  ;;  %v1963_v13 = vadd.f32 %v1957_v49, %v1951_v27  ;;  %v11505_v38 = vld [vmem:[#allocation123_spill] sm:$0xff] }
 0x660   : > { %v2076_v10 = vsub.f32 %v8146_v33, %v2074_v35  ;;  %v2082_v19 = vsub.f32 %v8152_v45, %v2074_v35  ;;  %v2088_v54 = vsub.f32 %v2046_v41, %v2074_v35  ;;  %v2094_v43 = vsub.f32 %v2068_v4, %v2074_v35 }
 0x661   : > { %v1964_v24 = vadd.f32 %v1958_v62, %v1952_v16  ;;  %v1966_v55 = vadd.f32 %v1960_v32, %v1954_v8  ;;  %v1965_v6 = vadd.f32 %v1959_v23, %v1953_v12  ;;  %v1969_v44 = vmul.f32 %v8202_v52, %v8174_v11 }
 0x662   : > { %v2079_v3 = vmul.f32 1.442695, %v2076_v10  ;;  %v2085_v48 = vmul.f32 1.442695, %v2082_v19  ;;  %v2091_v20 = vmul.f32 1.442695, %v2088_v54  ;;  %v1971_v58 = vmul.f32 %v8202_v52, %v8182_v21 }
 0x663   : > { %v6529_v9 = vpop.eup %6528  ;;  %v2097_v49 = vmul.f32 1.442695, %v2094_v43  ;;  %v8234_v27 = vadd.f32 %v1970_v28, %v1964_v24  ;;  %v8236_v33 = vadd.f32 %v1972_v5, %v1966_v55  ;;  %v8238_v45 = vadd.f32 %v1969_v44, %v1963_v13  ;;  %v11506_v28 = vld [vmem:[#allocation79_spill] sm:$0xff] }
 0x664   : > { %v6531_v41 = vpop.eup %6530  ;;  %6536 = vpow2.f32 %v2079_v3  ;;  %v8240_v4 = vadd.f32 %v1971_v58, %v1965_v6  ;;  %v1944_v50 = vmul.f32 %v1932_v2, %v11505_v38  ;;  %v1950_v62 = vmul.f32 %v1934_v22, %v8108_v46  ;;  %v11507_v22 = vld [vmem:[#allocation122_spill] sm:$0xff] }
 0x665   : > { %v6533_v32 = vpop.eup %6532  ;;  %v2099_v35 = vadd.f32 %v6531_v41, %v6529_v9  ;;  %6538 = vpow2.f32 %v2085_v48  ;;  %v2158_v43 = vpack.c.bf16 %v8236_v33, %v8234_v27  ;;  %v1962_v24 = vmul.f32 %v1936_v14, %v8168_v26  ;;  %v11510_v33 = vld [vmem:[#allocation82_spill] sm:$0xff] }
 0x666   : > { %v6535_v55 = vpop.eup %6534  ;;  %v1174_v5 = vadd.f32 %v11506_v28, %v8096_v31  ;;  %v2157_v3 = vpack.c.bf16 %v8240_v4, %v8238_v45  ;;  %v1956_v12 = vadd.f32 %v1950_v62, %v1944_v50  ;;  %v1974_v2 = vmul.f32 %v1938_v63, %v8190_v1 }
 0x667   : > { %v2101_v16 = vadd.f32 %v6533_v32, %v2099_v35  ;;  %6540 = vpow2.f32 %v2091_v20  ;;  %v1943_v8 = vmul.f32 %v8193_v51, %v11507_v22  ;;  %v1949_v23 = vmul.f32 %v8196_v30, %v8104_v37 }
 0x668   : > { %v1968_v13 = vadd.f32 %v1962_v24, %v1956_v12  ;;  %v1961_v14 = vmul.f32 %v8199_v29, %v8164_v60  ;;  %v1973_v10 = vmul.f32 %v8202_v52, %v1174_v5  ;;  %6542 = vpow2.f32 %v2097_v49 }
 0x669   : > { %v2103_v19 = vadd.f32 %v6535_v55, %v2101_v16  ;;  %v1955_v54 = vadd.f32 %v1949_v23, %v1943_v8 }
 0x66a   : > { %v8259_v6 = vadd.f32 %v1974_v2, %v1968_v13 }
 0x66b   : > { %6544 = vrcp.f32 %v2103_v19  ;;  %v1967_v63 = vadd.f32 %v1961_v14, %v1955_v54 }
 0x66d   : > { %v8261_v44 = vadd.f32 %v1973_v10, %v1967_v63 }
 0x66e   : > { %v6537_v48 = vpop.eup %6536 }
 0x66f   : > { %v6539_v51 = vpop.eup %6538 }
 0x670   : > { %v2100_v20 = vadd.f32 %v6539_v51, %v6537_v48 }
 0x671   : > { %v6541_v58 = vpop.eup %6540 }
 0x672   : > { %v2102_v30 = vadd.f32 %v6541_v58, %v2100_v20  ;;  %v6543_v50 = vpop.eup %6542 }
 0x674   : > { %v2104_v62 = vadd.f32 %v6543_v50, %v2102_v30 }
 0x675   : > { %v6545_v35 = vpop.eup %6544 }
 0x676   : > { %6546 = vrcp.f32 %v2104_v62  ;;  %v2107_v29 = vmul.f32 %v6545_v35, %v6529_v9  ;;  %v2109_v52 = vmul.f32 %v6545_v35, %v6531_v41  ;;  %v2111_v24 = vmul.f32 %v6545_v35, %v6533_v32 }
 0x677   : > { %v2113_v49 = vmul.f32 %v6545_v35, %v6535_v55 }
 0x678   : > { %v2115_v28 = vmul.f32 %v2107_v29, %v11497_v56  ;;  %v2117_v12 = vmul.f32 %v2107_v29, %v11498_v47  ;;  %v2121_v2 = vmul.f32 %v2109_v52, %v11499_v15  ;;  %v2123_v16 = vmul.f32 %v2109_v52, %v11500_v34 }
 0x679   : > { %v2133_v8 = vmul.f32 %v2111_v24, %v8112_v18  ;;  %v2135_v23 = vmul.f32 %v2111_v24, %v8156_v53  ;;  %v2145_v13 = vmul.f32 %v2113_v49, %v8174_v11  ;;  %v2147_v14 = vmul.f32 %v2113_v49, %v8182_v21 }
 0x67a   : > { %v2127_v9 = vadd.f32 %v2121_v2, %v2115_v28  ;;  %v2129_v41 = vadd.f32 %v2123_v16, %v2117_v12  ;;  %v2119_v32 = vmul.f32 %v2107_v29, %v11507_v22  ;;  %v2125_v56 = vmul.f32 %v2109_v52, %v8104_v37 }
 0x67b   : > { %v2137_v47 = vmul.f32 %v2111_v24, %v8164_v60  ;;  %v2149_v55 = vmul.f32 %v2113_v49, %v1174_v5  ;;  %v11509_v16 = vmov 0  }
 0x67c   : > { %v2139_v15 = vadd.f32 %v2133_v8, %v2127_v9  ;;  %v2141_v10 = vadd.f32 %v2135_v23, %v2129_v41  ;;  %v2131_v34 = vadd.f32 %v2125_v56, %v2119_v32  ;;  %v11513_v23 = vld [vmem:[#allocation85_spill] sm:$0xff]  ;;  %v11514_v56 = vld [vmem:[#allocation86_spill] sm:$0xff] }
 0x67e   : > { %v2151_v19 = vadd.f32 %v2145_v13, %v2139_v15  ;;  %v2153_v18 = vadd.f32 %v2147_v14, %v2141_v10  ;;  %v2143_v54 = vadd.f32 %v2137_v47, %v2131_v34 }
 0x680   : > { %v6547_v53 = vpop.eup %6546  ;;  %v2161_v63 = vpack.c.bf16 %v2153_v18, %v2151_v19  ;;  %v2155_v11 = vadd.f32 %v2149_v55, %v2143_v54 }
 0x681   : > { %v2108_v20 = vmul.f32 %v6547_v53, %v6537_v48  ;;  %v2110_v21 = vmul.f32 %v6547_v53, %v6539_v51  ;;  %v2112_v30 = vmul.f32 %v6547_v53, %v6541_v58  ;;  %v2114_v62 = vmul.f32 %v6547_v53, %v6543_v50 }
 0x682   : > { %v2163_v2 = vpack.c.bf16 %v2155_v11, %v2155_v11 }
 0x683   : > { %v2116_v22 = vmul.f32 %v2108_v20, %v11501_v7  ;;  %v2118_v37 = vmul.f32 %v2108_v20, %v11502_v59  ;;  %v2122_v60 = vmul.f32 %v2110_v21, %v11503_v57  ;;  %v2124_v5 = vmul.f32 %v2110_v21, %v11504_v17 }
 0x684   : > { %v2134_v35 = vmul.f32 %v2112_v30, %v8150_v25  ;;  %v2136_v29 = vmul.f32 %v2112_v30, %v8160_v42  ;;  %v2146_v52 = vmul.f32 %v2114_v62, %v8178_v0  ;;  %v2148_v24 = vmul.f32 %v2114_v62, %v8186_v61 }
 0x685   : > { %v2128_v48 = vadd.f32 %v2122_v60, %v2116_v22  ;;  %v2130_v51 = vadd.f32 %v2124_v5, %v2118_v37  ;;  %v2120_v58 = vmul.f32 %v2108_v20, %v11505_v38  ;;  %v2126_v7 = vmul.f32 %v2110_v21, %v8108_v46 }
 0x686   : > { %v2138_v59 = vmul.f32 %v2112_v30, %v8168_v26  ;;  %v2150_v57 = vmul.f32 %v2114_v62, %v8190_v1  ;;  %v2166_v46 = vsel %vm582_vm1, %v2163_v2, 0  ;;  %v11508_v26 = vld [vmem:[#allocation81_spill] sm:$0xff]  ;;  %v2160_v1 = vpack.c.bf16 %v8259_v6, %v8259_v6  ;;  %v11512_v6 = vld [vmem:[#allocation84_spill] sm:$0xff] }
 0x687   : > { %v2140_v50 = vadd.f32 %v2134_v35, %v2128_v48  ;;  %v2142_v17 = vadd.f32 %v2136_v29, %v2130_v51  ;;  %v2132_v49 = vadd.f32 %v2126_v7, %v2120_v58  ;;  %v2159_v38 = vpack.c.bf16 %v8261_v44, %v8261_v44  ;;  %v11515_v48 = vld [vmem:[#allocation87_spill] sm:$0xff] }
 0x689   : > { %v2152_v25 = vadd.f32 %v2146_v52, %v2140_v50  ;;  %v2154_v28 = vadd.f32 %v2148_v24, %v2142_v17  ;;  %v2144_v42 = vadd.f32 %v2138_v59, %v2132_v49  ;;  %v2223_v27 = vsel %vm582_vm1, %v2159_v38, 0 }
 0x68b   : > { %v2162_v12 = vpack.c.bf16 %v2154_v28, %v2152_v25  ;;  %v2156_v0 = vadd.f32 %v2150_v57, %v2144_v42 }
 0x68d   : > { %2171 = vmatprep.subr.bf16.mxu1 %v2162_v12  ;;  %v2164_v61 = vpack.c.bf16 %v2156_v0, %v2156_v0 }
 0x68e   : > { %2172 = vmatpush1.bf16.msra.mxu1 %v2161_v63 }
 0x68f   : > { %6277 = vmatprep.subr.msk.bf16.mxu1 %vm582_vm1, %v2164_v61 }
 0x692   : > { %2174 = vmatpush1.bf16.msra.mxu1 %v2166_v46 }
 0x693   : > { %2228 = vmatprep.subr.bf16.mxu1 %v2158_v43  ;;  %v11511_v43 = vld [vmem:[#allocation83_spill] sm:$0xff] }
 0x695   : > { %6278 = vmatmul.mubr.msk.bf16.vlgmr.msra.gmra.mrb[72].mxu1 %vm572_vm2, %v11508_v26 }
 0x696   : > { %2229 = vmatpush1.bf16.msra.mxu1 %v2157_v3  ;;  %2213 = vmatprep.mubr.bf16.mxu1 %v11509_v16 }
 0x697   : > { %6280 = vmatprep.subr.msk.bf16.mxu1 %vm582_vm1, %v2160_v1 }
 0x69a   : > { %2231 = vmatpush1.bf16.msra.mxu1 %v2223_v27 }
 0x69d   : > { %6279 = vmatmul.mubr.msk.bf16.gmra.mrb[76].mxu1 %vm572_vm2, %v11510_v33 }
 0x69e   : > { %2260 = vmatprep.mubr.bf16.mxu1 %v11509_v16 }
 0x6a5   : > { %6281 = vmatmul.mubr.msk.bf16.vlgmr.msra.gmra.mrb[72].mxu1 %vm572_vm2, %v11511_v43 }
 0x6a6   : > { %2270 = vmatprep.mubr.bf16.mxu1 %v11509_v16 }
 0x6ad   : > { %6282 = vmatmul.mubr.msk.bf16.gmra.mrb[80].mxu1 %vm572_vm2, %v11512_v6 }
 0x6ae   : > { %2523 = vmatprep.mubr.bf16.mxu1 %v11509_v16 }
 0x770   : > { %v2215_v45 = vpop.f32.mrb[76].mxu1 }
 0x771   : > { %v2217_v4 = vpop.f32.mrb[77].mxu1 }
 0x772   : > { %v2219_v3 = vpop.f32.mrb[78].mxu1 }
 0x773   : > { %v2220_v44 = vpop.f32.mrb[79].mxu1 }
 0x778   : > { %v2262_v8 = vpop.f32.mrb[72].mxu1 }
 0x779   : > { %v2279_v13 = vadd.f32 %v2262_v8, %v11513_v23  ;;  %v2264_v14 = vpop.f32.mrb[73].mxu1 }
 0x77a   : > { %v2280_v9 = vadd.f32 %v2264_v14, %v11513_v23  ;;  %v2266_v41 = vpop.f32.mrb[74].mxu1 }
 0x77b   : > { %v2291_v32 = vmul.f32 0.044715, %v2279_v13  ;;  %v2281_v47 = vadd.f32 %v2266_v41, %v11514_v56  ;;  %v2268_v55 = vpop.f32.mrb[75].mxu1  ;;  %v2285_v8 = vmul.f32 0.5, %v2279_v13 }
 0x77c   : > { %v2292_v15 = vmul.f32 0.044715, %v2280_v9  ;;  %v2282_v10 = vadd.f32 %v2268_v55, %v11514_v56 }
 0x77d   : > { %v2297_v34 = vmul.f32 %v2291_v32, %v2279_v13  ;;  %v2293_v19 = vmul.f32 0.044715, %v2281_v47  ;;  %v2287_v14 = vmul.f32 0.5, %v2281_v47  ;;  %v2286_v32 = vmul.f32 0.5, %v2280_v9 }
 0x77e   : > { %v2298_v18 = vmul.f32 %v2292_v15, %v2280_v9  ;;  %v2294_v54 = vmul.f32 0.044715, %v2282_v10  ;;  %v2288_v55 = vmul.f32 0.5, %v2282_v10 }
 0x77f   : > { %v2303_v53 = vmul.f32 %v2297_v34, %v2279_v13  ;;  %v2299_v63 = vmul.f32 %v2293_v19, %v2281_v47 }
 0x780   : > { %v2304_v11 = vmul.f32 %v2298_v18, %v2280_v9  ;;  %v2300_v20 = vmul.f32 %v2294_v54, %v2282_v10  ;;  %v2272_v21 = vpop.f32.mrb[80].mxu1 }
 0x781   : > { %v2309_v30 = vadd.f32 %v2303_v53, %v2279_v13  ;;  %v2305_v62 = vmul.f32 %v2299_v63, %v2281_v47  ;;  %v2273_v22 = vadd.f32 %v2272_v21, %v2215_v45  ;;  %v2274_v37 = vpop.f32.mrb[81].mxu1 }
 0x782   : > { %v2306_v60 = vmul.f32 %v2300_v20, %v2282_v10  ;;  %v2275_v5 = vadd.f32 %v2274_v37, %v2217_v4  ;;  %v2276_v35 = vpop.f32.mrb[82].mxu1  ;;  %v2310_v29 = vadd.f32 %v2304_v11, %v2280_v9 }
 0x783   : > { %v2315_v52 = vmul.f32 0.7978846, %v2309_v30  ;;  %v2311_v24 = vadd.f32 %v2305_v62, %v2281_v47  ;;  %v2283_v51 = vadd.f32 %v2273_v22, %v11515_v48  ;;  %v2277_v58 = vpop.f32.mrb[83].mxu1  ;;  %v11518_v35 = vld [vmem:[#allocation25_spill] sm:$0xff] }
 0x784   : > { %v2284_v7 = vadd.f32 %v2275_v5, %v11515_v48  ;;  %v2312_v59 = vadd.f32 %v2306_v60, %v2282_v10  ;;  %v2316_v57 = vmul.f32 0.7978846, %v2310_v29  ;;  %v11516_v60 = vld [vmem:[#allocation27_spill] sm:$0xff]  ;;  %v11517_v5 = vld [vmem:[#allocation88_spill] sm:$0xff]  ;;  %v11523_v58 = vld [vmem:[#allocation41_spill] sm:$0xff] }
 0x785   : > { %6548 = vtanh.f32 %v2315_v52  ;;  %v2317_v50 = vmul.f32 0.7978846, %v2311_v24  ;;  %v2295_v17 = vmul.f32 0.044715, %v2283_v51  ;;  %v2289_v21 = vmul.f32 0.5, %v2283_v51  ;;  %v11519_v29 = vld [vmem:[#allocation35_spill] sm:$0xff] }
 0x786   : > { %v2296_v49 = vmul.f32 0.044715, %v2284_v7  ;;  %v2318_v25 = vmul.f32 0.7978846, %v2312_v59  ;;  %6550 = vtanh.f32 %v2316_v57  ;;  %v2290_v62 = vmul.f32 0.5, %v2284_v7  ;;  %v11520_v52 = vld [vmem:[#allocation33_spill] sm:$0xff] }
 0x787   : > { %6552 = vtanh.f32 %v2317_v50  ;;  %v2301_v28 = vmul.f32 %v2295_v17, %v2283_v51  ;;  %v11521_v24 = vld [vmem:[#allocation42_spill] sm:$0xff]  ;;  %v11526_v57 = vld [vmem:[#allocation5_spill] sm:$0xff]  ;;  %v11527_v50 = vld [vmem:[#allocation48_spill] sm:$0xff] }
 0x788   : > { %v2302_v42 = vmul.f32 %v2296_v49, %v2284_v7  ;;  %6554 = vtanh.f32 %v2318_v25  ;;  %v11525_v59 = vld [vmem:[#allocation90_spill] sm:$0xff]  ;;  %v11528_v17 = vld [vmem:[#allocation56_spill] sm:$0xff]  ;;  %v11529_v49 = vld [vmem:[#allocation55_spill] sm:$0xff] }
 0x789   : > { %v2307_v12 = vmul.f32 %v2301_v28, %v2283_v51  ;;  %v11530_v25 = vld [vmem:[#allocation63_spill] sm:$0xff]  ;;  %v11531_v28 = vld [vmem:[#allocation6_spill] sm:$0xff] }
 0x78a   : > { %v2308_v0 = vmul.f32 %v2302_v42, %v2284_v7  ;;  %v11532_v42 = vld [vmem:[#allocation62_spill] sm:$0xff] }
 0x78b   : > { %v2313_v61 = vadd.f32 %v2307_v12, %v2283_v51  ;;  %v11522_v51 = vld [vmem:[#allocation89_spill] sm:$0xff] }
 0x78c   : > { %v2314_v2 = vadd.f32 %v2308_v0, %v2284_v7  ;;  %v11524_v7 = vld [vmem:[#allocation49_spill] sm:$0xff] }
 0x78d   : > { %v2319_v46 = vmul.f32 0.7978846, %v2313_v61 }
 0x78e   : > { %v2320_v1 = vmul.f32 0.7978846, %v2314_v2  ;;  %v11533_v2 = vld [vmem:[#allocation91_spill] sm:$0xff] }
 0x78f   : > { %v6549_v38 = vpop.eup %6548  ;;  %6556 = vtanh.f32 %v2319_v46 }
 0x790   : > { %v6551_v27 = vpop.eup %6550  ;;  %v2327_v45 = vadd.f32 1.0, %v6549_v38  ;;  %6558 = vtanh.f32 %v2320_v1  ;;  %v11534_v1 = vld [vmem:[#allocation92_spill] sm:$0xff] }
 0x791   : > { %v6553_v4 = vpop.eup %6552  ;;  %v2328_v3 = vadd.f32 1.0, %v6551_v27 }
 0x792   : > { %v6555_v44 = vpop.eup %6554  ;;  %v2329_v41 = vadd.f32 1.0, %v6553_v4  ;;  %v2333_v34 = vmul.f32 %v2327_v45, %v2285_v8 }
 0x793   : > { %v2330_v15 = vadd.f32 1.0, %v6555_v44  ;;  %v2334_v18 = vmul.f32 %v2328_v3, %v2286_v32  ;;  %v11535_v32 = vld [vmem:[#allocation93_spill] sm:$0xff] }
 0x794   : > { %v2335_v19 = vmul.f32 %v2329_v41, %v2287_v14 }
 0x795   : > { %v2336_v54 = vmul.f32 %v2330_v15, %v2288_v55  ;;  %v11536_v15 = vld [vmem:[#allocation94_spill] sm:$0xff] }
 0x796   : > { %v2339_v53 = vpack.c.bf16 %v2335_v19, %v2333_v34 }
 0x797   : > { %v2340_v63 = vpack.c.bf16 %v2336_v54, %v2334_v18 }
 0x799   : > { %v6557_v11 = vpop.eup %6556  ;;  %2349 = vmatprep.subr.bf16.mxu0 %v2340_v63 }
 0x79a   : > { %v6559_v20 = vpop.eup %6558  ;;  %2350 = vmatpush1.bf16.msra.mxu0 %v2339_v53  ;;  %v2331_v30 = vadd.f32 1.0, %v6557_v11  ;;  %v11555_v53 = vld [vmem:[#allocation17_spill] sm:$0xff] }
 0x79b   : > { %v2332_v22 = vadd.f32 1.0, %v6559_v20 }
 0x79c   : > { %v2337_v13 = vmul.f32 %v2331_v30, %v2289_v21  ;;  %v11537_v30 = vld [vmem:[#allocation95_spill] sm:$0xff] }
 0x79d   : > { %v2338_v47 = vmul.f32 %v2332_v22, %v2290_v62  ;;  %v11538_v22 = vld [vmem:[#allocation96_spill] sm:$0xff] }
 0x79e   : > { %v2341_v37 = vpack.c.bf16 %v2337_v13, %v2337_v13 }
 0x79f   : > { %v2342_v9 = vpack.c.bf16 %v2338_v47, %v2338_v47 }
 0x7a0   : > { %v2344_v10 = vsel %vm582_vm1, %v2341_v37, 0 }
 0x7a1   : > { %6283 = vmatprep.subr.msk.bf16.mxu0 %vm582_vm1, %v2342_v9 }
 0x7a2   : > { %2352 = vmatpush1.bf16.msra.mxu0 %v2344_v10 }
 0x7a3   : > { %2412 = vmatprep.subr.bf16.mxu0 %v11516_v60 }
 0x7a5   : > { %6284 = vmatmul.mubr.msk.bf16.vlgmr.msra.gmra.mrb[64].mxu0 %vm572_vm2, %v11517_v5 }
 0x7a6   : > { %2413 = vmatpush1.bf16.msra.mxu0 %v11518_v35  ;;  %2391 = vmatprep.mubr.bf16.mxu0 %v11509_v16 }
 0x7a7   : > { %2414 = vmatprep.subr.bf16.mxu0 %v11519_v29  ;;  %v11539_v29 = vld [vmem:[#allocation7_spill] sm:$0xff] }
 0x7aa   : > { %2415 = vmatpush1.bf16.msra.mxu0 %v11520_v52 }
 0x7ab   : > { %2416 = vmatprep.subr.bf16.mxu0 %v11521_v24 }
 0x7ad   : > { %6285 = vmatmul.mubr.msk.bf16.gmra.mrb[68].mxu0 %vm572_vm2, %v11522_v51  ;;  %v11672_v51 = vld [vmem:[#allocation101_spill] sm:$0xff] }
 0x7ae   : > { %2417 = vmatpush1.bf16.msra.mxu0 %v11523_v58  ;;  %2401 = vmatprep.mubr.bf16.mxu0 %v11509_v16 }
 0x7af   : > { %2590 = vmatprep.subr.bf16.mxu0 %v11524_v7 }
 0x7b5   : > { %6286 = vmatmul.mubr.msk.bf16.gmra.mrb[72].mxu0 %vm572_vm2, %v11525_v59 }
 0x7b6   : > { %2444 = vmatprep.mubr.bf16.mxu0 %v11509_v16 }
 0x7bd   : > { %6287 = vmatmul.mubr.msk.bf16.vlgmr.msra.gmra.mrb[76].mxu0 %vm462_vm0, %v11526_v57 }
 0x7be   : > { %2591 = vmatpush1.bf16.msra.mxu0 %v11527_v50  ;;  %2454 = vmatprep.mubr.bf16.mxu0 %v11509_v16  ;;  %v11540_v50 = vld [vmem:[#allocation8_spill] sm:$0xff] }
 0x7bf   : > { %2592 = vmatprep.subr.bf16.mxu0 %v11528_v17 }
 0x7c2   : > { %2593 = vmatpush1.bf16.msra.mxu0 %v11529_v49 }
 0x7c3   : > { %2594 = vmatprep.subr.bf16.mxu0 %v11530_v25 }
 0x7c5   : > { %6288 = vmatmul.mubr.msk.bf16.gmra.mrb[80].mxu0 %vm462_vm0, %v11531_v28 }
 0x7c6   : > { %2595 = vmatpush1.bf16.msra.mxu0 %v11532_v42  ;;  %2622 = vmatprep.mubr.bf16.mxu0 %v11509_v16 }
 0x7cd   : > { %6293 = vmatmul.mubr.msk.bf16.vlgmr.msra.gmra.mrb[84].mxu0 %vm462_vm0, %v11526_v57 }
 0x7ce   : > { %2632 = vmatprep.mubr.bf16.mxu0 %v11509_v16 }
 0x7d5   : > { %6294 = vmatmul.mubr.msk.bf16.gmra.mrb[88].mxu0 %vm462_vm0, %v11531_v28 }
 0x7d6   : > { %2812 = vmatprep.mubr.bf16.mxu0 %v11509_v16 }
 0x878   : > { %v2383_v12 = vpop.f32.mrb[64].mxu0 }
 0x879   : > { %v2385_v0 = vpop.f32.mrb[65].mxu0  ;;  %v8354_v46 = vadd.f32 %v2383_v12, %v11533_v2 }
 0x87a   : > { %v2387_v61 = vpop.f32.mrb[66].mxu0  ;;  %v8360_v45 = vadd.f32 %v2385_v0, %v11533_v2 }
 0x87b   : > { %v8357_v38 = vadd.f32 %v2387_v61, %v11534_v1  ;;  %v2389_v27 = vpop.f32.mrb[67].mxu0 }
 0x87c   : > { %v8363_v4 = vadd.f32 %v2389_v27, %v11534_v1 }
 0x880   : > { %v2393_v8 = vpop.f32.mrb[68].mxu0 }
 0x881   : > { %v2395_v14 = vpop.f32.mrb[69].mxu0  ;;  %v8370_v55 = vadd.f32 %v2393_v8, %v11535_v32 }
 0x882   : > { %v2397_v41 = vpop.f32.mrb[70].mxu0  ;;  %v8376_v18 = vadd.f32 %v2395_v14, %v11535_v32 }
 0x883   : > { %v8373_v34 = vadd.f32 %v2397_v41, %v11536_v15  ;;  %v2399_v19 = vpop.f32.mrb[71].mxu0  ;;  %v11541_v41 = vld [vmem:[#allocation9_spill] sm:$0xff] }
 0x884   : > { %v8379_v54 = vadd.f32 %v2399_v19, %v11536_v15 }
 0x888   : > { %v2403_v11 = vpop.f32.mrb[72].mxu0 }
 0x889   : > { %v2405_v20 = vpop.f32.mrb[73].mxu0  ;;  %v8386_v62 = vadd.f32 %v2403_v11, %v11537_v30 }
 0x88a   : > { %v2407_v21 = vpop.f32.mrb[74].mxu0  ;;  %v8392_v37 = vadd.f32 %v2405_v20, %v11537_v30 }
 0x88b   : > { %v8389_v13 = vadd.f32 %v2407_v21, %v11538_v22  ;;  %v2409_v47 = vpop.f32.mrb[75].mxu0 }
 0x88c   : > { %v8395_v9 = vadd.f32 %v2409_v47, %v11538_v22  ;;  %v11587_v22 = vld [vmem:[#allocation23_spill] sm:$0xff] }
 0x890   : > { %v2446_v35 = vpop.f32.mrb[76].mxu0 }
 0x891   : > { %v2447_v52 = vadd.f32 %v2446_v35, %v11539_v29  ;;  %v2448_v24 = vpop.f32.mrb[77].mxu0 }
 0x892   : > { %v2449_v58 = vadd.f32 %v2448_v24, %v11539_v29  ;;  %v2450_v7 = vpop.f32.mrb[78].mxu0 }
 0x893   : > { %v2451_v17 = vadd.f32 %v2450_v7, %v11540_v50  ;;  %v2452_v49 = vpop.f32.mrb[79].mxu0  ;;  %v2463_v42 = vmax.f32 %v2447_v52, 0.0 }
 0x894   : > { %v2453_v25 = vadd.f32 %v2452_v49, %v11540_v50  ;;  %v2464_v0 = vmax.f32 %v2449_v58, 0.0 }
 0x895   : > { %v2465_v12 = vmax.f32 %v2451_v17, 0.0 }
 0x896   : > { %v2466_v61 = vmax.f32 %v2453_v25, 0.0 }
 0x897   : > { %v2481_v27 = vpack.c.bf16 %v2465_v12, %v2463_v42 }
 0x898   : > { %v2482_v8 = vpack.c.bf16 %v2466_v61, %v2464_v0  ;;  %v2456_v14 = vpop.f32.mrb[80].mxu0 }
 0x899   : > { %v2457_v19 = vadd.f32 %v2456_v14, %v11541_v41  ;;  %v2458_v11 = vpop.f32.mrb[81].mxu0 }
 0x89a   : > { %v2459_v20 = vadd.f32 %v2458_v11, %v11541_v41  ;;  %v2460_v21 = vpop.f32.mrb[82].mxu0  ;;  %2491 = vmatprep.subr.bf16.mxu1 %v2482_v8  ;;  %v11542_v8 = vld [vmem:[#allocation10_spill] sm:$0xff] }
 0x89b   : > { %v2467_v47 = vmax.f32 %v2457_v19, 0.0  ;;  %v2461_v35 = vpop.f32.mrb[83].mxu0  ;;  %2492 = vmatpush1.bf16.msra.mxu1 %v2481_v27 }
 0x89c   : > { %v2468_v24 = vmax.f32 %v2459_v20, 0.0 }
 0x89d   : > { %v2483_v7 = vpack.c.bf16 %v2467_v47, %v2467_v47 }
 0x89e   : > { %v2484_v49 = vpack.c.bf16 %v2468_v24, %v2468_v24 }
 0x89f   : > { %v2486_v52 = vsel %vm582_vm1, %v2483_v7, 0 }
 0x8a0   : > { %6289 = vmatprep.subr.msk.bf16.mxu1 %vm582_vm1, %v2484_v49  ;;  %v2624_v58 = vpop.f32.mrb[84].mxu0 }
 0x8a1   : > { %v2625_v17 = vadd.f32 %v2624_v58, %v11539_v29  ;;  %2494 = vmatpush1.bf16.msra.mxu1 %v2486_v52  ;;  %v2626_v25 = vpop.f32.mrb[85].mxu0 }
 0x8a2   : > { %v2627_v42 = vadd.f32 %v2626_v25, %v11539_v29  ;;  %v2628_v12 = vpop.f32.mrb[86].mxu0 }
 0x8a3   : > { %v2629_v0 = vadd.f32 %v2628_v12, %v11540_v50  ;;  %v2630_v61 = vpop.f32.mrb[87].mxu0  ;;  %v2641_v14 = vmax.f32 %v2625_v17, 0.0  ;;  %v11543_v17 = vld [vmem:[#allocation11_spill] sm:$0xff] }
 0x8a4   : > { %v2631_v27 = vadd.f32 %v2630_v61, %v11540_v50  ;;  %6290 = vmatmul.mubr.msk.bf16.vlgmr.msra.gmra.mrb[84].mxu1 %vm572_vm2, %v11542_v8  ;;  %v2642_v11 = vmax.f32 %v2627_v42, 0.0 }
 0x8a5   : > { %v2643_v19 = vmax.f32 %v2629_v0, 0.0  ;;  %2533 = vmatprep.mubr.bf16.mxu1 %v11509_v16 }
 0x8a6   : > { %v2644_v20 = vmax.f32 %v2631_v27, 0.0  ;;  %v11544_v27 = vld [vmem:[#allocation12_spill] sm:$0xff] }
 0x8a7   : > { %v2659_v21 = vpack.c.bf16 %v2643_v19, %v2641_v14  ;;  %v11545_v14 = vld [vmem:[#allocation13_spill] sm:$0xff]  ;;  %v11546_v19 = vld [vmem:[#allocation19_spill] sm:$0xff] }
 0x8a8   : > { %v2660_v47 = vpack.c.bf16 %v2644_v20, %v2642_v11  ;;  %v2634_v35 = vpop.f32.mrb[88].mxu0  ;;  %v11547_v11 = vmax.f32 %v11546_v19, 0.0 }
 0x8a9   : > { %v2635_v24 = vadd.f32 %v2634_v35, %v11541_v41  ;;  %v2636_v7 = vpop.f32.mrb[89].mxu0 }
 0x8aa   : > { %v2637_v49 = vadd.f32 %v2636_v7, %v11541_v41  ;;  %2669 = vmatprep.subr.bf16.mxu1 %v2660_v47  ;;  %v2638_v52 = vpop.f32.mrb[90].mxu0  ;;  %v2469_v20 = vmul.f32 %v11547_v11, %v11545_v14  ;;  %v11548_v47 = vld [vmem:[#allocation21_spill] sm:$0xff] }
 0x8ab   : > { %v2645_v58 = vmax.f32 %v2635_v24, 0.0  ;;  %2670 = vmatpush1.bf16.msra.mxu1 %v2659_v21  ;;  %v2639_v25 = vpop.f32.mrb[91].mxu0  ;;  %v11549_v35 = vmax.f32 %v11548_v47, 0.0  ;;  %v11550_v52 = vld [vmem:[#allocation14_spill] sm:$0xff] }
 0x8ac   : > { %v2646_v12 = vmax.f32 %v2637_v49, 0.0  ;;  %6291 = vmatmul.mubr.msk.bf16.gmra.mrb[88].mxu1 %vm572_vm2, %v11543_v17 }
 0x8ad   : > { %v2661_v0 = vpack.c.bf16 %v2645_v58, %v2645_v58  ;;  %2543 = vmatprep.mubr.bf16.mxu1 %v11509_v16  ;;  %v2470_v24 = vmul.f32 %v11549_v35, %v11545_v14  ;;  %v11551_v58 = vld [vmem:[#allocation22_spill] sm:$0xff] }
 0x8ae   : > { %v2662_v42 = vpack.c.bf16 %v2646_v12, %v2646_v12  ;;  %v11552_v25 = vmax.f32 %v11551_v58, 0.0 }
 0x8af   : > { %v2664_v61 = vsel %vm582_vm1, %v2661_v0, 0 }
 0x8b0   : > { %6295 = vmatprep.subr.msk.bf16.mxu1 %vm582_vm1, %v2662_v42  ;;  %v2471_v12 = vmul.f32 %v11552_v25, %v11550_v52  ;;  %v11562_v25 = vld [vmem:[#allocation28_spill] sm:$0xff] }
 0x8b1   : > { %2672 = vmatpush1.bf16.msra.mxu1 %v2664_v61  ;;  %v11553_v61 = vld [vmem:[#allocation24_spill] sm:$0xff] }
 0x8b2   : > { %v11554_v10 = vmax.f32 %v11553_v61, 0.0 }
 0x8b4   : > { %6292 = vmatmul.mubr.msk.bf16.gmra.mrb[92].mxu1 %vm572_vm2, %v11544_v27  ;;  %v2472_v60 = vmul.f32 %v11554_v10, %v11550_v52  ;;  %v11561_v10 = vld [vmem:[#allocation15_spill] sm:$0xff] }
 0x8b5   : > { %2701 = vmatprep.mubr.bf16.mxu1 %v11509_v16 }
 0x8bc   : > { %6296 = vmatmul.mubr.msk.bf16.vlgmr.msra.gmra.mrb[96].mxu1 %vm572_vm2, %v11542_v8 }
 0x8bd   : > { %2711 = vmatprep.mubr.bf16.mxu1 %v11509_v16 }
 0x8c4   : > { %6297 = vmatmul.mubr.msk.bf16.gmra.mrb[100].mxu1 %vm572_vm2, %v11543_v17 }
 0x8c5   : > { %2721 = vmatprep.mubr.bf16.mxu1 %v11509_v16 }
 0x8cc   : > { %6298 = vmatmul.mubr.msk.bf16.gmra.mrb[104].mxu1 %vm572_vm2, %v11544_v27  ;;  %v11567_v27 = vld [vmem:[#allocation16_spill] sm:$0xff] }
 0x8cd   : > { %2905 = vmatprep.mubr.bf16.mxu1 %v11509_v16 }
 0x977   : > { %v2525_v21 = vpop.f32.mrb[84].mxu1 }
 0x978   : > { %v2554_v7 = vadd.f32 %v2525_v21, %v2469_v20  ;;  %v2527_v49 = vpop.f32.mrb[85].mxu1  ;;  %v11558_v21 = vld [vmem:[#allocation18_spill] sm:$0xff] }
 0x979   : > { %v2555_v0 = vadd.f32 %v2527_v49, %v2470_v24  ;;  %v2529_v42 = vpop.f32.mrb[86].mxu1 }
 0x97a   : > { %v8448_v19 = vadd.f32 %v2554_v7, %v11555_v53  ;;  %v2556_v11 = vadd.f32 %v2529_v42, %v2471_v12  ;;  %v2531_v63 = vpop.f32.mrb[87].mxu1  ;;  %v11563_v7 = vmax.f32 %v11562_v25, 0.0  ;;  %v11568_v25 = vld [vmem:[#allocation31_spill] sm:$0xff] }
 0x97b   : > { %v8451_v47 = vadd.f32 %v2555_v0, %v11555_v53  ;;  %v2557_v20 = vadd.f32 %v2531_v63, %v2472_v60  ;;  %v11564_v63 = vld [vmem:[#allocation30_spill] sm:$0xff]  ;;  %v11570_v0 = vld [vmem:[#allocation32_spill] sm:$0xff] }
 0x97c   : > { %11556 = vst [vmem:[#allocation67_spill] sm:$0xff] %v8448_v19  ;;  %v8454_v35 = vadd.f32 %v2556_v11, %v11558_v21  ;;  %v11085_v24 = vmax.f32 %v8448_v19, 0.0  ;;  %v2473_v61 = vmul.f32 %v11563_v7, %v11561_v10  ;;  %v11565_v60 = vmax.f32 %v11564_v63, 0.0 }
 0x97d   : > { %11557 = vst [vmem:[#allocation68_spill] sm:$0xff] %v8451_v47  ;;  %v8457_v58 = vadd.f32 %v2557_v20, %v11558_v21  ;;  %v11569_v7 = vmax.f32 %v11568_v25, 0.0  ;;  %v11571_v41 = vmax.f32 %v11570_v0, 0.0  ;;  %v11572_v63 = vmax.f32 %v8451_v47, 0.0 }
 0x97e   : > { %11559 = vst [vmem:[#allocation69_spill] sm:$0xff] %v8454_v35  ;;  %v11084_v49 = vmax.f32 %v8454_v35, 0.0  ;;  %v2474_v11 = vmul.f32 %v11565_v60, %v11561_v10 }
 0x97f   : > { %11560 = vst [vmem:[#allocation129_spill] sm:$0xff] %v8457_v58  ;;  %v2535_v42 = vpop.f32.mrb[88].mxu1  ;;  %v2475_v17 = vmul.f32 %v11569_v7, %v11567_v27  ;;  %v2476_v50 = vmul.f32 %v11571_v41, %v11567_v27  ;;  %v11573_v60 = vmax.f32 %v8457_v58, 0.0 }
 0x980   : > { %v8473_v20 = vpack.c.bf16 %v11084_v49, %v11085_v24  ;;  %v2558_v3 = vadd.f32 %v2535_v42, %v2473_v61  ;;  %v2537_v44 = vpop.f32.mrb[89].mxu1  ;;  %v11575_v49 = vld [vmem:[#allocation26_spill] sm:$0xff] }
 0x981   : > { %v2559_v12 = vadd.f32 %v2537_v44, %v2474_v11  ;;  %v2539_v8 = vpop.f32.mrb[90].mxu1  ;;  %v8485_v19 = vpack.c.bf16 %v11573_v60, %v11572_v63  ;;  %v11578_v11 = vld [vmem:[#allocation29_spill] sm:$0xff]  ;;  %v11590_v60 = vld [vmem:[#allocation40_spill] sm:$0xff] }
 0x982   : > { %11566 = vst [vmem:[#allocation114_spill] sm:$0xff] %v8473_v20  ;;  %v8488_v24 = vadd.f32 %v2558_v3, %v11575_v49  ;;  %v2560_v61 = vadd.f32 %v2539_v8, %v2475_v17  ;;  %v2541_v42 = vpop.f32.mrb[91].mxu1  ;;  %v11581_v8 = vld [vmem:[#allocation20_spill] sm:$0xff]  ;;  %v11591_v32 = vmax.f32 %v11590_v60, 0.0 }
 0x983   : > { %11574 = vst [vmem:[#allocation116_spill] sm:$0xff] %v8485_v19  ;;  %v8491_v25 = vadd.f32 %v2559_v12, %v11575_v49  ;;  %v2561_v44 = vadd.f32 %v2541_v42, %v2476_v50  ;;  %2780 = vmatprep.subr.bf16.mxu0 %v8485_v19  ;;  %v11582_v17 = vld [vmem:[#allocation36_spill] sm:$0xff] }
 0x984   : > { %11576 = vst [vmem:[#allocation124_spill] sm:$0xff] %v8488_v24  ;;  %v8495_v0 = vadd.f32 %v2560_v61, %v11578_v11  ;;  %2781 = vmatpush1.bf16.msra.mxu0 %v8473_v20  ;;  %v11097_v7 = vmax.f32 %v8488_v24, 0.0  ;;  %v11583_v63 = vmax.f32 %v11582_v17, 0.0  ;;  %v11584_v61 = vld [vmem:[#allocation38_spill] sm:$0xff]  ;;  %v11588_v17 = vld [vmem:[#allocation39_spill] sm:$0xff]  ;;  %v2480_v1 = vmul.f32 %v11591_v32, %v11587_v22 }
 0x985   : > { %11577 = vst [vmem:[#allocation131_spill] sm:$0xff] %v8491_v25  ;;  %v8499_v41 = vadd.f32 %v2561_v44, %v11578_v11  ;;  %v11585_v58 = vmax.f32 %v11584_v61, 0.0 }
 0x986   : > { %11579 = vst [vmem:[#allocation70_spill] sm:$0xff] %v8495_v0  ;;  %v11096_v3 = vmax.f32 %v8495_v0, 0.0  ;;  %v2477_v12 = vmul.f32 %v11583_v63, %v11581_v8  ;;  %v11589_v63 = vmax.f32 %v11588_v17, 0.0 }
 0x987   : > { %11580 = vst [vmem:[#allocation71_spill] sm:$0xff] %v8499_v41  ;;  %v2545_v42 = vpop.f32.mrb[92].mxu1  ;;  %v2478_v35 = vmul.f32 %v11585_v58, %v11581_v8  ;;  %v11592_v58 = vmax.f32 %v8491_v25, 0.0  ;;  %v11593_v61 = vmax.f32 %v8499_v41, 0.0 }
 0x988   : > { %v8515_v44 = vpack.c.bf16 %v11096_v3, %v11097_v7  ;;  %v2562_v47 = vadd.f32 %v2545_v42, %v2477_v12  ;;  %v2547_v29 = vpop.f32.mrb[93].mxu1  ;;  %v2479_v30 = vmul.f32 %v11589_v63, %v11587_v22  ;;  %v11595_v3 = vld [vmem:[#allocation34_spill] sm:$0xff] }
 0x989   : > { %v2563_v50 = vadd.f32 %v2547_v29, %v2478_v35  ;;  %v2549_v15 = vpop.f32.mrb[94].mxu1  ;;  %v8527_v24 = vpack.c.bf16 %v11593_v61, %v11592_v58  ;;  %v11598_v35 = vld [vmem:[#allocation37_spill] sm:$0xff]  ;;  %v11608_v58 = vld [vmem:[#allocation47_spill] sm:$0xff] }
 0x98a   : > { %11586 = vst [vmem:[#allocation72_spill] sm:$0xff] %v8515_v44  ;;  %v8530_v7 = vadd.f32 %v2562_v47, %v11595_v3  ;;  %v2564_v12 = vadd.f32 %v2549_v15, %v2479_v30  ;;  %v2551_v42 = vpop.f32.mrb[95].mxu1  ;;  %v11601_v15 = vld [vmem:[#allocation43_spill] sm:$0xff]  ;;  %v11609_v57 = vmax.f32 %v11608_v58, 0.0 }
 0x98b   : > { %11594 = vst [vmem:[#allocation73_spill] sm:$0xff] %v8527_v24  ;;  %v8533_v17 = vadd.f32 %v2563_v50, %v11595_v3  ;;  %v2565_v29 = vadd.f32 %v2551_v42, %v2480_v1  ;;  %2782 = vmatprep.subr.bf16.mxu0 %v8527_v24  ;;  %v11602_v30 = vmax.f32 %v11601_v15, 0.0  ;;  %v11606_v15 = vld [vmem:[#allocation46_spill] sm:$0xff] }
 0x98c   : > { %11596 = vst [vmem:[#allocation74_spill] sm:$0xff] %v8530_v7  ;;  %v8537_v60 = vadd.f32 %v2564_v12, %v11598_v35  ;;  %2783 = vmatpush1.bf16.msra.mxu0 %v8515_v44  ;;  %v11106_v63 = vmax.f32 %v8530_v7, 0.0  ;;  %v11603_v12 = vld [vmem:[#allocation44_spill] sm:$0xff]  ;;  %v2650_v59 = vmul.f32 %v11609_v57, %v11550_v52 }
 0x98d   : > { %11597 = vst [vmem:[#allocation75_spill] sm:$0xff] %v8533_v17  ;;  %v8541_v32 = vadd.f32 %v2565_v29, %v11598_v35  ;;  %v2647_v50 = vmul.f32 %v11602_v30, %v11545_v14  ;;  %v11604_v42 = vmax.f32 %v11603_v12, 0.0  ;;  %v11607_v30 = vmax.f32 %v11606_v15, 0.0 }
 0x98e   : > { %11599 = vst [vmem:[#allocation76_spill] sm:$0xff] %v8537_v60  ;;  %v11105_v47 = vmax.f32 %v8537_v60, 0.0  ;;  %v11610_v12 = vmax.f32 %v8533_v17, 0.0 }
 0x98f   : > { %11600 = vst [vmem:[#allocation77_spill] sm:$0xff] %v8541_v32  ;;  %v2703_v61 = vpop.f32.mrb[96].mxu1  ;;  %v2648_v41 = vmul.f32 %v11604_v42, %v11545_v14  ;;  %v2649_v2 = vmul.f32 %v11607_v30, %v11550_v52  ;;  %v11611_v42 = vmax.f32 %v8541_v32, 0.0  ;;  %v11668_v52 = vld [vmem:[#allocation100_spill] sm:$0xff] }
 0x990   : > { %v8557_v29 = vpack.c.bf16 %v11105_v47, %v11106_v63  ;;  %v2732_v0 = vadd.f32 %v2703_v61, %v2647_v50  ;;  %v2705_v25 = vpop.f32.mrb[97].mxu1  ;;  %v11625_v63 = vld [vmem:[#allocation53_spill] sm:$0xff] }
 0x991   : > { %v2733_v1 = vadd.f32 %v2705_v25, %v2648_v41  ;;  %v2707_v28 = vpop.f32.mrb[98].mxu1  ;;  %v8569_v7 = vpack.c.bf16 %v11611_v42, %v11610_v12  ;;  %v11626_v12 = vmax.f32 %v11625_v63, 0.0 }
 0x992   : > { %11605 = vst [vmem:[#allocation78_spill] sm:$0xff] %v8557_v29  ;;  %v8572_v47 = vadd.f32 %v2732_v0, %v11555_v53  ;;  %v2734_v50 = vadd.f32 %v2707_v28, %v2649_v2  ;;  %v2709_v61 = vpop.f32.mrb[99].mxu1  ;;  %v11617_v0 = vpack.c.bf16 %v8363_v4, %v8360_v45 }
 0x993   : > { %11612 = vst [vmem:[#allocation80_spill] sm:$0xff] %v8569_v7  ;;  %v8575_v15 = vadd.f32 %v2733_v1, %v11555_v53  ;;  %v2735_v25 = vadd.f32 %v2709_v61, %v2650_v59  ;;  %2784 = vmatprep.subr.bf16.mxu0 %v8569_v7  ;;  %v11618_v59 = vld [vmem:[#allocation50_spill] sm:$0xff]  ;;  %v11621_v61 = vld [vmem:[#allocation51_spill] sm:$0xff]  ;;  %v2653_v30 = vmul.f32 %v11626_v12, %v11567_v27 }
 0x994   : > { %11613 = vst [vmem:[#allocation117_spill] sm:$0xff] %v8572_v47  ;;  %v8579_v41 = vadd.f32 %v2734_v50, %v11558_v21  ;;  %2785 = vmatpush1.bf16.msra.mxu0 %v8557_v29  ;;  %v11109_v28 = vmax.f32 %v8572_v47, 0.0  ;;  %v11619_v1 = vmax.f32 %v11618_v59, 0.0  ;;  %v11620_v50 = vld [vmem:[#allocation45_spill] sm:$0xff]  ;;  %v11622_v45 = vmax.f32 %v11621_v61, 0.0 }
 0x995   : > { %11614 = vst [vmem:[#allocation119_spill] sm:$0xff] %v8575_v15  ;;  %v8583_v57 = vadd.f32 %v2735_v25, %v11558_v21  ;;  %2972 = vmatprep.subr.bf16.mxu0 %v11617_v0  ;;  %v11627_v47 = vpack.c.bf16 %v8379_v54, %v8376_v18 }
 0x996   : > { %11615 = vst [vmem:[#allocation125_spill] sm:$0xff] %v8579_v41  ;;  %v11108_v2 = vmax.f32 %v8579_v41, 0.0  ;;  %v2651_v58 = vmul.f32 %v11619_v1, %v11561_v10  ;;  %v2652_v4 = vmul.f32 %v11622_v45, %v11561_v10  ;;  %v11624_v1 = vpack.c.bf16 %v8357_v38, %v8354_v46 }
 0x997   : > { %11616 = vst [vmem:[#allocation128_spill] sm:$0xff] %v8583_v57  ;;  %v2713_v42 = vpop.f32.mrb[100].mxu1  ;;  %6299 = vmatmul.mubr.msk.bf16.vlgmr.msra.gmra.mrb[92].mxu0 %vm462_vm0, %v11620_v50  ;;  %v11631_v46 = vmax.f32 %v8583_v57, 0.0 }
 0x998   : > { %v8604_v25 = vpack.c.bf16 %v11108_v2, %v11109_v28  ;;  %v2736_v0 = vadd.f32 %v2713_v42, %v2651_v58  ;;  %v2715_v59 = vpop.f32.mrb[101].mxu1  ;;  %2973 = vmatpush1.bf16.msra.mxu0 %v11624_v1  ;;  %2822 = vmatprep.mubr.bf16.mxu0 %v11509_v16  ;;  %v11628_v2 = vld [vmem:[#allocation54_spill] sm:$0xff]  ;;  %v11630_v28 = vmax.f32 %v8575_v15, 0.0  ;;  %v11639_v1 = vld [vmem:[#allocation57_spill] sm:$0xff] }
 0x999   : > { %v2737_v61 = vadd.f32 %v2715_v59, %v2652_v4  ;;  %v2717_v45 = vpop.f32.mrb[102].mxu1  ;;  %2974 = vmatprep.subr.bf16.mxu0 %v11627_v47  ;;  %v11629_v58 = vmax.f32 %v11628_v2, 0.0  ;;  %v11636_v47 = vpack.c.bf16 %v8373_v34, %v8370_v55  ;;  %v11638_v2 = vpack.c.bf16 %v8395_v9, %v8392_v37  ;;  %v11648_v55 = vld [vmem:[#allocation61_spill] sm:$0xff] }
 0x99a   : > { %11623 = vst [vmem:[#allocation118_spill] sm:$0xff] %v8604_v25  ;;  %v8623_v38 = vpack.c.bf16 %v11631_v46, %v11630_v28  ;;  %v8626_v63 = vadd.f32 %v2736_v0, %v11575_v49  ;;  %v2738_v12 = vadd.f32 %v2717_v45, %v2653_v30  ;;  %v2719_v4 = vpop.f32.mrb[103].mxu1  ;;  %v11642_v46 = vld [vmem:[#allocation58_spill] sm:$0xff] }
 0x99b   : > { %v2654_v42 = vmul.f32 %v11629_v58, %v11567_v27  ;;  %v8629_v59 = vadd.f32 %v2737_v61, %v11575_v49  ;;  %v11640_v61 = vmax.f32 %v11639_v1, 0.0  ;;  %v11643_v37 = vmax.f32 %v11642_v46, 0.0 }
 0x99c   : > { %11632 = vst [vmem:[#allocation121_spill] sm:$0xff] %v8623_v38  ;;  %11633 = vst [vmem:[#allocation126_spill] sm:$0xff] %v8626_v63  ;;  %2873 = vmatprep.subr.bf16.mxu1 %v8623_v38  ;;  %v8633_v54 = vadd.f32 %v2738_v12, %v11578_v11  ;;  %2975 = vmatpush1.bf16.msra.mxu0 %v11636_v47  ;;  %v11116_v30 = vmax.f32 %v8626_v63, 0.0  ;;  %v11645_v47 = vpack.c.bf16 %v8389_v13, %v8386_v62 }
 0x99d   : > { %11634 = vst [vmem:[#allocation130_spill] sm:$0xff] %v8629_v59  ;;  %v2739_v18 = vadd.f32 %v2719_v4, %v2654_v42  ;;  %2874 = vmatpush1.bf16.msra.mxu1 %v8604_v25  ;;  %2976 = vmatprep.subr.bf16.mxu0 %v11638_v2  ;;  %v2655_v45 = vmul.f32 %v11640_v61, %v11581_v8  ;;  %v11641_v42 = vld [vmem:[#allocation52_spill] sm:$0xff]  ;;  %v11649_v58 = vmax.f32 %v11648_v55, 0.0  ;;  %v11670_v25 = vld [vmem:[#allocation105_spill] sm:$0xff] }
 0x99e   : > { %11635 = vst [vmem:[#allocation123_spill] sm:$0xff] %v8633_v54  ;;  %v11111_v0 = vmax.f32 %v8633_v54, 0.0  ;;  %v2656_v9 = vmul.f32 %v11643_v37, %v11581_v8  ;;  %v11646_v2 = vld [vmem:[#allocation60_spill] sm:$0xff] }
 0x99f   : > { %v8640_v28 = vadd.f32 %v2739_v18, %v11578_v11  ;;  %v2723_v34 = vpop.f32.mrb[104].mxu1  ;;  %6300 = vmatmul.mubr.msk.bf16.gmra.mrb[96].mxu0 %vm462_vm0, %v11641_v42  ;;  %v11647_v1 = vmax.f32 %v11646_v2, 0.0  ;;  %v2658_v54 = vmul.f32 %v11649_v58, %v11587_v22 }
 0x9a0   : > { %v8661_v12 = vpack.c.bf16 %v11111_v0, %v11116_v30  ;;  %v2740_v4 = vadd.f32 %v2723_v34, %v2655_v45  ;;  %v2725_v18 = vpop.f32.mrb[105].mxu1  ;;  %2977 = vmatpush1.bf16.msra.mxu0 %v11645_v47  ;;  %2832 = vmatprep.mubr.bf16.mxu0 %v11509_v16  ;;  %v11650_v0 = vmax.f32 %v8629_v59, 0.0 }
 0x9a1   : > { %11637 = vst [vmem:[#allocation79_spill] sm:$0xff] %v8640_v28  ;;  %v2657_v61 = vmul.f32 %v11647_v1, %v11587_v22  ;;  %v2741_v46 = vadd.f32 %v2725_v18, %v2656_v9  ;;  %v2727_v37 = vpop.f32.mrb[106].mxu1  ;;  %v11651_v45 = vmax.f32 %v8640_v28, 0.0 }
 0x9a2   : > { %11644 = vst [vmem:[#allocation122_spill] sm:$0xff] %v8661_v12  ;;  %v8680_v62 = vadd.f32 %v2740_v4, %v11595_v3  ;;  %v2729_v47 = vpop.f32.mrb[107].mxu1 }
 0x9a3   : > { %v8677_v34 = vpack.c.bf16 %v11651_v45, %v11650_v0  ;;  %v2742_v13 = vadd.f32 %v2727_v37, %v2657_v61  ;;  %v8683_v2 = vadd.f32 %v2741_v46, %v11595_v3  ;;  %v2743_v9 = vadd.f32 %v2729_v47, %v2658_v54  ;;  %v11657_v61 = vld [vmem:[#allocation59_spill] sm:$0xff]  ;;  %v11660_v37 = vld [vmem:[#allocation64_spill] sm:$0xff]  ;;  %v11661_v45 = vld [vmem:[#allocation65_spill] sm:$0xff] }
 0x9a4   : > { %11653 = vst [vmem:[#allocation25_spill] sm:$0xff] %v8680_v62  ;;  %v11115_v0 = vmax.f32 %v8680_v62, 0.0  ;;  %v11663_v47 = vld [vmem:[#allocation97_spill] sm:$0xff] }
 0x9a5   : > { %11652 = vst [vmem:[#allocation27_spill] sm:$0xff] %v8677_v34  ;;  %11654 = vst [vmem:[#allocation35_spill] sm:$0xff] %v8683_v2  ;;  %2875 = vmatprep.subr.bf16.mxu1 %v8677_v34  ;;  %v8687_v55 = vadd.f32 %v2742_v13, %v11598_v35  ;;  %v8691_v58 = vadd.f32 %v2743_v9, %v11598_v35  ;;  %v11114_v18 = vmax.f32 %v8683_v2, 0.0  ;;  %v11662_v13 = vld [vmem:[#allocation66_spill] sm:$0xff] }
 0x9a6   : > { %2876 = vmatpush1.bf16.msra.mxu1 %v8661_v12  ;;  %v11664_v9 = vld [vmem:[#allocation98_spill] sm:$0xff] }
 0x9a7   : > { %11655 = vst [vmem:[#allocation33_spill] sm:$0xff] %v8687_v55  ;;  %11656 = vst [vmem:[#allocation42_spill] sm:$0xff] %v8691_v58  ;;  %v11113_v4 = vmax.f32 %v8687_v55, 0.0  ;;  %v11112_v1 = vmax.f32 %v8691_v58, 0.0  ;;  %6301 = vmatmul.mubr.msk.bf16.gmra.mrb[100].mxu0 %vm462_vm0, %v11657_v61 }
 0x9a8   : > { %2842 = vmatprep.mubr.bf16.mxu0 %v11509_v16 }
 0x9a9   : > { %v8703_v54 = vpack.c.bf16 %v11113_v4, %v11115_v0  ;;  %v8710_v46 = vpack.c.bf16 %v11112_v1, %v11114_v18  ;;  %v11665_v1 = vld [vmem:[#allocation99_spill] sm:$0xff] }
 0x9ab   : > { %11658 = vst [vmem:[#allocation41_spill] sm:$0xff] %v8703_v54  ;;  %11659 = vst [vmem:[#allocation49_spill] sm:$0xff] %v8710_v46  ;;  %2877 = vmatprep.subr.bf16.mxu1 %v8710_v46  ;;  %v11669_v46 = vld [vmem:[#allocation102_spill] sm:$0xff] }
 0x9ac   : > { %2878 = vmatpush1.bf16.msra.mxu1 %v8703_v54 }
 0x9af   : > { %6302 = vmatmul.mubr.msk.bf16.gmra.mrb[104].mxu0 %vm462_vm0, %v11660_v37  ;;  %6305 = vmatmul.mubr.msk.bf16.vlgmr.msra.gmra.mrb[108].mxu1 %vm462_vm0, %v11620_v50 }
 0x9b0   : > { %2852 = vmatprep.mubr.bf16.mxu0 %v11509_v16  ;;  %2915 = vmatprep.mubr.bf16.mxu1 %v11509_v16 }
 0x9b7   : > { %6303 = vmatmul.mubr.msk.bf16.gmra.mrb[108].mxu0 %vm462_vm0, %v11661_v45  ;;  %6306 = vmatmul.mubr.msk.bf16.gmra.mrb[112].mxu1 %vm462_vm0, %v11641_v42 }
 0x9b8   : > { %2862 = vmatprep.mubr.bf16.mxu0 %v11509_v16  ;;  %2925 = vmatprep.mubr.bf16.mxu1 %v11509_v16 }
 0x9bf   : > { %6304 = vmatmul.mubr.msk.bf16.gmra.mrb[112].mxu0 %vm462_vm0, %v11662_v13  ;;  %6307 = vmatmul.mubr.msk.bf16.gmra.mrb[116].mxu1 %vm462_vm0, %v11657_v61 }
 0x9c0   : > { %2935 = vmatprep.mubr.bf16.mxu1 %v11509_v16  ;;  %3004 = vmatprep.mubr.bf16.mxu0 %v11509_v16 }
 0x9c7   : > { %6308 = vmatmul.mubr.msk.bf16.gmra.mrb[120].mxu1 %vm462_vm0, %v11660_v37  ;;  %6311 = vmatmul.mubr.msk.bf16.vlgmr.msra.gmra.mrb[116].mxu0 %vm462_vm0, %v11663_v47 }
 0x9c8   : > { %2945 = vmatprep.mubr.bf16.mxu1 %v11509_v16  ;;  %3014 = vmatprep.mubr.bf16.mxu0 %v11509_v16 }
 0x9cf   : > { %6309 = vmatmul.mubr.msk.bf16.gmra.mrb[124].mxu1 %vm462_vm0, %v11661_v45  ;;  %6312 = vmatmul.mubr.msk.bf16.gmra.mrb[120].mxu0 %vm462_vm0, %v11664_v9 }
 0x9d0   : > { %2955 = vmatprep.mubr.bf16.mxu1 %v11509_v16  ;;  %3024 = vmatprep.mubr.bf16.mxu0 %v11509_v16 }
 0x9d7   : > { %6310 = vmatmul.mubr.msk.bf16.gmra.mrb[128].mxu1 %vm462_vm0, %v11662_v13  ;;  %6313 = vmatmul.mubr.msk.bf16.gmra.mrb[124].mxu0 %vm462_vm0, %v11665_v1 }
 0x9d8   : > { %3433 = vmatprep.mubr.bf16.mxu1 %v11509_v16  ;;  %3611 = vmatprep.mubr.bf16.mxu0 %v11509_v16  ;;  %v11685_v16 = vld [vmem:[#allocation109_spill] sm:$0xff] }
 0xa6a   : > { %v2814_v4 = vpop.f32.mrb[92].mxu0 }
 0xa6b   : > { %v2816_v18 = vpop.f32.mrb[93].mxu0  ;;  %v8771_v14 = vadd.f32 %v2814_v4, %v11668_v52 }
 0xa6c   : > { %v2818_v0 = vpop.f32.mrb[94].mxu0  ;;  %v8774_v54 = vadd.f32 %v2816_v18, %v11668_v52  ;;  %v11673_v18 = vld [vmem:[#allocation104_spill] sm:$0xff] }
 0xa6d   : > { %v2820_v30 = vpop.f32.mrb[95].mxu0  ;;  %v8777_v12 = vadd.f32 %v2818_v0, %v11669_v46 }
 0xa6e   : > { %v8780_v34 = vadd.f32 %v2820_v30, %v11669_v46  ;;  %v11674_v30 = vld [vmem:[#allocation108_spill] sm:$0xff] }
 0xa72   : > { %v2824_v47 = vpop.f32.mrb[96].mxu0 }
 0xa73   : > { %v2826_v9 = vpop.f32.mrb[97].mxu0  ;;  %v8783_v38 = vadd.f32 %v2824_v47, %v11670_v25 }
 0xa74   : > { %v2828_v45 = vpop.f32.mrb[98].mxu0  ;;  %v8786_v29 = vadd.f32 %v2826_v9, %v11670_v25 }
 0xa75   : > { %v2830_v37 = vpop.f32.mrb[99].mxu0  ;;  %v8789_v7 = vadd.f32 %v2828_v45, %v11672_v51 }
 0xa76   : > { %11671 = vst [vmem:[#allocation55_spill] sm:$0xff] %v8786_v29  ;;  %v8792_v4 = vadd.f32 %v2830_v37, %v11672_v51 }
 0xa7a   : > { %v2834_v61 = vpop.f32.mrb[100].mxu0 }
 0xa7b   : > { %v2836_v58 = vpop.f32.mrb[101].mxu0  ;;  %v8795_v44 = vadd.f32 %v2834_v61, %v11673_v18 }
 0xa7c   : > { %v2838_v55 = vpop.f32.mrb[102].mxu0  ;;  %v8798_v0 = vadd.f32 %v2836_v58, %v11673_v18 }
 0xa7d   : > { %v2840_v2 = vpop.f32.mrb[103].mxu0  ;;  %v8801_v24 = vadd.f32 %v2838_v55, %v11674_v30 }
 0xa7e   : > { %v8804_v47 = vadd.f32 %v2840_v2, %v11674_v30  ;;  %v11679_v2 = vld [vmem:[#allocation110_spill] sm:$0xff] }
 0xa80   : > { %11675 = vst [vmem:[#allocation63_spill] sm:$0xff] %v8804_v47 }
 0xa82   : > { %v2844_v13 = vpop.f32.mrb[104].mxu0  ;;  %v2907_v42 = vpop.f32.mrb[108].mxu1 }
 0xa83   : > { %v2846_v62 = vpop.f32.mrb[105].mxu0  ;;  %v2909_v1 = vpop.f32.mrb[109].mxu1  ;;  %v8807_v9 = vadd.f32 %v2844_v13, %v7879_v40  ;;  %v8810_v45 = vadd.f32 %v2907_v42, %v11668_v52 }
 0xa84   : > { %v2848_v28 = vpop.f32.mrb[106].mxu0  ;;  %v2911_v59 = vpop.f32.mrb[110].mxu1  ;;  %v8815_v61 = vadd.f32 %v2846_v62, %v7879_v40  ;;  %v8818_v58 = vadd.f32 %v2909_v1, %v11668_v52 }
 0xa85   : > { %v2850_v50 = vpop.f32.mrb[107].mxu0  ;;  %v2913_v63 = vpop.f32.mrb[111].mxu1  ;;  %11676 = vst [vmem:[#allocation62_spill] sm:$0xff] %v8807_v9  ;;  %v8827_v42 = vadd.f32 %v2848_v28, %v11484_v39  ;;  %v8830_v48 = vadd.f32 %v2911_v59, %v11669_v46 }
 0xa86   : > { %11678 = vst [vmem:[#allocation21_spill] sm:$0xff] %v8815_v61  ;;  %v8857_v61 = vadd.f32 %v2913_v63, %v11669_v46 }
 0xa87   : > { %11681 = vst [vmem:[#allocation24_spill] sm:$0xff] %v8827_v42 }
 0xa8a   : > { %v2854_v57 = vpop.f32.mrb[108].mxu0  ;;  %v2917_v41 = vpop.f32.mrb[112].mxu1 }
 0xa8b   : > { %v8750_v15 = vpop.f32.mrb[109].mxu0  ;;  %v8752_v35 = vpop.f32.mrb[113].mxu1  ;;  %v8860_v42 = vadd.f32 %v2854_v57, %v11487_v36  ;;  %v8863_v9 = vadd.f32 %v2917_v41, %v11670_v25 }
 0xa8c   : > { %v8754_v3 = vpop.f32.mrb[110].mxu0  ;;  %v2921_v32 = vpop.f32.mrb[114].mxu1 }
 0xa8d   : > { %v8756_v60 = vpop.f32.mrb[111].mxu0  ;;  %v2923_v22 = vpop.f32.mrb[115].mxu1  ;;  %v8821_v55 = vadd.f32 %v2921_v32, %v11672_v51  ;;  %11686 = vst [vmem:[#allocation32_spill] sm:$0xff] %v8860_v42 }
 0xa8e   : > { %v8833_v62 = vadd.f32 %v2923_v22, %v11672_v51  ;;  %v8849_v51 = vadd.f32 %v2850_v50, %v11484_v39 }
 0xa90   : > { %11684 = vst [vmem:[#allocation31_spill] sm:$0xff] %v8849_v51 }
 0xa92   : > { %v8758_v17 = vpop.f32.mrb[112].mxu0  ;;  %v2927_v8 = vpop.f32.mrb[116].mxu1 }
 0xa93   : > { %v8760_v11 = vpop.f32.mrb[113].mxu0  ;;  %v2929_v49 = vpop.f32.mrb[117].mxu1  ;;  %v8852_v33 = vadd.f32 %v2927_v8, %v11673_v18 }
 0xa94   : > { %v8762_v27 = vpop.f32.mrb[114].mxu0  ;;  %v8764_v10 = vpop.f32.mrb[118].mxu1 }
 0xa95   : > { %11666 = vst [vmem:[#allocation48_spill] sm:$0xff] %v8762_v27  ;;  %v8766_v21 = vpop.f32.mrb[115].mxu0  ;;  %v8768_v53 = vpop.f32.mrb[119].mxu1 }
 0xa96   : > { %11667 = vst [vmem:[#allocation56_spill] sm:$0xff] %v8766_v21 }
 0xa9a   : > { %v8812_v37 = vpop.f32.mrb[120].mxu1  ;;  %v3006_v20 = vpop.f32.mrb[116].mxu0 }
 0xa9b   : > { %11677 = vst [vmem:[#allocation19_spill] sm:$0xff] %v8812_v37  ;;  %v3007_v5 = vadd.f32 %v3006_v20, %v11679_v2  ;;  %v8824_v19 = vpop.f32.mrb[121].mxu1  ;;  %v3008_v13 = vpop.f32.mrb[117].mxu0 }
 0xa9c   : > { %11680 = vst [vmem:[#allocation22_spill] sm:$0xff] %v8824_v19  ;;  %v3009_v1 = vadd.f32 %v3008_v13, %v11679_v2  ;;  %v8836_v52 = vpop.f32.mrb[122].mxu1  ;;  %v3010_v32 = vpop.f32.mrb[118].mxu0 }
 0xa9d   : > { %11682 = vst [vmem:[#allocation28_spill] sm:$0xff] %v8836_v52  ;;  %v3035_v56 = vmul.f32 %v3007_v5, %v8771_v14  ;;  %v3057_v20 = vmul.f32 %v3007_v5, %v8789_v7  ;;  %v3079_v23 = vmul.f32 %v3007_v5, %v8810_v45  ;;  %v3101_v28 = vmul.f32 %v3007_v5, %v8821_v55  ;;  %v8842_v6 = vpop.f32.mrb[123].mxu1  ;;  %v3012_v59 = vpop.f32.mrb[119].mxu0 }
 0xa9e   : > { %11683 = vst [vmem:[#allocation30_spill] sm:$0xff] %v8842_v6  ;;  %v3036_v43 = vmul.f32 %v3009_v1, %v8774_v54  ;;  %v3058_v22 = vmul.f32 %v3009_v1, %v8792_v4  ;;  %v3080_v13 = vmul.f32 %v3009_v1, %v8818_v58  ;;  %v3102_v2 = vmul.f32 %v3009_v1, %v8833_v62 }
 0xa9f   : > { %v3011_v26 = vadd.f32 %v3010_v32, %v11685_v16  ;;  %v3013_v5 = vadd.f32 %v3012_v59, %v11685_v16  ;;  %v8866_v1 = vadd.f32 %v2929_v49, %v11673_v18 }
 0xaa1   : > { %v3037_v50 = vmul.f32 %v3011_v26, %v8777_v12  ;;  %v3059_v8 = vmul.f32 %v3011_v26, %v8795_v44  ;;  %v3081_v32 = vmul.f32 %v3011_v26, %v8830_v48  ;;  %v3103_v59 = vmul.f32 %v3011_v26, %v8852_v33 }
 0xaa2   : > { %v3038_v63 = vmul.f32 %v3013_v5, %v8780_v34  ;;  %v3060_v16 = vmul.f32 %v3013_v5, %v8798_v0  ;;  %v3082_v57 = vmul.f32 %v3013_v5, %v8857_v61  ;;  %v3104_v41 = vmul.f32 %v3013_v5, %v8866_v1  ;;  %v8876_v46 = vpop.f32.mrb[124].mxu1  ;;  %v3016_v49 = vpop.f32.mrb[120].mxu0 }
 0xaa3   : > { %11687 = vst [vmem:[#allocation36_spill] sm:$0xff] %v8876_v46  ;;  %v3041_v18 = vadd.f32 %v3037_v50, %v3035_v56  ;;  %v3063_v42 = vadd.f32 %v3059_v8, %v3057_v20  ;;  %v3085_v51 = vadd.f32 %v3081_v32, %v3079_v23  ;;  %v3107_v6 = vadd.f32 %v3103_v59, %v3101_v28  ;;  %v8878_v52 = vpop.f32.mrb[125].mxu1  ;;  %v3018_v39 = vpop.f32.mrb[121].mxu0  ;;  %v11692_v23 = vld [vmem:[#allocation112_spill] sm:$0xff] }
 0xaa4   : > { %11688 = vst [vmem:[#allocation38_spill] sm:$0xff] %v8878_v52  ;;  %v3049_v19 = vadd.f32 %v3038_v63, %v3036_v43  ;;  %v3071_v26 = vadd.f32 %v3060_v16, %v3058_v22  ;;  %v3093_v37 = vadd.f32 %v3082_v57, %v3080_v13  ;;  %v3115_v40 = vadd.f32 %v3104_v41, %v3102_v2  ;;  %v8880_v21 = vpop.f32.mrb[126].mxu1  ;;  %v3020_v27 = vpop.f32.mrb[122].mxu0 }
 0xaa5   : > { %11689 = vst [vmem:[#allocation39_spill] sm:$0xff] %v8880_v21  ;;  %v8884_v5 = vadd.f32 %v8750_v15, %v11487_v36  ;;  %v8888_v56 = vadd.f32 %v8764_v10, %v11674_v30  ;;  %v3017_v20 = vadd.f32 %v3016_v49, %v11692_v23  ;;  %v3019_v28 = vadd.f32 %v3018_v39, %v11692_v23  ;;  %v8892_v50 = vpop.f32.mrb[127].mxu1  ;;  %v3022_v16 = vpop.f32.mrb[123].mxu0  ;;  %v11696_v15 = vld [vmem:[#allocation103_spill] sm:$0xff] }
 0xaa6   : > { %11693 = vst [vmem:[#allocation44_spill] sm:$0xff] %v8892_v50  ;;  %v8896_v43 = vadd.f32 %v8752_v35, %v11670_v25  ;;  %v8900_v2 = vadd.f32 %v8768_v53, %v11674_v30  ;;  %v8903_v22 = vadd.f32 %v3020_v27, %v11696_v15  ;;  %v8906_v10 = vadd.f32 %v3022_v16, %v11696_v15 }
 0xaa7   : > { %11690 = vst [vmem:[#allocation40_spill] sm:$0xff] %v8884_v5  ;;  %11691 = vst [vmem:[#allocation43_spill] sm:$0xff] %v8888_v56  ;;  %v3039_v13 = vmul.f32 %v3017_v20, %v8783_v38  ;;  %v3061_v39 = vmul.f32 %v3017_v20, %v8801_v24  ;;  %v3083_v8 = vmul.f32 %v3017_v20, %v8863_v9 }
 0xaa8   : > { %11694 = vst [vmem:[#allocation46_spill] sm:$0xff] %v8896_v43  ;;  %11695 = vst [vmem:[#allocation47_spill] sm:$0xff] %v8900_v2  ;;  %v3105_v32 = vmul.f32 %v3017_v20, %v8888_v56  ;;  %v3040_v35 = vmul.f32 %v3019_v28, %v8786_v29  ;;  %v3062_v59 = vmul.f32 %v3019_v28, %v8804_v47 }
 0xaa9   : > { %v3084_v53 = vmul.f32 %v3019_v28, %v8896_v43  ;;  %v3106_v27 = vmul.f32 %v3019_v28, %v8900_v2  ;;  %v3042_v63 = vadd.f32 %v3041_v18, %v3039_v13  ;;  %v3064_v57 = vadd.f32 %v3063_v42, %v3061_v39 }
 0xaaa   : > { %v3086_v41 = vadd.f32 %v3085_v51, %v3083_v8  ;;  %v3108_v49 = vadd.f32 %v3107_v6, %v3105_v32  ;;  %v3050_v16 = vadd.f32 %v3049_v19, %v3040_v35  ;;  %v3072_v15 = vadd.f32 %v3071_v26, %v3062_v59  ;;  %v8916_v25 = vpop.f32.mrb[128].mxu1  ;;  %v8918_v5 = vpop.f32.mrb[124].mxu0 }
 0xaab   : > { %v3094_v23 = vadd.f32 %v3093_v37, %v3084_v53  ;;  %v3116_v30 = vadd.f32 %v3115_v40, %v3106_v27  ;;  %11697 = vst [vmem:[#allocation50_spill] sm:$0xff] %v8916_v25  ;;  %v3043_v20 = vrot.slane %v3042_v63, 4  ;;  %v3065_v50 = vrot.slane %v3064_v57, 4  ;;  %v8920_v46 = vpop.f32.mrb[129].mxu1  ;;  %v8922_v36 = vpop.f32.mrb[125].mxu0 }
 0xaac   : > { %v3087_v21 = vrot.slane %v3086_v41, 4  ;;  %v3109_v52 = vrot.slane %v3108_v49, 4  ;;  %11698 = vst [vmem:[#allocation51_spill] sm:$0xff] %v8920_v46  ;;  %v3051_v18 = vrot.slane %v3050_v16, 4  ;;  %v3073_v42 = vrot.slane %v3072_v15, 4  ;;  %v8924_v19 = vpop.f32.mrb[130].mxu1 }
 0xaad   : > { %v3095_v51 = vrot.slane %v3094_v23, 4  ;;  %v3117_v6 = vrot.slane %v3116_v30, 4  ;;  %11699 = vst [vmem:[#allocation53_spill] sm:$0xff] %v8924_v19  ;;  %v8926_v37 = vpop.f32.mrb[126].mxu0  ;;  %v3044_v40 = vadd.f32 %v3043_v20, %v3042_v63  ;;  %v3066_v26 = vadd.f32 %v3065_v50, %v3064_v57  ;;  %v8928_v39 = vpop.f32.mrb[131].mxu1 }
 0xaae   : > { %v3088_v28 = vadd.f32 %v3087_v21, %v3086_v41  ;;  %v3110_v13 = vadd.f32 %v3109_v52, %v3108_v49  ;;  %11700 = vst [vmem:[#allocation54_spill] sm:$0xff] %v8928_v39  ;;  %v8930_v8 = vpop.f32.mrb[127].mxu0  ;;  %v3052_v32 = vadd.f32 %v3051_v18, %v3050_v16  ;;  %v3074_v35 = vadd.f32 %v3073_v42, %v3072_v15 }
 0xaaf   : > { %11701 = vst [vmem:[#allocation57_spill] sm:$0xff] %v8930_v8  ;;  %v3096_v59 = vadd.f32 %v3095_v51, %v3094_v23  ;;  %v3118_v53 = vadd.f32 %v3117_v6, %v3116_v30  ;;  %v3045_v27 = vrot.slane %v3044_v40, 2  ;;  %v3067_v46 = vrot.slane %v3066_v26, 2 }
 0xab0   : > { %v3089_v25 = vrot.slane %v3088_v28, 2  ;;  %v3111_v2 = vrot.slane %v3110_v13, 2  ;;  %v3053_v43 = vrot.slane %v3052_v32, 2  ;;  %v3075_v19 = vrot.slane %v3074_v35, 2 }
 0xab1   : > { %v3097_v47 = vrot.slane %v3096_v59, 2  ;;  %v3119_v29 = vrot.slane %v3118_v53, 2  ;;  %v3046_v63 = vadd.f32 %v3045_v27, %v3044_v40  ;;  %v3068_v50 = vadd.f32 %v3067_v46, %v3066_v26  ;;  %v11702_v27 = vld [vmem:[#allocation113_spill] sm:$0xff] }
 0xab2   : > { %v3090_v21 = vadd.f32 %v3089_v25, %v3088_v28  ;;  %v3112_v52 = vadd.f32 %v3111_v2, %v3110_v13  ;;  %v3054_v57 = vadd.f32 %v3053_v43, %v3052_v32  ;;  %v3076_v41 = vadd.f32 %v3075_v19, %v3074_v35 }
 0xab3   : > { %v3098_v49 = vadd.f32 %v3097_v47, %v3096_v59  ;;  %v3120_v20 = vadd.f32 %v3119_v29, %v3118_v53  ;;  %v3047_v16 = vrot.slane %v3046_v63, 1  ;;  %v3069_v15 = vrot.slane %v3068_v50, 1 }
 0xab4   : > { %v3091_v23 = vrot.slane %v3090_v21, 1  ;;  %v3113_v30 = vrot.slane %v3112_v52, 1  ;;  %v3055_v18 = vrot.slane %v3054_v57, 1  ;;  %v3077_v42 = vrot.slane %v3076_v41, 1 }
 0xab5   : > { %v3099_v51 = vrot.slane %v3098_v49, 1  ;;  %v3121_v6 = vrot.slane %v3120_v20, 1  ;;  %v3048_v39 = vadd.f32 %v3047_v16, %v3046_v63  ;;  %v3070_v31 = vadd.f32 %v3069_v15, %v3068_v50  ;;  %v11703_v50 = vld [vmem:[#allocation106_spill] sm:$0xff] }
 0xab6   : > { %v3092_v8 = vadd.f32 %v3091_v23, %v3090_v21  ;;  %v3114_v56 = vadd.f32 %v3113_v30, %v3112_v52  ;;  %v3056_v40 = vadd.f32 %v3055_v18, %v3054_v57  ;;  %v3078_v46 = vadd.f32 %v3077_v42, %v3076_v41 }
 0xab7   : > { %v3100_v25 = vadd.f32 %v3099_v51, %v3098_v49  ;;  %v3122_v2 = vadd.f32 %v3121_v6, %v3120_v20  ;;  %v3123_v43 = vmax.f32 %v3048_v39, %v3070_v31  ;;  %v3211_v29 = vmul.f32 %v8903_v22, %v8771_v14 }
 0xab8   : > { %v3125_v19 = vmax.f32 %v3092_v8, %v3114_v56  ;;  %v3233_v47 = vmul.f32 %v8903_v22, %v8789_v7  ;;  %v3124_v26 = vmax.f32 %v3056_v40, %v3078_v46  ;;  %v3255_v13 = vmul.f32 %v8903_v22, %v8810_v45 }
 0xab9   : > { %v3126_v28 = vmax.f32 %v3100_v25, %v3122_v2  ;;  %v3277_v32 = vmul.f32 %v8903_v22, %v8821_v55  ;;  %v3212_v59 = vmul.f32 %v8906_v10, %v8774_v54  ;;  %v3234_v53 = vmul.f32 %v8906_v10, %v8792_v4 }
 0xaba   : > { %v3127_v35 = vmax.f32 %v3123_v43, %v3125_v19  ;;  %v3256_v14 = vmul.f32 %v8906_v10, %v8818_v58  ;;  %v8948_v7 = vadd.f32 %v8754_v3, %v11702_v27  ;;  %v3278_v45 = vmul.f32 %v8906_v10, %v8833_v62  ;;  %v11704_v62 = vld [vmem:[#allocation127_spill] sm:$0xff] }
 0xabb   : > { %v3128_v63 = vmax.f32 %v3124_v26, %v3126_v28  ;;  %v3027_v55 = vadd.f32 %v8918_v5, %v11703_v50  ;;  %v8957_v15 = vadd.f32 %v8756_v60, %v11702_v27  ;;  %v8961_v5 = vadd.f32 %v8758_v17, %v11704_v62  ;;  %v11708_v26 = vld [vmem:[#allocation132_spill] sm:$0xff] }
 0xabc   : > { %v3129_v22 = vsub.f32 %v3048_v39, %v3127_v35  ;;  %v3135_v21 = vsub.f32 %v3070_v31, %v3127_v35  ;;  %v3141_v54 = vsub.f32 %v3092_v8, %v3127_v35  ;;  %v3147_v52 = vsub.f32 %v3114_v56, %v3127_v35  ;;  %v11709_v28 = vld [vmem:[#allocation48_spill] sm:$0xff] }
 0xabd   : > { %v3130_v57 = vsub.f32 %v3056_v40, %v3128_v63  ;;  %v3136_v4 = vsub.f32 %v3078_v46, %v3128_v63  ;;  %v3142_v41 = vsub.f32 %v3100_v25, %v3128_v63  ;;  %v3148_v49 = vsub.f32 %v3122_v2, %v3128_v63 }
 0xabe   : > { %v3131_v58 = vmul.f32 1.442695, %v3129_v22  ;;  %v3137_v20 = vmul.f32 1.442695, %v3135_v21  ;;  %v3143_v16 = vmul.f32 1.442695, %v3141_v54  ;;  %v3213_v3 = vmul.f32 %v3027_v55, %v8777_v12 }
 0xabf   : > { %v3133_v31 = vmul.f32 1.442695, %v3130_v57  ;;  %v3235_v56 = vmul.f32 %v3027_v55, %v8795_v44  ;;  %v3139_v10 = vmul.f32 1.442695, %v3136_v4  ;;  %v3145_v39 = vmul.f32 1.442695, %v3142_v41 }
 0xac0   : > { %6560 = vpow2.f32 %v3131_v58  ;;  %v3217_v8 = vadd.f32 %v3213_v3, %v3211_v29  ;;  %v3257_v30 = vmul.f32 %v3027_v55, %v8830_v48  ;;  %v3279_v12 = vmul.f32 %v3027_v55, %v8852_v33  ;;  %v11705_v44 = vld [vmem:[#allocation107_spill] sm:$0xff]  ;;  %v11713_v57 = vld [vmem:[#allocation46_spill] sm:$0xff] }
 0xac1   : > { %6562 = vpow2.f32 %v3137_v20  ;;  %v3239_v23 = vadd.f32 %v3235_v56, %v3233_v47  ;;  %v3149_v60 = vmul.f32 1.442695, %v3147_v52  ;;  %v3151_v18 = vmul.f32 1.442695, %v3148_v49  ;;  %v11712_v55 = vld [vmem:[#allocation63_spill] sm:$0xff] }
 0xac2   : > { %6564 = vpow2.f32 %v3143_v16  ;;  %v3029_v17 = vadd.f32 %v8922_v36, %v11703_v50  ;;  %v3261_v42 = vadd.f32 %v3257_v30, %v3255_v13  ;;  %v3283_v51 = vadd.f32 %v3279_v12, %v3277_v32  ;;  %v11710_v32 = vld [vmem:[#allocation56_spill] sm:$0xff]  ;;  %v11714_v41 = vld [vmem:[#allocation47_spill] sm:$0xff] }
 0xac3   : > { %6566 = vpow2.f32 %v3133_v31  ;;  %v3031_v6 = vadd.f32 %v8926_v37, %v11705_v44  ;;  %v8978_v37 = vadd.f32 %v8760_v11, %v11704_v62  ;;  %v8988_v13 = vadd.f32 %v11709_v28, %v11708_v26  ;;  %v11734_v50 = vld [vmem:[#allocation32_spill] sm:$0xff] }
 0xac4   : > { %6568 = vpow2.f32 %v3139_v10  ;;  %v3214_v40 = vmul.f32 %v3029_v17, %v8780_v34  ;;  %v3236_v46 = vmul.f32 %v3029_v17, %v8798_v0  ;;  %v3258_v48 = vmul.f32 %v3029_v17, %v8857_v61 }
 0xac5   : > { %6570 = vpow2.f32 %v3145_v39  ;;  %v3280_v33 = vmul.f32 %v3029_v17, %v8866_v1  ;;  %v3215_v25 = vmul.f32 %v3031_v6, %v8783_v38  ;;  %v3237_v36 = vmul.f32 %v3031_v6, %v8801_v24  ;;  %v11706_v1 = vld [vmem:[#allocation43_spill] sm:$0xff]  ;;  %v11707_v38 = vld [vmem:[#allocation57_spill] sm:$0xff] }
 0xac6   : > { %6572 = vpow2.f32 %v3149_v60  ;;  %v3225_v2 = vadd.f32 %v3214_v40, %v3212_v59  ;;  %v3247_v43 = vadd.f32 %v3236_v46, %v3234_v53  ;;  %v3269_v19 = vadd.f32 %v3258_v48, %v3256_v14 }
 0xac7   : > { %v8980_v34 = vadd.f32 %v3280_v33, %v3278_v45  ;;  %v3218_v0 = vadd.f32 %v3217_v8, %v3215_v25  ;;  %v3240_v29 = vadd.f32 %v3239_v23, %v3237_v36  ;;  %6574 = vpow2.f32 %v3151_v18 }
 0xac8   : > { %v3259_v61 = vmul.f32 %v3031_v6, %v8863_v9  ;;  %v3281_v47 = vmul.f32 %v3031_v6, %v11706_v1  ;;  %v3033_v24 = vadd.f32 %v11707_v38, %v11705_v44  ;;  %v8992_v11 = vadd.f32 %v11710_v32, %v11708_v26  ;;  %v11711_v9 = vld [vmem:[#allocation55_spill] sm:$0xff] }
 0xac9   : > { %v3219_v35 = vrot.slane %v3218_v0, 4  ;;  %v3241_v59 = vrot.slane %v3240_v29, 4 }
 0xaca   : > { %v8994_v53 = vpop.eup %6560  ;;  %v3262_v14 = vadd.f32 %v3261_v42, %v3259_v61  ;;  %v3284_v63 = vadd.f32 %v3283_v51, %v3281_v47  ;;  %v3216_v45 = vmul.f32 %v3033_v24, %v11711_v9  ;;  %v3238_v22 = vmul.f32 %v3033_v24, %v11712_v55 }
 0xacb   : > { %v8998_v21 = vpop.eup %6562  ;;  %v3220_v54 = vadd.f32 %v3219_v35, %v3218_v0  ;;  %v3242_v52 = vadd.f32 %v3241_v59, %v3240_v29  ;;  %v3260_v4 = vmul.f32 %v3033_v24, %v11713_v57  ;;  %v3282_v49 = vmul.f32 %v3033_v24, %v11714_v41  ;;  %v11715_v41 = vld [vmem:[#allocation111_spill] sm:$0xff] }
 0xacc   : > { %v9002_v58 = vpop.eup %6564  ;;  %v3153_v20 = vadd.f32 %v8998_v21, %v8994_v53  ;;  %v3263_v16 = vrot.slane %v3262_v14, 4  ;;  %v3285_v3 = vrot.slane %v3284_v63, 4  ;;  %v3226_v31 = vadd.f32 %v3225_v2, %v3216_v45 }
 0xacd   : > { %v9006_v56 = vpop.eup %6566  ;;  %v3221_v10 = vrot.slane %v3220_v54, 2  ;;  %v3243_v39 = vrot.slane %v3242_v52, 2  ;;  %v3248_v8 = vadd.f32 %v3247_v43, %v3238_v22  ;;  %v3270_v23 = vadd.f32 %v3269_v19, %v3260_v4 }
 0xace   : > { %v9008_v30 = vpop.eup %6568  ;;  %v3155_v12 = vadd.f32 %v9002_v58, %v3153_v20  ;;  %v3264_v60 = vadd.f32 %v3263_v16, %v3262_v14  ;;  %v3286_v18 = vadd.f32 %v3285_v3, %v3284_v63  ;;  %v3227_v17 = vrot.slane %v3226_v31, 4  ;;  %v11716_v20 = vld [vmem:[#allocation19_spill] sm:$0xff]  ;;  %v11717_v3 = vld [vmem:[#allocation22_spill] sm:$0xff] }
 0xacf   : > { %v9011_v42 = vpop.eup %6570  ;;  %v3154_v51 = vadd.f32 %v9008_v30, %v9006_v56  ;;  %v3222_v6 = vadd.f32 %v3221_v10, %v3220_v54  ;;  %v3244_v40 = vadd.f32 %v3243_v39, %v3242_v52  ;;  %v3249_v46 = vrot.slane %v3248_v8, 4 }
 0xad0   : > { %v6573_v48 = vpop.eup %6572  ;;  %v3265_v33 = vrot.slane %v3264_v60, 2  ;;  %v3287_v25 = vrot.slane %v3286_v18, 2  ;;  %v3228_v36 = vadd.f32 %v3227_v17, %v3226_v31  ;;  %v3271_v2 = vrot.slane %v3270_v23, 4  ;;  %v11721_v17 = vld [vmem:[#allocation120_spill] sm:$0xff] }
 0xad1   : > { %v3156_v43 = vadd.f32 %v9011_v42, %v3154_v51  ;;  %v3157_v19 = vadd.f32 %v6573_v48, %v3155_v12  ;;  %v3223_v0 = vrot.slane %v3222_v6, 1  ;;  %v3245_v29 = vrot.slane %v3244_v40, 1  ;;  %v9016_v61 = vpop.eup %6574  ;;  %v11719_v12 = vld [vmem:[#allocation28_spill] sm:$0xff] }
 0xad2   : > { %v3266_v1 = vadd.f32 %v3265_v33, %v3264_v60  ;;  %v3288_v47 = vadd.f32 %v3287_v25, %v3286_v18  ;;  %v3229_v38 = vrot.slane %v3228_v36, 2  ;;  %v3250_v24 = vadd.f32 %v3249_v46, %v3248_v8  ;;  %v11718_v8 = vld [vmem:[#allocation115_spill] sm:$0xff]  ;;  %v11722_v51 = vld [vmem:[#allocation36_spill] sm:$0xff]  ;;  %v11723_v25 = vld [vmem:[#allocation38_spill] sm:$0xff] }
 0xad3   : > { %6576 = vrcp.f32 %v3157_v19  ;;  %v3158_v28 = vadd.f32 %v9016_v61, %v3156_v43  ;;  %v3224_v32 = vadd.f32 %v3223_v0, %v3222_v6  ;;  %v3246_v35 = vadd.f32 %v3245_v29, %v3244_v40  ;;  %v11725_v29 = vld [vmem:[#allocation44_spill] sm:$0xff] }
 0xad4   : > { %v3267_v59 = vrot.slane %v3266_v1, 1  ;;  %v3289_v14 = vrot.slane %v3288_v47, 1  ;;  %v3230_v63 = vadd.f32 %v3229_v38, %v3228_v36  ;;  %v3251_v9 = vrot.slane %v3250_v24, 2 }
 0xad5   : > { %6578 = vrcp.f32 %v3158_v28  ;;  %v3299_v45 = vmax.f32 %v3224_v32, %v3246_v35  ;;  %v3272_v55 = vadd.f32 %v3271_v2, %v3270_v23  ;;  %v3292_v22 = vadd.f32 %v8980_v34, %v3282_v49  ;;  %v11720_v34 = vld [vmem:[#allocation30_spill] sm:$0xff]  ;;  %v11724_v2 = vld [vmem:[#allocation39_spill] sm:$0xff] }
 0xad6   : > { %v3268_v54 = vadd.f32 %v3267_v59, %v3266_v1  ;;  %v9020_v52 = vadd.f32 %v3289_v14, %v3288_v47  ;;  %v3231_v57 = vrot.slane %v3230_v63, 1  ;;  %v3252_v4 = vadd.f32 %v3251_v9, %v3250_v24  ;;  %v11726_v47 = vld [vmem:[#allocation50_spill] sm:$0xff]  ;;  %v11727_v24 = vld [vmem:[#allocation51_spill] sm:$0xff] }
 0xad7   : > { %v9024_v16 = vadd.f32 %v11716_v20, %v11715_v41  ;;  %v9028_v31 = vadd.f32 %v11717_v3, %v11715_v41  ;;  %v3273_v10 = vrot.slane %v3272_v55, 2  ;;  %v3293_v39 = vrot.slane %v3292_v22, 4 }
 0xad8   : > { %v9032_v23 = vadd.f32 %v11719_v12, %v11718_v8  ;;  %v9036_v49 = vadd.f32 %v11720_v34, %v11718_v8  ;;  %v3301_v60 = vmax.f32 %v3268_v54, %v9020_v52  ;;  %v3253_v18 = vrot.slane %v3252_v4, 1 }
 0xad9   : > { %v9041_v6 = vadd.f32 %v11722_v51, %v11721_v17  ;;  %v9043_v40 = vadd.f32 %v3231_v57, %v3230_v63  ;;  %v9045_v46 = vadd.f32 %v3273_v10, %v3272_v55  ;;  %v3294_v33 = vadd.f32 %v3293_v39, %v3292_v22  ;;  %v11728_v22 = vld [vmem:[#allocation53_spill] sm:$0xff]  ;;  %v11730_v51 = vld [vmem:[#allocation62_spill] sm:$0xff] }
 0xada   : > { %v9049_v36 = vadd.f32 %v11723_v25, %v11721_v17  ;;  %v9053_v43 = vadd.f32 %v11724_v2, %v11702_v27  ;;  %v3303_v19 = vmax.f32 %v3299_v45, %v3301_v60  ;;  %v9055_v0 = vadd.f32 %v3253_v18, %v3252_v4  ;;  %v11729_v4 = vld [vmem:[#allocation54_spill] sm:$0xff] }
 0xadb   : > { %v9059_v1 = vadd.f32 %v11725_v29, %v11702_v27  ;;  %v9063_v38 = vadd.f32 %v11726_v47, %v11704_v62  ;;  %v9067_v28 = vadd.f32 %v11727_v24, %v11704_v62  ;;  %v3295_v59 = vrot.slane %v3294_v33, 2  ;;  %v11731_v24 = vld [vmem:[#allocation24_spill] sm:$0xff] }
 0xadc   : > { %v3305_v14 = vsub.f32 %v3224_v32, %v3303_v19  ;;  %v3311_v63 = vsub.f32 %v3246_v35, %v3303_v19  ;;  %v3317_v9 = vsub.f32 %v3268_v54, %v3303_v19  ;;  %v3323_v45 = vsub.f32 %v9020_v52, %v3303_v19 }
 0xadd   : > { %v6577_v55 = vpop.eup %6576  ;;  %v9072_v57 = vadd.f32 %v11728_v22, %v11708_v26  ;;  %v9076_v20 = vadd.f32 %v11729_v4, %v11708_v26  ;;  %v3275_v3 = vrot.slane %v9045_v46, 1  ;;  %v3296_v18 = vadd.f32 %v3295_v59, %v3294_v33 }
 0xade   : > { %v3161_v32 = vmul.f32 %v6577_v55, %v8994_v53  ;;  %v3163_v35 = vmul.f32 %v6577_v55, %v8998_v21  ;;  %v3165_v54 = vmul.f32 %v6577_v55, %v9002_v58  ;;  %v3167_v52 = vmul.f32 %v6577_v55, %v6573_v48 }
 0xadf   : > { %v6579_v39 = vpop.eup %6578  ;;  %v3307_v12 = vmul.f32 1.442695, %v3305_v14  ;;  %v3313_v34 = vmul.f32 1.442695, %v3311_v63  ;;  %v3319_v60 = vmul.f32 1.442695, %v3317_v9 }
 0xae0   : > { %v3169_v25 = vmul.f32 %v3161_v32, %v11730_v51  ;;  %v3175_v2 = vmul.f32 %v3163_v35, %v8948_v7  ;;  %v3187_v19 = vmul.f32 %v3165_v54, %v9024_v16  ;;  %v3199_v29 = vmul.f32 %v3167_v52, %v9053_v43  ;;  %v11732_v63 = vld [vmem:[#allocation21_spill] sm:$0xff] }
 0xae1   : > { %v3162_v53 = vmul.f32 %v6579_v39, %v9006_v56  ;;  %v3164_v21 = vmul.f32 %v6579_v39, %v9008_v30  ;;  %v3166_v58 = vmul.f32 %v6579_v39, %v9011_v42  ;;  %v3168_v48 = vmul.f32 %v6579_v39, %v9016_v61  ;;  %v11733_v61 = vld [vmem:[#allocation31_spill] sm:$0xff] }
 0xae2   : > { %v3181_v47 = vadd.f32 %v3175_v2, %v3169_v25  ;;  %v3171_v14 = vmul.f32 %v3161_v32, %v11731_v24  ;;  %v3177_v33 = vmul.f32 %v3163_v35, %v8961_v5  ;;  %v3189_v59 = vmul.f32 %v3165_v54, %v9032_v23 }
 0xae3   : > { %v3170_v9 = vmul.f32 %v3162_v53, %v11732_v63  ;;  %v3176_v55 = vmul.f32 %v3164_v21, %v8957_v15  ;;  %v3188_v22 = vmul.f32 %v3166_v58, %v9028_v31  ;;  %v3200_v56 = vmul.f32 %v3168_v48, %v9059_v1 }
 0xae4   : > { %v3193_v30 = vadd.f32 %v3187_v19, %v3181_v47  ;;  %v3183_v4 = vadd.f32 %v3177_v33, %v3171_v14  ;;  %v3201_v42 = vmul.f32 %v3167_v52, %v9063_v38  ;;  %v3172_v39 = vmul.f32 %v3162_v53, %v11733_v61 }
 0xae5   : > { %v3182_v25 = vadd.f32 %v3176_v55, %v3170_v9  ;;  %v3178_v2 = vmul.f32 %v3164_v21, %v8978_v37  ;;  %v3190_v10 = vmul.f32 %v3166_v58, %v9036_v49  ;;  %v3202_v26 = vmul.f32 %v3168_v48, %v9067_v28 }
 0xae6   : > { %v9104_v44 = vadd.f32 %v3199_v29, %v3193_v30  ;;  %v3195_v62 = vadd.f32 %v3189_v59, %v3183_v4  ;;  %v3173_v27 = vmul.f32 %v3161_v32, %v11734_v50  ;;  %v3179_v17 = vmul.f32 %v3163_v35, %v8988_v13  ;;  %v11735_v59 = vld [vmem:[#allocation40_spill] sm:$0xff] }
 0xae7   : > { %v3194_v19 = vadd.f32 %v3188_v22, %v3182_v25  ;;  %v3184_v47 = vadd.f32 %v3178_v2, %v3172_v39  ;;  %v3191_v14 = vmul.f32 %v3165_v54, %v9041_v6  ;;  %v3203_v33 = vmul.f32 %v3167_v52, %v9072_v57 }
 0xae8   : > { %v9110_v9 = vadd.f32 %v3201_v42, %v3195_v62  ;;  %v3185_v55 = vadd.f32 %v3179_v17, %v3173_v27  ;;  %6580 = vpow2.f32 %v3307_v12  ;;  %v3325_v8 = vmul.f32 1.442695, %v3323_v45 }
 0xae9   : > { %v9112_v41 = vadd.f32 %v3200_v56, %v3194_v19  ;;  %v3196_v29 = vadd.f32 %v3190_v10, %v3184_v47  ;;  %6582 = vpow2.f32 %v3313_v34  ;;  %v3174_v30 = vmul.f32 %v3162_v53, %v11735_v59 }
 0xaea   : > { %v3387_v32 = vpack.c.bf16 %v9110_v9, %v9104_v44  ;;  %v3197_v35 = vadd.f32 %v3191_v14, %v3185_v55  ;;  %v3180_v22 = vmul.f32 %v3164_v21, %v8992_v11  ;;  %6584 = vpow2.f32 %v3319_v60 }
 0xaeb   : > { %v9118_v54 = vadd.f32 %v3202_v26, %v3196_v29  ;;  %v3192_v62 = vmul.f32 %v3166_v58, %v9049_v36  ;;  %v3204_v27 = vmul.f32 %v3168_v48, %v9076_v20  ;;  %v3276_v10 = vadd.f32 %v3275_v3, %v9045_v46 }
 0xaec   : > { %v9122_v17 = vadd.f32 %v3203_v33, %v3197_v35  ;;  %v3186_v45 = vadd.f32 %v3180_v22, %v3174_v30  ;;  %v3297_v52 = vrot.slane %v3296_v18, 1  ;;  %6586 = vpow2.f32 %v3325_v8 }
 0xaed   : > { %v3388_v12 = vpack.c.bf16 %v9118_v54, %v9112_v41  ;;  %v11736_v58 = vmax.f32 %v9043_v40, %v9055_v0  ;;  %v11739_v54 = vld [vmem:[#allocation82_spill] sm:$0xff] }
 0xaee   : > { %v3198_v34 = vadd.f32 %v3192_v62, %v3186_v45  ;;  %v3298_v53 = vadd.f32 %v3297_v52, %v3296_v18 }
 0xaf0   : > { %v9127_v21 = vadd.f32 %v3204_v27, %v3198_v34  ;;  %v3302_v26 = vmax.f32 %v3276_v10, %v3298_v53 }
 0xaf2   : > { %v6581_v60 = vpop.eup %6580  ;;  %v3304_v48 = vmax.f32 %v11736_v58, %v3302_v26 }
 0xaf3   : > { %v6583_v56 = vpop.eup %6582 }
 0xaf4   : > { %v3329_v4 = vadd.f32 %v6583_v56, %v6581_v60  ;;  %v3306_v42 = vsub.f32 %v9043_v40, %v3304_v48  ;;  %v3312_v46 = vsub.f32 %v9055_v0, %v3304_v48  ;;  %v3318_v8 = vsub.f32 %v3276_v10, %v3304_v48  ;;  %v6585_v3 = vpop.eup %6584 }
 0xaf5   : > { %v3324_v39 = vsub.f32 %v3298_v53, %v3304_v48 }
 0xaf6   : > { %v3331_v25 = vadd.f32 %v6585_v3, %v3329_v4  ;;  %v3309_v2 = vmul.f32 1.442695, %v3306_v42  ;;  %v3315_v18 = vmul.f32 1.442695, %v3312_v46  ;;  %v6587_v19 = vpop.eup %6586  ;;  %v3321_v47 = vmul.f32 1.442695, %v3318_v8 }
 0xaf7   : > { %v3327_v33 = vmul.f32 1.442695, %v3324_v39 }
 0xaf8   : > { %v3333_v14 = vadd.f32 %v6587_v19, %v3331_v25  ;;  %6588 = vpow2.f32 %v3309_v2 }
 0xaf9   : > { %6590 = vpow2.f32 %v3315_v18 }
 0xafa   : > { %6592 = vrcp.f32 %v3333_v14 }
 0xafb   : > { %6594 = vpow2.f32 %v3321_v47 }
 0xafc   : > { %6596 = vpow2.f32 %v3327_v33 }
 0xb02   : > { %v6589_v55 = vpop.eup %6588 }
 0xb03   : > { %v6591_v29 = vpop.eup %6590 }
 0xb04   : > { %v6593_v40 = vpop.eup %6592  ;;  %v3330_v30 = vadd.f32 %v6591_v29, %v6589_v55 }
 0xb05   : > { %v6595_v0 = vpop.eup %6594  ;;  %v3337_v35 = vmul.f32 %v6593_v40, %v6581_v60  ;;  %v3339_v22 = vmul.f32 %v6593_v40, %v6583_v56  ;;  %v3341_v62 = vmul.f32 %v6593_v40, %v6585_v3  ;;  %v3343_v27 = vmul.f32 %v6593_v40, %v6587_v19 }
 0xb06   : > { %v3332_v45 = vadd.f32 %v6595_v0, %v3330_v30  ;;  %v6597_v10 = vpop.eup %6596 }
 0xb07   : > { %v3345_v52 = vmul.f32 %v3337_v35, %v11730_v51  ;;  %v3347_v34 = vmul.f32 %v3337_v35, %v11731_v24  ;;  %v3351_v53 = vmul.f32 %v3339_v22, %v8948_v7  ;;  %v3353_v26 = vmul.f32 %v3339_v22, %v8961_v5 }
 0xb08   : > { %v3334_v58 = vadd.f32 %v6597_v10, %v3332_v45  ;;  %v3363_v48 = vmul.f32 %v3341_v62, %v9024_v16  ;;  %v3365_v4 = vmul.f32 %v3341_v62, %v9032_v23  ;;  %v3375_v60 = vmul.f32 %v3343_v27, %v9053_v43 }
 0xb09   : > { %v3357_v56 = vadd.f32 %v3351_v53, %v3345_v52  ;;  %v3359_v42 = vadd.f32 %v3353_v26, %v3347_v34  ;;  %v3377_v46 = vmul.f32 %v3343_v27, %v9063_v38  ;;  %v3349_v8 = vmul.f32 %v3337_v35, %v11734_v50  ;;  %v11742_v53 = vld [vmem:[#allocation85_spill] sm:$0xff] }
 0xb0a   : > { %6598 = vrcp.f32 %v3334_v58  ;;  %v3355_v51 = vmul.f32 %v3339_v22, %v8988_v13  ;;  %v3367_v7 = vmul.f32 %v3341_v62, %v9041_v6  ;;  %v3379_v5 = vmul.f32 %v3343_v27, %v9072_v57 }
 0xb0b   : > { %v3369_v24 = vadd.f32 %v3363_v48, %v3357_v56  ;;  %v3371_v3 = vadd.f32 %v3365_v4, %v3359_v42  ;;  %v11738_v52 = vmov 0   ;;  %v11743_v56 = vld [vmem:[#allocation86_spill] sm:$0xff] }
 0xb0c   : > { %v3361_v16 = vadd.f32 %v3355_v51, %v3349_v8 }
 0xb0d   : > { %v3381_v39 = vadd.f32 %v3375_v60, %v3369_v24  ;;  %v3383_v23 = vadd.f32 %v3377_v46, %v3371_v3 }
 0xb0e   : > { %v3373_v25 = vadd.f32 %v3367_v7, %v3361_v16 }
 0xb0f   : > { %v3391_v43 = vpack.c.bf16 %v3383_v23, %v3381_v39 }
 0xb10   : > { %v3385_v2 = vadd.f32 %v3379_v5, %v3373_v25 }
 0xb14   : > { %v6599_v18 = vpop.eup %6598 }
 0xb15   : > { %v3338_v19 = vmul.f32 %v6599_v18, %v6589_v55  ;;  %v3340_v38 = vmul.f32 %v6599_v18, %v6591_v29  ;;  %v3342_v47 = vmul.f32 %v6599_v18, %v6595_v0  ;;  %v3344_v50 = vmul.f32 %v6599_v18, %v6597_v10 }
 0xb16   : > { %v3393_v10 = vpack.c.bf16 %v3385_v2, %v3385_v2 }
 0xb17   : > { %v3346_v14 = vmul.f32 %v3338_v19, %v11732_v63  ;;  %v3348_v13 = vmul.f32 %v3338_v19, %v11733_v61  ;;  %v3352_v6 = vmul.f32 %v3340_v38, %v8957_v15  ;;  %v3354_v57 = vmul.f32 %v3340_v38, %v8978_v37 }
 0xb18   : > { %v3364_v33 = vmul.f32 %v3342_v47, %v9028_v31  ;;  %v3366_v40 = vmul.f32 %v3342_v47, %v9036_v49  ;;  %v3376_v30 = vmul.f32 %v3344_v50, %v9059_v1  ;;  %v3378_v35 = vmul.f32 %v3344_v50, %v9067_v28 }
 0xb19   : > { %v3358_v55 = vadd.f32 %v3352_v6, %v3346_v14  ;;  %v3360_v29 = vadd.f32 %v3354_v57, %v3348_v13  ;;  %v3350_v0 = vmul.f32 %v3338_v19, %v11735_v59  ;;  %v3356_v63 = vmul.f32 %v3340_v38, %v8992_v11  ;;  %v11737_v59 = vld [vmem:[#allocation81_spill] sm:$0xff] }
 0xb1a   : > { %v3368_v61 = vmul.f32 %v3342_v47, %v9049_v36  ;;  %v3380_v15 = vmul.f32 %v3344_v50, %v9076_v20  ;;  %v3396_v11 = vsel %vm582_vm1, %v3393_v10, 0  ;;  %v3389_v36 = vpack.c.bf16 %v9122_v17, %v9122_v17  ;;  %v11740_v17 = vld [vmem:[#allocation83_spill] sm:$0xff] }
 0xb1b   : > { %v3370_v22 = vadd.f32 %v3364_v33, %v3358_v55  ;;  %v3372_v37 = vadd.f32 %v3366_v40, %v3360_v29  ;;  %v3362_v62 = vadd.f32 %v3356_v63, %v3350_v0  ;;  %v3390_v20 = vpack.c.bf16 %v9127_v21, %v9127_v21  ;;  %v11744_v33 = vld [vmem:[#allocation87_spill] sm:$0xff] }
 0xb1c   : > { %v3453_v41 = vsel %vm582_vm1, %v3389_v36, 0 }
 0xb1d   : > { %v3382_v31 = vadd.f32 %v3376_v30, %v3370_v22  ;;  %v3384_v27 = vadd.f32 %v3378_v35, %v3372_v37  ;;  %v3374_v49 = vadd.f32 %v3368_v61, %v3362_v62 }
 0xb1f   : > { %v3392_v45 = vpack.c.bf16 %v3384_v27, %v3382_v31  ;;  %v3386_v1 = vadd.f32 %v3380_v15, %v3374_v49 }
 0xb21   : > { %3401 = vmatprep.subr.bf16.mxu1 %v3392_v45  ;;  %v3394_v28 = vpack.c.bf16 %v3386_v1, %v3386_v1 }
 0xb22   : > { %3402 = vmatpush1.bf16.msra.mxu1 %v3391_v43 }
 0xb23   : > { %6314 = vmatprep.subr.msk.bf16.mxu1 %vm582_vm1, %v3394_v28 }
 0xb26   : > { %3404 = vmatpush1.bf16.msra.mxu1 %v3396_v11 }
 0xb27   : > { %3458 = vmatprep.subr.bf16.mxu1 %v3388_v12  ;;  %v11741_v12 = vld [vmem:[#allocation84_spill] sm:$0xff] }
 0xb29   : > { %6315 = vmatmul.mubr.msk.bf16.vlgmr.msra.gmra.mrb[132].mxu1 %vm572_vm2, %v11737_v59  ;;  %v11917_v59 = vld [vmem:[#allocation120_spill] sm:$0xff] }
 0xb2a   : > { %3459 = vmatpush1.bf16.msra.mxu1 %v3387_v32  ;;  %3443 = vmatprep.mubr.bf16.mxu1 %v11738_v52 }
 0xb2b   : > { %6317 = vmatprep.subr.msk.bf16.mxu1 %vm582_vm1, %v3390_v20 }
 0xb2e   : > { %3461 = vmatpush1.bf16.msra.mxu1 %v3453_v41 }
 0xb31   : > { %6316 = vmatmul.mubr.msk.bf16.gmra.mrb[136].mxu1 %vm572_vm2, %v11739_v54 }
 0xb32   : > { %3490 = vmatprep.mubr.bf16.mxu1 %v11738_v52 }
 0xb39   : > { %6318 = vmatmul.mubr.msk.bf16.vlgmr.msra.gmra.mrb[132].mxu1 %vm572_vm2, %v11740_v17  ;;  %v11916_v17 = vld [vmem:[#allocation109_spill] sm:$0xff] }
 0xb3a   : > { %3500 = vmatprep.mubr.bf16.mxu1 %v11738_v52 }
 0xb41   : > { %6319 = vmatmul.mubr.msk.bf16.gmra.mrb[140].mxu1 %vm572_vm2, %v11741_v12 }
 0xb42   : > { %3753 = vmatprep.mubr.bf16.mxu1 %v11738_v52 }
 0xc04   : > { %v3445_v44 = vpop.f32.mrb[136].mxu1 }
 0xc05   : > { %v3447_v9 = vpop.f32.mrb[137].mxu1 }
 0xc06   : > { %v3449_v32 = vpop.f32.mrb[138].mxu1 }
 0xc07   : > { %v3450_v21 = vpop.f32.mrb[139].mxu1 }
 0xc0c   : > { %v3492_v34 = vpop.f32.mrb[132].mxu1 }
 0xc0d   : > { %v3509_v26 = vadd.f32 %v3492_v34, %v11742_v53  ;;  %v3494_v58 = vpop.f32.mrb[133].mxu1 }
 0xc0e   : > { %v3510_v48 = vadd.f32 %v3494_v58, %v11742_v53  ;;  %v3496_v4 = vpop.f32.mrb[134].mxu1 }
 0xc0f   : > { %v3521_v60 = vmul.f32 0.044715, %v3509_v26  ;;  %v3511_v42 = vadd.f32 %v3496_v4, %v11743_v56  ;;  %v3498_v46 = vpop.f32.mrb[135].mxu1 }
 0xc10   : > { %v3522_v8 = vmul.f32 0.044715, %v3510_v48  ;;  %v3512_v51 = vadd.f32 %v3498_v46, %v11743_v56  ;;  %v3516_v21 = vmul.f32 0.5, %v3510_v48 }
 0xc11   : > { %v3527_v7 = vmul.f32 %v3521_v60, %v3509_v26  ;;  %v3523_v5 = vmul.f32 0.044715, %v3511_v42 }
 0xc12   : > { %v3528_v24 = vmul.f32 %v3522_v8, %v3510_v48  ;;  %v3524_v3 = vmul.f32 0.044715, %v3512_v51  ;;  %v3518_v34 = vmul.f32 0.5, %v3512_v51 }
 0xc13   : > { %v3533_v16 = vmul.f32 %v3527_v7, %v3509_v26  ;;  %v3529_v39 = vmul.f32 %v3523_v5, %v3511_v42 }
 0xc14   : > { %v3534_v23 = vmul.f32 %v3528_v24, %v3510_v48  ;;  %v3530_v25 = vmul.f32 %v3524_v3, %v3512_v51  ;;  %v3502_v43 = vpop.f32.mrb[140].mxu1 }
 0xc15   : > { %v3539_v2 = vadd.f32 %v3533_v16, %v3509_v26  ;;  %v3535_v18 = vmul.f32 %v3529_v39, %v3511_v42  ;;  %v3503_v19 = vadd.f32 %v3502_v43, %v3445_v44  ;;  %v3504_v38 = vpop.f32.mrb[141].mxu1  ;;  %v3515_v44 = vmul.f32 0.5, %v3509_v26 }
 0xc16   : > { %v3536_v47 = vmul.f32 %v3530_v25, %v3512_v51  ;;  %v3505_v50 = vadd.f32 %v3504_v38, %v3447_v9  ;;  %v3506_v14 = vpop.f32.mrb[142].mxu1  ;;  %v3540_v13 = vadd.f32 %v3534_v23, %v3510_v48  ;;  %v3517_v9 = vmul.f32 0.5, %v3511_v42  ;;  %v11748_v38 = vld [vmem:[#allocation73_spill] sm:$0xff] }
 0xc17   : > { %v3545_v6 = vmul.f32 0.7978846, %v3539_v2  ;;  %v3541_v57 = vadd.f32 %v3535_v18, %v3511_v42  ;;  %v3513_v40 = vadd.f32 %v3503_v19, %v11744_v33  ;;  %v3507_v30 = vpop.f32.mrb[143].mxu1  ;;  %v11745_v2 = vld [vmem:[#allocation116_spill] sm:$0xff]  ;;  %v11747_v19 = vld [vmem:[#allocation114_spill] sm:$0xff]  ;;  %v11751_v14 = vld [vmem:[#allocation89_spill] sm:$0xff] }
 0xc18   : > { %v3514_v35 = vadd.f32 %v3505_v50, %v11744_v33  ;;  %v3542_v55 = vadd.f32 %v3536_v47, %v3512_v51  ;;  %v3546_v29 = vmul.f32 0.7978846, %v3540_v13  ;;  %v11746_v18 = vld [vmem:[#allocation88_spill] sm:$0xff]  ;;  %v11752_v13 = vld [vmem:[#allocation78_spill] sm:$0xff] }
 0xc19   : > { %6600 = vtanh.f32 %v3545_v6  ;;  %v3547_v0 = vmul.f32 0.7978846, %v3541_v57  ;;  %v3525_v63 = vmul.f32 0.044715, %v3513_v40  ;;  %v3519_v16 = vmul.f32 0.5, %v3513_v40  ;;  %v11749_v47 = vld [vmem:[#allocation72_spill] sm:$0xff] }
 0xc1a   : > { %v3526_v61 = vmul.f32 0.044715, %v3514_v35  ;;  %v3548_v15 = vmul.f32 0.7978846, %v3542_v55  ;;  %6602 = vtanh.f32 %v3546_v29  ;;  %v3520_v23 = vmul.f32 0.5, %v3514_v35  ;;  %v11750_v50 = vld [vmem:[#allocation80_spill] sm:$0xff] }
 0xc1b   : > { %6604 = vtanh.f32 %v3547_v0  ;;  %v3531_v22 = vmul.f32 %v3525_v63, %v3513_v40  ;;  %v11753_v6 = vld [vmem:[#allocation121_spill] sm:$0xff]  ;;  %v11754_v57 = vld [vmem:[#allocation90_spill] sm:$0xff] }
 0xc1c   : > { %v3532_v37 = vmul.f32 %v3526_v61, %v3514_v35  ;;  %6606 = vtanh.f32 %v3548_v15  ;;  %v11756_v30 = vld [vmem:[#allocation118_spill] sm:$0xff]  ;;  %v11759_v29 = vld [vmem:[#allocation49_spill] sm:$0xff] }
 0xc1d   : > { %v3537_v62 = vmul.f32 %v3531_v22, %v3513_v40  ;;  %v11758_v55 = vld [vmem:[#allocation122_spill] sm:$0xff]  ;;  %v11761_v63 = vld [vmem:[#allocation41_spill] sm:$0xff] }
 0xc1e   : > { %v3538_v31 = vmul.f32 %v3532_v37, %v3514_v35  ;;  %v11760_v0 = vld [vmem:[#allocation6_spill] sm:$0xff]  ;;  %v11762_v37 = vld [vmem:[#allocation91_spill] sm:$0xff] }
 0xc1f   : > { %v3543_v27 = vadd.f32 %v3537_v62, %v3513_v40  ;;  %v11755_v40 = vld [vmem:[#allocation5_spill] sm:$0xff] }
 0xc20   : > { %v3544_v49 = vadd.f32 %v3538_v31, %v3514_v35  ;;  %v11757_v35 = vld [vmem:[#allocation27_spill] sm:$0xff]  ;;  %v11763_v31 = vld [vmem:[#allocation92_spill] sm:$0xff] }
 0xc21   : > { %v3549_v45 = vmul.f32 0.7978846, %v3543_v27 }
 0xc22   : > { %v3550_v1 = vmul.f32 0.7978846, %v3544_v49 }
 0xc23   : > { %v6601_v28 = vpop.eup %6600  ;;  %6608 = vtanh.f32 %v3549_v45 }
 0xc24   : > { %v6603_v10 = vpop.eup %6602  ;;  %v3557_v11 = vadd.f32 1.0, %v6601_v28  ;;  %6610 = vtanh.f32 %v3550_v1 }
 0xc25   : > { %v6605_v36 = vpop.eup %6604  ;;  %v3558_v20 = vadd.f32 1.0, %v6603_v10 }
 0xc26   : > { %v6607_v41 = vpop.eup %6606  ;;  %v3559_v32 = vadd.f32 1.0, %v6605_v36  ;;  %v3563_v4 = vmul.f32 %v3557_v11, %v3515_v44 }
 0xc27   : > { %v3560_v58 = vadd.f32 1.0, %v6607_v41  ;;  %v3564_v46 = vmul.f32 %v3558_v20, %v3516_v21  ;;  %v11764_v41 = vld [vmem:[#allocation93_spill] sm:$0xff] }
 0xc28   : > { %v3565_v60 = vmul.f32 %v3559_v32, %v3517_v9  ;;  %v11765_v9 = vld [vmem:[#allocation94_spill] sm:$0xff] }
 0xc29   : > { %v3566_v8 = vmul.f32 %v3560_v58, %v3518_v34 }
 0xc2a   : > { %v3569_v7 = vpack.c.bf16 %v3565_v60, %v3563_v4  ;;  %v11796_v4 = vld [vmem:[#allocation16_spill] sm:$0xff] }
 0xc2b   : > { %v3570_v5 = vpack.c.bf16 %v3566_v8, %v3564_v46 }
 0xc2d   : > { %v6609_v24 = vpop.eup %6608  ;;  %3579 = vmatprep.subr.bf16.mxu0 %v3570_v5  ;;  %v11766_v5 = vld [vmem:[#allocation95_spill] sm:$0xff] }
 0xc2e   : > { %v6611_v3 = vpop.eup %6610  ;;  %3580 = vmatpush1.bf16.msra.mxu0 %v3569_v7  ;;  %v3561_v39 = vadd.f32 1.0, %v6609_v24 }
 0xc2f   : > { %v3562_v25 = vadd.f32 1.0, %v6611_v3  ;;  %v11767_v3 = vld [vmem:[#allocation96_spill] sm:$0xff] }
 0xc30   : > { %v3567_v26 = vmul.f32 %v3561_v39, %v3519_v16 }
 0xc31   : > { %v3568_v42 = vmul.f32 %v3562_v25, %v3520_v23 }
 0xc32   : > { %v3571_v43 = vpack.c.bf16 %v3567_v26, %v3567_v26 }
 0xc33   : > { %v3572_v48 = vpack.c.bf16 %v3568_v42, %v3568_v42 }
 0xc34   : > { %v3574_v51 = vsel %vm582_vm1, %v3571_v43, 0 }
 0xc35   : > { %6320 = vmatprep.subr.msk.bf16.mxu0 %vm582_vm1, %v3572_v48  ;;  %v11768_v48 = vld [vmem:[#allocation7_spill] sm:$0xff] }
 0xc36   : > { %3582 = vmatpush1.bf16.msra.mxu0 %v3574_v51 }
 0xc37   : > { %3642 = vmatprep.subr.bf16.mxu0 %v11745_v2 }
 0xc39   : > { %6321 = vmatmul.mubr.msk.bf16.vlgmr.msra.gmra.mrb[128].mxu0 %vm572_vm2, %v11746_v18 }
 0xc3a   : > { %3643 = vmatpush1.bf16.msra.mxu0 %v11747_v19  ;;  %3621 = vmatprep.mubr.bf16.mxu0 %v11738_v52 }
 0xc3b   : > { %3644 = vmatprep.subr.bf16.mxu0 %v11748_v38 }
 0xc3e   : > { %3645 = vmatpush1.bf16.msra.mxu0 %v11749_v47  ;;  %v11769_v47 = vld [vmem:[#allocation8_spill] sm:$0xff] }
 0xc3f   : > { %3646 = vmatprep.subr.bf16.mxu0 %v11750_v50 }
 0xc41   : > { %6322 = vmatmul.mubr.msk.bf16.gmra.mrb[132].mxu0 %vm572_vm2, %v11751_v14 }
 0xc42   : > { %3647 = vmatpush1.bf16.msra.mxu0 %v11752_v13  ;;  %3631 = vmatprep.mubr.bf16.mxu0 %v11738_v52 }
 0xc43   : > { %3820 = vmatprep.subr.bf16.mxu0 %v11753_v6 }
 0xc49   : > { %6323 = vmatmul.mubr.msk.bf16.gmra.mrb[136].mxu0 %vm572_vm2, %v11754_v57 }
 0xc4a   : > { %3674 = vmatprep.mubr.bf16.mxu0 %v11738_v52 }
 0xc51   : > { %6324 = vmatmul.mubr.msk.bf16.vlgmr.msra.gmra.mrb[140].mxu0 %vm462_vm0, %v11755_v40 }
 0xc52   : > { %3821 = vmatpush1.bf16.msra.mxu0 %v11756_v30  ;;  %3684 = vmatprep.mubr.bf16.mxu0 %v11738_v52 }
 0xc53   : > { %3822 = vmatprep.subr.bf16.mxu0 %v11757_v35 }
 0xc56   : > { %3823 = vmatpush1.bf16.msra.mxu0 %v11758_v55 }
 0xc57   : > { %3824 = vmatprep.subr.bf16.mxu0 %v11759_v29 }
 0xc59   : > { %6325 = vmatmul.mubr.msk.bf16.gmra.mrb[144].mxu0 %vm462_vm0, %v11760_v0 }
 0xc5a   : > { %3825 = vmatpush1.bf16.msra.mxu0 %v11761_v63  ;;  %3852 = vmatprep.mubr.bf16.mxu0 %v11738_v52 }
 0xc61   : > { %6330 = vmatmul.mubr.msk.bf16.vlgmr.msra.gmra.mrb[148].mxu0 %vm462_vm0, %v11755_v40  ;;  %v11901_v40 = vld [vmem:[#allocation101_spill] sm:$0xff] }
 0xc62   : > { %3862 = vmatprep.mubr.bf16.mxu0 %v11738_v52 }
 0xc69   : > { %6331 = vmatmul.mubr.msk.bf16.gmra.mrb[152].mxu0 %vm462_vm0, %v11760_v0 }
 0xc6a   : > { %4042 = vmatprep.mubr.bf16.mxu0 %v11738_v52 }
 0xd0c   : > { %v3613_v61 = vpop.f32.mrb[128].mxu0 }
 0xd0d   : > { %v3615_v15 = vpop.f32.mrb[129].mxu0  ;;  %v9226_v62 = vadd.f32 %v3613_v61, %v11762_v37 }
 0xd0e   : > { %v3617_v22 = vpop.f32.mrb[130].mxu0  ;;  %v9232_v45 = vadd.f32 %v3615_v15, %v11762_v37 }
 0xd0f   : > { %v9229_v27 = vadd.f32 %v3617_v22, %v11763_v31  ;;  %v3619_v49 = vpop.f32.mrb[131].mxu0  ;;  %v11770_v22 = vld [vmem:[#allocation9_spill] sm:$0xff] }
 0xd10   : > { %v9235_v1 = vadd.f32 %v3619_v49, %v11763_v31 }
 0xd14   : > { %v3623_v11 = vpop.f32.mrb[132].mxu0 }
 0xd15   : > { %v3625_v36 = vpop.f32.mrb[133].mxu0  ;;  %v9242_v44 = vadd.f32 %v3623_v11, %v11764_v41 }
 0xd16   : > { %v3627_v20 = vpop.f32.mrb[134].mxu0  ;;  %v9248_v34 = vadd.f32 %v3625_v36, %v11764_v41 }
 0xd17   : > { %v9245_v32 = vadd.f32 %v3627_v20, %v11765_v9  ;;  %v3629_v21 = vpop.f32.mrb[135].mxu0 }
 0xd18   : > { %v9251_v58 = vadd.f32 %v3629_v21, %v11765_v9 }
 0xd1c   : > { %v3633_v46 = vpop.f32.mrb[136].mxu0 }
 0xd1d   : > { %v3635_v8 = vpop.f32.mrb[137].mxu0  ;;  %v9258_v24 = vadd.f32 %v3633_v46, %v11766_v5 }
 0xd1e   : > { %v3637_v7 = vpop.f32.mrb[138].mxu0  ;;  %v9264_v23 = vadd.f32 %v3635_v8, %v11766_v5 }
 0xd1f   : > { %v9261_v16 = vadd.f32 %v3637_v7, %v11767_v3  ;;  %v3639_v39 = vpop.f32.mrb[139].mxu0 }
 0xd20   : > { %v9267_v25 = vadd.f32 %v3639_v39, %v11767_v3 }
 0xd24   : > { %v3676_v43 = vpop.f32.mrb[140].mxu0 }
 0xd25   : > { %v3677_v51 = vadd.f32 %v3676_v43, %v11768_v48  ;;  %v3678_v2 = vpop.f32.mrb[141].mxu0 }
 0xd26   : > { %v3679_v19 = vadd.f32 %v3678_v2, %v11768_v48  ;;  %v3680_v38 = vpop.f32.mrb[142].mxu0 }
 0xd27   : > { %v3681_v50 = vadd.f32 %v3680_v38, %v11769_v47  ;;  %v3682_v13 = vpop.f32.mrb[143].mxu0  ;;  %v3693_v30 = vmax.f32 %v3677_v51, 0.0 }
 0xd28   : > { %v3683_v6 = vadd.f32 %v3682_v13, %v11769_v47  ;;  %v3694_v55 = vmax.f32 %v3679_v19, 0.0 }
 0xd29   : > { %v3695_v35 = vmax.f32 %v3681_v50, 0.0 }
 0xd2a   : > { %v3696_v29 = vmax.f32 %v3683_v6, 0.0 }
 0xd2b   : > { %v3711_v63 = vpack.c.bf16 %v3695_v35, %v3693_v30  ;;  %v11771_v35 = vld [vmem:[#allocation10_spill] sm:$0xff] }
 0xd2c   : > { %v3712_v61 = vpack.c.bf16 %v3696_v29, %v3694_v55  ;;  %v3686_v15 = vpop.f32.mrb[144].mxu0 }
 0xd2d   : > { %v3687_v49 = vadd.f32 %v3686_v15, %v11770_v22  ;;  %v3688_v11 = vpop.f32.mrb[145].mxu0 }
 0xd2e   : > { %v3689_v36 = vadd.f32 %v3688_v11, %v11770_v22  ;;  %v3690_v20 = vpop.f32.mrb[146].mxu0  ;;  %3721 = vmatprep.subr.bf16.mxu1 %v3712_v61 }
 0xd2f   : > { %v3697_v21 = vmax.f32 %v3687_v49, 0.0  ;;  %v3691_v46 = vpop.f32.mrb[147].mxu0  ;;  %3722 = vmatpush1.bf16.msra.mxu1 %v3711_v63 }
 0xd30   : > { %v3698_v8 = vmax.f32 %v3689_v36, 0.0 }
 0xd31   : > { %v3713_v7 = vpack.c.bf16 %v3697_v21, %v3697_v21 }
 0xd32   : > { %v3714_v39 = vpack.c.bf16 %v3698_v8, %v3698_v8 }
 0xd33   : > { %v3716_v43 = vsel %vm582_vm1, %v3713_v7, 0 }
 0xd34   : > { %6326 = vmatprep.subr.msk.bf16.mxu1 %vm582_vm1, %v3714_v39  ;;  %v3854_v51 = vpop.f32.mrb[148].mxu0 }
 0xd35   : > { %v3855_v2 = vadd.f32 %v3854_v51, %v11768_v48  ;;  %3724 = vmatpush1.bf16.msra.mxu1 %v3716_v43  ;;  %v3856_v19 = vpop.f32.mrb[149].mxu0  ;;  %v11772_v43 = vld [vmem:[#allocation11_spill] sm:$0xff] }
 0xd36   : > { %v3857_v38 = vadd.f32 %v3856_v19, %v11768_v48  ;;  %v3858_v50 = vpop.f32.mrb[150].mxu0 }
 0xd37   : > { %v3859_v13 = vadd.f32 %v3858_v50, %v11769_v47  ;;  %v3860_v6 = vpop.f32.mrb[151].mxu0  ;;  %v3871_v55 = vmax.f32 %v3855_v2, 0.0  ;;  %v11774_v50 = vld [vmem:[#allocation13_spill] sm:$0xff] }
 0xd38   : > { %v3861_v30 = vadd.f32 %v3860_v6, %v11769_v47  ;;  %6327 = vmatmul.mubr.msk.bf16.vlgmr.msra.gmra.mrb[144].mxu1 %vm572_vm2, %v11771_v35  ;;  %v3872_v63 = vmax.f32 %v3857_v38, 0.0  ;;  %v11773_v38 = vld [vmem:[#allocation12_spill] sm:$0xff] }
 0xd39   : > { %v3873_v29 = vmax.f32 %v3859_v13, 0.0  ;;  %3763 = vmatprep.mubr.bf16.mxu1 %v11738_v52  ;;  %v11775_v13 = vld [vmem:[#allocation67_spill] sm:$0xff] }
 0xd3a   : > { %v3874_v61 = vmax.f32 %v3861_v30, 0.0  ;;  %v11776_v6 = vmax.f32 %v11775_v13, 0.0 }
 0xd3b   : > { %v3889_v15 = vpack.c.bf16 %v3873_v29, %v3871_v55  ;;  %v11777_v29 = vld [vmem:[#allocation68_spill] sm:$0xff] }
 0xd3c   : > { %v3890_v49 = vpack.c.bf16 %v3874_v61, %v3872_v63  ;;  %v3864_v11 = vpop.f32.mrb[152].mxu0  ;;  %v3699_v30 = vmul.f32 %v11776_v6, %v11774_v50  ;;  %v11778_v63 = vmax.f32 %v11777_v29, 0.0 }
 0xd3d   : > { %v3865_v36 = vadd.f32 %v3864_v11, %v11770_v22  ;;  %v3866_v20 = vpop.f32.mrb[153].mxu0  ;;  %v11779_v11 = vld [vmem:[#allocation14_spill] sm:$0xff] }
 0xd3e   : > { %v3867_v21 = vadd.f32 %v3866_v20, %v11770_v22  ;;  %3899 = vmatprep.subr.bf16.mxu1 %v3890_v49  ;;  %v3868_v46 = vpop.f32.mrb[154].mxu0  ;;  %v3700_v61 = vmul.f32 %v11778_v63, %v11774_v50 }
 0xd3f   : > { %v3875_v8 = vmax.f32 %v3865_v36, 0.0  ;;  %3900 = vmatpush1.bf16.msra.mxu1 %v3889_v15  ;;  %v3869_v7 = vpop.f32.mrb[155].mxu0  ;;  %v11780_v36 = vld [vmem:[#allocation69_spill] sm:$0xff] }
 0xd40   : > { %v3876_v39 = vmax.f32 %v3867_v21, 0.0  ;;  %6328 = vmatmul.mubr.msk.bf16.gmra.mrb[148].mxu1 %vm572_vm2, %v11772_v43  ;;  %v11781_v20 = vmax.f32 %v11780_v36, 0.0  ;;  %v11782_v7 = vld [vmem:[#allocation129_spill] sm:$0xff] }
 0xd41   : > { %v3891_v51 = vpack.c.bf16 %v3875_v8, %v3875_v8  ;;  %3773 = vmatprep.mubr.bf16.mxu1 %v11738_v52 }
 0xd42   : > { %v3892_v2 = vpack.c.bf16 %v3876_v39, %v3876_v39  ;;  %v3701_v21 = vmul.f32 %v11781_v20, %v11779_v11  ;;  %v11783_v39 = vmax.f32 %v11782_v7, 0.0  ;;  %v11790_v20 = vld [vmem:[#allocation15_spill] sm:$0xff]  ;;  %v11791_v7 = vld [vmem:[#allocation124_spill] sm:$0xff] }
 0xd43   : > { %v3894_v19 = vsel %vm582_vm1, %v3891_v51, 0 }
 0xd44   : > { %6332 = vmatprep.subr.msk.bf16.mxu1 %vm582_vm1, %v3892_v2  ;;  %v3702_v51 = vmul.f32 %v11783_v39, %v11779_v11  ;;  %v11784_v2 = vld [vmem:[#allocation17_spill] sm:$0xff] }
 0xd45   : > { %3902 = vmatpush1.bf16.msra.mxu1 %v3894_v19 }
 0xd48   : > { %6329 = vmatmul.mubr.msk.bf16.gmra.mrb[152].mxu1 %vm572_vm2, %v11773_v38 }
 0xd49   : > { %3931 = vmatprep.mubr.bf16.mxu1 %v11738_v52 }
 0xd50   : > { %6333 = vmatmul.mubr.msk.bf16.vlgmr.msra.gmra.mrb[156].mxu1 %vm572_vm2, %v11771_v35  ;;  %v11816_v35 = vld [vmem:[#allocation23_spill] sm:$0xff] }
 0xd51   : > { %3941 = vmatprep.mubr.bf16.mxu1 %v11738_v52 }
 0xd58   : > { %6334 = vmatmul.mubr.msk.bf16.gmra.mrb[160].mxu1 %vm572_vm2, %v11772_v43 }
 0xd59   : > { %3951 = vmatprep.mubr.bf16.mxu1 %v11738_v52 }
 0xd60   : > { %6335 = vmatmul.mubr.msk.bf16.gmra.mrb[164].mxu1 %vm572_vm2, %v11773_v38 }
 0xd61   : > { %4135 = vmatprep.mubr.bf16.mxu1 %v11738_v52 }
 0xe0b   : > { %v3755_v55 = vpop.f32.mrb[144].mxu1 }
 0xe0c   : > { %v3784_v15 = vadd.f32 %v3755_v55, %v3699_v30  ;;  %v3757_v49 = vpop.f32.mrb[145].mxu1  ;;  %v11787_v55 = vld [vmem:[#allocation18_spill] sm:$0xff] }
 0xe0d   : > { %v3785_v46 = vadd.f32 %v3757_v49, %v3700_v61  ;;  %v3759_v8 = vpop.f32.mrb[146].mxu1 }
 0xe0e   : > { %v9320_v19 = vadd.f32 %v3784_v15, %v11784_v2  ;;  %v3786_v13 = vadd.f32 %v3759_v8, %v3701_v21  ;;  %v3761_v6 = vpop.f32.mrb[147].mxu1  ;;  %v11792_v15 = vmax.f32 %v11791_v7, 0.0  ;;  %v11797_v7 = vld [vmem:[#allocation70_spill] sm:$0xff] }
 0xe0f   : > { %v9323_v29 = vadd.f32 %v3785_v46, %v11784_v2  ;;  %v3787_v30 = vadd.f32 %v3761_v6, %v3702_v51  ;;  %v11793_v51 = vld [vmem:[#allocation131_spill] sm:$0xff] }
 0xe10   : > { %11785 = vst [vmem:[#allocation58_spill] sm:$0xff] %v9320_v19  ;;  %v9326_v63 = vadd.f32 %v3786_v13, %v11787_v55  ;;  %v11202_v61 = vmax.f32 %v9320_v19, 0.0  ;;  %v3703_v39 = vmul.f32 %v11792_v15, %v11790_v20  ;;  %v11794_v13 = vmax.f32 %v11793_v51, 0.0  ;;  %v11799_v46 = vld [vmem:[#allocation71_spill] sm:$0xff] }
 0xe11   : > { %11786 = vst [vmem:[#allocation60_spill] sm:$0xff] %v9323_v29  ;;  %v9329_v36 = vadd.f32 %v3787_v30, %v11787_v55  ;;  %v11798_v15 = vmax.f32 %v11797_v7, 0.0  ;;  %v11800_v21 = vmax.f32 %v11799_v46, 0.0  ;;  %v11801_v51 = vmax.f32 %v9323_v29, 0.0 }
 0xe12   : > { %11788 = vst [vmem:[#allocation61_spill] sm:$0xff] %v9326_v63  ;;  %v11201_v49 = vmax.f32 %v9326_v63, 0.0  ;;  %v3704_v6 = vmul.f32 %v11794_v13, %v11790_v20 }
 0xe13   : > { %11789 = vst [vmem:[#allocation43_spill] sm:$0xff] %v9329_v36  ;;  %v3765_v8 = vpop.f32.mrb[148].mxu1  ;;  %v3705_v60 = vmul.f32 %v11798_v15, %v11796_v4  ;;  %v3706_v38 = vmul.f32 %v11800_v21, %v11796_v4  ;;  %v11802_v13 = vmax.f32 %v9329_v36, 0.0 }
 0xe14   : > { %v9345_v30 = vpack.c.bf16 %v11201_v49, %v11202_v61  ;;  %v3788_v26 = vadd.f32 %v3765_v8, %v3703_v39  ;;  %v3767_v42 = vpop.f32.mrb[149].mxu1  ;;  %v11804_v49 = vld [vmem:[#allocation26_spill] sm:$0xff] }
 0xe15   : > { %v3789_v28 = vadd.f32 %v3767_v42, %v3704_v6  ;;  %v3769_v10 = vpop.f32.mrb[150].mxu1  ;;  %v9357_v19 = vpack.c.bf16 %v11802_v13, %v11801_v51  ;;  %v11807_v6 = vld [vmem:[#allocation29_spill] sm:$0xff] }
 0xe16   : > { %11795 = vst [vmem:[#allocation57_spill] sm:$0xff] %v9345_v30  ;;  %v9360_v61 = vadd.f32 %v3788_v26, %v11804_v49  ;;  %v3790_v39 = vadd.f32 %v3769_v10, %v3705_v60  ;;  %v3771_v8 = vpop.f32.mrb[151].mxu1  ;;  %v11810_v10 = vld [vmem:[#allocation20_spill] sm:$0xff]  ;;  %v11811_v60 = vld [vmem:[#allocation74_spill] sm:$0xff]  ;;  %v11819_v13 = vld [vmem:[#allocation77_spill] sm:$0xff] }
 0xe17   : > { %11803 = vst [vmem:[#allocation48_spill] sm:$0xff] %v9357_v19  ;;  %v9363_v7 = vadd.f32 %v3789_v28, %v11804_v49  ;;  %v3791_v42 = vadd.f32 %v3771_v8, %v3706_v38  ;;  %4010 = vmatprep.subr.bf16.mxu0 %v9357_v19  ;;  %v11812_v51 = vmax.f32 %v11811_v60, 0.0  ;;  %v11817_v60 = vld [vmem:[#allocation76_spill] sm:$0xff]  ;;  %v11820_v48 = vmax.f32 %v11819_v13, 0.0 }
 0xe18   : > { %11805 = vst [vmem:[#allocation56_spill] sm:$0xff] %v9360_v61  ;;  %v9367_v46 = vadd.f32 %v3790_v39, %v11807_v6  ;;  %4011 = vmatpush1.bf16.msra.mxu0 %v9345_v30  ;;  %v11214_v15 = vmax.f32 %v9360_v61, 0.0  ;;  %v11813_v39 = vld [vmem:[#allocation75_spill] sm:$0xff] }
 0xe19   : > { %11806 = vst [vmem:[#allocation55_spill] sm:$0xff] %v9363_v7  ;;  %v9371_v21 = vadd.f32 %v3791_v42, %v11807_v6  ;;  %v3707_v28 = vmul.f32 %v11812_v51, %v11810_v10  ;;  %v11814_v36 = vmax.f32 %v11813_v39, 0.0  ;;  %v11818_v51 = vmax.f32 %v11817_v60, 0.0  ;;  %v11911_v30 = vld [vmem:[#allocation115_spill] sm:$0xff] }
 0xe1a   : > { %11808 = vst [vmem:[#allocation63_spill] sm:$0xff] %v9367_v46  ;;  %v11213_v26 = vmax.f32 %v9367_v46, 0.0  ;;  %v3710_v3 = vmul.f32 %v11820_v48, %v11816_v35 }
 0xe1b   : > { %11809 = vst [vmem:[#allocation46_spill] sm:$0xff] %v9371_v21  ;;  %v3775_v8 = vpop.f32.mrb[152].mxu1  ;;  %v3708_v63 = vmul.f32 %v11814_v36, %v11810_v10  ;;  %v3709_v22 = vmul.f32 %v11818_v51, %v11816_v35  ;;  %v11821_v36 = vmax.f32 %v9363_v7, 0.0  ;;  %v11822_v39 = vmax.f32 %v9371_v21, 0.0 }
 0xe1c   : > { %v9387_v42 = vpack.c.bf16 %v11213_v26, %v11214_v15  ;;  %v3792_v29 = vadd.f32 %v3775_v8, %v3707_v28  ;;  %v3777_v43 = vpop.f32.mrb[153].mxu1  ;;  %v11824_v26 = vld [vmem:[#allocation34_spill] sm:$0xff] }
 0xe1d   : > { %v3793_v38 = vadd.f32 %v3777_v43, %v3708_v63  ;;  %v3779_v47 = vpop.f32.mrb[154].mxu1  ;;  %v9399_v61 = vpack.c.bf16 %v11822_v39, %v11821_v36  ;;  %v11827_v63 = vld [vmem:[#allocation37_spill] sm:$0xff]  ;;  %v11837_v36 = vld [vmem:[#allocation128_spill] sm:$0xff] }
 0xe1e   : > { %11815 = vst [vmem:[#allocation47_spill] sm:$0xff] %v9387_v42  ;;  %v9402_v15 = vadd.f32 %v3792_v29, %v11824_v26  ;;  %v3794_v28 = vadd.f32 %v3779_v47, %v3709_v22  ;;  %v3781_v8 = vpop.f32.mrb[155].mxu1  ;;  %v11830_v47 = vld [vmem:[#allocation117_spill] sm:$0xff]  ;;  %v11838_v41 = vmax.f32 %v11837_v36, 0.0 }
 0xe1f   : > { %11823 = vst [vmem:[#allocation19_spill] sm:$0xff] %v9399_v61  ;;  %v9405_v60 = vadd.f32 %v3793_v38, %v11824_v26  ;;  %v3795_v43 = vadd.f32 %v3781_v8, %v3710_v3  ;;  %4012 = vmatprep.subr.bf16.mxu0 %v9399_v61  ;;  %v11831_v22 = vmax.f32 %v11830_v47, 0.0  ;;  %v11835_v47 = vld [vmem:[#allocation125_spill] sm:$0xff] }
 0xe20   : > { %11825 = vst [vmem:[#allocation22_spill] sm:$0xff] %v9402_v15  ;;  %v9409_v13 = vadd.f32 %v3794_v28, %v11827_v63  ;;  %4013 = vmatpush1.bf16.msra.mxu0 %v9387_v42  ;;  %v11224_v51 = vmax.f32 %v9402_v15, 0.0  ;;  %v11832_v28 = vld [vmem:[#allocation119_spill] sm:$0xff]  ;;  %v3880_v31 = vmul.f32 %v11838_v41, %v11779_v11 }
 0xe21   : > { %11826 = vst [vmem:[#allocation28_spill] sm:$0xff] %v9405_v60  ;;  %v9413_v48 = vadd.f32 %v3795_v43, %v11827_v63  ;;  %v3877_v38 = vmul.f32 %v11831_v22, %v11774_v50  ;;  %v11833_v8 = vmax.f32 %v11832_v28, 0.0  ;;  %v11836_v22 = vmax.f32 %v11835_v47, 0.0 }
 0xe22   : > { %11828 = vst [vmem:[#allocation30_spill] sm:$0xff] %v9409_v13  ;;  %v11223_v29 = vmax.f32 %v9409_v13, 0.0  ;;  %v11839_v28 = vmax.f32 %v9405_v60, 0.0 }
 0xe23   : > { %11829 = vst [vmem:[#allocation36_spill] sm:$0xff] %v9413_v48  ;;  %v3933_v39 = vpop.f32.mrb[156].mxu1  ;;  %v3878_v21 = vmul.f32 %v11833_v8, %v11774_v50  ;;  %v3879_v5 = vmul.f32 %v11836_v22, %v11779_v11  ;;  %v11840_v8 = vmax.f32 %v9413_v48, 0.0  ;;  %v11897_v11 = vld [vmem:[#allocation100_spill] sm:$0xff] }
 0xe24   : > { %v9429_v43 = vpack.c.bf16 %v11223_v29, %v11224_v51  ;;  %v3962_v46 = vadd.f32 %v3933_v39, %v3877_v38  ;;  %v3935_v7 = vpop.f32.mrb[157].mxu1  ;;  %v11854_v51 = vld [vmem:[#allocation123_spill] sm:$0xff] }
 0xe25   : > { %v3963_v3 = vadd.f32 %v3935_v7, %v3878_v21  ;;  %v3937_v9 = vpop.f32.mrb[158].mxu1  ;;  %v9441_v15 = vpack.c.bf16 %v11840_v8, %v11839_v28  ;;  %v11855_v28 = vmax.f32 %v11854_v51, 0.0 }
 0xe26   : > { %11834 = vst [vmem:[#allocation38_spill] sm:$0xff] %v9429_v43  ;;  %v9444_v29 = vadd.f32 %v3962_v46, %v11784_v2  ;;  %v3964_v38 = vadd.f32 %v3937_v9, %v3879_v5  ;;  %v3939_v39 = vpop.f32.mrb[159].mxu1  ;;  %v11846_v46 = vpack.c.bf16 %v9235_v1, %v9232_v45 }
 0xe27   : > { %11841 = vst [vmem:[#allocation39_spill] sm:$0xff] %v9441_v15  ;;  %v9447_v47 = vadd.f32 %v3963_v3, %v11784_v2  ;;  %v3965_v7 = vadd.f32 %v3939_v39, %v3880_v31  ;;  %4014 = vmatprep.subr.bf16.mxu0 %v9441_v15  ;;  %v11847_v31 = vld [vmem:[#allocation126_spill] sm:$0xff]  ;;  %v3883_v22 = vmul.f32 %v11855_v28, %v11796_v4 }
 0xe28   : > { %11842 = vst [vmem:[#allocation44_spill] sm:$0xff] %v9444_v29  ;;  %v9451_v21 = vadd.f32 %v3964_v38, %v11787_v55  ;;  %4015 = vmatpush1.bf16.msra.mxu0 %v9429_v43  ;;  %v11227_v9 = vmax.f32 %v9444_v29, 0.0  ;;  %v11848_v3 = vmax.f32 %v11847_v31, 0.0  ;;  %v11849_v38 = vld [vmem:[#allocation45_spill] sm:$0xff]  ;;  %v11850_v39 = vld [vmem:[#allocation130_spill] sm:$0xff]  ;;  %v11856_v29 = vpack.c.bf16 %v9251_v58, %v9248_v34 }
 0xe29   : > { %11843 = vst [vmem:[#allocation50_spill] sm:$0xff] %v9447_v47  ;;  %v9455_v41 = vadd.f32 %v3965_v7, %v11787_v55  ;;  %4202 = vmatprep.subr.bf16.mxu0 %v11846_v46  ;;  %v11851_v45 = vmax.f32 %v11850_v39, 0.0 }
 0xe2a   : > { %11844 = vst [vmem:[#allocation51_spill] sm:$0xff] %v9451_v21  ;;  %v11226_v5 = vmax.f32 %v9451_v21, 0.0  ;;  %v3881_v36 = vmul.f32 %v11848_v3, %v11790_v20  ;;  %v11853_v3 = vpack.c.bf16 %v9229_v27, %v9226_v62 }
 0xe2b   : > { %11845 = vst [vmem:[#allocation53_spill] sm:$0xff] %v9455_v41  ;;  %v3943_v8 = vpop.f32.mrb[160].mxu1  ;;  %6336 = vmatmul.mubr.msk.bf16.vlgmr.msra.gmra.mrb[156].mxu0 %vm462_vm0, %v11849_v38  ;;  %v3882_v1 = vmul.f32 %v11851_v45, %v11790_v20  ;;  %v11860_v62 = vmax.f32 %v9455_v41, 0.0 }
 0xe2c   : > { %v9476_v7 = vpack.c.bf16 %v11226_v5, %v11227_v9  ;;  %v3966_v46 = vadd.f32 %v3943_v8, %v3881_v36  ;;  %v3945_v31 = vpop.f32.mrb[161].mxu1  ;;  %4203 = vmatpush1.bf16.msra.mxu0 %v11853_v3  ;;  %4052 = vmatprep.mubr.bf16.mxu0 %v11738_v52  ;;  %v11857_v5 = vld [vmem:[#allocation79_spill] sm:$0xff]  ;;  %v11859_v9 = vmax.f32 %v9447_v47, 0.0  ;;  %v11868_v3 = vld [vmem:[#allocation25_spill] sm:$0xff] }
 0xe2d   : > { %v3967_v39 = vadd.f32 %v3945_v31, %v3882_v1  ;;  %v3947_v45 = vpop.f32.mrb[162].mxu1  ;;  %4204 = vmatprep.subr.bf16.mxu0 %v11856_v29  ;;  %v11858_v36 = vmax.f32 %v11857_v5, 0.0  ;;  %v11865_v29 = vpack.c.bf16 %v9245_v32, %v9242_v44  ;;  %v11867_v5 = vpack.c.bf16 %v9267_v25, %v9264_v23  ;;  %v11877_v44 = vld [vmem:[#allocation42_spill] sm:$0xff] }
 0xe2e   : > { %11852 = vst [vmem:[#allocation54_spill] sm:$0xff] %v9476_v7  ;;  %v9495_v27 = vpack.c.bf16 %v11860_v62, %v11859_v9  ;;  %v9498_v51 = vadd.f32 %v3966_v46, %v11804_v49  ;;  %v3968_v28 = vadd.f32 %v3947_v45, %v3883_v22  ;;  %v3949_v1 = vpop.f32.mrb[163].mxu1  ;;  %v11871_v62 = vld [vmem:[#allocation35_spill] sm:$0xff] }
 0xe2f   : > { %v3884_v8 = vmul.f32 %v11858_v36, %v11796_v4  ;;  %v9501_v31 = vadd.f32 %v3967_v39, %v11804_v49  ;;  %v11869_v39 = vmax.f32 %v11868_v3, 0.0  ;;  %v11872_v23 = vmax.f32 %v11871_v62, 0.0 }
 0xe30   : > { %11861 = vst [vmem:[#allocation62_spill] sm:$0xff] %v9495_v27  ;;  %11862 = vst [vmem:[#allocation24_spill] sm:$0xff] %v9498_v51  ;;  %4103 = vmatprep.subr.bf16.mxu1 %v9495_v27  ;;  %v9505_v58 = vadd.f32 %v3968_v28, %v11807_v6  ;;  %4205 = vmatpush1.bf16.msra.mxu0 %v11865_v29  ;;  %v11234_v22 = vmax.f32 %v9498_v51, 0.0  ;;  %v11874_v29 = vpack.c.bf16 %v9261_v16, %v9258_v24 }
 0xe31   : > { %11863 = vst [vmem:[#allocation21_spill] sm:$0xff] %v9501_v31  ;;  %v3969_v34 = vadd.f32 %v3949_v1, %v3884_v8  ;;  %4104 = vmatpush1.bf16.msra.mxu1 %v9476_v7  ;;  %4206 = vmatprep.subr.bf16.mxu0 %v11867_v5  ;;  %v3885_v45 = vmul.f32 %v11869_v39, %v11810_v10  ;;  %v11870_v8 = vld [vmem:[#allocation52_spill] sm:$0xff]  ;;  %v11875_v5 = vld [vmem:[#allocation33_spill] sm:$0xff]  ;;  %v11878_v36 = vmax.f32 %v11877_v44, 0.0 }
 0xe32   : > { %11864 = vst [vmem:[#allocation31_spill] sm:$0xff] %v9505_v58  ;;  %v11229_v46 = vmax.f32 %v9505_v58, 0.0  ;;  %v3886_v25 = vmul.f32 %v11872_v23, %v11810_v10  ;;  %v11876_v3 = vmax.f32 %v11875_v5, 0.0 }
 0xe33   : > { %v9512_v9 = vadd.f32 %v3969_v34, %v11807_v6  ;;  %v3953_v32 = vpop.f32.mrb[164].mxu1  ;;  %6337 = vmatmul.mubr.msk.bf16.gmra.mrb[160].mxu0 %vm462_vm0, %v11870_v8  ;;  %v3888_v58 = vmul.f32 %v11878_v36, %v11816_v35 }
 0xe34   : > { %v9533_v28 = vpack.c.bf16 %v11229_v46, %v11234_v22  ;;  %v3970_v1 = vadd.f32 %v3953_v32, %v3885_v45  ;;  %v3955_v34 = vpop.f32.mrb[165].mxu1  ;;  %4207 = vmatpush1.bf16.msra.mxu0 %v11874_v29  ;;  %v3887_v39 = vmul.f32 %v11876_v3, %v11816_v35  ;;  %4062 = vmatprep.mubr.bf16.mxu0 %v11738_v52  ;;  %v11879_v46 = vmax.f32 %v9501_v31, 0.0 }
 0xe35   : > { %11866 = vst [vmem:[#allocation32_spill] sm:$0xff] %v9512_v9  ;;  %v3971_v62 = vadd.f32 %v3955_v34, %v3886_v25  ;;  %v3957_v23 = vpop.f32.mrb[166].mxu1  ;;  %v11880_v45 = vmax.f32 %v9512_v9, 0.0 }
 0xe36   : > { %11873 = vst [vmem:[#allocation40_spill] sm:$0xff] %v9533_v28  ;;  %v9552_v24 = vadd.f32 %v3970_v1, %v11824_v26  ;;  %v3972_v16 = vadd.f32 %v3957_v23, %v3887_v39  ;;  %v3959_v29 = vpop.f32.mrb[167].mxu1  ;;  %v11886_v39 = vld [vmem:[#allocation59_spill] sm:$0xff]  ;;  %v11889_v23 = vld [vmem:[#allocation64_spill] sm:$0xff] }
 0xe37   : > { %v9549_v32 = vpack.c.bf16 %v11880_v45, %v11879_v46  ;;  %v9555_v5 = vadd.f32 %v3971_v62, %v11824_v26  ;;  %v3973_v25 = vadd.f32 %v3959_v29, %v3888_v58  ;;  %v11890_v45 = vld [vmem:[#allocation65_spill] sm:$0xff] }
 0xe38   : > { %11882 = vst [vmem:[#allocation114_spill] sm:$0xff] %v9552_v24  ;;  %v9559_v44 = vadd.f32 %v3972_v16, %v11827_v63  ;;  %v11233_v46 = vmax.f32 %v9552_v24, 0.0  ;;  %v11891_v16 = vld [vmem:[#allocation66_spill] sm:$0xff]  ;;  %v11892_v29 = vld [vmem:[#allocation97_spill] sm:$0xff] }
 0xe39   : > { %11881 = vst [vmem:[#allocation116_spill] sm:$0xff] %v9549_v32  ;;  %11883 = vst [vmem:[#allocation73_spill] sm:$0xff] %v9555_v5  ;;  %4105 = vmatprep.subr.bf16.mxu1 %v9549_v32  ;;  %v9563_v36 = vadd.f32 %v3973_v25, %v11827_v63  ;;  %v11232_v34 = vmax.f32 %v9555_v5, 0.0  ;;  %v11893_v25 = vld [vmem:[#allocation98_spill] sm:$0xff] }
 0xe3a   : > { %11884 = vst [vmem:[#allocation72_spill] sm:$0xff] %v9559_v44  ;;  %4106 = vmatpush1.bf16.msra.mxu1 %v9533_v28  ;;  %v11231_v1 = vmax.f32 %v9559_v44, 0.0  ;;  %v11899_v28 = vld [vmem:[#allocation105_spill] sm:$0xff] }
 0xe3b   : > { %11885 = vst [vmem:[#allocation80_spill] sm:$0xff] %v9563_v36  ;;  %v11230_v3 = vmax.f32 %v9563_v36, 0.0  ;;  %6338 = vmatmul.mubr.msk.bf16.gmra.mrb[164].mxu0 %vm462_vm0, %v11886_v39 }
 0xe3c   : > { %v9575_v58 = vpack.c.bf16 %v11231_v1, %v11233_v46  ;;  %4072 = vmatprep.mubr.bf16.mxu0 %v11738_v52 }
 0xe3d   : > { %v9582_v62 = vpack.c.bf16 %v11230_v3, %v11232_v34  ;;  %v11894_v3 = vld [vmem:[#allocation99_spill] sm:$0xff] }
 0xe3e   : > { %11887 = vst [vmem:[#allocation78_spill] sm:$0xff] %v9575_v58 }
 0xe3f   : > { %11888 = vst [vmem:[#allocation121_spill] sm:$0xff] %v9582_v62  ;;  %4107 = vmatprep.subr.bf16.mxu1 %v9582_v62 }
 0xe40   : > { %4108 = vmatpush1.bf16.msra.mxu1 %v9575_v58  ;;  %v11898_v58 = vld [vmem:[#allocation102_spill] sm:$0xff] }
 0xe43   : > { %6339 = vmatmul.mubr.msk.bf16.gmra.mrb[168].mxu0 %vm462_vm0, %v11889_v23  ;;  %6342 = vmatmul.mubr.msk.bf16.vlgmr.msra.gmra.mrb[168].mxu1 %vm462_vm0, %v11849_v38 }
 0xe44   : > { %4082 = vmatprep.mubr.bf16.mxu0 %v11738_v52  ;;  %4145 = vmatprep.mubr.bf16.mxu1 %v11738_v52 }
 0xe4b   : > { %6340 = vmatmul.mubr.msk.bf16.gmra.mrb[172].mxu0 %vm462_vm0, %v11890_v45  ;;  %6343 = vmatmul.mubr.msk.bf16.gmra.mrb[172].mxu1 %vm462_vm0, %v11870_v8 }
 0xe4c   : > { %4092 = vmatprep.mubr.bf16.mxu0 %v11738_v52  ;;  %4155 = vmatprep.mubr.bf16.mxu1 %v11738_v52 }
 0xe53   : > { %6341 = vmatmul.mubr.msk.bf16.gmra.mrb[176].mxu0 %vm462_vm0, %v11891_v16  ;;  %6344 = vmatmul.mubr.msk.bf16.gmra.mrb[176].mxu1 %vm462_vm0, %v11886_v39 }
 0xe54   : > { %4165 = vmatprep.mubr.bf16.mxu1 %v11738_v52  ;;  %4234 = vmatprep.mubr.bf16.mxu0 %v11738_v52 }
 0xe5b   : > { %6345 = vmatmul.mubr.msk.bf16.gmra.mrb[180].mxu1 %vm462_vm0, %v11889_v23  ;;  %6348 = vmatmul.mubr.msk.bf16.vlgmr.msra.gmra.mrb[180].mxu0 %vm462_vm0, %v11892_v29 }
 0xe5c   : > { %4175 = vmatprep.mubr.bf16.mxu1 %v11738_v52  ;;  %4244 = vmatprep.mubr.bf16.mxu0 %v11738_v52 }
 0xe63   : > { %6346 = vmatmul.mubr.msk.bf16.gmra.mrb[184].mxu1 %vm462_vm0, %v11890_v45  ;;  %6349 = vmatmul.mubr.msk.bf16.gmra.mrb[184].mxu0 %vm462_vm0, %v11893_v25 }
 0xe64   : > { %4185 = vmatprep.mubr.bf16.mxu1 %v11738_v52  ;;  %4254 = vmatprep.mubr.bf16.mxu0 %v11738_v52 }
 0xe6b   : > { %6347 = vmatmul.mubr.msk.bf16.gmra.mrb[188].mxu1 %vm462_vm0, %v11891_v16  ;;  %6350 = vmatmul.mubr.msk.bf16.gmra.mrb[188].mxu0 %vm462_vm0, %v11894_v3 }
 0xe6c   : > { %4663 = vmatprep.mubr.bf16.mxu1 %v11738_v52  ;;  %4841 = vmatprep.mubr.bf16.mxu0 %v11738_v52 }
 0xefe   : > { %v4044_v1 = vpop.f32.mrb[156].mxu0 }
 0xeff   : > { %v4046_v34 = vpop.f32.mrb[157].mxu0  ;;  %v9643_v50 = vadd.f32 %v4044_v1, %v11897_v11 }
 0xf00   : > { %v4048_v46 = vpop.f32.mrb[158].mxu0  ;;  %v9646_v37 = vadd.f32 %v4046_v34, %v11897_v11  ;;  %v11902_v34 = vld [vmem:[#allocation104_spill] sm:$0xff] }
 0xf01   : > { %v4050_v22 = vpop.f32.mrb[159].mxu0  ;;  %v9649_v0 = vadd.f32 %v4048_v46, %v11898_v58 }
 0xf02   : > { %v9652_v62 = vadd.f32 %v4050_v22, %v11898_v58  ;;  %v11903_v22 = vld [vmem:[#allocation108_spill] sm:$0xff] }
 0xf06   : > { %v4054_v29 = vpop.f32.mrb[160].mxu0 }
 0xf07   : > { %v4056_v25 = vpop.f32.mrb[161].mxu0  ;;  %v9655_v32 = vadd.f32 %v4054_v29, %v11899_v28 }
 0xf08   : > { %v4058_v45 = vpop.f32.mrb[162].mxu0  ;;  %v9658_v7 = vadd.f32 %v4056_v25, %v11899_v28  ;;  %v11905_v25 = vld [vmem:[#allocation111_spill] sm:$0xff] }
 0xf09   : > { %v4060_v23 = vpop.f32.mrb[163].mxu0  ;;  %v9661_v57 = vadd.f32 %v4058_v45, %v11901_v40 }
 0xf0a   : > { %11900 = vst [vmem:[#allocation122_spill] sm:$0xff] %v9658_v7  ;;  %v9664_v1 = vadd.f32 %v4060_v23, %v11901_v40 }
 0xf0e   : > { %v4064_v39 = vpop.f32.mrb[164].mxu0 }
 0xf0f   : > { %v4066_v36 = vpop.f32.mrb[165].mxu0  ;;  %v9667_v27 = vadd.f32 %v4064_v39, %v11902_v34 }
 0xf10   : > { %v4068_v44 = vpop.f32.mrb[166].mxu0  ;;  %v9670_v46 = vadd.f32 %v4066_v36, %v11902_v34 }
 0xf11   : > { %v4070_v5 = vpop.f32.mrb[167].mxu0  ;;  %v9673_v43 = vadd.f32 %v4068_v44, %v11903_v22 }
 0xf12   : > { %v9676_v29 = vadd.f32 %v4070_v5, %v11903_v22  ;;  %v11909_v5 = vld [vmem:[#allocation110_spill] sm:$0xff] }
 0xf14   : > { %11904 = vst [vmem:[#allocation49_spill] sm:$0xff] %v9676_v29 }
 0xf16   : > { %v4074_v16 = vpop.f32.mrb[168].mxu0  ;;  %v4137_v8 = vpop.f32.mrb[168].mxu1 }
 0xf17   : > { %v4076_v24 = vpop.f32.mrb[169].mxu0  ;;  %v4139_v3 = vpop.f32.mrb[169].mxu1  ;;  %v9679_v14 = vadd.f32 %v4074_v16, %v11905_v25  ;;  %v9682_v45 = vadd.f32 %v4137_v8, %v11897_v11 }
 0xf18   : > { %v4078_v9 = vpop.f32.mrb[170].mxu0  ;;  %v4141_v31 = vpop.f32.mrb[170].mxu1  ;;  %v9687_v39 = vadd.f32 %v4076_v24, %v11905_v25  ;;  %v9690_v36 = vadd.f32 %v4139_v3, %v11897_v11 }
 0xf19   : > { %v4080_v38 = vpop.f32.mrb[171].mxu0  ;;  %v4143_v51 = vpop.f32.mrb[171].mxu1  ;;  %11906 = vst [vmem:[#allocation41_spill] sm:$0xff] %v9679_v14  ;;  %v9699_v8 = vadd.f32 %v4078_v9, %v11911_v30  ;;  %v9702_v18 = vadd.f32 %v4141_v31, %v11898_v58 }
 0xf1a   : > { %11908 = vst [vmem:[#allocation68_spill] sm:$0xff] %v9687_v39  ;;  %v9729_v52 = vadd.f32 %v4143_v51, %v11898_v58 }
 0xf1b   : > { %11912 = vst [vmem:[#allocation129_spill] sm:$0xff] %v9699_v8 }
 0xf1e   : > { %v4084_v41 = vpop.f32.mrb[172].mxu0  ;;  %v4147_v21 = vpop.f32.mrb[172].mxu1 }
 0xf1f   : > { %v9622_v47 = vpop.f32.mrb[173].mxu0  ;;  %v9624_v63 = vpop.f32.mrb[173].mxu1  ;;  %v9732_v39 = vadd.f32 %v4084_v41, %v11917_v59  ;;  %v9735_v8 = vadd.f32 %v4147_v21, %v11899_v28 }
 0xf20   : > { %v9626_v26 = vpop.f32.mrb[174].mxu0  ;;  %v4151_v48 = vpop.f32.mrb[174].mxu1 }
 0xf21   : > { %v9628_v13 = vpop.f32.mrb[175].mxu0  ;;  %v4153_v35 = vpop.f32.mrb[175].mxu1  ;;  %v9693_v44 = vadd.f32 %v4151_v48, %v11901_v40  ;;  %11918 = vst [vmem:[#allocation71_spill] sm:$0xff] %v9732_v39 }
 0xf22   : > { %v9705_v24 = vadd.f32 %v4153_v35, %v11901_v40  ;;  %v9721_v40 = vadd.f32 %v4080_v38, %v11911_v30 }
 0xf24   : > { %11915 = vst [vmem:[#allocation70_spill] sm:$0xff] %v9721_v40 }
 0xf26   : > { %v9630_v60 = vpop.f32.mrb[176].mxu0  ;;  %v4157_v10 = vpop.f32.mrb[176].mxu1 }
 0xf27   : > { %v9632_v6 = vpop.f32.mrb[177].mxu0  ;;  %v4159_v49 = vpop.f32.mrb[177].mxu1  ;;  %v9724_v12 = vadd.f32 %v4157_v10, %v11902_v34 }
 0xf28   : > { %v9634_v4 = vpop.f32.mrb[178].mxu0  ;;  %v9636_v20 = vpop.f32.mrb[178].mxu1 }
 0xf29   : > { %11895 = vst [vmem:[#allocation118_spill] sm:$0xff] %v9634_v4  ;;  %v9638_v55 = vpop.f32.mrb[179].mxu0  ;;  %v9640_v2 = vpop.f32.mrb[179].mxu1 }
 0xf2a   : > { %11896 = vst [vmem:[#allocation27_spill] sm:$0xff] %v9638_v55 }
 0xf2e   : > { %v9684_v23 = vpop.f32.mrb[180].mxu1  ;;  %v4236_v15 = vpop.f32.mrb[180].mxu0 }
 0xf2f   : > { %11907 = vst [vmem:[#allocation67_spill] sm:$0xff] %v9684_v23  ;;  %v4237_v42 = vadd.f32 %v4236_v15, %v11909_v5  ;;  %v9696_v61 = vpop.f32.mrb[181].mxu1  ;;  %v4238_v16 = vpop.f32.mrb[181].mxu0 }
 0xf30   : > { %11910 = vst [vmem:[#allocation69_spill] sm:$0xff] %v9696_v61  ;;  %v4239_v3 = vadd.f32 %v4238_v16, %v11909_v5  ;;  %v9708_v11 = vpop.f32.mrb[182].mxu1  ;;  %v4240_v48 = vpop.f32.mrb[182].mxu0 }
 0xf31   : > { %11913 = vst [vmem:[#allocation124_spill] sm:$0xff] %v9708_v11  ;;  %v4265_v19 = vmul.f32 %v4237_v42, %v9643_v50  ;;  %v4287_v15 = vmul.f32 %v4237_v42, %v9661_v57  ;;  %v4309_v33 = vmul.f32 %v4237_v42, %v9682_v45  ;;  %v4331_v9 = vmul.f32 %v4237_v42, %v9693_v44  ;;  %v9714_v56 = vpop.f32.mrb[183].mxu1  ;;  %v4242_v31 = vpop.f32.mrb[183].mxu0 }
 0xf32   : > { %11914 = vst [vmem:[#allocation131_spill] sm:$0xff] %v9714_v56  ;;  %v4266_v53 = vmul.f32 %v4239_v3, %v9646_v37  ;;  %v4288_v35 = vmul.f32 %v4239_v3, %v9664_v1  ;;  %v4310_v16 = vmul.f32 %v4239_v3, %v9690_v36  ;;  %v4332_v5 = vmul.f32 %v4239_v3, %v9705_v24 }
 0xf33   : > { %v4241_v54 = vadd.f32 %v4240_v48, %v11916_v17  ;;  %v4243_v42 = vadd.f32 %v4242_v31, %v11916_v17  ;;  %v9738_v3 = vadd.f32 %v4159_v49, %v11902_v34 }
 0xf35   : > { %v4267_v38 = vmul.f32 %v4241_v54, %v9649_v0  ;;  %v4289_v10 = vmul.f32 %v4241_v54, %v9667_v27  ;;  %v4311_v48 = vmul.f32 %v4241_v54, %v9702_v18  ;;  %v4333_v31 = vmul.f32 %v4241_v54, %v9724_v12 }
 0xf36   : > { %v4268_v51 = vmul.f32 %v4243_v42, %v9652_v62  ;;  %v4290_v17 = vmul.f32 %v4243_v42, %v9670_v46  ;;  %v4312_v41 = vmul.f32 %v4243_v42, %v9729_v52  ;;  %v4334_v21 = vmul.f32 %v4243_v42, %v9738_v3  ;;  %v9748_v58 = vpop.f32.mrb[184].mxu1  ;;  %v4246_v49 = vpop.f32.mrb[184].mxu0 }
 0xf37   : > { %11919 = vst [vmem:[#allocation74_spill] sm:$0xff] %v9748_v58  ;;  %v4271_v34 = vadd.f32 %v4267_v38, %v4265_v19  ;;  %v4293_v39 = vadd.f32 %v4289_v10, %v4287_v15  ;;  %v4315_v40 = vadd.f32 %v4311_v48, %v4309_v33  ;;  %v4337_v14 = vadd.f32 %v4333_v31, %v4331_v9  ;;  %v9750_v56 = vpop.f32.mrb[185].mxu1  ;;  %v4248_v11 = vpop.f32.mrb[185].mxu0  ;;  %v11924_v33 = vld [vmem:[#allocation112_spill] sm:$0xff] }
 0xf38   : > { %11920 = vst [vmem:[#allocation75_spill] sm:$0xff] %v9750_v56  ;;  %v4279_v30 = vadd.f32 %v4268_v51, %v4266_v53  ;;  %v4301_v54 = vadd.f32 %v4290_v17, %v4288_v35  ;;  %v4323_v61 = vadd.f32 %v4312_v41, %v4310_v16  ;;  %v4345_v23 = vadd.f32 %v4334_v21, %v4332_v5  ;;  %v9752_v25 = vpop.f32.mrb[186].mxu1  ;;  %v4250_v55 = vpop.f32.mrb[186].mxu0 }
 0xf39   : > { %11921 = vst [vmem:[#allocation76_spill] sm:$0xff] %v9752_v25  ;;  %v9756_v42 = vadd.f32 %v9622_v47, %v11917_v59  ;;  %v9760_v19 = vadd.f32 %v9636_v20, %v11903_v22  ;;  %v4247_v15 = vadd.f32 %v4246_v49, %v11924_v33  ;;  %v4249_v9 = vadd.f32 %v4248_v11, %v11924_v33  ;;  %v9764_v38 = vpop.f32.mrb[187].mxu1  ;;  %v4252_v17 = vpop.f32.mrb[187].mxu0  ;;  %v11928_v47 = vld [vmem:[#allocation103_spill] sm:$0xff] }
 0xf3a   : > { %11925 = vst [vmem:[#allocation119_spill] sm:$0xff] %v9764_v38  ;;  %v9768_v53 = vadd.f32 %v9624_v63, %v11899_v28  ;;  %v9772_v5 = vadd.f32 %v9640_v2, %v11903_v22  ;;  %v9775_v35 = vadd.f32 %v4250_v55, %v11928_v47  ;;  %v9778_v20 = vadd.f32 %v4252_v17, %v11928_v47 }
 0xf3b   : > { %11922 = vst [vmem:[#allocation77_spill] sm:$0xff] %v9756_v42  ;;  %11923 = vst [vmem:[#allocation117_spill] sm:$0xff] %v9760_v19  ;;  %v4269_v16 = vmul.f32 %v4247_v15, %v9655_v32  ;;  %v4291_v11 = vmul.f32 %v4247_v15, %v9673_v43  ;;  %v4313_v10 = vmul.f32 %v4247_v15, %v9735_v8 }
 0xf3c   : > { %11926 = vst [vmem:[#allocation125_spill] sm:$0xff] %v9768_v53  ;;  %11927 = vst [vmem:[#allocation128_spill] sm:$0xff] %v9772_v5  ;;  %v4335_v48 = vmul.f32 %v4247_v15, %v9760_v19  ;;  %v4270_v63 = vmul.f32 %v4249_v9, %v9658_v7  ;;  %v4292_v31 = vmul.f32 %v4249_v9, %v9676_v29 }
 0xf3d   : > { %v4314_v2 = vmul.f32 %v4249_v9, %v9768_v53  ;;  %v4336_v55 = vmul.f32 %v4249_v9, %v9772_v5  ;;  %v4272_v51 = vadd.f32 %v4271_v34, %v4269_v16  ;;  %v4294_v41 = vadd.f32 %v4293_v39, %v4291_v11 }
 0xf3e   : > { %v4316_v21 = vadd.f32 %v4315_v40, %v4313_v10  ;;  %v4338_v49 = vadd.f32 %v4337_v14, %v4335_v48  ;;  %v4280_v17 = vadd.f32 %v4279_v30, %v4270_v63  ;;  %v4302_v47 = vadd.f32 %v4301_v54, %v4292_v31  ;;  %v9788_v28 = vpop.f32.mrb[188].mxu1  ;;  %v9790_v42 = vpop.f32.mrb[188].mxu0 }
 0xf3f   : > { %v4324_v33 = vadd.f32 %v4323_v61, %v4314_v2  ;;  %v4346_v22 = vadd.f32 %v4345_v23, %v4336_v55  ;;  %11929 = vst [vmem:[#allocation126_spill] sm:$0xff] %v9788_v28  ;;  %v4273_v15 = vrot.slane %v4272_v51, 4  ;;  %v4295_v38 = vrot.slane %v4294_v41, 4  ;;  %v9792_v58 = vpop.f32.mrb[189].mxu1  ;;  %v9794_v59 = vpop.f32.mrb[189].mxu0 }
 0xf40   : > { %v4317_v25 = vrot.slane %v4316_v21, 4  ;;  %v4339_v56 = vrot.slane %v4338_v49, 4  ;;  %11930 = vst [vmem:[#allocation130_spill] sm:$0xff] %v9792_v58  ;;  %v4281_v34 = vrot.slane %v4280_v17, 4  ;;  %v4303_v39 = vrot.slane %v4302_v47, 4  ;;  %v9796_v30 = vpop.f32.mrb[190].mxu1 }
 0xf41   : > { %v4325_v40 = vrot.slane %v4324_v33, 4  ;;  %v4347_v14 = vrot.slane %v4346_v22, 4  ;;  %11931 = vst [vmem:[#allocation123_spill] sm:$0xff] %v9796_v30  ;;  %v9798_v61 = vpop.f32.mrb[190].mxu0  ;;  %v4274_v23 = vadd.f32 %v4273_v15, %v4272_v51  ;;  %v4296_v54 = vadd.f32 %v4295_v38, %v4294_v41  ;;  %v9800_v11 = vpop.f32.mrb[191].mxu1 }
 0xf42   : > { %v4318_v9 = vadd.f32 %v4317_v25, %v4316_v21  ;;  %v4340_v16 = vadd.f32 %v4339_v56, %v4338_v49  ;;  %11932 = vst [vmem:[#allocation79_spill] sm:$0xff] %v9800_v11  ;;  %v9802_v10 = vpop.f32.mrb[191].mxu0  ;;  %v4282_v48 = vadd.f32 %v4281_v34, %v4280_v17  ;;  %v4304_v63 = vadd.f32 %v4303_v39, %v4302_v47 }
 0xf43   : > { %11933 = vst [vmem:[#allocation25_spill] sm:$0xff] %v9802_v10  ;;  %v4326_v31 = vadd.f32 %v4325_v40, %v4324_v33  ;;  %v4348_v2 = vadd.f32 %v4347_v14, %v4346_v22  ;;  %v4275_v55 = vrot.slane %v4274_v23, 2  ;;  %v4297_v58 = vrot.slane %v4296_v54, 2 }
 0xf44   : > { %v4319_v28 = vrot.slane %v4318_v9, 2  ;;  %v4341_v5 = vrot.slane %v4340_v16, 2  ;;  %v4283_v53 = vrot.slane %v4282_v48, 2  ;;  %v4305_v30 = vrot.slane %v4304_v63, 2 }
 0xf45   : > { %v4327_v29 = vrot.slane %v4326_v31, 2  ;;  %v4349_v7 = vrot.slane %v4348_v2, 2  ;;  %v4276_v51 = vadd.f32 %v4275_v55, %v4274_v23  ;;  %v4298_v38 = vadd.f32 %v4297_v58, %v4296_v54  ;;  %v11934_v55 = vld [vmem:[#allocation113_spill] sm:$0xff] }
 0xf46   : > { %v4320_v25 = vadd.f32 %v4319_v28, %v4318_v9  ;;  %v4342_v56 = vadd.f32 %v4341_v5, %v4340_v16  ;;  %v4284_v41 = vadd.f32 %v4283_v53, %v4282_v48  ;;  %v4306_v21 = vadd.f32 %v4305_v30, %v4304_v63 }
 0xf47   : > { %v4328_v49 = vadd.f32 %v4327_v29, %v4326_v31  ;;  %v4350_v15 = vadd.f32 %v4349_v7, %v4348_v2  ;;  %v4277_v17 = vrot.slane %v4276_v51, 1  ;;  %v4299_v47 = vrot.slane %v4298_v38, 1 }
 0xf48   : > { %v4321_v33 = vrot.slane %v4320_v25, 1  ;;  %v4343_v22 = vrot.slane %v4342_v56, 1  ;;  %v4285_v34 = vrot.slane %v4284_v41, 1  ;;  %v4307_v39 = vrot.slane %v4306_v21, 1 }
 0xf49   : > { %v4329_v40 = vrot.slane %v4328_v49, 1  ;;  %v4351_v14 = vrot.slane %v4350_v15, 1  ;;  %v4278_v11 = vadd.f32 %v4277_v17, %v4276_v51  ;;  %v4300_v4 = vadd.f32 %v4299_v47, %v4298_v38  ;;  %v11935_v38 = vld [vmem:[#allocation106_spill] sm:$0xff] }
 0xf4a   : > { %v4322_v10 = vadd.f32 %v4321_v33, %v4320_v25  ;;  %v4344_v19 = vadd.f32 %v4343_v22, %v4342_v56  ;;  %v4286_v23 = vadd.f32 %v4285_v34, %v4284_v41  ;;  %v4308_v58 = vadd.f32 %v4307_v39, %v4306_v21 }
 0xf4b   : > { %v4330_v28 = vadd.f32 %v4329_v40, %v4328_v49  ;;  %v4352_v5 = vadd.f32 %v4351_v14, %v4350_v15  ;;  %v4353_v53 = vmax.f32 %v4278_v11, %v4300_v4  ;;  %v4441_v7 = vmul.f32 %v9775_v35, %v9643_v50 }
 0xf4c   : > { %v4355_v30 = vmax.f32 %v4322_v10, %v4344_v19  ;;  %v4463_v29 = vmul.f32 %v9775_v35, %v9661_v57  ;;  %v4354_v54 = vmax.f32 %v4286_v23, %v4308_v58  ;;  %v4485_v16 = vmul.f32 %v9775_v35, %v9682_v45 }
 0xf4d   : > { %v4356_v9 = vmax.f32 %v4330_v28, %v4352_v5  ;;  %v4507_v48 = vmul.f32 %v9775_v35, %v9693_v44  ;;  %v4442_v31 = vmul.f32 %v9778_v20, %v9646_v37  ;;  %v4464_v2 = vmul.f32 %v9778_v20, %v9664_v1 }
 0xf4e   : > { %v4357_v63 = vmax.f32 %v4353_v53, %v4355_v30  ;;  %v4486_v50 = vmul.f32 %v9778_v20, %v9690_v36  ;;  %v9820_v57 = vadd.f32 %v9626_v26, %v11934_v55  ;;  %v4508_v45 = vmul.f32 %v9778_v20, %v9705_v24  ;;  %v11936_v24 = vld [vmem:[#allocation127_spill] sm:$0xff] }
 0xf4f   : > { %v4358_v51 = vmax.f32 %v4354_v54, %v4356_v9  ;;  %v4257_v44 = vadd.f32 %v9790_v42, %v11935_v38  ;;  %v9829_v47 = vadd.f32 %v9628_v13, %v11934_v55  ;;  %v9833_v42 = vadd.f32 %v9630_v60, %v11936_v24  ;;  %v11940_v54 = vld [vmem:[#allocation132_spill] sm:$0xff]  ;;  %v11941_v9 = vld [vmem:[#allocation118_spill] sm:$0xff] }
 0xf50   : > { %v4359_v35 = vsub.f32 %v4278_v11, %v4357_v63  ;;  %v4365_v25 = vsub.f32 %v4300_v4, %v4357_v63  ;;  %v4371_v37 = vsub.f32 %v4322_v10, %v4357_v63  ;;  %v4377_v56 = vsub.f32 %v4344_v19, %v4357_v63 }
 0xf51   : > { %v4360_v41 = vsub.f32 %v4286_v23, %v4358_v51  ;;  %v4366_v1 = vsub.f32 %v4308_v58, %v4358_v51  ;;  %v4372_v21 = vsub.f32 %v4330_v28, %v4358_v51  ;;  %v4378_v49 = vsub.f32 %v4352_v5, %v4358_v51 }
 0xf52   : > { %v4361_v36 = vmul.f32 1.442695, %v4359_v35  ;;  %v4367_v15 = vmul.f32 1.442695, %v4365_v25  ;;  %v4373_v17 = vmul.f32 1.442695, %v4371_v37  ;;  %v4443_v26 = vmul.f32 %v4257_v44, %v9649_v0 }
 0xf53   : > { %v4363_v4 = vmul.f32 1.442695, %v4360_v41  ;;  %v4465_v19 = vmul.f32 %v4257_v44, %v9667_v27  ;;  %v4369_v20 = vmul.f32 1.442695, %v4366_v1  ;;  %v4375_v11 = vmul.f32 1.442695, %v4372_v21 }
 0xf54   : > { %6612 = vpow2.f32 %v4361_v36  ;;  %v4447_v10 = vadd.f32 %v4443_v26, %v4441_v7  ;;  %v4487_v22 = vmul.f32 %v4257_v44, %v9702_v18  ;;  %v4509_v0 = vmul.f32 %v4257_v44, %v9724_v12  ;;  %v11937_v27 = vld [vmem:[#allocation107_spill] sm:$0xff]  ;;  %v11944_v44 = vld [vmem:[#allocation49_spill] sm:$0xff]  ;;  %v11946_v21 = vld [vmem:[#allocation128_spill] sm:$0xff] }
 0xf55   : > { %6614 = vpow2.f32 %v4367_v15  ;;  %v4469_v33 = vadd.f32 %v4465_v19, %v4463_v29  ;;  %v4379_v13 = vmul.f32 1.442695, %v4377_v56  ;;  %v4381_v34 = vmul.f32 1.442695, %v4378_v49  ;;  %v11945_v41 = vld [vmem:[#allocation125_spill] sm:$0xff] }
 0xf56   : > { %6616 = vpow2.f32 %v4373_v17  ;;  %v4259_v60 = vadd.f32 %v9794_v59, %v11935_v38  ;;  %v4491_v39 = vadd.f32 %v4487_v22, %v4485_v16  ;;  %v4513_v40 = vadd.f32 %v4509_v0, %v4507_v48  ;;  %v11942_v48 = vld [vmem:[#allocation27_spill] sm:$0xff] }
 0xf57   : > { %6618 = vpow2.f32 %v4363_v4  ;;  %v4261_v14 = vadd.f32 %v9798_v61, %v11937_v27  ;;  %v9850_v61 = vadd.f32 %v9632_v6, %v11936_v24  ;;  %v9860_v16 = vadd.f32 %v11941_v9, %v11940_v54  ;;  %v11966_v38 = vld [vmem:[#allocation71_spill] sm:$0xff] }
 0xf58   : > { %6620 = vpow2.f32 %v4369_v20  ;;  %v4444_v23 = vmul.f32 %v4259_v60, %v9652_v62  ;;  %v4466_v58 = vmul.f32 %v4259_v60, %v9670_v46  ;;  %v4488_v18 = vmul.f32 %v4259_v60, %v9729_v52 }
 0xf59   : > { %6622 = vpow2.f32 %v4375_v11  ;;  %v4510_v12 = vmul.f32 %v4259_v60, %v9738_v3  ;;  %v4445_v28 = vmul.f32 %v4261_v14, %v9655_v32  ;;  %v4467_v59 = vmul.f32 %v4261_v14, %v9673_v43  ;;  %v11938_v3 = vld [vmem:[#allocation117_spill] sm:$0xff] }
 0xf5a   : > { %6624 = vpow2.f32 %v4379_v13  ;;  %v4455_v5 = vadd.f32 %v4444_v23, %v4442_v31  ;;  %v4477_v53 = vadd.f32 %v4466_v58, %v4464_v2  ;;  %v4499_v30 = vadd.f32 %v4488_v18, %v4486_v50  ;;  %v11939_v32 = vld [vmem:[#allocation25_spill] sm:$0xff] }
 0xf5b   : > { %v9852_v62 = vadd.f32 %v4510_v12, %v4508_v45  ;;  %v4448_v46 = vadd.f32 %v4447_v10, %v4445_v28  ;;  %v4470_v7 = vadd.f32 %v4469_v33, %v4467_v59  ;;  %6626 = vpow2.f32 %v4381_v34 }
 0xf5c   : > { %v4489_v52 = vmul.f32 %v4261_v14, %v9735_v8  ;;  %v4511_v29 = vmul.f32 %v4261_v14, %v11938_v3  ;;  %v4263_v43 = vadd.f32 %v11939_v32, %v11937_v27  ;;  %v9864_v6 = vadd.f32 %v11942_v48, %v11940_v54  ;;  %v11943_v8 = vld [vmem:[#allocation122_spill] sm:$0xff] }
 0xf5d   : > { %v4449_v63 = vrot.slane %v4448_v46, 4  ;;  %v4471_v31 = vrot.slane %v4470_v7, 4 }
 0xf5e   : > { %v9866_v2 = vpop.eup %6612  ;;  %v4492_v50 = vadd.f32 %v4491_v39, %v4489_v52  ;;  %v4514_v51 = vadd.f32 %v4513_v40, %v4511_v29  ;;  %v4446_v45 = vmul.f32 %v4263_v43, %v11943_v8  ;;  %v4468_v35 = vmul.f32 %v4263_v43, %v11944_v44 }
 0xf5f   : > { %v9870_v25 = vpop.eup %6614  ;;  %v4450_v37 = vadd.f32 %v4449_v63, %v4448_v46  ;;  %v4472_v56 = vadd.f32 %v4471_v31, %v4470_v7  ;;  %v4490_v1 = vmul.f32 %v4263_v43, %v11945_v41  ;;  %v4512_v49 = vmul.f32 %v4263_v43, %v11946_v21  ;;  %v11947_v21 = vld [vmem:[#allocation111_spill] sm:$0xff] }
 0xf60   : > { %v9874_v36 = vpop.eup %6616  ;;  %v4383_v15 = vadd.f32 %v9870_v25, %v9866_v2  ;;  %v4493_v17 = vrot.slane %v4492_v50, 4  ;;  %v4515_v26 = vrot.slane %v4514_v51, 4  ;;  %v4456_v4 = vadd.f32 %v4455_v5, %v4446_v45 }
 0xf61   : > { %v9878_v19 = vpop.eup %6618  ;;  %v4451_v20 = vrot.slane %v4450_v37, 2  ;;  %v4473_v11 = vrot.slane %v4472_v56, 2  ;;  %v4478_v10 = vadd.f32 %v4477_v53, %v4468_v35  ;;  %v4500_v33 = vadd.f32 %v4499_v30, %v4490_v1 }
 0xf62   : > { %v9880_v22 = vpop.eup %6620  ;;  %v4385_v0 = vadd.f32 %v9874_v36, %v4383_v15  ;;  %v4494_v13 = vadd.f32 %v4493_v17, %v4492_v50  ;;  %v4516_v34 = vadd.f32 %v4515_v26, %v4514_v51  ;;  %v4457_v60 = vrot.slane %v4456_v4, 4  ;;  %v11948_v15 = vld [vmem:[#allocation67_spill] sm:$0xff]  ;;  %v11949_v26 = vld [vmem:[#allocation69_spill] sm:$0xff] }
 0xf63   : > { %v9883_v39 = vpop.eup %6622  ;;  %v4384_v40 = vadd.f32 %v9880_v22, %v9878_v19  ;;  %v4452_v14 = vadd.f32 %v4451_v20, %v4450_v37  ;;  %v4474_v23 = vadd.f32 %v4473_v11, %v4472_v56  ;;  %v4479_v58 = vrot.slane %v4478_v10, 4 }
 0xf64   : > { %v6625_v18 = vpop.eup %6624  ;;  %v4495_v12 = vrot.slane %v4494_v13, 2  ;;  %v4517_v28 = vrot.slane %v4516_v34, 2  ;;  %v4458_v59 = vadd.f32 %v4457_v60, %v4456_v4  ;;  %v4501_v5 = vrot.slane %v4500_v33, 4  ;;  %v11953_v60 = vld [vmem:[#allocation120_spill] sm:$0xff] }
 0xf65   : > { %v4386_v53 = vadd.f32 %v9883_v39, %v4384_v40  ;;  %v4387_v30 = vadd.f32 %v6625_v18, %v4385_v0  ;;  %v4453_v46 = vrot.slane %v4452_v14, 1  ;;  %v4475_v7 = vrot.slane %v4474_v23, 1  ;;  %v9888_v52 = vpop.eup %6626  ;;  %v11951_v0 = vld [vmem:[#allocation124_spill] sm:$0xff]  ;;  %v11954_v40 = vld [vmem:[#allocation74_spill] sm:$0xff] }
 0xf66   : > { %v4496_v3 = vadd.f32 %v4495_v12, %v4494_v13  ;;  %v4518_v29 = vadd.f32 %v4517_v28, %v4516_v34  ;;  %v4459_v32 = vrot.slane %v4458_v59, 2  ;;  %v4480_v43 = vadd.f32 %v4479_v58, %v4478_v10  ;;  %v11950_v10 = vld [vmem:[#allocation115_spill] sm:$0xff] }
 0xf67   : > { %6628 = vrcp.f32 %v4387_v30  ;;  %v4388_v9 = vadd.f32 %v9888_v52, %v4386_v53  ;;  %v4454_v48 = vadd.f32 %v4453_v46, %v4452_v14  ;;  %v4476_v63 = vadd.f32 %v4475_v7, %v4474_v23  ;;  %v11955_v28 = vld [vmem:[#allocation75_spill] sm:$0xff] }
 0xf68   : > { %v4497_v31 = vrot.slane %v4496_v3, 1  ;;  %v4519_v50 = vrot.slane %v4518_v29, 1  ;;  %v4460_v51 = vadd.f32 %v4459_v32, %v4458_v59  ;;  %v4481_v8 = vrot.slane %v4480_v43, 2  ;;  %v11957_v7 = vld [vmem:[#allocation119_spill] sm:$0xff] }
 0xf69   : > { %6630 = vrcp.f32 %v4388_v9  ;;  %v4529_v45 = vmax.f32 %v4454_v48, %v4476_v63  ;;  %v4502_v44 = vadd.f32 %v4501_v5, %v4500_v33  ;;  %v4522_v35 = vadd.f32 %v9852_v62, %v4512_v49  ;;  %v11952_v62 = vld [vmem:[#allocation131_spill] sm:$0xff]  ;;  %v11956_v5 = vld [vmem:[#allocation76_spill] sm:$0xff] }
 0xf6a   : > { %v4498_v37 = vadd.f32 %v4497_v31, %v4496_v3  ;;  %v9892_v56 = vadd.f32 %v4519_v50, %v4518_v29  ;;  %v4461_v41 = vrot.slane %v4460_v51, 1  ;;  %v4482_v1 = vadd.f32 %v4481_v8, %v4480_v43  ;;  %v11958_v29 = vld [vmem:[#allocation126_spill] sm:$0xff] }
 0xf6b   : > { %v9896_v17 = vadd.f32 %v11948_v15, %v11947_v21  ;;  %v9900_v4 = vadd.f32 %v11949_v26, %v11947_v21  ;;  %v4503_v20 = vrot.slane %v4502_v44, 2  ;;  %v4523_v11 = vrot.slane %v4522_v35, 4  ;;  %v11959_v43 = vld [vmem:[#allocation130_spill] sm:$0xff] }
 0xf6c   : > { %v9904_v33 = vadd.f32 %v11951_v0, %v11950_v10  ;;  %v9908_v49 = vadd.f32 %v11952_v62, %v11950_v10  ;;  %v4531_v13 = vmax.f32 %v4498_v37, %v9892_v56  ;;  %v4483_v34 = vrot.slane %v4482_v1, 1 }
 0xf6d   : > { %v9913_v14 = vadd.f32 %v11954_v40, %v11953_v60  ;;  %v9915_v23 = vadd.f32 %v4461_v41, %v4460_v51  ;;  %v9917_v58 = vadd.f32 %v4503_v20, %v4502_v44  ;;  %v4524_v12 = vadd.f32 %v4523_v11, %v4522_v35  ;;  %v11960_v35 = vld [vmem:[#allocation123_spill] sm:$0xff]  ;;  %v11962_v40 = vld [vmem:[#allocation41_spill] sm:$0xff] }
 0xf6e   : > { %v9921_v59 = vadd.f32 %v11955_v28, %v11953_v60  ;;  %v9925_v53 = vadd.f32 %v11956_v5, %v11934_v55  ;;  %v4533_v30 = vmax.f32 %v4529_v45, %v4531_v13  ;;  %v9927_v46 = vadd.f32 %v4483_v34, %v4482_v1  ;;  %v11961_v1 = vld [vmem:[#allocation79_spill] sm:$0xff] }
 0xf6f   : > { %v9931_v3 = vadd.f32 %v11957_v7, %v11934_v55  ;;  %v9935_v32 = vadd.f32 %v11958_v29, %v11936_v24  ;;  %v9939_v9 = vadd.f32 %v11959_v43, %v11936_v24  ;;  %v4525_v31 = vrot.slane %v4524_v12, 2  ;;  %v11963_v43 = vld [vmem:[#allocation129_spill] sm:$0xff] }
 0xf70   : > { %v4535_v50 = vsub.f32 %v4454_v48, %v4533_v30  ;;  %v4541_v51 = vsub.f32 %v4476_v63, %v4533_v30  ;;  %v4547_v8 = vsub.f32 %v4498_v37, %v4533_v30  ;;  %v4553_v45 = vsub.f32 %v9892_v56, %v4533_v30 }
 0xf71   : > { %v6629_v44 = vpop.eup %6628  ;;  %v9944_v41 = vadd.f32 %v11960_v35, %v11940_v54  ;;  %v9948_v15 = vadd.f32 %v11961_v1, %v11940_v54  ;;  %v4505_v26 = vrot.slane %v9917_v58, 1  ;;  %v4526_v34 = vadd.f32 %v4525_v31, %v4524_v12 }
 0xf72   : > { %v4391_v48 = vmul.f32 %v6629_v44, %v9866_v2  ;;  %v4393_v63 = vmul.f32 %v6629_v44, %v9870_v25  ;;  %v4395_v37 = vmul.f32 %v6629_v44, %v9874_v36  ;;  %v4397_v56 = vmul.f32 %v6629_v44, %v6625_v18 }
 0xf73   : > { %v6631_v11 = vpop.eup %6630  ;;  %v4537_v0 = vmul.f32 1.442695, %v4535_v50  ;;  %v4543_v62 = vmul.f32 1.442695, %v4541_v51  ;;  %v4549_v13 = vmul.f32 1.442695, %v4547_v8 }
 0xf74   : > { %v4399_v28 = vmul.f32 %v4391_v48, %v11962_v40  ;;  %v4405_v5 = vmul.f32 %v4393_v63, %v9820_v57  ;;  %v4417_v30 = vmul.f32 %v4395_v37, %v9896_v17  ;;  %v4429_v7 = vmul.f32 %v4397_v56, %v9925_v53  ;;  %v11964_v51 = vld [vmem:[#allocation68_spill] sm:$0xff] }
 0xf75   : > { %v4392_v2 = vmul.f32 %v6631_v11, %v9878_v19  ;;  %v4394_v25 = vmul.f32 %v6631_v11, %v9880_v22  ;;  %v4396_v36 = vmul.f32 %v6631_v11, %v9883_v39  ;;  %v4398_v18 = vmul.f32 %v6631_v11, %v9888_v52  ;;  %v11965_v52 = vld [vmem:[#allocation70_spill] sm:$0xff] }
 0xf76   : > { %v4411_v29 = vadd.f32 %v4405_v5, %v4399_v28  ;;  %v4401_v50 = vmul.f32 %v4391_v48, %v11963_v43  ;;  %v4407_v12 = vmul.f32 %v4393_v63, %v9833_v42  ;;  %v4419_v31 = vmul.f32 %v4395_v37, %v9904_v33 }
 0xf77   : > { %v4400_v8 = vmul.f32 %v4392_v2, %v11964_v51  ;;  %v4406_v44 = vmul.f32 %v4394_v25, %v9829_v47  ;;  %v4418_v35 = vmul.f32 %v4396_v36, %v9900_v4  ;;  %v4430_v19 = vmul.f32 %v4398_v18, %v9931_v3 }
 0xf78   : > { %v4423_v22 = vadd.f32 %v4417_v30, %v4411_v29  ;;  %v4413_v1 = vadd.f32 %v4407_v12, %v4401_v50  ;;  %v4431_v39 = vmul.f32 %v4397_v56, %v9935_v32  ;;  %v4402_v11 = vmul.f32 %v4392_v2, %v11965_v52 }
 0xf79   : > { %v4412_v28 = vadd.f32 %v4406_v44, %v4400_v8  ;;  %v4408_v5 = vmul.f32 %v4394_v25, %v9850_v61  ;;  %v4420_v20 = vmul.f32 %v4396_v36, %v9908_v49  ;;  %v4432_v54 = vmul.f32 %v4398_v18, %v9939_v9 }
 0xf7a   : > { %v9976_v27 = vadd.f32 %v4429_v7, %v4423_v22  ;;  %v4425_v24 = vadd.f32 %v4419_v31, %v4413_v1  ;;  %v4403_v55 = vmul.f32 %v4391_v48, %v11966_v38  ;;  %v4409_v60 = vmul.f32 %v4393_v63, %v9860_v16  ;;  %v11967_v31 = vld [vmem:[#allocation77_spill] sm:$0xff] }
 0xf7b   : > { %v4424_v30 = vadd.f32 %v4418_v35, %v4412_v28  ;;  %v4414_v29 = vadd.f32 %v4408_v5, %v4402_v11  ;;  %v4421_v50 = vmul.f32 %v4395_v37, %v9913_v14  ;;  %v4433_v12 = vmul.f32 %v4397_v56, %v9944_v41 }
 0xf7c   : > { %v9982_v8 = vadd.f32 %v4431_v39, %v4425_v24  ;;  %v4415_v44 = vadd.f32 %v4409_v60, %v4403_v55  ;;  %6632 = vpow2.f32 %v4537_v0  ;;  %v4555_v10 = vmul.f32 1.442695, %v4553_v45 }
 0xf7d   : > { %v9984_v21 = vadd.f32 %v4430_v19, %v4424_v30  ;;  %v4426_v7 = vadd.f32 %v4420_v20, %v4414_v29  ;;  %6634 = vpow2.f32 %v4543_v62  ;;  %v4404_v22 = vmul.f32 %v4392_v2, %v11967_v31 }
 0xf7e   : > { %v4617_v48 = vpack.c.bf16 %v9982_v8, %v9976_v27  ;;  %v4427_v63 = vadd.f32 %v4421_v50, %v4415_v44  ;;  %v4410_v35 = vmul.f32 %v4394_v25, %v9864_v6  ;;  %6636 = vpow2.f32 %v4549_v13 }
 0xf7f   : > { %v9990_v37 = vadd.f32 %v4432_v54, %v4426_v7  ;;  %v4422_v24 = vmul.f32 %v4396_v36, %v9921_v59  ;;  %v4434_v55 = vmul.f32 %v4398_v18, %v9948_v15  ;;  %v4506_v20 = vadd.f32 %v4505_v26, %v9917_v58 }
 0xf80   : > { %v9994_v60 = vadd.f32 %v4433_v12, %v4427_v63  ;;  %v4416_v45 = vadd.f32 %v4410_v35, %v4404_v22  ;;  %v4527_v56 = vrot.slane %v4526_v34, 1  ;;  %6638 = vpow2.f32 %v4555_v10 }
 0xf81   : > { %v4618_v0 = vpack.c.bf16 %v9990_v37, %v9984_v21  ;;  %v11968_v36 = vmax.f32 %v9915_v23, %v9927_v46  ;;  %v11971_v37 = vld [vmem:[#allocation82_spill] sm:$0xff] }
 0xf82   : > { %v4428_v62 = vadd.f32 %v4422_v24, %v4416_v45  ;;  %v4528_v2 = vadd.f32 %v4527_v56, %v4526_v34 }
 0xf84   : > { %v9999_v25 = vadd.f32 %v4434_v55, %v4428_v62  ;;  %v4532_v54 = vmax.f32 %v4506_v20, %v4528_v2 }
 0xf86   : > { %v6633_v13 = vpop.eup %6632  ;;  %v4534_v18 = vmax.f32 %v11968_v36, %v4532_v54 }
 0xf87   : > { %v6635_v19 = vpop.eup %6634 }
 0xf88   : > { %v4559_v1 = vadd.f32 %v6635_v19, %v6633_v13  ;;  %v4536_v39 = vsub.f32 %v9915_v23, %v4534_v18  ;;  %v4542_v58 = vsub.f32 %v9927_v46, %v4534_v18  ;;  %v4548_v10 = vsub.f32 %v4506_v20, %v4534_v18  ;;  %v6637_v26 = vpop.eup %6636 }
 0xf89   : > { %v4554_v11 = vsub.f32 %v4528_v2, %v4534_v18 }
 0xf8a   : > { %v4561_v28 = vadd.f32 %v6637_v26, %v4559_v1  ;;  %v4539_v5 = vmul.f32 1.442695, %v4536_v39  ;;  %v4545_v34 = vmul.f32 1.442695, %v4542_v58  ;;  %v6639_v30 = vpop.eup %6638  ;;  %v4551_v29 = vmul.f32 1.442695, %v4548_v10 }
 0xf8b   : > { %v4557_v12 = vmul.f32 1.442695, %v4554_v11 }
 0xf8c   : > { %v4563_v50 = vadd.f32 %v6639_v30, %v4561_v28  ;;  %6640 = vpow2.f32 %v4539_v5 }
 0xf8d   : > { %6642 = vpow2.f32 %v4545_v34 }
 0xf8e   : > { %6644 = vrcp.f32 %v4563_v50 }
 0xf8f   : > { %6646 = vpow2.f32 %v4551_v29 }
 0xf90   : > { %6648 = vpow2.f32 %v4557_v12 }
 0xf96   : > { %v6641_v44 = vpop.eup %6640 }
 0xf97   : > { %v6643_v7 = vpop.eup %6642 }
 0xf98   : > { %v6645_v23 = vpop.eup %6644  ;;  %v4560_v22 = vadd.f32 %v6643_v7, %v6641_v44 }
 0xf99   : > { %v6647_v46 = vpop.eup %6646  ;;  %v4567_v63 = vmul.f32 %v6645_v23, %v6633_v13  ;;  %v4569_v35 = vmul.f32 %v6645_v23, %v6635_v19  ;;  %v4571_v24 = vmul.f32 %v6645_v23, %v6637_v26  ;;  %v4573_v55 = vmul.f32 %v6645_v23, %v6639_v30 }
 0xf9a   : > { %v4562_v45 = vadd.f32 %v6647_v46, %v4560_v22  ;;  %v6649_v20 = vpop.eup %6648 }
 0xf9b   : > { %v4575_v56 = vmul.f32 %v4567_v63, %v11962_v40  ;;  %v4577_v62 = vmul.f32 %v4567_v63, %v11963_v43  ;;  %v4581_v2 = vmul.f32 %v4569_v35, %v9820_v57  ;;  %v4583_v54 = vmul.f32 %v4569_v35, %v9833_v42 }
 0xf9c   : > { %v4564_v36 = vadd.f32 %v6649_v20, %v4562_v45  ;;  %v4593_v18 = vmul.f32 %v4571_v24, %v9896_v17  ;;  %v4595_v1 = vmul.f32 %v4571_v24, %v9904_v33  ;;  %v4605_v13 = vmul.f32 %v4573_v55, %v9925_v53 }
 0xf9d   : > { %v4587_v19 = vadd.f32 %v4581_v2, %v4575_v56  ;;  %v4589_v39 = vadd.f32 %v4583_v54, %v4577_v62  ;;  %v4607_v58 = vmul.f32 %v4573_v55, %v9935_v32  ;;  %v4579_v10 = vmul.f32 %v4567_v63, %v11966_v38  ;;  %v11974_v2 = vld [vmem:[#allocation85_spill] sm:$0xff] }
 0xf9e   : > { %6650 = vrcp.f32 %v4564_v36  ;;  %v4585_v40 = vmul.f32 %v4569_v35, %v9860_v16  ;;  %v4597_v57 = vmul.f32 %v4571_v24, %v9913_v14  ;;  %v4609_v42 = vmul.f32 %v4573_v55, %v9944_v41 }
 0xf9f   : > { %v4599_v43 = vadd.f32 %v4593_v18, %v4587_v19  ;;  %v4601_v26 = vadd.f32 %v4595_v1, %v4589_v39  ;;  %v11970_v56 = vmov 0   ;;  %v11975_v19 = vld [vmem:[#allocation86_spill] sm:$0xff] }
 0xfa0   : > { %v4591_v17 = vadd.f32 %v4585_v40, %v4579_v10 }
 0xfa1   : > { %v4611_v11 = vadd.f32 %v4605_v13, %v4599_v43  ;;  %v4613_v33 = vadd.f32 %v4607_v58, %v4601_v26 }
 0xfa2   : > { %v4603_v28 = vadd.f32 %v4597_v57, %v4591_v17 }
 0xfa3   : > { %v4621_v53 = vpack.c.bf16 %v4613_v33, %v4611_v11 }
 0xfa4   : > { %v4615_v5 = vadd.f32 %v4609_v42, %v4603_v28 }
 0xfa8   : > { %v6651_v34 = vpop.eup %6650 }
 0xfa9   : > { %v4568_v30 = vmul.f32 %v6651_v34, %v6641_v44  ;;  %v4570_v32 = vmul.f32 %v6651_v34, %v6643_v7  ;;  %v4572_v29 = vmul.f32 %v6651_v34, %v6647_v46  ;;  %v4574_v38 = vmul.f32 %v6651_v34, %v6649_v20 }
 0xfaa   : > { %v4623_v20 = vpack.c.bf16 %v4615_v5, %v4615_v5 }
 0xfab   : > { %v4576_v50 = vmul.f32 %v4568_v30, %v11964_v51  ;;  %v4578_v16 = vmul.f32 %v4568_v30, %v11965_v52  ;;  %v4582_v14 = vmul.f32 %v4570_v32, %v9829_v47  ;;  %v4584_v41 = vmul.f32 %v4570_v32, %v9850_v61 }
 0xfac   : > { %v4594_v12 = vmul.f32 %v4572_v29, %v9900_v4  ;;  %v4596_v23 = vmul.f32 %v4572_v29, %v9908_v49  ;;  %v4606_v22 = vmul.f32 %v4574_v38, %v9931_v3  ;;  %v4608_v63 = vmul.f32 %v4574_v38, %v9939_v9 }
 0xfad   : > { %v4588_v44 = vadd.f32 %v4582_v14, %v4576_v50  ;;  %v4590_v7 = vadd.f32 %v4584_v41, %v4578_v16  ;;  %v4580_v46 = vmul.f32 %v4568_v30, %v11967_v31  ;;  %v4586_v51 = vmul.f32 %v4570_v32, %v9864_v6  ;;  %v11969_v31 = vld [vmem:[#allocation81_spill] sm:$0xff] }
 0xfae   : > { %v4598_v52 = vmul.f32 %v4572_v29, %v9921_v59  ;;  %v4610_v47 = vmul.f32 %v4574_v38, %v9948_v15  ;;  %v4626_v6 = vsel %vm582_vm1, %v4623_v20, 0  ;;  %v4619_v59 = vpack.c.bf16 %v9994_v60, %v9994_v60  ;;  %v11972_v60 = vld [vmem:[#allocation83_spill] sm:$0xff] }
 0xfaf   : > { %v4600_v35 = vadd.f32 %v4594_v12, %v4588_v44  ;;  %v4602_v61 = vadd.f32 %v4596_v23, %v4590_v7  ;;  %v4592_v24 = vadd.f32 %v4586_v51, %v4580_v46  ;;  %v4620_v15 = vpack.c.bf16 %v9999_v25, %v9999_v25  ;;  %v11976_v12 = vld [vmem:[#allocation87_spill] sm:$0xff] }
 0xfb0   : > { %v4683_v21 = vsel %vm582_vm1, %v4619_v59, 0 }
 0xfb1   : > { %v4612_v4 = vadd.f32 %v4606_v22, %v4600_v35  ;;  %v4614_v55 = vadd.f32 %v4608_v63, %v4602_v61  ;;  %v4604_v49 = vadd.f32 %v4598_v52, %v4592_v24 }
 0xfb3   : > { %v4622_v45 = vpack.c.bf16 %v4614_v55, %v4612_v4  ;;  %v4616_v3 = vadd.f32 %v4610_v47, %v4604_v49 }
 0xfb5   : > { %4631 = vmatprep.subr.bf16.mxu1 %v4622_v45  ;;  %v4624_v9 = vpack.c.bf16 %v4616_v3, %v4616_v3 }
 0xfb6   : > { %4632 = vmatpush1.bf16.msra.mxu1 %v4621_v53 }
 0xfb7   : > { %6351 = vmatprep.subr.msk.bf16.mxu1 %vm582_vm1, %v4624_v9 }
 0xfba   : > { %4634 = vmatpush1.bf16.msra.mxu1 %v4626_v6 }
 0xfbb   : > { %4688 = vmatprep.subr.bf16.mxu1 %v4618_v0  ;;  %v11973_v0 = vld [vmem:[#allocation84_spill] sm:$0xff] }
 0xfbd   : > { %6352 = vmatmul.mubr.msk.bf16.vlgmr.msra.gmra.mrb[192].mxu1 %vm572_vm2, %v11969_v31  ;;  %v12103_v31 = vld [vmem:[#allocation120_spill] sm:$0xff] }
 0xfbe   : > { %4689 = vmatpush1.bf16.msra.mxu1 %v4617_v48  ;;  %4673 = vmatprep.mubr.bf16.mxu1 %v11970_v56 }
 0xfbf   : > { %6354 = vmatprep.subr.msk.bf16.mxu1 %vm582_vm1, %v4620_v15 }
 0xfc2   : > { %4691 = vmatpush1.bf16.msra.mxu1 %v4683_v21 }
 0xfc5   : > { %6353 = vmatmul.mubr.msk.bf16.gmra.mrb[196].mxu1 %vm572_vm2, %v11971_v37 }
 0xfc6   : > { %4720 = vmatprep.mubr.bf16.mxu1 %v11970_v56 }
 0xfcd   : > { %6355 = vmatmul.mubr.msk.bf16.vlgmr.msra.gmra.mrb[192].mxu1 %vm572_vm2, %v11972_v60  ;;  %v12102_v60 = vld [vmem:[#allocation109_spill] sm:$0xff] }
 0xfce   : > { %4730 = vmatprep.mubr.bf16.mxu1 %v11970_v56 }
 0xfd5   : > { %6356 = vmatmul.mubr.msk.bf16.gmra.mrb[200].mxu1 %vm572_vm2, %v11973_v0 }
 0xfd6   : > { %4983 = vmatprep.mubr.bf16.mxu1 %v11970_v56 }
0x1098   : > { %v4675_v27 = vpop.f32.mrb[196].mxu1 }
0x1099   : > { %v4677_v8 = vpop.f32.mrb[197].mxu1 }
0x109a   : > { %v4679_v48 = vpop.f32.mrb[198].mxu1 }
0x109b   : > { %v4680_v25 = vpop.f32.mrb[199].mxu1 }
0x10a0   : > { %v4722_v62 = vpop.f32.mrb[192].mxu1 }
0x10a1   : > { %v4739_v54 = vadd.f32 %v4722_v62, %v11974_v2  ;;  %v4724_v36 = vpop.f32.mrb[193].mxu1 }
0x10a2   : > { %v4740_v18 = vadd.f32 %v4724_v36, %v11974_v2  ;;  %v4726_v1 = vpop.f32.mrb[194].mxu1 }
0x10a3   : > { %v4751_v13 = vmul.f32 0.044715, %v4739_v54  ;;  %v4741_v39 = vadd.f32 %v4726_v1, %v11975_v19  ;;  %v4728_v58 = vpop.f32.mrb[195].mxu1 }
0x10a4   : > { %v4752_v10 = vmul.f32 0.044715, %v4740_v18  ;;  %v4742_v40 = vadd.f32 %v4728_v58, %v11975_v19  ;;  %v4746_v25 = vmul.f32 0.5, %v4740_v18 }
0x10a5   : > { %v4757_v57 = vmul.f32 %v4751_v13, %v4739_v54  ;;  %v4753_v42 = vmul.f32 0.044715, %v4741_v39 }
0x10a6   : > { %v4758_v43 = vmul.f32 %v4752_v10, %v4740_v18  ;;  %v4754_v26 = vmul.f32 0.044715, %v4742_v40  ;;  %v4748_v62 = vmul.f32 0.5, %v4742_v40 }
0x10a7   : > { %v4763_v17 = vmul.f32 %v4757_v57, %v4739_v54  ;;  %v4759_v11 = vmul.f32 %v4753_v42, %v4741_v39 }
0x10a8   : > { %v4764_v33 = vmul.f32 %v4758_v43, %v4740_v18  ;;  %v4760_v28 = vmul.f32 %v4754_v26, %v4742_v40  ;;  %v4732_v53 = vpop.f32.mrb[200].mxu1 }
0x10a9   : > { %v4769_v5 = vadd.f32 %v4763_v17, %v4739_v54  ;;  %v4765_v34 = vmul.f32 %v4759_v11, %v4741_v39  ;;  %v4733_v30 = vadd.f32 %v4732_v53, %v4675_v27  ;;  %v4734_v32 = vpop.f32.mrb[201].mxu1  ;;  %v4745_v27 = vmul.f32 0.5, %v4739_v54 }
0x10aa   : > { %v4766_v29 = vmul.f32 %v4760_v28, %v4742_v40  ;;  %v4735_v38 = vadd.f32 %v4734_v32, %v4677_v8  ;;  %v4736_v50 = vpop.f32.mrb[202].mxu1  ;;  %v4770_v16 = vadd.f32 %v4764_v33, %v4740_v18  ;;  %v4747_v8 = vmul.f32 0.5, %v4741_v39  ;;  %v11980_v32 = vld [vmem:[#allocation19_spill] sm:$0xff] }
0x10ab   : > { %v4775_v14 = vmul.f32 0.7978846, %v4769_v5  ;;  %v4771_v41 = vadd.f32 %v4765_v34, %v4741_v39  ;;  %v4743_v23 = vadd.f32 %v4733_v30, %v11976_v12  ;;  %v4737_v22 = vpop.f32.mrb[203].mxu1  ;;  %v11977_v5 = vld [vmem:[#allocation48_spill] sm:$0xff]  ;;  %v11979_v30 = vld [vmem:[#allocation57_spill] sm:$0xff] }
0x10ac   : > { %v4744_v63 = vadd.f32 %v4735_v38, %v11976_v12  ;;  %v4772_v44 = vadd.f32 %v4766_v29, %v4742_v40  ;;  %v4776_v7 = vmul.f32 0.7978846, %v4770_v16  ;;  %v11978_v34 = vld [vmem:[#allocation88_spill] sm:$0xff]  ;;  %v11981_v29 = vld [vmem:[#allocation47_spill] sm:$0xff]  ;;  %v11983_v50 = vld [vmem:[#allocation89_spill] sm:$0xff] }
0x10ad   : > { %6652 = vtanh.f32 %v4775_v14  ;;  %v4777_v46 = vmul.f32 0.7978846, %v4771_v41  ;;  %v4755_v51 = vmul.f32 0.044715, %v4743_v23  ;;  %v4749_v17 = vmul.f32 0.5, %v4743_v23  ;;  %v11982_v38 = vld [vmem:[#allocation39_spill] sm:$0xff] }
0x10ae   : > { %v4756_v52 = vmul.f32 0.044715, %v4744_v63  ;;  %v4778_v47 = vmul.f32 0.7978846, %v4772_v44  ;;  %6654 = vtanh.f32 %v4776_v7  ;;  %v4750_v33 = vmul.f32 0.5, %v4744_v63  ;;  %v11984_v16 = vld [vmem:[#allocation38_spill] sm:$0xff] }
0x10af   : > { %6656 = vtanh.f32 %v4777_v46  ;;  %v4761_v35 = vmul.f32 %v4755_v51, %v4743_v23  ;;  %v11985_v14 = vld [vmem:[#allocation62_spill] sm:$0xff]  ;;  %v11990_v44 = vld [vmem:[#allocation40_spill] sm:$0xff]  ;;  %v11991_v7 = vld [vmem:[#allocation121_spill] sm:$0xff] }
0x10b0   : > { %v4762_v61 = vmul.f32 %v4756_v52, %v4744_v63  ;;  %6658 = vtanh.f32 %v4778_v47  ;;  %v11986_v41 = vld [vmem:[#allocation90_spill] sm:$0xff] }
0x10b1   : > { %v4767_v24 = vmul.f32 %v4761_v35, %v4743_v23  ;;  %v11988_v22 = vld [vmem:[#allocation54_spill] sm:$0xff] }
0x10b2   : > { %v4768_v4 = vmul.f32 %v4762_v61, %v4744_v63  ;;  %v11992_v46 = vld [vmem:[#allocation6_spill] sm:$0xff]  ;;  %v11994_v61 = vld [vmem:[#allocation91_spill] sm:$0xff] }
0x10b3   : > { %v4773_v55 = vadd.f32 %v4767_v24, %v4743_v23  ;;  %v11987_v23 = vld [vmem:[#allocation5_spill] sm:$0xff]  ;;  %v11993_v51 = vld [vmem:[#allocation78_spill] sm:$0xff] }
0x10b4   : > { %v4774_v49 = vadd.f32 %v4768_v4, %v4744_v63  ;;  %v11989_v63 = vld [vmem:[#allocation116_spill] sm:$0xff] }
0x10b5   : > { %v4779_v45 = vmul.f32 0.7978846, %v4773_v55  ;;  %v11995_v4 = vld [vmem:[#allocation92_spill] sm:$0xff] }
0x10b6   : > { %v4780_v3 = vmul.f32 0.7978846, %v4774_v49 }
0x10b7   : > { %v6653_v9 = vpop.eup %6652  ;;  %6660 = vtanh.f32 %v4779_v45 }
0x10b8   : > { %v6655_v20 = vpop.eup %6654  ;;  %v4787_v6 = vadd.f32 1.0, %v6653_v9  ;;  %6662 = vtanh.f32 %v4780_v3 }
0x10b9   : > { %v6657_v59 = vpop.eup %6656  ;;  %v4788_v15 = vadd.f32 1.0, %v6655_v20 }
0x10ba   : > { %v6659_v21 = vpop.eup %6658  ;;  %v4789_v48 = vadd.f32 1.0, %v6657_v59  ;;  %v4793_v1 = vmul.f32 %v4787_v6, %v4745_v27 }
0x10bb   : > { %v4790_v36 = vadd.f32 1.0, %v6659_v21  ;;  %v4794_v58 = vmul.f32 %v4788_v15, %v4746_v25  ;;  %v11996_v21 = vld [vmem:[#allocation93_spill] sm:$0xff] }
0x10bc   : > { %v4795_v13 = vmul.f32 %v4789_v48, %v4747_v8  ;;  %v11997_v8 = vld [vmem:[#allocation94_spill] sm:$0xff] }
0x10bd   : > { %v4796_v10 = vmul.f32 %v4790_v36, %v4748_v62 }
0x10be   : > { %v4799_v57 = vpack.c.bf16 %v4795_v13, %v4793_v1  ;;  %v12038_v1 = vld [vmem:[#allocation36_spill] sm:$0xff] }
0x10bf   : > { %v4800_v42 = vpack.c.bf16 %v4796_v10, %v4794_v58 }
0x10c1   : > { %v6661_v43 = vpop.eup %6660  ;;  %4809 = vmatprep.subr.bf16.mxu0 %v4800_v42  ;;  %v11998_v42 = vld [vmem:[#allocation95_spill] sm:$0xff] }
0x10c2   : > { %v6663_v26 = vpop.eup %6662  ;;  %4810 = vmatpush1.bf16.msra.mxu0 %v4799_v57  ;;  %v4791_v11 = vadd.f32 1.0, %v6661_v43 }
0x10c3   : > { %v4792_v28 = vadd.f32 1.0, %v6663_v26  ;;  %v11999_v26 = vld [vmem:[#allocation96_spill] sm:$0xff] }
0x10c4   : > { %v4797_v54 = vmul.f32 %v4791_v11, %v4749_v17 }
0x10c5   : > { %v4798_v39 = vmul.f32 %v4792_v28, %v4750_v33 }
0x10c6   : > { %v4801_v53 = vpack.c.bf16 %v4797_v54, %v4797_v54 }
0x10c7   : > { %v4802_v18 = vpack.c.bf16 %v4798_v39, %v4798_v39 }
0x10c8   : > { %v4804_v40 = vsel %vm582_vm1, %v4801_v53, 0 }
0x10c9   : > { %6357 = vmatprep.subr.msk.bf16.mxu0 %vm582_vm1, %v4802_v18  ;;  %v12000_v18 = vld [vmem:[#allocation7_spill] sm:$0xff] }
0x10ca   : > { %4812 = vmatpush1.bf16.msra.mxu0 %v4804_v40 }
0x10cb   : > { %4872 = vmatprep.subr.bf16.mxu0 %v11977_v5 }
0x10cd   : > { %6358 = vmatmul.mubr.msk.bf16.vlgmr.msra.gmra.mrb[192].mxu0 %vm572_vm2, %v11978_v34 }
0x10ce   : > { %4873 = vmatpush1.bf16.msra.mxu0 %v11979_v30  ;;  %4851 = vmatprep.mubr.bf16.mxu0 %v11970_v56 }
0x10cf   : > { %4874 = vmatprep.subr.bf16.mxu0 %v11980_v32 }
0x10d2   : > { %4875 = vmatpush1.bf16.msra.mxu0 %v11981_v29  ;;  %v12001_v29 = vld [vmem:[#allocation8_spill] sm:$0xff] }
0x10d3   : > { %4876 = vmatprep.subr.bf16.mxu0 %v11982_v38 }
0x10d5   : > { %6359 = vmatmul.mubr.msk.bf16.gmra.mrb[196].mxu0 %vm572_vm2, %v11983_v50 }
0x10d6   : > { %4877 = vmatpush1.bf16.msra.mxu0 %v11984_v16  ;;  %4861 = vmatprep.mubr.bf16.mxu0 %v11970_v56 }
0x10d7   : > { %5050 = vmatprep.subr.bf16.mxu0 %v11985_v14 }
0x10dd   : > { %6360 = vmatmul.mubr.msk.bf16.gmra.mrb[200].mxu0 %vm572_vm2, %v11986_v41  ;;  %v12097_v41 = vld [vmem:[#allocation115_spill] sm:$0xff] }
0x10de   : > { %4904 = vmatprep.mubr.bf16.mxu0 %v11970_v56 }
0x10e5   : > { %6361 = vmatmul.mubr.msk.bf16.vlgmr.msra.gmra.mrb[204].mxu0 %vm462_vm0, %v11987_v23 }
0x10e6   : > { %5051 = vmatpush1.bf16.msra.mxu0 %v11988_v22  ;;  %4914 = vmatprep.mubr.bf16.mxu0 %v11970_v56 }
0x10e7   : > { %5052 = vmatprep.subr.bf16.mxu0 %v11989_v63 }
0x10ea   : > { %5053 = vmatpush1.bf16.msra.mxu0 %v11990_v44 }
0x10eb   : > { %5054 = vmatprep.subr.bf16.mxu0 %v11991_v7 }
0x10ed   : > { %6362 = vmatmul.mubr.msk.bf16.gmra.mrb[208].mxu0 %vm462_vm0, %v11992_v46 }
0x10ee   : > { %5055 = vmatpush1.bf16.msra.mxu0 %v11993_v51  ;;  %5082 = vmatprep.mubr.bf16.mxu0 %v11970_v56 }
0x10f5   : > { %6367 = vmatmul.mubr.msk.bf16.vlgmr.msra.gmra.mrb[212].mxu0 %vm462_vm0, %v11987_v23 }
0x10f6   : > { %5092 = vmatprep.mubr.bf16.mxu0 %v11970_v56 }
0x10fd   : > { %6368 = vmatmul.mubr.msk.bf16.gmra.mrb[216].mxu0 %vm462_vm0, %v11992_v46 }
0x10fe   : > { %5272 = vmatprep.mubr.bf16.mxu0 %v11970_v56 }
0x11a0   : > { %v4843_v52 = vpop.f32.mrb[192].mxu0 }
0x11a1   : > { %v4845_v47 = vpop.f32.mrb[193].mxu0  ;;  %v10098_v24 = vadd.f32 %v4843_v52, %v11994_v61  ;;  %v12002_v52 = vld [vmem:[#allocation9_spill] sm:$0xff] }
0x11a2   : > { %v4847_v35 = vpop.f32.mrb[194].mxu0  ;;  %v10104_v45 = vadd.f32 %v4845_v47, %v11994_v61 }
0x11a3   : > { %v10101_v55 = vadd.f32 %v4847_v35, %v11995_v4  ;;  %v4849_v49 = vpop.f32.mrb[195].mxu0 }
0x11a4   : > { %v10107_v3 = vadd.f32 %v4849_v49, %v11995_v4 }
0x11a8   : > { %v4853_v6 = vpop.f32.mrb[196].mxu0 }
0x11a9   : > { %v4855_v59 = vpop.f32.mrb[197].mxu0  ;;  %v10114_v27 = vadd.f32 %v4853_v6, %v11996_v21 }
0x11aa   : > { %v4857_v15 = vpop.f32.mrb[198].mxu0  ;;  %v10120_v62 = vadd.f32 %v4855_v59, %v11996_v21 }
0x11ab   : > { %v10117_v48 = vadd.f32 %v4857_v15, %v11997_v8  ;;  %v4859_v25 = vpop.f32.mrb[199].mxu0 }
0x11ac   : > { %v10123_v36 = vadd.f32 %v4859_v25, %v11997_v8 }
0x11b0   : > { %v4863_v58 = vpop.f32.mrb[200].mxu0 }
0x11b1   : > { %v4865_v10 = vpop.f32.mrb[201].mxu0  ;;  %v10130_v43 = vadd.f32 %v4863_v58, %v11998_v42 }
0x11b2   : > { %v4867_v57 = vpop.f32.mrb[202].mxu0  ;;  %v10136_v33 = vadd.f32 %v4865_v10, %v11998_v42 }
0x11b3   : > { %v10133_v17 = vadd.f32 %v4867_v57, %v11999_v26  ;;  %v4869_v11 = vpop.f32.mrb[203].mxu0 }
0x11b4   : > { %v10139_v28 = vadd.f32 %v4869_v11, %v11999_v26 }
0x11b8   : > { %v4906_v53 = vpop.f32.mrb[204].mxu0 }
0x11b9   : > { %v4907_v40 = vadd.f32 %v4906_v53, %v12000_v18  ;;  %v4908_v5 = vpop.f32.mrb[205].mxu0 }
0x11ba   : > { %v4909_v30 = vadd.f32 %v4908_v5, %v12000_v18  ;;  %v4910_v32 = vpop.f32.mrb[206].mxu0 }
0x11bb   : > { %v4911_v38 = vadd.f32 %v4910_v32, %v12001_v29  ;;  %v4912_v16 = vpop.f32.mrb[207].mxu0  ;;  %v4923_v23 = vmax.f32 %v4907_v40, 0.0 }
0x11bc   : > { %v4913_v14 = vadd.f32 %v4912_v16, %v12001_v29  ;;  %v4924_v63 = vmax.f32 %v4909_v30, 0.0 }
0x11bd   : > { %v4925_v22 = vmax.f32 %v4911_v38, 0.0 }
0x11be   : > { %v4926_v44 = vmax.f32 %v4913_v14, 0.0  ;;  %v12003_v14 = vld [vmem:[#allocation10_spill] sm:$0xff] }
0x11bf   : > { %v4941_v7 = vpack.c.bf16 %v4925_v22, %v4923_v23 }
0x11c0   : > { %v4942_v46 = vpack.c.bf16 %v4926_v44, %v4924_v63  ;;  %v4916_v51 = vpop.f32.mrb[208].mxu0 }
0x11c1   : > { %v4917_v47 = vadd.f32 %v4916_v51, %v12002_v52  ;;  %v4918_v35 = vpop.f32.mrb[209].mxu0 }
0x11c2   : > { %v4919_v49 = vadd.f32 %v4918_v35, %v12002_v52  ;;  %v4920_v6 = vpop.f32.mrb[210].mxu0  ;;  %4951 = vmatprep.subr.bf16.mxu1 %v4942_v46 }
0x11c3   : > { %v4927_v59 = vmax.f32 %v4917_v47, 0.0  ;;  %v4921_v15 = vpop.f32.mrb[211].mxu0  ;;  %4952 = vmatpush1.bf16.msra.mxu1 %v4941_v7 }
0x11c4   : > { %v4928_v25 = vmax.f32 %v4919_v49, 0.0  ;;  %v12004_v15 = vld [vmem:[#allocation11_spill] sm:$0xff] }
0x11c5   : > { %v4943_v58 = vpack.c.bf16 %v4927_v59, %v4927_v59 }
0x11c6   : > { %v4944_v10 = vpack.c.bf16 %v4928_v25, %v4928_v25 }
0x11c7   : > { %v4946_v57 = vsel %vm582_vm1, %v4943_v58, 0 }
0x11c8   : > { %6363 = vmatprep.subr.msk.bf16.mxu1 %vm582_vm1, %v4944_v10  ;;  %v5084_v11 = vpop.f32.mrb[212].mxu0 }
0x11c9   : > { %v5085_v53 = vadd.f32 %v5084_v11, %v12000_v18  ;;  %4954 = vmatpush1.bf16.msra.mxu1 %v4946_v57  ;;  %v5086_v40 = vpop.f32.mrb[213].mxu0  ;;  %v12005_v57 = vld [vmem:[#allocation12_spill] sm:$0xff]  ;;  %v12007_v11 = vld [vmem:[#allocation58_spill] sm:$0xff] }
0x11ca   : > { %v5087_v5 = vadd.f32 %v5086_v40, %v12000_v18  ;;  %v5088_v30 = vpop.f32.mrb[214].mxu0 }
0x11cb   : > { %v5089_v32 = vadd.f32 %v5088_v30, %v12001_v29  ;;  %v5090_v38 = vpop.f32.mrb[215].mxu0  ;;  %v5101_v23 = vmax.f32 %v5085_v53, 0.0  ;;  %v12008_v53 = vmax.f32 %v12007_v11, 0.0  ;;  %v12009_v30 = vld [vmem:[#allocation60_spill] sm:$0xff] }
0x11cc   : > { %v5091_v16 = vadd.f32 %v5090_v38, %v12001_v29  ;;  %6364 = vmatmul.mubr.msk.bf16.vlgmr.msra.gmra.mrb[204].mxu1 %vm572_vm2, %v12003_v14  ;;  %v5102_v63 = vmax.f32 %v5087_v5, 0.0 }
0x11cd   : > { %v5103_v22 = vmax.f32 %v5089_v32, 0.0  ;;  %4993 = vmatprep.mubr.bf16.mxu1 %v11970_v56  ;;  %v12010_v32 = vmax.f32 %v12009_v30, 0.0 }
0x11ce   : > { %v5104_v44 = vmax.f32 %v5091_v16, 0.0 }
0x11cf   : > { %v5119_v7 = vpack.c.bf16 %v5103_v22, %v5101_v23  ;;  %v12011_v23 = vld [vmem:[#allocation14_spill] sm:$0xff]  ;;  %v12012_v22 = vld [vmem:[#allocation61_spill] sm:$0xff] }
0x11d0   : > { %v5120_v46 = vpack.c.bf16 %v5104_v44, %v5102_v63  ;;  %v5094_v51 = vpop.f32.mrb[216].mxu0  ;;  %v12013_v63 = vmax.f32 %v12012_v22, 0.0 }
0x11d1   : > { %v5095_v18 = vadd.f32 %v5094_v51, %v12002_v52  ;;  %v5096_v47 = vpop.f32.mrb[217].mxu0  ;;  %v12014_v51 = vld [vmem:[#allocation43_spill] sm:$0xff] }
0x11d2   : > { %v5097_v35 = vadd.f32 %v5096_v47, %v12002_v52  ;;  %5129 = vmatprep.subr.bf16.mxu1 %v5120_v46  ;;  %v5098_v49 = vpop.f32.mrb[218].mxu0  ;;  %v12006_v52 = vld [vmem:[#allocation13_spill] sm:$0xff]  ;;  %v4931_v44 = vmul.f32 %v12013_v63, %v12011_v23 }
0x11d3   : > { %v5105_v29 = vmax.f32 %v5095_v18, 0.0  ;;  %5130 = vmatpush1.bf16.msra.mxu1 %v5119_v7  ;;  %v5099_v6 = vpop.f32.mrb[219].mxu0  ;;  %v4929_v40 = vmul.f32 %v12008_v53, %v12006_v52  ;;  %v4930_v38 = vmul.f32 %v12010_v32, %v12006_v52  ;;  %v12015_v18 = vmax.f32 %v12014_v51, 0.0  ;;  %v12018_v53 = vld [vmem:[#allocation15_spill] sm:$0xff]  ;;  %v12023_v51 = vld [vmem:[#allocation16_spill] sm:$0xff] }
0x11d4   : > { %v5106_v59 = vmax.f32 %v5097_v35, 0.0  ;;  %6365 = vmatmul.mubr.msk.bf16.gmra.mrb[208].mxu1 %vm572_vm2, %v12004_v15  ;;  %v12016_v35 = vld [vmem:[#allocation17_spill] sm:$0xff] }
0x11d5   : > { %v5121_v25 = vpack.c.bf16 %v5105_v29, %v5105_v29  ;;  %5003 = vmatprep.mubr.bf16.mxu1 %v11970_v56  ;;  %v4932_v47 = vmul.f32 %v12015_v18, %v12011_v23  ;;  %v12024_v18 = vld [vmem:[#allocation63_spill] sm:$0xff] }
0x11d6   : > { %v5122_v58 = vpack.c.bf16 %v5106_v59, %v5106_v59 }
0x11d7   : > { %v5124_v10 = vsel %vm582_vm1, %v5121_v25, 0  ;;  %v12017_v25 = vld [vmem:[#allocation18_spill] sm:$0xff] }
0x11d8   : > { %6369 = vmatprep.subr.msk.bf16.mxu1 %vm582_vm1, %v5122_v58 }
0x11d9   : > { %5132 = vmatpush1.bf16.msra.mxu1 %v5124_v10 }
0x11dc   : > { %6366 = vmatmul.mubr.msk.bf16.gmra.mrb[212].mxu1 %vm572_vm2, %v12005_v57 }
0x11dd   : > { %5161 = vmatprep.mubr.bf16.mxu1 %v11970_v56 }
0x11e4   : > { %6370 = vmatmul.mubr.msk.bf16.vlgmr.msra.gmra.mrb[216].mxu1 %vm572_vm2, %v12003_v14 }
0x11e5   : > { %5171 = vmatprep.mubr.bf16.mxu1 %v11970_v56 }
0x11ec   : > { %6371 = vmatmul.mubr.msk.bf16.gmra.mrb[220].mxu1 %vm572_vm2, %v12004_v15 }
0x11ed   : > { %5181 = vmatprep.mubr.bf16.mxu1 %v11970_v56 }
0x11f4   : > { %6372 = vmatmul.mubr.msk.bf16.gmra.mrb[224].mxu1 %vm572_vm2, %v12005_v57 }
0x11f5   : > { %5365 = vmatprep.mubr.bf16.mxu1 %v11970_v56 }
0x129f   : > { %v4985_v5 = vpop.f32.mrb[204].mxu1 }
0x12a0   : > { %v5014_v16 = vadd.f32 %v4985_v5, %v4929_v40  ;;  %v4987_v14 = vpop.f32.mrb[205].mxu1  ;;  %v12019_v40 = vld [vmem:[#allocation56_spill] sm:$0xff] }
0x12a1   : > { %v5015_v7 = vadd.f32 %v4987_v14, %v4930_v38  ;;  %v4989_v46 = vpop.f32.mrb[206].mxu1  ;;  %v12020_v5 = vmax.f32 %v12019_v40, 0.0 }
0x12a2   : > { %v5026_v49 = vadd.f32 %v5014_v16, %v12016_v35  ;;  %v5016_v29 = vadd.f32 %v4989_v46, %v4931_v44  ;;  %v4991_v6 = vpop.f32.mrb[207].mxu1  ;;  %v12021_v16 = vld [vmem:[#allocation55_spill] sm:$0xff] }
0x12a3   : > { %v5027_v59 = vadd.f32 %v5015_v7, %v12016_v35  ;;  %v5017_v15 = vadd.f32 %v4991_v6, %v4932_v47  ;;  %v4933_v30 = vmul.f32 %v12020_v5, %v12018_v53  ;;  %v12022_v22 = vmax.f32 %v12021_v16, 0.0 }
0x12a4   : > { %v5028_v58 = vadd.f32 %v5016_v29, %v12017_v25  ;;  %v5038_v57 = vmax.f32 %v5026_v49, 0.0  ;;  %v12025_v47 = vmax.f32 %v12024_v18, 0.0  ;;  %v12031_v18 = vld [vmem:[#allocation22_spill] sm:$0xff] }
0x12a5   : > { %v5029_v10 = vadd.f32 %v5017_v15, %v12017_v25  ;;  %v5039_v32 = vmax.f32 %v5027_v59, 0.0  ;;  %v4934_v63 = vmul.f32 %v12022_v22, %v12018_v53  ;;  %v12026_v15 = vld [vmem:[#allocation46_spill] sm:$0xff] }
0x12a6   : > { %v5040_v11 = vmax.f32 %v5028_v58, 0.0  ;;  %v4935_v29 = vmul.f32 %v12025_v47, %v12023_v51  ;;  %v12027_v58 = vmax.f32 %v12026_v15, 0.0  ;;  %v12032_v47 = vmax.f32 %v12031_v18, 0.0 }
0x12a7   : > { %v5041_v38 = vmax.f32 %v5029_v10, 0.0  ;;  %v4995_v14 = vpop.f32.mrb[208].mxu1  ;;  %v12028_v10 = vld [vmem:[#allocation26_spill] sm:$0xff]  ;;  %v12039_v18 = vmax.f32 %v12038_v1, 0.0 }
0x12a8   : > { %v5228_v44 = vpack.c.bf16 %v5040_v11, %v5038_v57  ;;  %v5018_v7 = vadd.f32 %v4995_v14, %v4933_v30  ;;  %v4997_v46 = vpop.f32.mrb[209].mxu1  ;;  %v4936_v40 = vmul.f32 %v12027_v58, %v12023_v51  ;;  %v12029_v11 = vld [vmem:[#allocation29_spill] sm:$0xff] }
0x12a9   : > { %v5019_v49 = vadd.f32 %v4997_v46, %v4934_v63  ;;  %v4999_v6 = vpop.f32.mrb[210].mxu1  ;;  %v5229_v59 = vpack.c.bf16 %v5041_v38, %v5039_v32  ;;  %v12030_v46 = vld [vmem:[#allocation20_spill] sm:$0xff] }
0x12aa   : > { %v5030_v5 = vadd.f32 %v5018_v7, %v12028_v10  ;;  %v5020_v54 = vadd.f32 %v4999_v6, %v4935_v29  ;;  %v5001_v39 = vpop.f32.mrb[211].mxu1  ;;  %v4937_v15 = vmul.f32 %v12032_v47, %v12030_v46  ;;  %v12033_v29 = vld [vmem:[#allocation28_spill] sm:$0xff] }
0x12ab   : > { %v5031_v16 = vadd.f32 %v5019_v49, %v12028_v10  ;;  %v5021_v57 = vadd.f32 %v5001_v39, %v4936_v40  ;;  %5240 = vmatprep.subr.bf16.mxu0 %v5229_v59  ;;  %v12034_v6 = vmax.f32 %v12033_v29, 0.0 }
0x12ac   : > { %v5032_v30 = vadd.f32 %v5020_v54, %v12029_v11  ;;  %5241 = vmatpush1.bf16.msra.mxu0 %v5228_v44  ;;  %v5042_v22 = vmax.f32 %v5030_v5, 0.0  ;;  %v12035_v54 = vld [vmem:[#allocation23_spill] sm:$0xff]  ;;  %v12036_v44 = vld [vmem:[#allocation30_spill] sm:$0xff] }
0x12ad   : > { %v5033_v14 = vadd.f32 %v5021_v57, %v12029_v11  ;;  %v5043_v32 = vmax.f32 %v5031_v16, 0.0  ;;  %v4938_v49 = vmul.f32 %v12034_v6, %v12030_v46  ;;  %v12037_v59 = vmax.f32 %v12036_v44, 0.0 }
0x12ae   : > { %v5044_v63 = vmax.f32 %v5032_v30, 0.0  ;;  %v4940_v47 = vmul.f32 %v12039_v18, %v12035_v54 }
0x12af   : > { %v5045_v38 = vmax.f32 %v5033_v14, 0.0  ;;  %v5005_v7 = vpop.f32.mrb[212].mxu1  ;;  %v4939_v57 = vmul.f32 %v12037_v59, %v12035_v54  ;;  %v12040_v14 = vld [vmem:[#allocation34_spill] sm:$0xff] }
0x12b0   : > { %v5230_v39 = vpack.c.bf16 %v5044_v63, %v5042_v22  ;;  %v5022_v58 = vadd.f32 %v5005_v7, %v4937_v15  ;;  %v5007_v40 = vpop.f32.mrb[213].mxu1  ;;  %v12041_v63 = vld [vmem:[#allocation37_spill] sm:$0xff]  ;;  %v12044_v59 = vld [vmem:[#allocation50_spill] sm:$0xff] }
0x12b1   : > { %v5023_v5 = vadd.f32 %v5007_v40, %v4938_v49  ;;  %v5009_v30 = vpop.f32.mrb[214].mxu1  ;;  %v5231_v16 = vpack.c.bf16 %v5045_v38, %v5043_v32  ;;  %v12042_v40 = vld [vmem:[#allocation44_spill] sm:$0xff] }
0x12b2   : > { %v5034_v13 = vadd.f32 %v5022_v58, %v12040_v14  ;;  %v5024_v9 = vadd.f32 %v5009_v30, %v4939_v57  ;;  %v5011_v20 = vpop.f32.mrb[215].mxu1  ;;  %v12043_v1 = vmax.f32 %v12042_v40, 0.0  ;;  %v12045_v57 = vmax.f32 %v12044_v59, 0.0 }
0x12b3   : > { %v5035_v29 = vadd.f32 %v5023_v5, %v12040_v14  ;;  %v5025_v22 = vadd.f32 %v5011_v20, %v4940_v47  ;;  %5242 = vmatprep.subr.bf16.mxu0 %v5231_v16 }
0x12b4   : > { %v5036_v15 = vadd.f32 %v5024_v9, %v12041_v63  ;;  %5243 = vmatpush1.bf16.msra.mxu0 %v5230_v39  ;;  %v5046_v6 = vmax.f32 %v5034_v13, 0.0  ;;  %v5107_v44 = vmul.f32 %v12043_v1, %v12006_v52  ;;  %v5108_v5 = vmul.f32 %v12045_v57, %v12006_v52  ;;  %v12046_v9 = vld [vmem:[#allocation51_spill] sm:$0xff] }
0x12b5   : > { %v5037_v7 = vadd.f32 %v5025_v22, %v12041_v63  ;;  %v5047_v32 = vmax.f32 %v5035_v29, 0.0  ;;  %v12047_v39 = vmax.f32 %v12046_v9, 0.0  ;;  %v12048_v22 = vld [vmem:[#allocation53_spill] sm:$0xff] }
0x12b6   : > { %v5048_v49 = vmax.f32 %v5036_v15, 0.0  ;;  %v12049_v15 = vmax.f32 %v12048_v22, 0.0 }
0x12b7   : > { %v5049_v38 = vmax.f32 %v5037_v7, 0.0  ;;  %v5163_v58 = vpop.f32.mrb[216].mxu1  ;;  %v5109_v47 = vmul.f32 %v12047_v39, %v12011_v23 }
0x12b8   : > { %v5232_v20 = vpack.c.bf16 %v5048_v49, %v5046_v6  ;;  %v5192_v30 = vadd.f32 %v5163_v58, %v5107_v44  ;;  %v5165_v18 = vpop.f32.mrb[217].mxu1  ;;  %v5110_v40 = vmul.f32 %v12049_v15, %v12011_v23  ;;  %v12050_v58 = vpack.c.bf16 %v10107_v3, %v10104_v45 }
0x12b9   : > { %v5193_v13 = vadd.f32 %v5165_v18, %v5108_v5  ;;  %v5167_v16 = vpop.f32.mrb[218].mxu1  ;;  %v5233_v29 = vpack.c.bf16 %v5049_v38, %v5047_v32  ;;  %v12051_v32 = vld [vmem:[#allocation24_spill] sm:$0xff]  ;;  %v12056_v3 = vpack.c.bf16 %v10101_v55, %v10098_v24 }
0x12ba   : > { %v5204_v7 = vadd.f32 %v5192_v30, %v12016_v35  ;;  %v5194_v1 = vadd.f32 %v5167_v16, %v5109_v47  ;;  %v5169_v26 = vpop.f32.mrb[219].mxu1  ;;  %v12052_v38 = vmax.f32 %v12051_v32, 0.0  ;;  %v12057_v47 = vld [vmem:[#allocation31_spill] sm:$0xff] }
0x12bb   : > { %v5205_v52 = vadd.f32 %v5193_v13, %v12016_v35  ;;  %v5195_v6 = vadd.f32 %v5169_v26, %v5110_v40  ;;  %5244 = vmatprep.subr.bf16.mxu0 %v5233_v29  ;;  %v12053_v26 = vld [vmem:[#allocation45_spill] sm:$0xff]  ;;  %v12058_v13 = vmax.f32 %v12057_v47, 0.0  ;;  %v12059_v40 = vpack.c.bf16 %v10123_v36, %v10120_v62 }
0x12bc   : > { %v5206_v49 = vadd.f32 %v5194_v1, %v12017_v25  ;;  %5245 = vmatpush1.bf16.msra.mxu0 %v5232_v20  ;;  %v5216_v59 = vmax.f32 %v5204_v7, 0.0  ;;  %v5111_v57 = vmul.f32 %v12052_v38, %v12018_v53  ;;  %v12054_v20 = vld [vmem:[#allocation21_spill] sm:$0xff]  ;;  %v12062_v62 = vpack.c.bf16 %v10117_v48, %v10114_v27 }
0x12bd   : > { %v5207_v44 = vadd.f32 %v5195_v6, %v12017_v25  ;;  %5432 = vmatprep.subr.bf16.mxu0 %v12050_v58  ;;  %v5217_v5 = vmax.f32 %v5205_v52, 0.0  ;;  %v12055_v18 = vmax.f32 %v12054_v20, 0.0  ;;  %v5113_v16 = vmul.f32 %v12058_v13, %v12023_v51  ;;  %v12067_v27 = vld [vmem:[#allocation73_spill] sm:$0xff] }
0x12be   : > { %v5218_v23 = vmax.f32 %v5206_v49, 0.0  ;;  %v12068_v48 = vmax.f32 %v12067_v27, 0.0 }
0x12bf   : > { %v5219_v30 = vmax.f32 %v5207_v44, 0.0  ;;  %v5173_v35 = vpop.f32.mrb[220].mxu1  ;;  %6373 = vmatmul.mubr.msk.bf16.vlgmr.msra.gmra.mrb[220].mxu0 %vm462_vm0, %v12053_v26  ;;  %v5112_v25 = vmul.f32 %v12055_v18, %v12018_v53  ;;  %v12060_v53 = vld [vmem:[#allocation32_spill] sm:$0xff] }
0x12c0   : > { %v5234_v9 = vpack.c.bf16 %v5218_v23, %v5216_v59  ;;  %v5196_v39 = vadd.f32 %v5173_v35, %v5111_v57  ;;  %v5175_v45 = vpop.f32.mrb[221].mxu1  ;;  %5433 = vmatpush1.bf16.msra.mxu0 %v12056_v3  ;;  %5282 = vmatprep.mubr.bf16.mxu0 %v11970_v56  ;;  %v12061_v29 = vmax.f32 %v12060_v53, 0.0  ;;  %v12064_v23 = vld [vmem:[#allocation114_spill] sm:$0xff]  ;;  %v12070_v18 = vld [vmem:[#allocation72_spill] sm:$0xff] }
0x12c1   : > { %v5197_v22 = vadd.f32 %v5175_v45, %v5112_v25  ;;  %v5177_v15 = vpop.f32.mrb[222].mxu1  ;;  %5434 = vmatprep.subr.bf16.mxu0 %v12059_v40  ;;  %v5235_v1 = vpack.c.bf16 %v5219_v30, %v5217_v5  ;;  %v12066_v30 = vld [vmem:[#allocation52_spill] sm:$0xff]  ;;  %v12071_v25 = vmax.f32 %v12070_v18, 0.0 }
0x12c2   : > { %v5114_v7 = vmul.f32 %v12061_v29, %v12023_v51  ;;  %v5208_v24 = vadd.f32 %v5196_v39, %v12028_v10  ;;  %v5198_v55 = vadd.f32 %v5177_v15, %v5113_v16  ;;  %v5179_v52 = vpop.f32.mrb[223].mxu1  ;;  %v12063_v51 = vpack.c.bf16 %v10139_v28, %v10136_v33  ;;  %v12072_v3 = vld [vmem:[#allocation80_spill] sm:$0xff] }
0x12c3   : > { %v5209_v6 = vadd.f32 %v5197_v22, %v12028_v10  ;;  %5333 = vmatprep.subr.bf16.mxu1 %v5235_v1  ;;  %v12065_v10 = vmax.f32 %v12064_v23, 0.0  ;;  %v12069_v28 = vpack.c.bf16 %v10133_v17, %v10130_v43  ;;  %v12073_v47 = vmax.f32 %v12072_v3, 0.0 }
0x12c4   : > { %v5199_v49 = vadd.f32 %v5179_v52, %v5114_v7  ;;  %v5210_v44 = vadd.f32 %v5198_v55, %v12029_v11  ;;  %5334 = vmatpush1.bf16.msra.mxu1 %v5234_v9  ;;  %5435 = vmatpush1.bf16.msra.mxu0 %v12062_v62  ;;  %v5220_v58 = vmax.f32 %v5208_v24, 0.0  ;;  %v5117_v9 = vmul.f32 %v12071_v25, %v12035_v54  ;;  %v12074_v55 = vld [vmem:[#allocation59_spill] sm:$0xff] }
0x12c5   : > { %5436 = vmatprep.subr.bf16.mxu0 %v12063_v51  ;;  %v5115_v32 = vmul.f32 %v12065_v10, %v12030_v46  ;;  %v5221_v38 = vmax.f32 %v5209_v6, 0.0  ;;  %v5118_v13 = vmul.f32 %v12073_v47, %v12035_v54  ;;  %v12077_v6 = vld [vmem:[#allocation66_spill] sm:$0xff] }
0x12c6   : > { %v5211_v36 = vadd.f32 %v5199_v49, %v12029_v11  ;;  %v5222_v59 = vmax.f32 %v5210_v44, 0.0  ;;  %v5116_v11 = vmul.f32 %v12068_v48, %v12030_v46  ;;  %v12079_v49 = vld [vmem:[#allocation98_spill] sm:$0xff]  ;;  %v12080_v44 = vld [vmem:[#allocation99_spill] sm:$0xff] }
0x12c7   : > { %v5183_v5 = vpop.f32.mrb[224].mxu1  ;;  %6374 = vmatmul.mubr.msk.bf16.gmra.mrb[224].mxu0 %vm462_vm0, %v12066_v30 }
0x12c8   : > { %v5223_v57 = vmax.f32 %v5211_v36, 0.0  ;;  %v5236_v35 = vpack.c.bf16 %v5222_v59, %v5220_v58  ;;  %v5200_v20 = vadd.f32 %v5183_v5, %v5115_v32  ;;  %v5185_v33 = vpop.f32.mrb[225].mxu1  ;;  %5437 = vmatpush1.bf16.msra.mxu0 %v12069_v28  ;;  %5292 = vmatprep.mubr.bf16.mxu0 %v11970_v56 }
0x12c9   : > { %v5201_v39 = vadd.f32 %v5185_v33, %v5116_v11  ;;  %v5187_v45 = vpop.f32.mrb[226].mxu1 }
0x12ca   : > { %v5237_v46 = vpack.c.bf16 %v5223_v57, %v5221_v38  ;;  %v5212_v16 = vadd.f32 %v5200_v20, %v12040_v14  ;;  %v5202_v22 = vadd.f32 %v5187_v45, %v5117_v9  ;;  %v5189_v15 = vpop.f32.mrb[227].mxu1 }
0x12cb   : > { %v5213_v43 = vadd.f32 %v5201_v39, %v12040_v14  ;;  %v5203_v17 = vadd.f32 %v5189_v15, %v5118_v13  ;;  %v12075_v14 = vld [vmem:[#allocation64_spill] sm:$0xff] }
0x12cc   : > { %5335 = vmatprep.subr.bf16.mxu1 %v5237_v46  ;;  %v5214_v40 = vadd.f32 %v5202_v22, %v12041_v63  ;;  %v5224_v29 = vmax.f32 %v5212_v16, 0.0 }
0x12cd   : > { %5336 = vmatpush1.bf16.msra.mxu1 %v5236_v35  ;;  %v5215_v53 = vadd.f32 %v5203_v17, %v12041_v63  ;;  %v5225_v1 = vmax.f32 %v5213_v43, 0.0  ;;  %v12076_v63 = vld [vmem:[#allocation65_spill] sm:$0xff] }
0x12ce   : > { %v5226_v7 = vmax.f32 %v5214_v40, 0.0 }
0x12cf   : > { %v5227_v24 = vmax.f32 %v5215_v53, 0.0  ;;  %6375 = vmatmul.mubr.msk.bf16.gmra.mrb[228].mxu0 %vm462_vm0, %v12074_v55 }
0x12d0   : > { %v5238_v54 = vpack.c.bf16 %v5226_v7, %v5224_v29  ;;  %5302 = vmatprep.mubr.bf16.mxu0 %v11970_v56  ;;  %v12083_v7 = vld [vmem:[#allocation100_spill] sm:$0xff] }
0x12d1   : > { %v5239_v52 = vpack.c.bf16 %v5227_v24, %v5225_v1 }
0x12d3   : > { %5337 = vmatprep.subr.bf16.mxu1 %v5239_v52 }
0x12d4   : > { %5338 = vmatpush1.bf16.msra.mxu1 %v5238_v54 }
0x12d7   : > { %6376 = vmatmul.mubr.msk.bf16.gmra.mrb[232].mxu0 %vm462_vm0, %v12075_v14  ;;  %6379 = vmatmul.mubr.msk.bf16.vlgmr.msra.gmra.mrb[228].mxu1 %vm462_vm0, %v12053_v26  ;;  %v12078_v26 = vld [vmem:[#allocation97_spill] sm:$0xff] }
0x12d8   : > { %5312 = vmatprep.mubr.bf16.mxu0 %v11970_v56  ;;  %5375 = vmatprep.mubr.bf16.mxu1 %v11970_v56 }
0x12df   : > { %6377 = vmatmul.mubr.msk.bf16.gmra.mrb[236].mxu0 %vm462_vm0, %v12076_v63  ;;  %6380 = vmatmul.mubr.msk.bf16.gmra.mrb[232].mxu1 %vm462_vm0, %v12066_v30 }
0x12e0   : > { %5322 = vmatprep.mubr.bf16.mxu0 %v11970_v56  ;;  %5385 = vmatprep.mubr.bf16.mxu1 %v11970_v56 }
0x12e7   : > { %6378 = vmatmul.mubr.msk.bf16.gmra.mrb[240].mxu0 %vm462_vm0, %v12077_v6  ;;  %6381 = vmatmul.mubr.msk.bf16.gmra.mrb[236].mxu1 %vm462_vm0, %v12074_v55  ;;  %v12084_v55 = vld [vmem:[#allocation102_spill] sm:$0xff] }
0x12e8   : > { %5395 = vmatprep.mubr.bf16.mxu1 %v11970_v56  ;;  %5464 = vmatprep.mubr.bf16.mxu0 %v11970_v56 }
0x12ef   : > { %6382 = vmatmul.mubr.msk.bf16.gmra.mrb[240].mxu1 %vm462_vm0, %v12075_v14  ;;  %6385 = vmatmul.mubr.msk.bf16.vlgmr.msra.gmra.mrb[244].mxu0 %vm462_vm0, %v12078_v26  ;;  %v12085_v14 = vld [vmem:[#allocation105_spill] sm:$0xff] }
0x12f0   : > { %5405 = vmatprep.mubr.bf16.mxu1 %v11970_v56  ;;  %5474 = vmatprep.mubr.bf16.mxu0 %v11970_v56  ;;  %v12087_v26 = vld [vmem:[#allocation101_spill] sm:$0xff] }
0x12f7   : > { %6383 = vmatmul.mubr.msk.bf16.gmra.mrb[244].mxu1 %vm462_vm0, %v12076_v63  ;;  %6386 = vmatmul.mubr.msk.bf16.gmra.mrb[248].mxu0 %vm462_vm0, %v12079_v49 }
0x12f8   : > { %5415 = vmatprep.mubr.bf16.mxu1 %v11970_v56  ;;  %5484 = vmatprep.mubr.bf16.mxu0 %v11970_v56 }
0x12ff   : > { %6384 = vmatmul.mubr.msk.bf16.gmra.mrb[248].mxu1 %vm462_vm0, %v12077_v6  ;;  %6387 = vmatmul.mubr.msk.bf16.gmra.mrb[252].mxu0 %vm462_vm0, %v12080_v44 }
0x1300   : > { %5893 = vmatprep.mubr.bf16.mxu1 %v11970_v56  ;;  %6071 = vmatprep.mubr.bf16.mxu0 %v11970_v56 }
0x1392   : > { %v5274_v62 = vpop.f32.mrb[220].mxu0 }
0x1393   : > { %v5276_v36 = vpop.f32.mrb[221].mxu0  ;;  %v10359_v1 = vadd.f32 %v5274_v62, %v12083_v7  ;;  %v12088_v62 = vld [vmem:[#allocation104_spill] sm:$0xff] }
0x1394   : > { %v5278_v51 = vpop.f32.mrb[222].mxu0  ;;  %v10362_v24 = vadd.f32 %v5276_v36, %v12083_v7 }
0x1395   : > { %v5280_v58 = vpop.f32.mrb[223].mxu0  ;;  %v10365_v54 = vadd.f32 %v5278_v51, %v12084_v55 }
0x1396   : > { %v10368_v52 = vadd.f32 %v5280_v58, %v12084_v55  ;;  %v12089_v58 = vld [vmem:[#allocation108_spill] sm:$0xff] }
0x139a   : > { %v5284_v59 = vpop.f32.mrb[224].mxu0 }
0x139b   : > { %v5286_v23 = vpop.f32.mrb[225].mxu0  ;;  %v10371_v63 = vadd.f32 %v5284_v59, %v12085_v14 }
0x139c   : > { %v5288_v10 = vpop.f32.mrb[226].mxu0  ;;  %v10374_v6 = vadd.f32 %v5286_v23, %v12085_v14  ;;  %v12091_v23 = vld [vmem:[#allocation111_spill] sm:$0xff] }
0x139d   : > { %v5290_v32 = vpop.f32.mrb[227].mxu0  ;;  %v10377_v49 = vadd.f32 %v5288_v10, %v12087_v26 }
0x139e   : > { %12086 = vst [vmem:[#allocation42_spill] sm:$0xff] %v10374_v6  ;;  %v10380_v44 = vadd.f32 %v5290_v32, %v12087_v26 }
0x13a2   : > { %v5294_v38 = vpop.f32.mrb[228].mxu0 }
0x13a3   : > { %v5296_v57 = vpop.f32.mrb[229].mxu0  ;;  %v10383_v36 = vadd.f32 %v5294_v38, %v12088_v62 }
0x13a4   : > { %v5298_v5 = vpop.f32.mrb[230].mxu0  ;;  %v10386_v51 = vadd.f32 %v5296_v57, %v12088_v62 }
0x13a5   : > { %v5300_v30 = vpop.f32.mrb[231].mxu0  ;;  %v10389_v42 = vadd.f32 %v5298_v5, %v12089_v58 }
0x13a6   : > { %v10392_v59 = vadd.f32 %v5300_v30, %v12089_v58  ;;  %v12095_v30 = vld [vmem:[#allocation110_spill] sm:$0xff] }
0x13a8   : > { %12090 = vst [vmem:[#allocation117_spill] sm:$0xff] %v10392_v59 }
0x13aa   : > { %v5304_v27 = vpop.f32.mrb[232].mxu0  ;;  %v5367_v48 = vpop.f32.mrb[228].mxu1 }
0x13ab   : > { %v5306_v11 = vpop.f32.mrb[233].mxu0  ;;  %v5369_v35 = vpop.f32.mrb[229].mxu1  ;;  %v10395_v8 = vadd.f32 %v5304_v27, %v12091_v23  ;;  %v10398_v10 = vadd.f32 %v5367_v48, %v12083_v7 }
0x13ac   : > { %v5308_v20 = vpop.f32.mrb[234].mxu0  ;;  %v5371_v33 = vpop.f32.mrb[230].mxu1  ;;  %v10403_v38 = vadd.f32 %v5306_v11, %v12091_v23  ;;  %v10406_v57 = vadd.f32 %v5369_v35, %v12083_v7 }
0x13ad   : > { %v5310_v28 = vpop.f32.mrb[235].mxu0  ;;  %v5373_v18 = vpop.f32.mrb[231].mxu1  ;;  %12092 = vst [vmem:[#allocation25_spill] sm:$0xff] %v10395_v8  ;;  %v10415_v48 = vadd.f32 %v5308_v20, %v12097_v41  ;;  %v10418_v50 = vadd.f32 %v5371_v33, %v12084_v55 }
0x13ae   : > { %12094 = vst [vmem:[#allocation27_spill] sm:$0xff] %v10403_v38  ;;  %v10445_v56 = vadd.f32 %v5373_v18, %v12084_v55 }
0x13af   : > { %12098 = vst [vmem:[#allocation49_spill] sm:$0xff] %v10415_v48 }
0x13b2   : > { %v5314_v25 = vpop.f32.mrb[236].mxu0  ;;  %v5377_v9 = vpop.f32.mrb[232].mxu1 }
0x13b3   : > { %v10338_v39 = vpop.f32.mrb[237].mxu0  ;;  %v10340_v45 = vpop.f32.mrb[233].mxu1  ;;  %v10448_v38 = vadd.f32 %v5314_v25, %v12103_v31  ;;  %v10451_v48 = vadd.f32 %v5377_v9, %v12085_v14 }
0x13b4   : > { %v10342_v3 = vpop.f32.mrb[238].mxu0  ;;  %v5381_v47 = vpop.f32.mrb[234].mxu1 }
0x13b5   : > { %v10344_v13 = vpop.f32.mrb[239].mxu0  ;;  %v5383_v46 = vpop.f32.mrb[235].mxu1  ;;  %v10409_v5 = vadd.f32 %v5381_v47, %v12087_v26  ;;  %12104 = vst [vmem:[#allocation69_spill] sm:$0xff] %v10448_v38 }
0x13b6   : > { %v10421_v11 = vadd.f32 %v5383_v46, %v12087_v26 }
0x13ba   : > { %v10346_v16 = vpop.f32.mrb[240].mxu0  ;;  %v5387_v22 = vpop.f32.mrb[236].mxu1 }
0x13bb   : > { %v10348_v15 = vpop.f32.mrb[241].mxu0  ;;  %v5389_v43 = vpop.f32.mrb[237].mxu1  ;;  %v10440_v0 = vadd.f32 %v5387_v22, %v12088_v62 }
0x13bc   : > { %v10350_v17 = vpop.f32.mrb[242].mxu0  ;;  %v10352_v40 = vpop.f32.mrb[238].mxu1 }
0x13bd   : > { %12081 = vst [vmem:[#allocation35_spill] sm:$0xff] %v10350_v17  ;;  %v10354_v53 = vpop.f32.mrb[243].mxu0  ;;  %v10356_v29 = vpop.f32.mrb[239].mxu1 }
0x13be   : > { %12082 = vst [vmem:[#allocation33_spill] sm:$0xff] %v10354_v53 }
0x13c2   : > { %v10400_v32 = vpop.f32.mrb[240].mxu1  ;;  %v5466_v21 = vpop.f32.mrb[244].mxu0 }
0x13c3   : > { %12093 = vst [vmem:[#allocation118_spill] sm:$0xff] %v10400_v32  ;;  %v5467_v4 = vadd.f32 %v5466_v21, %v12095_v30  ;;  %v10412_v61 = vpop.f32.mrb[241].mxu1  ;;  %v5468_v27 = vpop.f32.mrb[245].mxu0 }
0x13c4   : > { %12096 = vst [vmem:[#allocation122_spill] sm:$0xff] %v10412_v61  ;;  %v5469_v35 = vadd.f32 %v5468_v27, %v12095_v30  ;;  %v10424_v7 = vpop.f32.mrb[242].mxu1  ;;  %v5470_v47 = vpop.f32.mrb[246].mxu0  ;;  %v10437_v27 = vadd.f32 %v5310_v28, %v12097_v41 }
0x13c5   : > { %12099 = vst [vmem:[#allocation125_spill] sm:$0xff] %v10424_v7  ;;  %v5495_v34 = vmul.f32 %v5467_v4, %v10359_v1  ;;  %v5517_v21 = vmul.f32 %v5467_v4, %v10377_v49  ;;  %v5539_v12 = vmul.f32 %v5467_v4, %v10398_v10  ;;  %v5561_v20 = vmul.f32 %v5467_v4, %v10409_v5  ;;  %v10430_v19 = vpop.f32.mrb[243].mxu1  ;;  %v5472_v33 = vpop.f32.mrb[247].mxu0 }
0x13c6   : > { %12100 = vst [vmem:[#allocation128_spill] sm:$0xff] %v10430_v19  ;;  %v5496_v2 = vmul.f32 %v5469_v35, %v10362_v24  ;;  %v5518_v46 = vmul.f32 %v5469_v35, %v10380_v44  ;;  %v5540_v26 = vmul.f32 %v5469_v35, %v10406_v57  ;;  %v5562_v30 = vmul.f32 %v5469_v35, %v10421_v11 }
0x13c7   : > { %12101 = vst [vmem:[#allocation67_spill] sm:$0xff] %v10437_v27  ;;  %v5471_v37 = vadd.f32 %v5470_v47, %v12102_v60  ;;  %v5473_v4 = vadd.f32 %v5472_v33, %v12102_v60  ;;  %v10454_v35 = vadd.f32 %v5389_v43, %v12088_v62 }
0x13c9   : > { %v5497_v28 = vmul.f32 %v5471_v37, %v10365_v54  ;;  %v5519_v22 = vmul.f32 %v5471_v37, %v10383_v36  ;;  %v5541_v47 = vmul.f32 %v5471_v37, %v10418_v50  ;;  %v5563_v60 = vmul.f32 %v5471_v37, %v10440_v0 }
0x13ca   : > { %v5498_v18 = vmul.f32 %v5473_v4, %v10368_v52  ;;  %v5520_v55 = vmul.f32 %v5473_v4, %v10386_v51  ;;  %v5542_v25 = vmul.f32 %v5473_v4, %v10445_v56  ;;  %v5564_v9 = vmul.f32 %v5473_v4, %v10454_v35  ;;  %v10464_v33 = vpop.f32.mrb[244].mxu1  ;;  %v5476_v43 = vpop.f32.mrb[248].mxu0 }
0x13cb   : > { %12105 = vst [vmem:[#allocation124_spill] sm:$0xff] %v10464_v33  ;;  %v5501_v62 = vadd.f32 %v5497_v28, %v5495_v34  ;;  %v5523_v38 = vadd.f32 %v5519_v22, %v5517_v21  ;;  %v5545_v27 = vadd.f32 %v5541_v47, %v5539_v12  ;;  %v5567_v8 = vadd.f32 %v5563_v60, %v5561_v20  ;;  %v10466_v19 = vpop.f32.mrb[245].mxu1  ;;  %v5478_v7 = vpop.f32.mrb[249].mxu0  ;;  %v12110_v12 = vld [vmem:[#allocation112_spill] sm:$0xff] }
0x13cc   : > { %12106 = vst [vmem:[#allocation131_spill] sm:$0xff] %v10466_v19  ;;  %v5509_v41 = vadd.f32 %v5498_v18, %v5496_v2  ;;  %v5531_v37 = vadd.f32 %v5520_v55, %v5518_v46  ;;  %v5553_v61 = vadd.f32 %v5542_v25, %v5540_v26  ;;  %v5575_v32 = vadd.f32 %v5564_v9, %v5562_v30  ;;  %v10468_v23 = vpop.f32.mrb[246].mxu1  ;;  %v5480_v53 = vpop.f32.mrb[250].mxu0 }
0x13cd   : > { %12107 = vst [vmem:[#allocation74_spill] sm:$0xff] %v10468_v23  ;;  %v10472_v4 = vadd.f32 %v10338_v39, %v12103_v31  ;;  %v10476_v34 = vadd.f32 %v10352_v40, %v12089_v58  ;;  %v5477_v21 = vadd.f32 %v5476_v43, %v12110_v12  ;;  %v5479_v20 = vadd.f32 %v5478_v7, %v12110_v12  ;;  %v10480_v28 = vpop.f32.mrb[247].mxu1  ;;  %v5482_v2 = vpop.f32.mrb[251].mxu0  ;;  %v12114_v39 = vld [vmem:[#allocation103_spill] sm:$0xff] }
0x13ce   : > { %12111 = vst [vmem:[#allocation119_spill] sm:$0xff] %v10480_v28  ;;  %v10484_v46 = vadd.f32 %v10340_v45, %v12085_v14  ;;  %v10488_v26 = vadd.f32 %v10356_v29, %v12089_v58  ;;  %v10491_v30 = vadd.f32 %v5480_v53, %v12114_v39  ;;  %v10494_v40 = vadd.f32 %v5482_v2, %v12114_v39 }
0x13cf   : > { %12108 = vst [vmem:[#allocation75_spill] sm:$0xff] %v10472_v4  ;;  %12109 = vst [vmem:[#allocation76_spill] sm:$0xff] %v10476_v34  ;;  %v5499_v22 = vmul.f32 %v5477_v21, %v10371_v63  ;;  %v5521_v7 = vmul.f32 %v5477_v21, %v10389_v42  ;;  %v5543_v47 = vmul.f32 %v5477_v21, %v10451_v48 }
0x13d0   : > { %12112 = vst [vmem:[#allocation126_spill] sm:$0xff] %v10484_v46  ;;  %12113 = vst [vmem:[#allocation130_spill] sm:$0xff] %v10488_v26  ;;  %v5565_v60 = vmul.f32 %v5477_v21, %v10476_v34  ;;  %v5500_v45 = vmul.f32 %v5479_v20, %v10374_v6  ;;  %v5522_v14 = vmul.f32 %v5479_v20, %v10392_v59 }
0x13d1   : > { %v5544_v29 = vmul.f32 %v5479_v20, %v10484_v46  ;;  %v5566_v53 = vmul.f32 %v5479_v20, %v10488_v26  ;;  %v5502_v58 = vadd.f32 %v5501_v62, %v5499_v22  ;;  %v5524_v18 = vadd.f32 %v5523_v38, %v5521_v7 }
0x13d2   : > { %v5546_v55 = vadd.f32 %v5545_v27, %v5543_v47  ;;  %v5568_v25 = vadd.f32 %v5567_v8, %v5565_v60  ;;  %v5510_v9 = vadd.f32 %v5509_v41, %v5500_v45  ;;  %v5532_v43 = vadd.f32 %v5531_v37, %v5522_v14  ;;  %v10504_v39 = vpop.f32.mrb[248].mxu1  ;;  %v10506_v4 = vpop.f32.mrb[252].mxu0 }
0x13d3   : > { %v5554_v12 = vadd.f32 %v5553_v61, %v5544_v29  ;;  %v5576_v2 = vadd.f32 %v5575_v32, %v5566_v53  ;;  %12115 = vst [vmem:[#allocation123_spill] sm:$0xff] %v10504_v39  ;;  %v5503_v21 = vrot.slane %v5502_v58, 4  ;;  %v5525_v28 = vrot.slane %v5524_v18, 4  ;;  %v10508_v33 = vpop.f32.mrb[249].mxu1  ;;  %v10510_v31 = vpop.f32.mrb[253].mxu0 }
0x13d4   : > { %v5547_v23 = vrot.slane %v5546_v55, 4  ;;  %v5569_v19 = vrot.slane %v5568_v25, 4  ;;  %12116 = vst [vmem:[#allocation79_spill] sm:$0xff] %v10508_v33  ;;  %v5511_v62 = vrot.slane %v5510_v9, 4  ;;  %v5533_v38 = vrot.slane %v5532_v43, 4  ;;  %v10512_v41 = vpop.f32.mrb[250].mxu1 }
0x13d5   : > { %v5555_v27 = vrot.slane %v5554_v12, 4  ;;  %v5577_v8 = vrot.slane %v5576_v2, 4  ;;  %12117 = vst [vmem:[#allocation41_spill] sm:$0xff] %v10512_v41  ;;  %v10514_v61 = vpop.f32.mrb[254].mxu0  ;;  %v5504_v32 = vadd.f32 %v5503_v21, %v5502_v58  ;;  %v5526_v37 = vadd.f32 %v5525_v28, %v5524_v18  ;;  %v10516_v7 = vpop.f32.mrb[251].mxu1 }
0x13d6   : > { %v5548_v20 = vadd.f32 %v5547_v23, %v5546_v55  ;;  %v5570_v22 = vadd.f32 %v5569_v19, %v5568_v25  ;;  %12118 = vst [vmem:[#allocation129_spill] sm:$0xff] %v10516_v7  ;;  %v10518_v47 = vpop.f32.mrb[255].mxu0  ;;  %v5512_v60 = vadd.f32 %v5511_v62, %v5510_v9  ;;  %v5534_v45 = vadd.f32 %v5533_v38, %v5532_v43 }
0x13d7   : > { %12119 = vst [vmem:[#allocation68_spill] sm:$0xff] %v10518_v47  ;;  %v5556_v14 = vadd.f32 %v5555_v27, %v5554_v12  ;;  %v5578_v29 = vadd.f32 %v5577_v8, %v5576_v2  ;;  %v5505_v53 = vrot.slane %v5504_v32, 2  ;;  %v5527_v33 = vrot.slane %v5526_v37, 2 }
0x13d8   : > { %v5549_v39 = vrot.slane %v5548_v20, 2  ;;  %v5571_v26 = vrot.slane %v5570_v22, 2  ;;  %v5513_v46 = vrot.slane %v5512_v60, 2  ;;  %v5535_v41 = vrot.slane %v5534_v45, 2 }
0x13d9   : > { %v5557_v59 = vrot.slane %v5556_v14, 2  ;;  %v5579_v6 = vrot.slane %v5578_v29, 2  ;;  %v5506_v58 = vadd.f32 %v5505_v53, %v5504_v32  ;;  %v5528_v28 = vadd.f32 %v5527_v33, %v5526_v37  ;;  %v12120_v53 = vld [vmem:[#allocation113_spill] sm:$0xff] }
0x13da   : > { %v5550_v23 = vadd.f32 %v5549_v39, %v5548_v20  ;;  %v5572_v19 = vadd.f32 %v5571_v26, %v5570_v22  ;;  %v5514_v18 = vadd.f32 %v5513_v46, %v5512_v60  ;;  %v5536_v55 = vadd.f32 %v5535_v41, %v5534_v45 }
0x13db   : > { %v5558_v25 = vadd.f32 %v5557_v59, %v5556_v14  ;;  %v5580_v21 = vadd.f32 %v5579_v6, %v5578_v29  ;;  %v5507_v9 = vrot.slane %v5506_v58, 1  ;;  %v5529_v43 = vrot.slane %v5528_v28, 1 }
0x13dc   : > { %v5551_v12 = vrot.slane %v5550_v23, 1  ;;  %v5573_v2 = vrot.slane %v5572_v19, 1  ;;  %v5515_v62 = vrot.slane %v5514_v18, 1  ;;  %v5537_v38 = vrot.slane %v5536_v55, 1 }
0x13dd   : > { %v5559_v27 = vrot.slane %v5558_v25, 1  ;;  %v5581_v8 = vrot.slane %v5580_v21, 1  ;;  %v5508_v7 = vadd.f32 %v5507_v9, %v5506_v58  ;;  %v5530_v17 = vadd.f32 %v5529_v43, %v5528_v28  ;;  %v12121_v28 = vld [vmem:[#allocation106_spill] sm:$0xff] }
0x13de   : > { %v5552_v47 = vadd.f32 %v5551_v12, %v5550_v23  ;;  %v5574_v34 = vadd.f32 %v5573_v2, %v5572_v19  ;;  %v5516_v32 = vadd.f32 %v5515_v62, %v5514_v18  ;;  %v5538_v33 = vadd.f32 %v5537_v38, %v5536_v55 }
0x13df   : > { %v5560_v39 = vadd.f32 %v5559_v27, %v5558_v25  ;;  %v5582_v26 = vadd.f32 %v5581_v8, %v5580_v21  ;;  %v5583_v46 = vmax.f32 %v5508_v7, %v5530_v17  ;;  %v5671_v6 = vmul.f32 %v10491_v30, %v10359_v1 }
0x13e0   : > { %v5585_v41 = vmax.f32 %v5552_v47, %v5574_v34  ;;  %v5693_v59 = vmul.f32 %v10491_v30, %v10377_v49  ;;  %v5584_v37 = vmax.f32 %v5516_v32, %v5538_v33  ;;  %v5715_v22 = vmul.f32 %v10491_v30, %v10398_v10 }
0x13e1   : > { %v5586_v20 = vmax.f32 %v5560_v39, %v5582_v26  ;;  %v5737_v60 = vmul.f32 %v10491_v30, %v10409_v5  ;;  %v5672_v14 = vmul.f32 %v10494_v40, %v10362_v24  ;;  %v5694_v29 = vmul.f32 %v10494_v40, %v10380_v44 }
0x13e2   : > { %v5587_v45 = vmax.f32 %v5583_v46, %v5585_v41  ;;  %v5716_v1 = vmul.f32 %v10494_v40, %v10406_v57  ;;  %v10536_v49 = vadd.f32 %v10342_v3, %v12120_v53  ;;  %v5738_v10 = vmul.f32 %v10494_v40, %v10421_v11  ;;  %v12122_v11 = vld [vmem:[#allocation127_spill] sm:$0xff] }
0x13e3   : > { %v5588_v58 = vmax.f32 %v5584_v37, %v5586_v20  ;;  %v5487_v5 = vadd.f32 %v10506_v4, %v12121_v28  ;;  %v10545_v43 = vadd.f32 %v10344_v13, %v12120_v53  ;;  %v10549_v4 = vadd.f32 %v10346_v16, %v12122_v11  ;;  %v12126_v37 = vld [vmem:[#allocation132_spill] sm:$0xff]  ;;  %v12127_v20 = vld [vmem:[#allocation35_spill] sm:$0xff] }
0x13e4   : > { %v5589_v30 = vsub.f32 %v5508_v7, %v5587_v45  ;;  %v5595_v23 = vsub.f32 %v5530_v17, %v5587_v45  ;;  %v5601_v24 = vsub.f32 %v5552_v47, %v5587_v45  ;;  %v5607_v19 = vsub.f32 %v5574_v34, %v5587_v45 }
0x13e5   : > { %v5590_v18 = vsub.f32 %v5516_v32, %v5588_v58  ;;  %v5596_v44 = vsub.f32 %v5538_v33, %v5588_v58  ;;  %v5602_v55 = vsub.f32 %v5560_v39, %v5588_v58  ;;  %v5608_v25 = vsub.f32 %v5582_v26, %v5588_v58 }
0x13e6   : > { %v5591_v57 = vmul.f32 1.442695, %v5589_v30  ;;  %v5597_v21 = vmul.f32 1.442695, %v5595_v23  ;;  %v5603_v9 = vmul.f32 1.442695, %v5601_v24  ;;  %v5673_v3 = vmul.f32 %v5487_v5, %v10365_v54 }
0x13e7   : > { %v5593_v17 = vmul.f32 1.442695, %v5590_v18  ;;  %v5695_v34 = vmul.f32 %v5487_v5, %v10383_v36  ;;  %v5599_v40 = vmul.f32 1.442695, %v5596_v44  ;;  %v5605_v7 = vmul.f32 1.442695, %v5602_v55 }
0x13e8   : > { %6664 = vpow2.f32 %v5591_v57  ;;  %v5677_v47 = vadd.f32 %v5673_v3, %v5671_v6  ;;  %v5717_v2 = vmul.f32 %v5487_v5, %v10418_v50  ;;  %v5739_v54 = vmul.f32 %v5487_v5, %v10440_v0  ;;  %v12123_v36 = vld [vmem:[#allocation107_spill] sm:$0xff]  ;;  %v12132_v44 = vld [vmem:[#allocation130_spill] sm:$0xff] }
0x13e9   : > { %6666 = vpow2.f32 %v5597_v21  ;;  %v5699_v12 = vadd.f32 %v5695_v34, %v5693_v59  ;;  %v5609_v13 = vmul.f32 1.442695, %v5607_v19  ;;  %v5611_v62 = vmul.f32 1.442695, %v5608_v25  ;;  %v12131_v19 = vld [vmem:[#allocation126_spill] sm:$0xff] }
0x13ea   : > { %6668 = vpow2.f32 %v5603_v9  ;;  %v5489_v16 = vadd.f32 %v10510_v31, %v12121_v28  ;;  %v5721_v38 = vadd.f32 %v5717_v2, %v5715_v22  ;;  %v5743_v27 = vadd.f32 %v5739_v54, %v5737_v60  ;;  %v12128_v60 = vld [vmem:[#allocation33_spill] sm:$0xff] }
0x13eb   : > { %6670 = vpow2.f32 %v5593_v17  ;;  %v5491_v8 = vadd.f32 %v10514_v61, %v12123_v36  ;;  %v10566_v61 = vadd.f32 %v10348_v15, %v12122_v11  ;;  %v10576_v22 = vadd.f32 %v12127_v20, %v12126_v37  ;;  %v12130_v28 = vld [vmem:[#allocation117_spill] sm:$0xff] }
0x13ec   : > { %6672 = vpow2.f32 %v5599_v40  ;;  %v5674_v32 = vmul.f32 %v5489_v16, %v10368_v52  ;;  %v5696_v33 = vmul.f32 %v5489_v16, %v10386_v51  ;;  %v5718_v50 = vmul.f32 %v5489_v16, %v10445_v56 }
0x13ed   : > { %6674 = vpow2.f32 %v5605_v7  ;;  %v5740_v0 = vmul.f32 %v5489_v16, %v10454_v35  ;;  %v5675_v39 = vmul.f32 %v5491_v8, %v10371_v63  ;;  %v5697_v31 = vmul.f32 %v5491_v8, %v10389_v42  ;;  %v12124_v35 = vld [vmem:[#allocation76_spill] sm:$0xff] }
0x13ee   : > { %6676 = vpow2.f32 %v5609_v13  ;;  %v5685_v26 = vadd.f32 %v5674_v32, %v5672_v14  ;;  %v5707_v46 = vadd.f32 %v5696_v33, %v5694_v29  ;;  %v5729_v41 = vadd.f32 %v5718_v50, %v5716_v1  ;;  %v12125_v63 = vld [vmem:[#allocation68_spill] sm:$0xff] }
0x13ef   : > { %v10568_v52 = vadd.f32 %v5740_v0, %v5738_v10  ;;  %v5678_v51 = vadd.f32 %v5677_v47, %v5675_v39  ;;  %v5700_v6 = vadd.f32 %v5699_v12, %v5697_v31  ;;  %6678 = vpow2.f32 %v5611_v62 }
0x13f0   : > { %v5719_v56 = vmul.f32 %v5491_v8, %v10451_v48  ;;  %v5741_v59 = vmul.f32 %v5491_v8, %v12124_v35  ;;  %v5493_v42 = vadd.f32 %v12125_v63, %v12123_v36  ;;  %v10580_v15 = vadd.f32 %v12128_v60, %v12126_v37  ;;  %v12129_v48 = vld [vmem:[#allocation42_spill] sm:$0xff] }
0x13f1   : > { %v5679_v45 = vrot.slane %v5678_v51, 4  ;;  %v5701_v14 = vrot.slane %v5700_v6, 4 }
0x13f2   : > { %v10582_v29 = vpop.eup %6664  ;;  %v5722_v1 = vadd.f32 %v5721_v38, %v5719_v56  ;;  %v5744_v58 = vadd.f32 %v5743_v27, %v5741_v59  ;;  %v5676_v10 = vmul.f32 %v5493_v42, %v12129_v48  ;;  %v5698_v5 = vmul.f32 %v5493_v42, %v12130_v28 }
0x13f3   : > { %v10586_v30 = vpop.eup %6666  ;;  %v5680_v23 = vadd.f32 %v5679_v45, %v5678_v51  ;;  %v5702_v24 = vadd.f32 %v5701_v14, %v5700_v6  ;;  %v5720_v18 = vmul.f32 %v5493_v42, %v12131_v19  ;;  %v5742_v55 = vmul.f32 %v5493_v42, %v12132_v44  ;;  %v12133_v19 = vld [vmem:[#allocation111_spill] sm:$0xff] }
0x13f4   : > { %v10590_v25 = vpop.eup %6668  ;;  %v5613_v57 = vadd.f32 %v10586_v30, %v10582_v29  ;;  %v5723_v21 = vrot.slane %v5722_v1, 4  ;;  %v5745_v9 = vrot.slane %v5744_v58, 4  ;;  %v5686_v3 = vadd.f32 %v5685_v26, %v5676_v10 }
0x13f5   : > { %v10594_v17 = vpop.eup %6670  ;;  %v5681_v34 = vrot.slane %v5680_v23, 2  ;;  %v5703_v40 = vrot.slane %v5702_v24, 2  ;;  %v5708_v7 = vadd.f32 %v5707_v46, %v5698_v5  ;;  %v5730_v47 = vadd.f32 %v5729_v41, %v5720_v18  ;;  %v12134_v18 = vld [vmem:[#allocation118_spill] sm:$0xff] }
0x13f6   : > { %v10596_v12 = vpop.eup %6672  ;;  %v5615_v2 = vadd.f32 %v10590_v25, %v5613_v57  ;;  %v5724_v54 = vadd.f32 %v5723_v21, %v5722_v1  ;;  %v5746_v13 = vadd.f32 %v5745_v9, %v5744_v58  ;;  %v5687_v62 = vrot.slane %v5686_v3, 4  ;;  %v12135_v57 = vld [vmem:[#allocation122_spill] sm:$0xff] }
0x13f7   : > { %v10599_v16 = vpop.eup %6674  ;;  %v5614_v38 = vadd.f32 %v10596_v12, %v10594_v17  ;;  %v5682_v27 = vadd.f32 %v5681_v34, %v5680_v23  ;;  %v5704_v36 = vadd.f32 %v5703_v40, %v5702_v24  ;;  %v5709_v8 = vrot.slane %v5708_v7, 4  ;;  %v12136_v34 = vld [vmem:[#allocation115_spill] sm:$0xff]  ;;  %v12137_v40 = vld [vmem:[#allocation125_spill] sm:$0xff] }
0x13f8   : > { %v6677_v32 = vpop.eup %6676  ;;  %v5725_v33 = vrot.slane %v5724_v54, 2  ;;  %v5747_v50 = vrot.slane %v5746_v13, 2  ;;  %v5688_v0 = vadd.f32 %v5687_v62, %v5686_v3  ;;  %v5731_v39 = vrot.slane %v5730_v47, 4 }
0x13f9   : > { %v5616_v31 = vadd.f32 %v10599_v16, %v5614_v38  ;;  %v5617_v26 = vadd.f32 %v6677_v32, %v5615_v2  ;;  %v5683_v46 = vrot.slane %v5682_v27, 1  ;;  %v5705_v41 = vrot.slane %v5704_v36, 1  ;;  %v10604_v51 = vpop.eup %6678 }
0x13fa   : > { %v5726_v6 = vadd.f32 %v5725_v33, %v5724_v54  ;;  %v5748_v56 = vadd.f32 %v5747_v50, %v5746_v13  ;;  %v5689_v35 = vrot.slane %v5688_v0, 2  ;;  %v5710_v59 = vadd.f32 %v5709_v8, %v5708_v7  ;;  %v12139_v54 = vld [vmem:[#allocation120_spill] sm:$0xff]  ;;  %v12141_v8 = vld [vmem:[#allocation131_spill] sm:$0xff]  ;;  %v12142_v50 = vld [vmem:[#allocation74_spill] sm:$0xff] }
0x13fb   : > { %6680 = vrcp.f32 %v5617_v26  ;;  %v5618_v63 = vadd.f32 %v10604_v51, %v5616_v31  ;;  %v5684_v42 = vadd.f32 %v5683_v46, %v5682_v27  ;;  %v5706_v20 = vadd.f32 %v5705_v41, %v5704_v36  ;;  %v12140_v13 = vld [vmem:[#allocation124_spill] sm:$0xff]  ;;  %v12143_v26 = vld [vmem:[#allocation119_spill] sm:$0xff] }
0x13fc   : > { %v5727_v60 = vrot.slane %v5726_v6, 1  ;;  %v5749_v45 = vrot.slane %v5748_v56, 1  ;;  %v5690_v14 = vadd.f32 %v5689_v35, %v5688_v0  ;;  %v5711_v1 = vrot.slane %v5710_v59, 2  ;;  %v12144_v41 = vld [vmem:[#allocation123_spill] sm:$0xff] }
0x13fd   : > { %6682 = vrcp.f32 %v5618_v63  ;;  %v5759_v58 = vmax.f32 %v5684_v42, %v5706_v20  ;;  %v5732_v48 = vadd.f32 %v5731_v39, %v5730_v47  ;;  %v5752_v10 = vadd.f32 %v10568_v52, %v5742_v55  ;;  %v12138_v52 = vld [vmem:[#allocation128_spill] sm:$0xff] }
0x13fe   : > { %v5728_v28 = vadd.f32 %v5727_v60, %v5726_v6  ;;  %v10608_v5 = vadd.f32 %v5749_v45, %v5748_v56  ;;  %v5691_v23 = vrot.slane %v5690_v14, 1  ;;  %v5712_v24 = vadd.f32 %v5711_v1, %v5710_v59  ;;  %v12145_v56 = vld [vmem:[#allocation79_spill] sm:$0xff] }
0x13ff   : > { %v10612_v44 = vadd.f32 %v12134_v18, %v12133_v19  ;;  %v10616_v21 = vadd.f32 %v12135_v57, %v12133_v19  ;;  %v5733_v9 = vrot.slane %v5732_v48, 2  ;;  %v5753_v3 = vrot.slane %v5752_v10, 4 }
0x1400   : > { %v10620_v7 = vadd.f32 %v12137_v40, %v12136_v34  ;;  %v10624_v55 = vadd.f32 %v12138_v52, %v12136_v34  ;;  %v5761_v47 = vmax.f32 %v5728_v28, %v10608_v5  ;;  %v5713_v2 = vrot.slane %v5712_v24, 1 }
0x1401   : > { %v10629_v62 = vadd.f32 %v12140_v13, %v12139_v54  ;;  %v10631_v38 = vadd.f32 %v5691_v23, %v5690_v14  ;;  %v10633_v27 = vadd.f32 %v5733_v9, %v5732_v48  ;;  %v5754_v36 = vadd.f32 %v5753_v3, %v5752_v10  ;;  %v12148_v3 = vld [vmem:[#allocation25_spill] sm:$0xff] }
0x1402   : > { %v10637_v33 = vadd.f32 %v12141_v8, %v12139_v54  ;;  %v10641_v0 = vadd.f32 %v12142_v50, %v12120_v53  ;;  %v5763_v39 = vmax.f32 %v5759_v58, %v5761_v47  ;;  %v10643_v31 = vadd.f32 %v5713_v2, %v5712_v24  ;;  %v12146_v58 = vld [vmem:[#allocation41_spill] sm:$0xff]  ;;  %v12150_v8 = vld [vmem:[#allocation27_spill] sm:$0xff] }
0x1403   : > { %v10647_v46 = vadd.f32 %v12143_v26, %v12120_v53  ;;  %v10651_v6 = vadd.f32 %v12144_v41, %v12122_v11  ;;  %v10655_v35 = vadd.f32 %v12145_v56, %v12122_v11  ;;  %v5755_v59 = vrot.slane %v5754_v36, 2  ;;  %v12147_v53 = vld [vmem:[#allocation129_spill] sm:$0xff] }
0x1404   : > { %v5765_v63 = vsub.f32 %v5684_v42, %v5763_v39  ;;  %v5771_v60 = vsub.f32 %v5706_v20, %v5763_v39  ;;  %v5777_v45 = vsub.f32 %v5728_v28, %v5763_v39  ;;  %v5783_v14 = vsub.f32 %v10608_v5, %v5763_v39  ;;  %v12149_v2 = vld [vmem:[#allocation49_spill] sm:$0xff] }
0x1405   : > { %v6681_v1 = vpop.eup %6680  ;;  %v10660_v48 = vadd.f32 %v12146_v58, %v12126_v37  ;;  %v10664_v10 = vadd.f32 %v12147_v53, %v12126_v37  ;;  %v5735_v23 = vrot.slane %v10633_v27, 1  ;;  %v5756_v9 = vadd.f32 %v5755_v59, %v5754_v36  ;;  %v12152_v53 = vld [vmem:[#allocation69_spill] sm:$0xff] }
0x1406   : > { %v5621_v42 = vmul.f32 %v6681_v1, %v10582_v29  ;;  %v5623_v20 = vmul.f32 %v6681_v1, %v10586_v30  ;;  %v5625_v28 = vmul.f32 %v6681_v1, %v10590_v25  ;;  %v5627_v5 = vmul.f32 %v6681_v1, %v6677_v32 }
0x1407   : > { %v6683_v24 = vpop.eup %6682  ;;  %v5767_v19 = vmul.f32 1.442695, %v5765_v63  ;;  %v5773_v18 = vmul.f32 1.442695, %v5771_v60  ;;  %v5779_v57 = vmul.f32 1.442695, %v5777_v45 }
0x1408   : > { %v5629_v37 = vmul.f32 %v5621_v42, %v12148_v3  ;;  %v5635_v34 = vmul.f32 %v5623_v20, %v10536_v49  ;;  %v5647_v40 = vmul.f32 %v5625_v28, %v10612_v44  ;;  %v5659_v52 = vmul.f32 %v5627_v5, %v10641_v0 }
0x1409   : > { %v5622_v29 = vmul.f32 %v6683_v24, %v10594_v17  ;;  %v5624_v30 = vmul.f32 %v6683_v24, %v10596_v12  ;;  %v5626_v25 = vmul.f32 %v6683_v24, %v10599_v16  ;;  %v5628_v32 = vmul.f32 %v6683_v24, %v10604_v51  ;;  %v12151_v51 = vld [vmem:[#allocation67_spill] sm:$0xff] }
0x140a   : > { %v5641_v47 = vadd.f32 %v5635_v34, %v5629_v37  ;;  %v5631_v54 = vmul.f32 %v5621_v42, %v12149_v2  ;;  %v5637_v13 = vmul.f32 %v5623_v20, %v10549_v4  ;;  %v5649_v36 = vmul.f32 %v5625_v28, %v10620_v7 }
0x140b   : > { %v5630_v50 = vmul.f32 %v5622_v29, %v12150_v8  ;;  %v5636_v39 = vmul.f32 %v5624_v30, %v10545_v43  ;;  %v5648_v26 = vmul.f32 %v5626_v25, %v10616_v21  ;;  %v5660_v17 = vmul.f32 %v5628_v32, %v10647_v46 }
0x140c   : > { %v5653_v12 = vadd.f32 %v5647_v40, %v5641_v47  ;;  %v5643_v41 = vadd.f32 %v5637_v13, %v5631_v54  ;;  %v5661_v16 = vmul.f32 %v5627_v5, %v10651_v6  ;;  %v5632_v56 = vmul.f32 %v5622_v29, %v12151_v51 }
0x140d   : > { %v5642_v59 = vadd.f32 %v5636_v39, %v5630_v50  ;;  %v5638_v63 = vmul.f32 %v5624_v30, %v10566_v61  ;;  %v5650_v60 = vmul.f32 %v5626_v25, %v10624_v55  ;;  %v5662_v45 = vmul.f32 %v5628_v32, %v10655_v35 }
0x140e   : > { %v10692_v1 = vadd.f32 %v5659_v52, %v5653_v12  ;;  %v5655_v58 = vadd.f32 %v5649_v36, %v5643_v41  ;;  %v5633_v24 = vmul.f32 %v5621_v42, %v12152_v53  ;;  %v5639_v37 = vmul.f32 %v5623_v20, %v10576_v22  ;;  %v12153_v36 = vld [vmem:[#allocation75_spill] sm:$0xff] }
0x140f   : > { %v5654_v34 = vadd.f32 %v5648_v26, %v5642_v59  ;;  %v5644_v40 = vadd.f32 %v5638_v63, %v5632_v56  ;;  %v5651_v47 = vmul.f32 %v5625_v28, %v10629_v62  ;;  %v5663_v54 = vmul.f32 %v5627_v5, %v10660_v48 }
0x1410   : > { %v10698_v13 = vadd.f32 %v5661_v16, %v5655_v58  ;;  %v5645_v50 = vadd.f32 %v5639_v37, %v5633_v24  ;;  %6684 = vpow2.f32 %v5767_v19  ;;  %v5785_v39 = vmul.f32 1.442695, %v5783_v14 }
0x1411   : > { %v10700_v11 = vadd.f32 %v5660_v17, %v5654_v34  ;;  %v5656_v52 = vadd.f32 %v5650_v60, %v5644_v40  ;;  %6686 = vpow2.f32 %v5773_v18  ;;  %v5634_v12 = vmul.f32 %v5622_v29, %v12153_v36 }
0x1412   : > { %v5847_v42 = vpack.c.bf16 %v10698_v13, %v10692_v1  ;;  %v5657_v20 = vadd.f32 %v5651_v47, %v5645_v50  ;;  %v5640_v26 = vmul.f32 %v5624_v30, %v10580_v15  ;;  %6688 = vpow2.f32 %v5779_v57 }
0x1413   : > { %v10706_v28 = vadd.f32 %v5662_v45, %v5656_v52  ;;  %v5652_v5 = vmul.f32 %v5626_v25, %v10637_v33  ;;  %v5664_v19 = vmul.f32 %v5628_v32, %v10664_v10  ;;  %v5736_v18 = vadd.f32 %v5735_v23, %v10633_v27 }
0x1414   : > { %v10710_v14 = vadd.f32 %v5663_v54, %v5657_v20  ;;  %v5646_v17 = vadd.f32 %v5640_v26, %v5634_v12  ;;  %v5757_v41 = vrot.slane %v5756_v9, 1  ;;  %6690 = vpow2.f32 %v5785_v39 }
0x1415   : > { %v5848_v29 = vpack.c.bf16 %v10706_v28, %v10700_v11  ;;  %v12154_v25 = vmax.f32 %v10631_v38, %v10643_v31  ;;  %v12157_v28 = vld [vmem:[#allocation82_spill] sm:$0xff] }
0x1416   : > { %v5658_v16 = vadd.f32 %v5652_v5, %v5646_v17  ;;  %v5758_v56 = vadd.f32 %v5757_v41, %v5756_v9 }
0x1418   : > { %v10715_v30 = vadd.f32 %v5664_v19, %v5658_v16  ;;  %v5762_v59 = vmax.f32 %v5736_v18, %v5758_v56 }
0x141a   : > { %v6685_v57 = vpop.eup %6684  ;;  %v5764_v32 = vmax.f32 %v12154_v25, %v5762_v59 }
0x141b   : > { %v6687_v63 = vpop.eup %6686 }
0x141c   : > { %v5789_v60 = vadd.f32 %v6687_v63, %v6685_v57  ;;  %v5766_v45 = vsub.f32 %v10631_v38, %v5764_v32  ;;  %v5772_v27 = vsub.f32 %v10643_v31, %v5764_v32  ;;  %v5778_v23 = vsub.f32 %v5736_v18, %v5764_v32  ;;  %v6689_v58 = vpop.eup %6688 }
0x141d   : > { %v5784_v24 = vsub.f32 %v5758_v56, %v5764_v32 }
0x141e   : > { %v5791_v37 = vadd.f32 %v6689_v58, %v5789_v60  ;;  %v5769_v34 = vmul.f32 1.442695, %v5766_v45  ;;  %v5775_v9 = vmul.f32 1.442695, %v5772_v27  ;;  %v6691_v40 = vpop.eup %6690  ;;  %v5781_v47 = vmul.f32 1.442695, %v5778_v23 }
0x141f   : > { %v5787_v50 = vmul.f32 1.442695, %v5784_v24 }
0x1420   : > { %v5793_v54 = vadd.f32 %v6691_v40, %v5791_v37  ;;  %6692 = vpow2.f32 %v5769_v34 }
0x1421   : > { %6694 = vpow2.f32 %v5775_v9 }
0x1422   : > { %6696 = vrcp.f32 %v5793_v54 }
0x1423   : > { %6698 = vpow2.f32 %v5781_v47 }
0x1424   : > { %6700 = vpow2.f32 %v5787_v50 }
0x142a   : > { %v6693_v39 = vpop.eup %6692 }
0x142b   : > { %v6695_v52 = vpop.eup %6694 }
0x142c   : > { %v6697_v38 = vpop.eup %6696  ;;  %v5790_v12 = vadd.f32 %v6695_v52, %v6693_v39 }
0x142d   : > { %v6699_v31 = vpop.eup %6698  ;;  %v5797_v20 = vmul.f32 %v6697_v38, %v6685_v57  ;;  %v5799_v26 = vmul.f32 %v6697_v38, %v6687_v63  ;;  %v5801_v5 = vmul.f32 %v6697_v38, %v6689_v58  ;;  %v5803_v19 = vmul.f32 %v6697_v38, %v6691_v40 }
0x142e   : > { %v5792_v17 = vadd.f32 %v6699_v31, %v5790_v12  ;;  %v6701_v18 = vpop.eup %6700 }
0x142f   : > { %v5805_v41 = vmul.f32 %v5797_v20, %v12148_v3  ;;  %v5807_v16 = vmul.f32 %v5797_v20, %v12149_v2  ;;  %v5811_v56 = vmul.f32 %v5799_v26, %v10536_v49  ;;  %v5813_v59 = vmul.f32 %v5799_v26, %v10549_v4 }
0x1430   : > { %v5794_v25 = vadd.f32 %v6701_v18, %v5792_v17  ;;  %v5823_v32 = vmul.f32 %v5801_v5, %v10612_v44  ;;  %v5825_v60 = vmul.f32 %v5801_v5, %v10620_v7  ;;  %v5835_v57 = vmul.f32 %v5803_v19, %v10641_v0 }
0x1431   : > { %v5817_v63 = vadd.f32 %v5811_v56, %v5805_v41  ;;  %v5819_v45 = vadd.f32 %v5813_v59, %v5807_v16  ;;  %v5837_v27 = vmul.f32 %v5803_v19, %v10651_v6  ;;  %v5809_v23 = vmul.f32 %v5797_v20, %v12152_v53  ;;  %v12160_v56 = vld [vmem:[#allocation85_spill] sm:$0xff] }
0x1432   : > { %6702 = vrcp.f32 %v5794_v25  ;;  %v5815_v3 = vmul.f32 %v5799_v26, %v10576_v22  ;;  %v5827_v49 = vmul.f32 %v5801_v5, %v10629_v62  ;;  %v5839_v4 = vmul.f32 %v5803_v19, %v10660_v48 }
0x1433   : > { %v5829_v2 = vadd.f32 %v5823_v32, %v5817_v63  ;;  %v5831_v58 = vadd.f32 %v5825_v60, %v5819_v45  ;;  %v12156_v41 = vmov 0   ;;  %v12161_v63 = vld [vmem:[#allocation86_spill] sm:$0xff] }
0x1434   : > { %v5821_v44 = vadd.f32 %v5815_v3, %v5809_v23 }
0x1435   : > { %v5841_v24 = vadd.f32 %v5835_v57, %v5829_v2  ;;  %v5843_v7 = vadd.f32 %v5837_v27, %v5831_v58 }
0x1436   : > { %v5833_v37 = vadd.f32 %v5827_v49, %v5821_v44 }
0x1437   : > { %v5851_v0 = vpack.c.bf16 %v5843_v7, %v5841_v24 }
0x1438   : > { %v5845_v34 = vadd.f32 %v5839_v4, %v5833_v37 }
0x143c   : > { %v6703_v9 = vpop.eup %6702 }
0x143d   : > { %v5798_v40 = vmul.f32 %v6703_v9, %v6693_v39  ;;  %v5800_v6 = vmul.f32 %v6703_v9, %v6695_v52  ;;  %v5802_v47 = vmul.f32 %v6703_v9, %v6699_v31  ;;  %v5804_v53 = vmul.f32 %v6703_v9, %v6701_v18 }
0x143e   : > { %v5853_v18 = vpack.c.bf16 %v5845_v34, %v5845_v34 }
0x143f   : > { %v5806_v54 = vmul.f32 %v5798_v40, %v12150_v8  ;;  %v5808_v22 = vmul.f32 %v5798_v40, %v12151_v51  ;;  %v5812_v62 = vmul.f32 %v5800_v6, %v10545_v43  ;;  %v5814_v48 = vmul.f32 %v5800_v6, %v10566_v61 }
0x1440   : > { %v5824_v50 = vmul.f32 %v5802_v47, %v10616_v21  ;;  %v5826_v38 = vmul.f32 %v5802_v47, %v10624_v55  ;;  %v5836_v12 = vmul.f32 %v5804_v53, %v10647_v46  ;;  %v5838_v20 = vmul.f32 %v5804_v53, %v10655_v35 }
0x1441   : > { %v5818_v39 = vadd.f32 %v5812_v62, %v5806_v54  ;;  %v5820_v52 = vadd.f32 %v5814_v48, %v5808_v22  ;;  %v5810_v31 = vmul.f32 %v5798_v40, %v12153_v36  ;;  %v5816_v8 = vmul.f32 %v5800_v6, %v10580_v15  ;;  %v12155_v36 = vld [vmem:[#allocation81_spill] sm:$0xff] }
0x1442   : > { %v5828_v51 = vmul.f32 %v5802_v47, %v10637_v33  ;;  %v5840_v43 = vmul.f32 %v5804_v53, %v10664_v10  ;;  %v5856_v15 = vsel %vm582_vm1, %v5853_v18, 0  ;;  %v5849_v33 = vpack.c.bf16 %v10710_v14, %v10710_v14  ;;  %v12158_v14 = vld [vmem:[#allocation83_spill] sm:$0xff] }
0x1443   : > { %v5830_v26 = vadd.f32 %v5824_v50, %v5818_v39  ;;  %v5832_v61 = vadd.f32 %v5826_v38, %v5820_v52  ;;  %v5822_v5 = vadd.f32 %v5816_v8, %v5810_v31  ;;  %v5850_v10 = vpack.c.bf16 %v10715_v30, %v10715_v30  ;;  %v12162_v50 = vld [vmem:[#allocation87_spill] sm:$0xff] }
0x1444   : > { %v5913_v11 = vsel %vm582_vm1, %v5849_v33, 0 }
0x1445   : > { %v5842_v21 = vadd.f32 %v5836_v12, %v5830_v26  ;;  %v5844_v19 = vadd.f32 %v5838_v20, %v5832_v61  ;;  %v5834_v55 = vadd.f32 %v5828_v51, %v5822_v5 }
0x1447   : > { %v5852_v17 = vpack.c.bf16 %v5844_v19, %v5842_v21  ;;  %v5846_v46 = vadd.f32 %v5840_v43, %v5834_v55 }
0x1449   : > { %5861 = vmatprep.subr.bf16.mxu1 %v5852_v17  ;;  %v5854_v35 = vpack.c.bf16 %v5846_v46, %v5846_v46 }
0x144a   : > { %5862 = vmatpush1.bf16.msra.mxu1 %v5851_v0 }
0x144b   : > { %6388 = vmatprep.subr.msk.bf16.mxu1 %vm582_vm1, %v5854_v35 }
0x144e   : > { %5864 = vmatpush1.bf16.msra.mxu1 %v5856_v15 }
0x144f   : > { %5918 = vmatprep.subr.bf16.mxu1 %v5848_v29  ;;  %v12159_v29 = vld [vmem:[#allocation84_spill] sm:$0xff] }
0x1451   : > { %6389 = vmatmul.mubr.msk.bf16.vlgmr.msra.gmra.mrb[252].mxu1 %vm572_vm2, %v12155_v36 }
0x1452   : > { %5919 = vmatpush1.bf16.msra.mxu1 %v5847_v42  ;;  %5903 = vmatprep.mubr.bf16.mxu1 %v12156_v41 }
0x1453   : > { %6391 = vmatprep.subr.msk.bf16.mxu1 %vm582_vm1, %v5850_v10 }
0x1456   : > { %5921 = vmatpush1.bf16.msra.mxu1 %v5913_v11 }
0x1459   : > { %6390 = vmatmul.mubr.msk.bf16.gmra.mrb[0].mxu1 %vm572_vm2, %v12157_v28 }
0x145a   : > { %5950 = vmatprep.mubr.bf16.mxu1 %v12156_v41 }
0x1461   : > { %6392 = vmatmul.mubr.msk.bf16.vlgmr.msra.gmra.mrb[252].mxu1 %vm572_vm2, %v12158_v14 }
0x1462   : > { %5960 = vmatprep.mubr.bf16.mxu1 %v12156_v41 }
0x1469   : > { %6393 = vmatmul.mubr.msk.bf16.gmra.mrb[4].mxu1 %vm572_vm2, %v12159_v29 }
0x152c   : > { %v5905_v1 = vpop.f32.mrb[0].mxu1 }
0x152d   : > { %v5907_v13 = vpop.f32.mrb[1].mxu1 }
0x152e   : > { %v5909_v42 = vpop.f32.mrb[2].mxu1 }
0x152f   : > { %v5910_v30 = vpop.f32.mrb[3].mxu1 }
0x1534   : > { %v5952_v16 = vpop.f32.mrb[252].mxu1 }
0x1535   : > { %v5969_v59 = vadd.f32 %v5952_v16, %v12160_v56  ;;  %v5954_v25 = vpop.f32.mrb[253].mxu1 }
0x1536   : > { %v5970_v32 = vadd.f32 %v5954_v25, %v12160_v56  ;;  %v5956_v60 = vpop.f32.mrb[254].mxu1 }
0x1537   : > { %v5981_v57 = vmul.f32 0.044715, %v5969_v59  ;;  %v5971_v45 = vadd.f32 %v5956_v60, %v12161_v63  ;;  %v5958_v27 = vpop.f32.mrb[255].mxu1  ;;  %v5975_v11 = vmul.f32 0.5, %v5969_v59 }
0x1538   : > { %v5982_v23 = vmul.f32 0.044715, %v5970_v32  ;;  %v5972_v3 = vadd.f32 %v5958_v27, %v12161_v63  ;;  %v5976_v29 = vmul.f32 0.5, %v5970_v32 }
0x1539   : > { %v5987_v49 = vmul.f32 %v5981_v57, %v5969_v59  ;;  %v5983_v4 = vmul.f32 0.044715, %v5971_v45  ;;  %v5977_v28 = vmul.f32 0.5, %v5971_v45 }
0x153a   : > { %v5988_v2 = vmul.f32 %v5982_v23, %v5970_v32  ;;  %v5984_v58 = vmul.f32 0.044715, %v5972_v3 }
0x153b   : > { %v5993_v44 = vmul.f32 %v5987_v49, %v5969_v59  ;;  %v5989_v24 = vmul.f32 %v5983_v4, %v5971_v45 }
0x153c   : > { %v5994_v7 = vmul.f32 %v5988_v2, %v5970_v32  ;;  %v5990_v37 = vmul.f32 %v5984_v58, %v5972_v3  ;;  %v5962_v0 = vpop.f32.mrb[4].mxu1  ;;  %v12163_v58 = vld [vmem:[#allocation88_spill] sm:$0xff] }
0x153d   : > { %v5999_v34 = vadd.f32 %v5993_v44, %v5969_v59  ;;  %v5995_v9 = vmul.f32 %v5989_v24, %v5971_v45  ;;  %v5963_v40 = vadd.f32 %v5962_v0, %v5905_v1  ;;  %v5964_v6 = vpop.f32.mrb[5].mxu1  ;;  %v5978_v1 = vmul.f32 0.5, %v5972_v3  ;;  %v12164_v44 = vld [vmem:[#allocation89_spill] sm:$0xff]  ;;  %v12165_v24 = vld [vmem:[#allocation90_spill] sm:$0xff] }
0x153e   : > { %v5996_v47 = vmul.f32 %v5990_v37, %v5972_v3  ;;  %v5965_v53 = vadd.f32 %v5964_v6, %v5907_v13  ;;  %v6000_v54 = vadd.f32 %v5994_v7, %v5970_v32  ;;  %v5966_v22 = vpop.f32.mrb[6].mxu1  ;;  %v12166_v37 = vld [vmem:[#allocation91_spill] sm:$0xff] }
0x153f   : > { %v6005_v62 = vmul.f32 0.7978846, %v5999_v34  ;;  %v6001_v48 = vadd.f32 %v5995_v9, %v5971_v45  ;;  %v5973_v38 = vadd.f32 %v5963_v40, %v12162_v50  ;;  %v5967_v12 = vpop.f32.mrb[7].mxu1  ;;  %v12168_v22 = vld [vmem:[#allocation93_spill] sm:$0xff] }
0x1540   : > { %v5974_v20 = vadd.f32 %v5965_v53, %v12162_v50  ;;  %v6002_v39 = vadd.f32 %v5996_v47, %v5972_v3  ;;  %v6006_v52 = vmul.f32 0.7978846, %v6000_v54  ;;  %v12169_v12 = vld [vmem:[#allocation94_spill] sm:$0xff] }
0x1541   : > { %6704 = vtanh.f32 %v6005_v62  ;;  %v6007_v31 = vmul.f32 0.7978846, %v6001_v48  ;;  %v5985_v8 = vmul.f32 0.044715, %v5973_v38  ;;  %v5979_v27 = vmul.f32 0.5, %v5973_v38 }
0x1542   : > { %v5986_v51 = vmul.f32 0.044715, %v5974_v20  ;;  %v6008_v43 = vmul.f32 0.7978846, %v6002_v39  ;;  %6706 = vtanh.f32 %v6006_v52  ;;  %v5980_v59 = vmul.f32 0.5, %v5974_v20 }
0x1543   : > { %6708 = vtanh.f32 %v6007_v31  ;;  %v5991_v26 = vmul.f32 %v5985_v8, %v5973_v38  ;;  %v12170_v8 = vld [vmem:[#allocation95_spill] sm:$0xff] }
0x1544   : > { %v5992_v61 = vmul.f32 %v5986_v51, %v5974_v20  ;;  %6710 = vtanh.f32 %v6008_v43 }
0x1545   : > { %v5997_v5 = vmul.f32 %v5991_v26, %v5973_v38 }
0x1546   : > { %v5998_v21 = vmul.f32 %v5992_v61, %v5974_v20 }
0x1547   : > { %v6003_v19 = vadd.f32 %v5997_v5, %v5973_v38  ;;  %v12171_v5 = vld [vmem:[#allocation96_spill] sm:$0xff] }
0x1548   : > { %v6004_v55 = vadd.f32 %v5998_v21, %v5974_v20 }
0x1549   : > { %v6009_v17 = vmul.f32 0.7978846, %v6003_v19 }
0x154a   : > { %v6010_v46 = vmul.f32 0.7978846, %v6004_v55 }
0x154b   : > { %v6705_v35 = vpop.eup %6704  ;;  %6712 = vtanh.f32 %v6009_v17 }
0x154c   : > { %v6707_v18 = vpop.eup %6706  ;;  %v6017_v15 = vadd.f32 1.0, %v6705_v35  ;;  %6714 = vtanh.f32 %v6010_v46 }
0x154d   : > { %v6709_v33 = vpop.eup %6708  ;;  %v6018_v10 = vadd.f32 1.0, %v6707_v18 }
0x154e   : > { %v6711_v36 = vpop.eup %6710  ;;  %v6019_v14 = vadd.f32 1.0, %v6709_v33  ;;  %v6023_v42 = vmul.f32 %v6017_v15, %v5975_v11 }
0x154f   : > { %v6020_v13 = vadd.f32 1.0, %v6711_v36  ;;  %v6024_v16 = vmul.f32 %v6018_v10, %v5976_v29 }
0x1550   : > { %v6025_v30 = vmul.f32 %v6019_v14, %v5977_v28 }
0x1551   : > { %v6026_v56 = vmul.f32 %v6020_v13, %v5978_v1 }
0x1552   : > { %v6029_v25 = vpack.c.bf16 %v6025_v30, %v6023_v42 }
0x1553   : > { %v6030_v60 = vpack.c.bf16 %v6026_v56, %v6024_v16 }
0x1555   : > { %v6713_v57 = vpop.eup %6712  ;;  %6039 = vmatprep.subr.bf16.mxu0 %v6030_v60 }
0x1556   : > { %v6715_v63 = vpop.eup %6714  ;;  %6040 = vmatpush1.bf16.msra.mxu0 %v6029_v25  ;;  %v6021_v23 = vadd.f32 1.0, %v6713_v57 }
0x1557   : > { %v6022_v45 = vadd.f32 1.0, %v6715_v63 }
0x1558   : > { %v6027_v49 = vmul.f32 %v6021_v23, %v5979_v27 }
0x1559   : > { %v6028_v32 = vmul.f32 %v6022_v45, %v5980_v59 }
0x155a   : > { %v6031_v3 = vpack.c.bf16 %v6027_v49, %v6027_v49 }
0x155b   : > { %v6032_v4 = vpack.c.bf16 %v6028_v32, %v6028_v32 }
0x155c   : > { %v6034_v2 = vsel %vm582_vm1, %v6031_v3, 0 }
0x155d   : > { %6394 = vmatprep.subr.msk.bf16.mxu0 %vm582_vm1, %v6032_v4 }
0x155e   : > { %6042 = vmatpush1.bf16.msra.mxu0 %v6034_v2 }
0x1561   : > { %6395 = vmatmul.mubr.msk.bf16.vlgmr.msra.gmra.mrb[0].mxu0 %vm572_vm2, %v12163_v58 }
0x1562   : > { %6081 = vmatprep.mubr.bf16.mxu0 %v12156_v41 }
0x1569   : > { %6396 = vmatmul.mubr.msk.bf16.gmra.mrb[4].mxu0 %vm572_vm2, %v12164_v44 }
0x156a   : > { %6091 = vmatprep.mubr.bf16.mxu0 %v12156_v41  ;;  %v12167_v41 = vld [vmem:[#allocation92_spill] sm:$0xff] }
0x1571   : > { %6397 = vmatmul.mubr.msk.bf16.gmra.mrb[8].mxu0 %vm572_vm2, %v12165_v24 }
0x1634   : > { %v6073_v7 = vpop.f32.mrb[0].mxu0 }
0x1635   : > { %v6074_v0 = vadd.f32 %v6073_v7, %v12166_v37  ;;  %v6075_v34 = vpop.f32.mrb[1].mxu0 }
0x1636   : > { %v6076_v9 = vadd.f32 %v6075_v34, %v12166_v37  ;;  %v6077_v40 = vpop.f32.mrb[2].mxu0 }
0x1637   : > { %6102 = vst [vmem:[%s10792_s29] sm:$0xff] %v6074_v0  ;;  %v6078_v6 = vadd.f32 %v6077_v40, %v12167_v41  ;;  %v6079_v47 = vpop.f32.mrb[3].mxu0 }
0x1638   : > { %6103 = vst [vmem:[%s10792_s29 + $0x8] sm:$0xff] %v6076_v9  ;;  %v6080_v53 = vadd.f32 %v6079_v47, %v12167_v41 }
0x1639   : > { %6104 = vst [vmem:[%s10792_s29 + $0x10] sm:$0xff] %v6078_v6 }
0x163a   : > { %6105 = vst [vmem:[%s10792_s29 + $0x18] sm:$0xff] %v6080_v53 }
0x163c   : > { %v6083_v54 = vpop.f32.mrb[4].mxu0 }
0x163d   : > { %v6084_v62 = vadd.f32 %v6083_v54, %v12168_v22  ;;  %v6085_v48 = vpop.f32.mrb[5].mxu0 }
0x163e   : > { %v6086_v50 = vadd.f32 %v6085_v48, %v12168_v22  ;;  %v6087_v38 = vpop.f32.mrb[6].mxu0 }
0x163f   : > { %6106 = vst [vmem:[%s10792_s29 + $0x20] sm:$0xff] %v6084_v62  ;;  %v6088_v20 = vadd.f32 %v6087_v38, %v12169_v12  ;;  %v6089_v39 = vpop.f32.mrb[7].mxu0 }
0x1640   : > { %6107 = vst [vmem:[%s10792_s29 + $0x28] sm:$0xff] %v6086_v50  ;;  %v6090_v52 = vadd.f32 %v6089_v39, %v12169_v12 }
0x1641   : > { %6108 = vst [vmem:[%s10792_s29 + $0x30] sm:$0xff] %v6088_v20 }
0x1642   : > { %6109 = vst [vmem:[%s10792_s29 + $0x38] sm:$0xff] %v6090_v52 }
0x1644   : > { %v6093_v31 = vpop.f32.mrb[8].mxu0 }
0x1645   : > { %v6094_v51 = vadd.f32 %v6093_v31, %v12170_v8  ;;  %v6095_v43 = vpop.f32.mrb[9].mxu0 }
0x1646   : > { %v6096_v26 = vadd.f32 %v6095_v43, %v12170_v8  ;;  %v6097_v61 = vpop.f32.mrb[10].mxu0 }
0x1647   : > { %6110 = vst [vmem:[%s10792_s29 + $0x40] sm:$0xff] %v6094_v51  ;;  %v6098_v21 = vadd.f32 %v6097_v61, %v12171_v5  ;;  %v6099_v19 = vpop.f32.mrb[11].mxu0 }
0x1648   : > { %6111 = vst [vmem:[%s10792_s29 + $0x48] sm:$0xff] %v6096_v26  ;;  %v6100_v55 = vadd.f32 %v6099_v19, %v12171_v5 }
0x1649   : > { %6112 = vst [vmem:[%s10792_s29 + $0x50] sm:$0xff] %v6098_v21 }
0x164a   : > { %6113 = vst [vmem:[%s10792_s29 + $0x58] sm:$0xff] %v6100_v55 }
0x164b   : > { %6729 = shalt.err (!%p6726_p5)
}
0x164c   : > { %s6730_s16 = scalar_lea.hbm %s10821_s9, 1536  ;;  %s6734_s25 = scalar_lea.hbm %s10878_s5, 3072 }
0x164d   : > { %p6731_p6 = scmp.ne.s32.totalorder %s10821_s9, %s6730_s16  ;;  %p6735_p10 = scmp.lt.u32.totalorder %s10821_s9, %s10878_s5 }
0x164e   : > { %p6736_p11 = scmp.lt.u32.totalorder %s6734_s25, %s6730_s16  ;;  %p6738_p13 = scmp.lt.u32.totalorder %s6730_s16, %s10821_s9 }
0x164f   : > { %p6732_p7 = pnand %p6731_p6, %p6870_p4 }
0x1650   : > { %p6737_p12 = por %p6736_p11, %p6735_p10 }
0x1651   : > { %p6733_p9 = pneg %p6732_p7 }
0x1652   : > { %p6739_p0 = por %p6738_p13, %p6737_p12 }
0x1654   : > { %p6740_p1 = pnand %p6739_p0, %p6733_p9 }
0x1656   : > { %6743 = shalt.err (!%p6740_p1)
}
0x1657   : > { %s6798_s11 = smov 256   ;;  %s6799_s21 = smov 16  }
0x1658   : > { %6436 = dma.vmem_to_hbm [thread:$0]  (%p6870_p4), %s10814_s7, 1536, %s10821_s9, %s10827_s10, %s6798_s11, %s6798_s11, %s6799_s21  }
0x1659 PF: > { %p6442_p2 = scmp.ge.s32.totalorder %s6794_s23, 2  ;;  %s6145_s8 = sand.u32 1, %s6774_s18  }
0x165a   : > { %s6146_s12 = scalar_lea.sflag [#allocation3], %s6145_s8 }
0x165b   : > { %p6439_p3 = pnand %p6442_p2, %p6877_p8 }
0x165d   : > { %6769 = dma.done.wait (!%p6439_p3), %s6146_s12, 1536  }
0x165e   : > { %6771 = vsyncadd (!%p6439_p3), %s6146_s12, 4294965760  ;;  %s18_s23 = sadd.s32 1, %s6794_s23   ;;  %s12172_s18 = smov %s6778_s19 }
0x165f   : > { %p15_p5 = scmp.ge.s32.totalorder %s18_s23, 4   ;;  %s12173_s19 = smov %s6782_s20 }
0x1660   : > { %s12174_s20 = smov %s6883_s6  ;;  %s12175_s21 = smov %s6790_s22 }
0x1661   : > { %s12176_s22 = smov %s12178_s26  ;;  %17 = sbr.rel (!%p15_p5) target bundleno = 4 (0x4), region = 78 }
0x1668   :  { %6151 = vsyncpa [#allocation3], 1 }
0x1669   :  { %6153 = vsyncpa [#allocation3 + $0x1], 1 }

</bundles_post_ra>
